<compile_context>
chip_gen: v5e
topology: v5e:2x2
jax: 0.10.0
libtpu: 0.0.40
codegen_flags: <defaults>
</compile_context>

<pallas_src>
import math
import functools

import jax
import jax.numpy as jnp
from jax import lax
from jax.experimental import pallas as pl

# ------------------------- model config -------------------------
DIM = 32
NUM_LAYERS = 4
NUM_HEADS = 4
NUM_TIMESTEPS = 128
MAX_DEGREE = 4
OUT_CHANNELS = 2


# ------------------------- in-kernel math helpers -------------------------
def _sigmoid(x):
    # divide-free sigmoid via tanh (EUP slot, keeps VALU free)
    return 0.5 * (jnp.tanh(0.5 * x) + 1.0)


def _silu(x):
    return x * _sigmoid(x)


def _softplus(x):
    # numerically stable softplus using only exp/log/abs/max (Mosaic-friendly)
    return jnp.maximum(x, 0.0) + jnp.log(1.0 + jnp.exp(-jnp.abs(x)))


def _mish(x):
    return x * jnp.tanh(_softplus(x))


def _mm(a, b):
    return jnp.dot(a, b, preferred_element_type=jnp.float32)


def _mm_t(a, b):  # a @ b.T without materializing a transpose
    return lax.dot_general(a, b, (((1,), (1,)), ((), ())),
                           preferred_element_type=jnp.float32)


# ------------------------- fully fused forward kernel -------------------------
def _tgnn_fused_kernel(
        # stacked per-layer weights [L, ...]
        time_w_ref, time_b_ref, qkvs_wn_ref, qkvs_wt_ref, qkvs_b_ref,
        # layer-invariant data
        x0_ref, sin_ref, bias_ref, has_in_ref, amean_ref, expand_ref,
        src_sel_ref, dst_sel_ref,
        # shared weights
        emb_w_ref, emb_b_ref,
        mlp_w1_ref, mlp_b1_ref, mlp_w2_ref, mlp_b2_ref,
        gmlp_w1_ref, gmlp_b1_ref, gmlp_w2_ref, gmlp_b2_ref,
        cmlp_w1n_ref, cmlp_w1c_ref, cmlp_b1_ref, cmlp_w2_ref, cmlp_b2_ref,
        gru_wih_ref, gru_whh_ref, gru_bih_ref, gru_bhh_ref,
        fin_w1s_ref, fin_w1d_ref, fin_b1_ref, fin_w2_ref, fin_b2_ref,
        # outputs
        logits_ref, nodes_out_ref,
        *, dim, n_heads, n_layers, scale):
    f32 = jnp.float32

    # ---------- prologue: degree embedding, time MLP (Mish hoisted), initial contexts
    nodes = _mm(x0_ref[...], emb_w_ref[...]) + emb_b_ref[...]        # embedding_t
    h = nodes                                                        # GRU hidden init
    t_h = _silu(_mm(sin_ref[...], mlp_w1_ref[...]) + mlp_b1_ref[...])
    t = _mm(t_h, mlp_w2_ref[...]) + mlp_b2_ref[...]                  # self.mlp
    mish_t = _mish(t)                                                # layer-invariant Mish
    g = _mm(amean_ref[...], nodes)                                   # scatter mean
    g = _silu(_mm(g, gmlp_w1_ref[...]) + gmlp_b1_ref[...])
    g = _mm(g, gmlp_w2_ref[...]) + gmlp_b2_ref[...]                  # global_mlp
    contexts = _mm(expand_ref[...], g)                               # repeat_interleave

    bias = bias_ref[...]                                             # additive mask [N, N]
    head_scale = has_in_ref[...] * f32(1.0 / n_heads)                # [N, 1]; zeros isolated rows
    HD = n_heads * dim

    # ---------- statically unrolled layer stack
    for l in range(n_layers):
        # TimeEmb (Mish hoisted): Linear per layer
        t_emb = _mm(mish_t, time_w_ref[l]) + time_b_ref[l]

        # fused Q|K|V|skip projection of x_cat = [nodes, t_emb]  (lane-dense, 416 wide)
        qkvs = (_mm(nodes, qkvs_wn_ref[l]) + _mm(t_emb, qkvs_wt_ref[l])
                + qkvs_b_ref[l])                                     # [N, 3*H*D + D]

        # PyG TransformerConv (concat=False, root_weight=True) as masked MHA,
        # accumulated head-by-head on the [N, H*D] layout (no [H, N, D] temps).
        acc = jnp.zeros_like(nodes)
        for hh in range(n_heads):
            qh = qkvs[:, hh * dim:(hh + 1) * dim]
            kh = qkvs[:, HD + hh * dim:HD + (hh + 1) * dim]
            vh = qkvs[:, 2 * HD + hh * dim:2 * HD + (hh + 1) * dim]
            s = _mm_t(qh, kh) * f32(scale) + bias                    # [N, N]
            smax = jnp.max(s, axis=-1, keepdims=True)
            e = jnp.exp(s - smax)                                    # masked entries underflow to 0
            inv_den = pl.reciprocal(jnp.sum(e, axis=-1, keepdims=True), approx=True)
            acc = acc + _mm(e, vh) * inv_den
        skip = qkvs[:, 3 * HD:3 * HD + dim]
        # concat=False -> mean over heads (+ zero isolated rows), + lin_skip; norm=Identity; SiLU
        nodes = _silu(acc * head_scale + skip)

        # ---------- GRU cell (seq_len = 1): gate order r, z, n; r|z fused 64-wide
        gi = _mm(nodes, gru_wih_ref[...]) + gru_bih_ref[...]
        gh = _mm(h, gru_whh_ref[...]) + gru_bhh_ref[...]
        rz = _sigmoid(gi[:, 0:2 * dim] + gh[:, 0:2 * dim])
        r = rz[:, 0:dim]
        z = rz[:, dim:2 * dim]
        n = jnp.tanh(gi[:, 2 * dim:3 * dim] + r * gh[:, 2 * dim:3 * dim])
        h = (1.0 - z) * n + z * h
        nodes = h

        # ---------- context update (context_mlp -> scatter mean -> global_mlp -> expand -> residual)
        nc_h = _silu(_mm(nodes, cmlp_w1n_ref[...]) + _mm(contexts, cmlp_w1c_ref[...])
                     + cmlp_b1_ref[...])
        nc = _mm(nc_h, cmlp_w2_ref[...]) + cmlp_b2_ref[...]
        g = _mm(amean_ref[...], contexts + nc)
        g = _silu(_mm(g, gmlp_w1_ref[...]) + gmlp_b1_ref[...])
        g = _mm(g, gmlp_w2_ref[...]) + gmlp_b2_ref[...]
        contexts = _mm(expand_ref[...], g)
        nodes = nodes + contexts

    # ---------- outputs: final node states + fused EdgeRegressionHead epilogue
    nodes_out_ref[...] = nodes
    # gather-via-selector done AFTER projecting nodes (cheaper: N*D*D + E*N*D flops)
    proj_s = _mm(nodes, fin_w1s_ref[...])
    proj_d = _mm(nodes, fin_w1d_ref[...])
    hcat = _silu(_mm(src_sel_ref[...], proj_s) + _mm(dst_sel_ref[...], proj_d)
                 + fin_b1_ref[...])
    logits_ref[...] = _mm(hcat, fin_w2_ref[...]) + fin_b2_ref[...]


# ------------------------- glue helpers -------------------------
def sinusoidal_pos_emb(t, dim, num_steps, rescale_steps=4000.0):
    # assumed SinusoidalPosEmb: rescale timestep then standard sin/cos embedding
    x = t.astype(jnp.float32) / float(num_steps) * float(rescale_steps)
    half = dim // 2
    freqs = jnp.exp(jnp.arange(half, dtype=jnp.float32)
                    * -(math.log(10000.0) / (half - 1)))
    arg = x[:, None] * freqs[None, :]
    return jnp.concatenate([jnp.sin(arg), jnp.cos(arg)], axis=-1)


def init_params(key, dim, heads, out_channels):
    cnt = [0]

    def nk():
        cnt[0] += 1
        return jax.random.fold_in(key, cnt[0])

    def dense(fan_in, fan_out):
        lim = 1.0 / math.sqrt(fan_in)
        w = jax.random.uniform(nk(), (fan_in, fan_out), jnp.float32, -lim, lim)
        b = jax.random.uniform(nk(), (fan_out,), jnp.float32, -lim, lim)
        return w, b

    p = {}
    p['emb'] = dense(1, dim)                                        # embedding_t
    p['mlp'] = dense(dim, 4 * dim) + dense(4 * dim, dim)            # self.mlp
    p['global_mlp'] = dense(dim, 4 * dim) + dense(4 * dim, dim)
    p['context_mlp'] = dense(2 * dim, 4 * dim) + dense(4 * dim, dim)
    p['gru_wih'], p['gru_bih'] = dense(dim, 3 * dim)
    p['gru_whh'], p['gru_bhh'] = dense(dim, 3 * dim)
    p['layers'] = []
    for H in heads:
        p['layers'].append({
            'time': dense(dim, dim),                 # TimeEmb: Mish -> Linear
            'q': dense(2 * dim, H * dim),            # TransformerConv lin_query
            'k': dense(2 * dim, H * dim),            # lin_key
            'v': dense(2 * dim, H * dim),            # lin_value
            'skip': dense(2 * dim, dim),             # lin_skip (root weight)
        })
    p['final'] = dense(2 * dim, dim) + dense(dim, out_channels)     # EdgeRegressionHead
    return p


def pack_layer_params(params, heads, dim):
    """Stack per-layer weights along a leading layer axis; fuse Q|K|V|skip.

    Layers with fewer heads than H_max have their head weights replicated
    (mean over identical heads == the single head output => exact)."""
    L = len(heads)
    h_max = max(heads)
    time_w = jnp.stack([params['layers'][i]['time'][0] for i in range(L)])
    time_b = jnp.stack([params['layers'][i]['time'][1].reshape(1, dim) for i in range(L)])
    wn, wt, bb = [], [], []
    for i, H in enumerate(heads):
        rep = h_max // H
        lp = params['layers'][i]
        qw, qb = lp['q']; kw, kb = lp['k']; vw, vb = lp['v']; sw, sb = lp['skip']
        qw, qb = jnp.tile(qw, (1, rep)), jnp.tile(qb, (rep,))
        kw, kb = jnp.tile(kw, (1, rep)), jnp.tile(kb, (rep,))
        vw, vb = jnp.tile(vw, (1, rep)), jnp.tile(vb, (rep,))
        W = jnp.concatenate([qw, kw, vw, sw], axis=1)        # [2D, 3*H*D + D]
        b = jnp.concatenate([qb, kb, vb, sb], axis=0)
        wn.append(W[:dim])      # rows multiplying `nodes`
        wt.append(W[dim:])      # rows multiplying `t_emb`
        bb.append(b.reshape(1, -1))
    return dict(time_w=time_w, time_b=time_b,
                qkvs_wn=jnp.stack(wn), qkvs_wt=jnp.stack(wt), qkvs_b=jnp.stack(bb))


# ------------------------- TGNN forward -------------------------
def tgnn_forward(params, edge_index, full_edge_index, batch, t_node,
                 num_nodes, num_graphs, heads):
    dim = DIM
    N = num_nodes
    L = len(heads)
    h_max = max(heads)

    # degree features (glue: scatter-add of ones, clamp(max=max_degree+1), .long(), / max_degree)
    deg = jnp.zeros((N,), jnp.float32).at[edge_index[0]].add(1.0)
    deg = jnp.floor(jnp.minimum(deg, float(MAX_DEGREE + 1)))
    x0 = (deg / float(MAX_DEGREE))[:, None]
    x0p = jnp.pad(x0, ((0, 0), (0, 7)))                         # pad contraction 1 -> 8
    emb_w = jnp.pad(params['emb'][0], ((0, 7), (0, 0)))         # [8, D]
    emb_b = params['emb'][1].reshape(1, dim)

    sin_emb = sinusoidal_pos_emb(t_node, dim, NUM_TIMESTEPS)    # [N, D]

    # graph-level scatter-mean / repeat_interleave as matmuls (padded graph axis)
    BP = max(num_graphs, 8)
    assign = jax.nn.one_hot(batch, BP, dtype=jnp.float32).T     # [BP, N]
    counts = jnp.maximum(assign.sum(axis=1, keepdims=True), 1.0)
    assign_mean = assign / counts
    expand = assign.T                                           # [N, BP]

    # adjacency: adj[i, j] = 1 iff edge (source j -> target i); precompute additive mask bias
    adj = jnp.zeros((N, N), jnp.float32).at[edge_index[1], edge_index[0]].set(1.0)
    mask_bias = jnp.where(adj > 0, 0.0, -1e30).astype(jnp.float32)   # keep f32 for exp underflow
    has_in = (adj.sum(axis=1, keepdims=True) > 0).astype(jnp.float32)  # [N, 1]
    scale = 1.0 / math.sqrt(dim)                                # 1/sqrt(out_channels)

    # one-hot selectors for the fused edge head gathers
    E = full_edge_index.shape[1]
    src_sel = jax.nn.one_hot(full_edge_index[0], N, dtype=jnp.float32)   # [E, N]
    dst_sel = jax.nn.one_hot(full_edge_index[1], N, dtype=jnp.float32)   # [E, N]

    stacked = pack_layer_params(params, heads, dim)
    cmlp_w1 = params['context_mlp'][0]
    cmlp_w1n, cmlp_w1c = cmlp_w1[:dim], cmlp_w1[dim:]
    fin_w1 = params['final'][0]
    fin_w1s, fin_w1d = fin_w1[:dim], fin_w1[dim:]

    kernel = functools.partial(_tgnn_fused_kernel, dim=dim, n_heads=h_max,
                               n_layers=L, scale=scale)

    # Single invocation (no grid): every operand is a whole-array VMEM block,
    # total footprint < 1 MB, so no pipelining / double-buffering is needed.
    edge_logits, nodes = pl.pallas_call(
        kernel,
        out_shape=(jax.ShapeDtypeStruct((E, OUT_CHANNELS), jnp.float32),
                   jax.ShapeDtypeStruct((N, dim), jnp.float32)),
    )(
        stacked['time_w'], stacked['time_b'],
        stacked['qkvs_wn'], stacked['qkvs_wt'], stacked['qkvs_b'],
        x0p, sin_emb, mask_bias, has_in, assign_mean, expand,
        src_sel, dst_sel,
        emb_w, emb_b,
        params['mlp'][0], params['mlp'][1].reshape(1, -1),
        params['mlp'][2], params['mlp'][3].reshape(1, -1),
        params['global_mlp'][0], params['global_mlp'][1].reshape(1, -1),
        params['global_mlp'][2], params['global_mlp'][3].reshape(1, -1),
        cmlp_w1n, cmlp_w1c, params['context_mlp'][1].reshape(1, -1),
        params['context_mlp'][2], params['context_mlp'][3].reshape(1, -1),
        params['gru_wih'], params['gru_whh'],
        params['gru_bih'].reshape(1, -1), params['gru_bhh'].reshape(1, -1),
        fin_w1s, fin_w1d, params['final'][1].reshape(1, -1),
        params['final'][2], params['final'][3].reshape(1, -1),
    )

    # TODO(synk): dummy_edge_feats / node_interaction (MiniAttentionLayer) are unused
    # in the reference forward, so they are intentionally not implemented.
    return edge_logits, [nodes]


# ------------------------- main -------------------------
if __name__ == "__main__":
    key = jax.random.PRNGKey(0)

    num_graphs = 2
    nodes_per_graph = 8
    N = num_graphs * nodes_per_graph
    heads = [NUM_HEADS] * (NUM_LAYERS - 1) + [1]

    params = init_params(key, DIM, heads, OUT_CHANNELS)

    # bidirectional ring per graph (message-passing edge_index)
    src_list, dst_list = [], []
    for g in range(num_graphs):
        off = g * nodes_per_graph
        for i in range(nodes_per_graph):
            j = (i + 1) % nodes_per_graph
            src_list += [off + i, off + j]
            dst_list += [off + j, off + i]
    edge_index = jnp.array([src_list, dst_list], dtype=jnp.int32)

    # full_edge_index: all ordered pairs (i != j) within each graph
    fsrc, fdst = [], []
    for g in range(num_graphs):
        off = g * nodes_per_graph
        for i in range(nodes_per_graph):
            for j in range(nodes_per_graph):
                if i != j:
                    fsrc.append(off + i)
                    fdst.append(off + j)
    full_edge_index = jnp.array([fsrc, fdst], dtype=jnp.int32)

    batch = jnp.repeat(jnp.arange(num_graphs), nodes_per_graph).astype(jnp.int32)
    t_node = jnp.repeat(jnp.array([17.0, 101.0], dtype=jnp.float32), nodes_per_graph)

    edge_logits, node_list = tgnn_forward(
        params, edge_index, full_edge_index, batch, t_node,
        num_nodes=N, num_graphs=num_graphs, heads=heads)

    jax.block_until_ready(edge_logits)
    jax.block_until_ready(node_list[0])
    assert edge_logits.shape == (full_edge_index.shape[1], OUT_CHANNELS)
    assert node_list[0].shape == (N, DIM)
    print("KERNEL_OK")
</pallas_src>

<mosaic_0001>
module attributes {stable_mosaic.version = 11 : i64} {
  func.func @_tgnn_fused_kernel(%arg0: memref<4x32x32xf32, #tpu.memory_space<vmem>>, %arg1: memref<4x1x32xf32, #tpu.memory_space<vmem>>, %arg2: memref<4x32x416xf32, #tpu.memory_space<vmem>>, %arg3: memref<4x32x416xf32, #tpu.memory_space<vmem>>, %arg4: memref<4x1x416xf32, #tpu.memory_space<vmem>>, %arg5: memref<16x8xf32, #tpu.memory_space<vmem>>, %arg6: memref<16x32xf32, #tpu.memory_space<vmem>>, %arg7: memref<16x16xf32, #tpu.memory_space<vmem>>, %arg8: memref<16x1xf32, #tpu.memory_space<vmem>>, %arg9: memref<8x16xf32, #tpu.memory_space<vmem>>, %arg10: memref<16x8xf32, #tpu.memory_space<vmem>>, %arg11: memref<112x16xf32, #tpu.memory_space<vmem>>, %arg12: memref<112x16xf32, #tpu.memory_space<vmem>>, %arg13: memref<8x32xf32, #tpu.memory_space<vmem>>, %arg14: memref<1x32xf32, #tpu.memory_space<vmem>>, %arg15: memref<32x128xf32, #tpu.memory_space<vmem>>, %arg16: memref<1x128xf32, #tpu.memory_space<vmem>>, %arg17: memref<128x32xf32, #tpu.memory_space<vmem>>, %arg18: memref<1x32xf32, #tpu.memory_space<vmem>>, %arg19: memref<32x128xf32, #tpu.memory_space<vmem>>, %arg20: memref<1x128xf32, #tpu.memory_space<vmem>>, %arg21: memref<128x32xf32, #tpu.memory_space<vmem>>, %arg22: memref<1x32xf32, #tpu.memory_space<vmem>>, %arg23: memref<32x128xf32, #tpu.memory_space<vmem>>, %arg24: memref<32x128xf32, #tpu.memory_space<vmem>>, %arg25: memref<1x128xf32, #tpu.memory_space<vmem>>, %arg26: memref<128x32xf32, #tpu.memory_space<vmem>>, %arg27: memref<1x32xf32, #tpu.memory_space<vmem>>, %arg28: memref<32x96xf32, #tpu.memory_space<vmem>>, %arg29: memref<32x96xf32, #tpu.memory_space<vmem>>, %arg30: memref<1x96xf32, #tpu.memory_space<vmem>>, %arg31: memref<1x96xf32, #tpu.memory_space<vmem>>, %arg32: memref<32x32xf32, #tpu.memory_space<vmem>>, %arg33: memref<32x32xf32, #tpu.memory_space<vmem>>, %arg34: memref<1x32xf32, #tpu.memory_space<vmem>>, %arg35: memref<32x2xf32, #tpu.memory_space<vmem>>, %arg36: memref<1x2xf32, #tpu.memory_space<vmem>>, %arg37: memref<112x2xf32, #tpu.memory_space<vmem>>, %arg38: memref<16x32xf32, #tpu.memory_space<vmem>>) attributes {dimension_semantics = [], scalar_prefetch = 0 : i64, scratch_operands = 0 : i64, tpu.core_type = #tpu.core_type<tc>} {
    %c0 = arith.constant 0 : index
    %c0_0 = arith.constant 0 : index
    %0 = vector.load %arg5[%c0, %c0_0] : memref<16x8xf32, #tpu.memory_space<vmem>>, vector<16x8xf32>
    %c0_1 = arith.constant 0 : index
    %c0_2 = arith.constant 0 : index
    %1 = vector.load %arg13[%c0_1, %c0_2] : memref<8x32xf32, #tpu.memory_space<vmem>>, vector<8x32xf32>
    %cst = arith.constant dense<0.000000e+00> : vector<16x32xf32>
    %2 = tpu.matmul %0, %1, %cst {dimension_numbers = #tpu.dot_dimension_numbers<[1], [0], [0], [1], [0, 0, 1, 1], [], []>} : vector<16x8xf32>, vector<8x32xf32>, vector<16x32xf32> -> vector<16x32xf32>
    %c0_3 = arith.constant 0 : index
    %c0_4 = arith.constant 0 : index
    %3 = vector.load %arg14[%c0_3, %c0_4] : memref<1x32xf32, #tpu.memory_space<vmem>>, vector<1x32xf32>
    %4 = vector.broadcast %3 : vector<1x32xf32> to vector<16x32xf32>
    %5 = arith.addf %2, %4 : vector<16x32xf32>
    %c0_5 = arith.constant 0 : index
    %c0_6 = arith.constant 0 : index
    %6 = vector.load %arg6[%c0_5, %c0_6] : memref<16x32xf32, #tpu.memory_space<vmem>>, vector<16x32xf32>
    %c0_7 = arith.constant 0 : index
    %c0_8 = arith.constant 0 : index
    %7 = vector.load %arg15[%c0_7, %c0_8] : memref<32x128xf32, #tpu.memory_space<vmem>>, vector<32x128xf32>
    %cst_9 = arith.constant dense<0.000000e+00> : vector<16x128xf32>
    %8 = tpu.matmul %6, %7, %cst_9 {dimension_numbers = #tpu.dot_dimension_numbers<[1], [0], [0], [1], [0, 0, 1, 1], [], []>} : vector<16x32xf32>, vector<32x128xf32>, vector<16x128xf32> -> vector<16x128xf32>
    %c0_10 = arith.constant 0 : index
    %c0_11 = arith.constant 0 : index
    %9 = vector.load %arg16[%c0_10, %c0_11] : memref<1x128xf32, #tpu.memory_space<vmem>>, vector<1x128xf32>
    %10 = vector.broadcast %9 : vector<1x128xf32> to vector<16x128xf32>
    %11 = arith.addf %8, %10 : vector<16x128xf32>
    %cst_12 = arith.constant 5.000000e-01 : f32
    %12 = vector.broadcast %cst_12 : f32 to vector<16x128xf32>
    %13 = arith.mulf %12, %11 : vector<16x128xf32>
    %14 = math.tanh %13 : vector<16x128xf32>
    %cst_13 = arith.constant 1.000000e+00 : f32
    %15 = vector.broadcast %cst_13 : f32 to vector<16x128xf32>
    %16 = arith.addf %14, %15 : vector<16x128xf32>
    %cst_14 = arith.constant 5.000000e-01 : f32
    %17 = vector.broadcast %cst_14 : f32 to vector<16x128xf32>
    %18 = arith.mulf %17, %16 : vector<16x128xf32>
    %19 = arith.mulf %11, %18 : vector<16x128xf32>
    %c0_15 = arith.constant 0 : index
    %c0_16 = arith.constant 0 : index
    %20 = vector.load %arg17[%c0_15, %c0_16] : memref<128x32xf32, #tpu.memory_space<vmem>>, vector<128x32xf32>
    %cst_17 = arith.constant dense<0.000000e+00> : vector<16x32xf32>
    %21 = tpu.matmul %19, %20, %cst_17 {dimension_numbers = #tpu.dot_dimension_numbers<[1], [0], [0], [1], [0, 0, 1, 1], [], []>} : vector<16x128xf32>, vector<128x32xf32>, vector<16x32xf32> -> vector<16x32xf32>
    %c0_18 = arith.constant 0 : index
    %c0_19 = arith.constant 0 : index
    %22 = vector.load %arg18[%c0_18, %c0_19] : memref<1x32xf32, #tpu.memory_space<vmem>>, vector<1x32xf32>
    %23 = vector.broadcast %22 : vector<1x32xf32> to vector<16x32xf32>
    %24 = arith.addf %21, %23 : vector<16x32xf32>
    %cst_20 = arith.constant 0.000000e+00 : f32
    %25 = vector.broadcast %cst_20 : f32 to vector<16x32xf32>
    %26 = arith.maximumf %24, %25 : vector<16x32xf32>
    %27 = math.absf %24 : vector<16x32xf32>
    %cst_21 = arith.constant 0.000000e+00 : f32
    %28 = vector.broadcast %cst_21 : f32 to vector<16x32xf32>
    %29 = arith.subf %28, %27 : vector<16x32xf32>
    %30 = math.exp %29 : vector<16x32xf32>
    %cst_22 = arith.constant 1.000000e+00 : f32
    %31 = vector.broadcast %cst_22 : f32 to vector<16x32xf32>
    %32 = arith.addf %31, %30 : vector<16x32xf32>
    %33 = math.log %32 : vector<16x32xf32>
    %34 = arith.addf %26, %33 : vector<16x32xf32>
    %35 = math.tanh %34 : vector<16x32xf32>
    %36 = arith.mulf %24, %35 : vector<16x32xf32>
    %c0_23 = arith.constant 0 : index
    %c0_24 = arith.constant 0 : index
    %37 = vector.load %arg9[%c0_23, %c0_24] : memref<8x16xf32, #tpu.memory_space<vmem>>, vector<8x16xf32>
    %cst_25 = arith.constant dense<0.000000e+00> : vector<8x32xf32>
    %38 = tpu.matmul %37, %5, %cst_25 {dimension_numbers = #tpu.dot_dimension_numbers<[1], [0], [0], [1], [0, 0, 1, 1], [], []>} : vector<8x16xf32>, vector<16x32xf32>, vector<8x32xf32> -> vector<8x32xf32>
    %c0_26 = arith.constant 0 : index
    %c0_27 = arith.constant 0 : index
    %39 = vector.load %arg19[%c0_26, %c0_27] : memref<32x128xf32, #tpu.memory_space<vmem>>, vector<32x128xf32>
    %cst_28 = arith.constant dense<0.000000e+00> : vector<8x128xf32>
    %40 = tpu.matmul %38, %39, %cst_28 {dimension_numbers = #tpu.dot_dimension_numbers<[1], [0], [0], [1], [0, 0, 1, 1], [], []>} : vector<8x32xf32>, vector<32x128xf32>, vector<8x128xf32> -> vector<8x128xf32>
    %c0_29 = arith.constant 0 : index
    %c0_30 = arith.constant 0 : index
    %41 = vector.load %arg20[%c0_29, %c0_30] : memref<1x128xf32, #tpu.memory_space<vmem>>, vector<1x128xf32>
    %42 = vector.broadcast %41 : vector<1x128xf32> to vector<8x128xf32>
    %43 = arith.addf %40, %42 : vector<8x128xf32>
    %cst_31 = arith.constant 5.000000e-01 : f32
    %44 = vector.broadcast %cst_31 : f32 to vector<8x128xf32>
    %45 = arith.mulf %44, %43 : vector<8x128xf32>
    %46 = math.tanh %45 : vector<8x128xf32>
    %cst_32 = arith.constant 1.000000e+00 : f32
    %47 = vector.broadcast %cst_32 : f32 to vector<8x128xf32>
    %48 = arith.addf %46, %47 : vector<8x128xf32>
    %cst_33 = arith.constant 5.000000e-01 : f32
    %49 = vector.broadcast %cst_33 : f32 to vector<8x128xf32>
    %50 = arith.mulf %49, %48 : vector<8x128xf32>
    %51 = arith.mulf %43, %50 : vector<8x128xf32>
    %c0_34 = arith.constant 0 : index
    %c0_35 = arith.constant 0 : index
    %52 = vector.load %arg21[%c0_34, %c0_35] : memref<128x32xf32, #tpu.memory_space<vmem>>, vector<128x32xf32>
    %cst_36 = arith.constant dense<0.000000e+00> : vector<8x32xf32>
    %53 = tpu.matmul %51, %52, %cst_36 {dimension_numbers = #tpu.dot_dimension_numbers<[1], [0], [0], [1], [0, 0, 1, 1], [], []>} : vector<8x128xf32>, vector<128x32xf32>, vector<8x32xf32> -> vector<8x32xf32>
    %c0_37 = arith.constant 0 : index
    %c0_38 = arith.constant 0 : index
    %54 = vector.load %arg22[%c0_37, %c0_38] : memref<1x32xf32, #tpu.memory_space<vmem>>, vector<1x32xf32>
    %55 = vector.broadcast %54 : vector<1x32xf32> to vector<8x32xf32>
    %56 = arith.addf %53, %55 : vector<8x32xf32>
    %c0_39 = arith.constant 0 : index
    %c0_40 = arith.constant 0 : index
    %57 = vector.load %arg10[%c0_39, %c0_40] : memref<16x8xf32, #tpu.memory_space<vmem>>, vector<16x8xf32>
    %cst_41 = arith.constant dense<0.000000e+00> : vector<16x32xf32>
    %58 = tpu.matmul %57, %56, %cst_41 {dimension_numbers = #tpu.dot_dimension_numbers<[1], [0], [0], [1], [0, 0, 1, 1], [], []>} : vector<16x8xf32>, vector<8x32xf32>, vector<16x32xf32> -> vector<16x32xf32>
    %c0_42 = arith.constant 0 : index
    %c0_43 = arith.constant 0 : index
    %59 = vector.load %arg7[%c0_42, %c0_43] : memref<16x16xf32, #tpu.memory_space<vmem>>, vector<16x16xf32>
    %c0_44 = arith.constant 0 : index
    %c0_45 = arith.constant 0 : index
    %60 = vector.load %arg8[%c0_44, %c0_45] : memref<16x1xf32, #tpu.memory_space<vmem>>, vector<16x1xf32>
    %cst_46 = arith.constant 2.500000e-01 : f32
    %61 = vector.broadcast %cst_46 : f32 to vector<16x1xf32>
    %62 = arith.mulf %60, %61 : vector<16x1xf32>
    %c0_47 = arith.constant 0 : index
    %c0_48 = arith.constant 0 : index
    %c0_49 = arith.constant 0 : index
    %63 = vector.load %arg0[%c0_47, %c0_48, %c0_49] : memref<4x32x32xf32, #tpu.memory_space<vmem>>, vector<1x32x32xf32>
    %64 = vector.shape_cast %63 : vector<1x32x32xf32> to vector<32x32xf32>
    %cst_50 = arith.constant dense<0.000000e+00> : vector<16x32xf32>
    %65 = tpu.matmul %36, %64, %cst_50 {dimension_numbers = #tpu.dot_dimension_numbers<[1], [0], [0], [1], [0, 0, 1, 1], [], []>} : vector<16x32xf32>, vector<32x32xf32>, vector<16x32xf32> -> vector<16x32xf32>
    %c0_51 = arith.constant 0 : index
    %c0_52 = arith.constant 0 : index
    %c0_53 = arith.constant 0 : index
    %66 = vector.load %arg1[%c0_51, %c0_52, %c0_53] : memref<4x1x32xf32, #tpu.memory_space<vmem>>, vector<1x1x32xf32>
    %67 = vector.shape_cast %66 : vector<1x1x32xf32> to vector<1x32xf32>
    %68 = vector.broadcast %67 : vector<1x32xf32> to vector<16x32xf32>
    %69 = arith.addf %65, %68 : vector<16x32xf32>
    %c0_54 = arith.constant 0 : index
    %c0_55 = arith.constant 0 : index
    %c0_56 = arith.constant 0 : index
    %70 = vector.load %arg2[%c0_54, %c0_55, %c0_56] : memref<4x32x416xf32, #tpu.memory_space<vmem>>, vector<1x32x416xf32>
    %71 = vector.shape_cast %70 : vector<1x32x416xf32> to vector<32x416xf32>
    %cst_57 = arith.constant dense<0.000000e+00> : vector<16x416xf32>
    %72 = tpu.matmul %5, %71, %cst_57 {dimension_numbers = #tpu.dot_dimension_numbers<[1], [0], [0], [1], [0, 0, 1, 1], [], []>} : vector<16x32xf32>, vector<32x416xf32>, vector<16x416xf32> -> vector<16x416xf32>
    %c0_58 = arith.constant 0 : index
    %c0_59 = arith.constant 0 : index
    %c0_60 = arith.constant 0 : index
    %73 = vector.load %arg3[%c0_58, %c0_59, %c0_60] : memref<4x32x416xf32, #tpu.memory_space<vmem>>, vector<1x32x416xf32>
    %74 = vector.shape_cast %73 : vector<1x32x416xf32> to vector<32x416xf32>
    %cst_61 = arith.constant dense<0.000000e+00> : vector<16x416xf32>
    %75 = tpu.matmul %69, %74, %cst_61 {dimension_numbers = #tpu.dot_dimension_numbers<[1], [0], [0], [1], [0, 0, 1, 1], [], []>} : vector<16x32xf32>, vector<32x416xf32>, vector<16x416xf32> -> vector<16x416xf32>
    %76 = arith.addf %72, %75 : vector<16x416xf32>
    %c0_62 = arith.constant 0 : index
    %c0_63 = arith.constant 0 : index
    %c0_64 = arith.constant 0 : index
    %77 = vector.load %arg4[%c0_62, %c0_63, %c0_64] : memref<4x1x416xf32, #tpu.memory_space<vmem>>, vector<1x1x416xf32>
    %78 = vector.shape_cast %77 : vector<1x1x416xf32> to vector<1x416xf32>
    %79 = vector.broadcast %78 : vector<1x416xf32> to vector<16x416xf32>
    %80 = arith.addf %76, %79 : vector<16x416xf32>
    %cst_65 = arith.constant 0.000000e+00 : f32
    %81 = vector.broadcast %cst_65 : f32 to vector<16x32xf32>
    %82 = vector.extract_strided_slice %80 {offsets = [0, 0], sizes = [16, 32], strides = [1, 1]} : vector<16x416xf32> to vector<16x32xf32>
    %83 = vector.extract_strided_slice %80 {offsets = [0, 128], sizes = [16, 32], strides = [1, 1]} : vector<16x416xf32> to vector<16x32xf32>
    %84 = vector.extract_strided_slice %80 {offsets = [0, 256], sizes = [16, 32], strides = [1, 1]} : vector<16x416xf32> to vector<16x32xf32>
    %cst_66 = arith.constant dense<0.000000e+00> : vector<16x16xf32>
    %85 = tpu.matmul %82, %83, %cst_66 {dimension_numbers = #tpu.dot_dimension_numbers<[1], [1], [0], [0], [0, 0, 1, 0], [], []>} : vector<16x32xf32>, vector<16x32xf32>, vector<16x16xf32> -> vector<16x16xf32>
    %cst_67 = arith.constant 0.176776692 : f32
    %86 = vector.broadcast %cst_67 : f32 to vector<16x16xf32>
    %87 = arith.mulf %85, %86 : vector<16x16xf32>
    %88 = arith.addf %87, %59 : vector<16x16xf32>
    %cst_68 = arith.constant dense<0xFF800000> : vector<16xf32>
    %89 = vector.multi_reduction <maximumf>, %88, %cst_68 [1] : vector<16x16xf32> to vector<16xf32>
    %90 = vector.shape_cast %89 : vector<16xf32> to vector<16x1xf32>
    %91 = vector.broadcast %90 : vector<16x1xf32> to vector<16x16xf32>
    %92 = arith.subf %88, %91 : vector<16x16xf32>
    %93 = math.exp %92 : vector<16x16xf32>
    %cst_69 = arith.constant dense<0.000000e+00> : vector<16xf32>
    %94 = vector.multi_reduction <add>, %93, %cst_69 [1] : vector<16x16xf32> to vector<16xf32>
    %95 = vector.shape_cast %94 : vector<16xf32> to vector<16x1xf32>
    %96 = tpu.reciprocal %95 {approx = true} : vector<16x1xf32> -> vector<16x1xf32>
    %cst_70 = arith.constant dense<0.000000e+00> : vector<16x32xf32>
    %97 = tpu.matmul %93, %84, %cst_70 {dimension_numbers = #tpu.dot_dimension_numbers<[1], [0], [0], [1], [0, 0, 1, 1], [], []>} : vector<16x16xf32>, vector<16x32xf32>, vector<16x32xf32> -> vector<16x32xf32>
    %98 = vector.broadcast %96 : vector<16x1xf32> to vector<16x32xf32>
    %99 = arith.mulf %97, %98 : vector<16x32xf32>
    %100 = arith.addf %81, %99 : vector<16x32xf32>
    %101 = vector.extract_strided_slice %80 {offsets = [0, 32], sizes = [16, 32], strides = [1, 1]} : vector<16x416xf32> to vector<16x32xf32>
    %102 = vector.extract_strided_slice %80 {offsets = [0, 160], sizes = [16, 32], strides = [1, 1]} : vector<16x416xf32> to vector<16x32xf32>
    %103 = vector.extract_strided_slice %80 {offsets = [0, 288], sizes = [16, 32], strides = [1, 1]} : vector<16x416xf32> to vector<16x32xf32>
    %cst_71 = arith.constant dense<0.000000e+00> : vector<16x16xf32>
    %104 = tpu.matmul %101, %102, %cst_71 {dimension_numbers = #tpu.dot_dimension_numbers<[1], [1], [0], [0], [0, 0, 1, 0], [], []>} : vector<16x32xf32>, vector<16x32xf32>, vector<16x16xf32> -> vector<16x16xf32>
    %cst_72 = arith.constant 0.176776692 : f32
    %105 = vector.broadcast %cst_72 : f32 to vector<16x16xf32>
    %106 = arith.mulf %104, %105 : vector<16x16xf32>
    %107 = arith.addf %106, %59 : vector<16x16xf32>
    %cst_73 = arith.constant dense<0xFF800000> : vector<16xf32>
    %108 = vector.multi_reduction <maximumf>, %107, %cst_73 [1] : vector<16x16xf32> to vector<16xf32>
    %109 = vector.shape_cast %108 : vector<16xf32> to vector<16x1xf32>
    %110 = vector.broadcast %109 : vector<16x1xf32> to vector<16x16xf32>
    %111 = arith.subf %107, %110 : vector<16x16xf32>
    %112 = math.exp %111 : vector<16x16xf32>
    %cst_74 = arith.constant dense<0.000000e+00> : vector<16xf32>
    %113 = vector.multi_reduction <add>, %112, %cst_74 [1] : vector<16x16xf32> to vector<16xf32>
    %114 = vector.shape_cast %113 : vector<16xf32> to vector<16x1xf32>
    %115 = tpu.reciprocal %114 {approx = true} : vector<16x1xf32> -> vector<16x1xf32>
    %cst_75 = arith.constant dense<0.000000e+00> : vector<16x32xf32>
    %116 = tpu.matmul %112, %103, %cst_75 {dimension_numbers = #tpu.dot_dimension_numbers<[1], [0], [0], [1], [0, 0, 1, 1], [], []>} : vector<16x16xf32>, vector<16x32xf32>, vector<16x32xf32> -> vector<16x32xf32>
    %117 = vector.broadcast %115 : vector<16x1xf32> to vector<16x32xf32>
    %118 = arith.mulf %116, %117 : vector<16x32xf32>
    %119 = arith.addf %100, %118 : vector<16x32xf32>
    %120 = vector.extract_strided_slice %80 {offsets = [0, 64], sizes = [16, 32], strides = [1, 1]} : vector<16x416xf32> to vector<16x32xf32>
    %121 = vector.extract_strided_slice %80 {offsets = [0, 192], sizes = [16, 32], strides = [1, 1]} : vector<16x416xf32> to vector<16x32xf32>
    %122 = vector.extract_strided_slice %80 {offsets = [0, 320], sizes = [16, 32], strides = [1, 1]} : vector<16x416xf32> to vector<16x32xf32>
    %cst_76 = arith.constant dense<0.000000e+00> : vector<16x16xf32>
    %123 = tpu.matmul %120, %121, %cst_76 {dimension_numbers = #tpu.dot_dimension_numbers<[1], [1], [0], [0], [0, 0, 1, 0], [], []>} : vector<16x32xf32>, vector<16x32xf32>, vector<16x16xf32> -> vector<16x16xf32>
    %cst_77 = arith.constant 0.176776692 : f32
    %124 = vector.broadcast %cst_77 : f32 to vector<16x16xf32>
    %125 = arith.mulf %123, %124 : vector<16x16xf32>
    %126 = arith.addf %125, %59 : vector<16x16xf32>
    %cst_78 = arith.constant dense<0xFF800000> : vector<16xf32>
    %127 = vector.multi_reduction <maximumf>, %126, %cst_78 [1] : vector<16x16xf32> to vector<16xf32>
    %128 = vector.shape_cast %127 : vector<16xf32> to vector<16x1xf32>
    %129 = vector.broadcast %128 : vector<16x1xf32> to vector<16x16xf32>
    %130 = arith.subf %126, %129 : vector<16x16xf32>
    %131 = math.exp %130 : vector<16x16xf32>
    %cst_79 = arith.constant dense<0.000000e+00> : vector<16xf32>
    %132 = vector.multi_reduction <add>, %131, %cst_79 [1] : vector<16x16xf32> to vector<16xf32>
    %133 = vector.shape_cast %132 : vector<16xf32> to vector<16x1xf32>
    %134 = tpu.reciprocal %133 {approx = true} : vector<16x1xf32> -> vector<16x1xf32>
    %cst_80 = arith.constant dense<0.000000e+00> : vector<16x32xf32>
    %135 = tpu.matmul %131, %122, %cst_80 {dimension_numbers = #tpu.dot_dimension_numbers<[1], [0], [0], [1], [0, 0, 1, 1], [], []>} : vector<16x16xf32>, vector<16x32xf32>, vector<16x32xf32> -> vector<16x32xf32>
    %136 = vector.broadcast %134 : vector<16x1xf32> to vector<16x32xf32>
    %137 = arith.mulf %135, %136 : vector<16x32xf32>
    %138 = arith.addf %119, %137 : vector<16x32xf32>
    %139 = vector.extract_strided_slice %80 {offsets = [0, 96], sizes = [16, 32], strides = [1, 1]} : vector<16x416xf32> to vector<16x32xf32>
    %140 = vector.extract_strided_slice %80 {offsets = [0, 224], sizes = [16, 32], strides = [1, 1]} : vector<16x416xf32> to vector<16x32xf32>
    %141 = vector.extract_strided_slice %80 {offsets = [0, 352], sizes = [16, 32], strides = [1, 1]} : vector<16x416xf32> to vector<16x32xf32>
    %cst_81 = arith.constant dense<0.000000e+00> : vector<16x16xf32>
    %142 = tpu.matmul %139, %140, %cst_81 {dimension_numbers = #tpu.dot_dimension_numbers<[1], [1], [0], [0], [0, 0, 1, 0], [], []>} : vector<16x32xf32>, vector<16x32xf32>, vector<16x16xf32> -> vector<16x16xf32>
    %cst_82 = arith.constant 0.176776692 : f32
    %143 = vector.broadcast %cst_82 : f32 to vector<16x16xf32>
    %144 = arith.mulf %142, %143 : vector<16x16xf32>
    %145 = arith.addf %144, %59 : vector<16x16xf32>
    %cst_83 = arith.constant dense<0xFF800000> : vector<16xf32>
    %146 = vector.multi_reduction <maximumf>, %145, %cst_83 [1] : vector<16x16xf32> to vector<16xf32>
    %147 = vector.shape_cast %146 : vector<16xf32> to vector<16x1xf32>
    %148 = vector.broadcast %147 : vector<16x1xf32> to vector<16x16xf32>
    %149 = arith.subf %145, %148 : vector<16x16xf32>
    %150 = math.exp %149 : vector<16x16xf32>
    %cst_84 = arith.constant dense<0.000000e+00> : vector<16xf32>
    %151 = vector.multi_reduction <add>, %150, %cst_84 [1] : vector<16x16xf32> to vector<16xf32>
    %152 = vector.shape_cast %151 : vector<16xf32> to vector<16x1xf32>
    %153 = tpu.reciprocal %152 {approx = true} : vector<16x1xf32> -> vector<16x1xf32>
    %cst_85 = arith.constant dense<0.000000e+00> : vector<16x32xf32>
    %154 = tpu.matmul %150, %141, %cst_85 {dimension_numbers = #tpu.dot_dimension_numbers<[1], [0], [0], [1], [0, 0, 1, 1], [], []>} : vector<16x16xf32>, vector<16x32xf32>, vector<16x32xf32> -> vector<16x32xf32>
    %155 = vector.broadcast %153 : vector<16x1xf32> to vector<16x32xf32>
    %156 = arith.mulf %154, %155 : vector<16x32xf32>
    %157 = arith.addf %138, %156 : vector<16x32xf32>
    %158 = vector.extract_strided_slice %80 {offsets = [0, 384], sizes = [16, 32], strides = [1, 1]} : vector<16x416xf32> to vector<16x32xf32>
    %159 = vector.broadcast %62 : vector<16x1xf32> to vector<16x32xf32>
    %160 = arith.mulf %157, %159 : vector<16x32xf32>
    %161 = arith.addf %160, %158 : vector<16x32xf32>
    %cst_86 = arith.constant 5.000000e-01 : f32
    %162 = vector.broadcast %cst_86 : f32 to vector<16x32xf32>
    %163 = arith.mulf %162, %161 : vector<16x32xf32>
    %164 = math.tanh %163 : vector<16x32xf32>
    %cst_87 = arith.constant 1.000000e+00 : f32
    %165 = vector.broadcast %cst_87 : f32 to vector<16x32xf32>
    %166 = arith.addf %164, %165 : vector<16x32xf32>
    %cst_88 = arith.constant 5.000000e-01 : f32
    %167 = vector.broadcast %cst_88 : f32 to vector<16x32xf32>
    %168 = arith.mulf %167, %166 : vector<16x32xf32>
    %169 = arith.mulf %161, %168 : vector<16x32xf32>
    %c0_89 = arith.constant 0 : index
    %c0_90 = arith.constant 0 : index
    %170 = vector.load %arg28[%c0_89, %c0_90] : memref<32x96xf32, #tpu.memory_space<vmem>>, vector<32x96xf32>
    %cst_91 = arith.constant dense<0.000000e+00> : vector<16x96xf32>
    %171 = tpu.matmul %169, %170, %cst_91 {dimension_numbers = #tpu.dot_dimension_numbers<[1], [0], [0], [1], [0, 0, 1, 1], [], []>} : vector<16x32xf32>, vector<32x96xf32>, vector<16x96xf32> -> vector<16x96xf32>
    %c0_92 = arith.constant 0 : index
    %c0_93 = arith.constant 0 : index
    %172 = vector.load %arg30[%c0_92, %c0_93] : memref<1x96xf32, #tpu.memory_space<vmem>>, vector<1x96xf32>
    %173 = vector.broadcast %172 : vector<1x96xf32> to vector<16x96xf32>
    %174 = arith.addf %171, %173 : vector<16x96xf32>
    %c0_94 = arith.constant 0 : index
    %c0_95 = arith.constant 0 : index
    %175 = vector.load %arg29[%c0_94, %c0_95] : memref<32x96xf32, #tpu.memory_space<vmem>>, vector<32x96xf32>
    %cst_96 = arith.constant dense<0.000000e+00> : vector<16x96xf32>
    %176 = tpu.matmul %5, %175, %cst_96 {dimension_numbers = #tpu.dot_dimension_numbers<[1], [0], [0], [1], [0, 0, 1, 1], [], []>} : vector<16x32xf32>, vector<32x96xf32>, vector<16x96xf32> -> vector<16x96xf32>
    %c0_97 = arith.constant 0 : index
    %c0_98 = arith.constant 0 : index
    %177 = vector.load %arg31[%c0_97, %c0_98] : memref<1x96xf32, #tpu.memory_space<vmem>>, vector<1x96xf32>
    %178 = vector.broadcast %177 : vector<1x96xf32> to vector<16x96xf32>
    %179 = arith.addf %176, %178 : vector<16x96xf32>
    %180 = vector.extract_strided_slice %174 {offsets = [0, 0], sizes = [16, 64], strides = [1, 1]} : vector<16x96xf32> to vector<16x64xf32>
    %181 = vector.extract_strided_slice %179 {offsets = [0, 0], sizes = [16, 64], strides = [1, 1]} : vector<16x96xf32> to vector<16x64xf32>
    %182 = arith.addf %180, %181 : vector<16x64xf32>
    %cst_99 = arith.constant 5.000000e-01 : f32
    %183 = vector.broadcast %cst_99 : f32 to vector<16x64xf32>
    %184 = arith.mulf %183, %182 : vector<16x64xf32>
    %185 = math.tanh %184 : vector<16x64xf32>
    %cst_100 = arith.constant 1.000000e+00 : f32
    %186 = vector.broadcast %cst_100 : f32 to vector<16x64xf32>
    %187 = arith.addf %185, %186 : vector<16x64xf32>
    %cst_101 = arith.constant 5.000000e-01 : f32
    %188 = vector.broadcast %cst_101 : f32 to vector<16x64xf32>
    %189 = arith.mulf %188, %187 : vector<16x64xf32>
    %190 = vector.extract_strided_slice %189 {offsets = [0, 0], sizes = [16, 32], strides = [1, 1]} : vector<16x64xf32> to vector<16x32xf32>
    %191 = vector.extract_strided_slice %189 {offsets = [0, 32], sizes = [16, 32], strides = [1, 1]} : vector<16x64xf32> to vector<16x32xf32>
    %192 = vector.extract_strided_slice %174 {offsets = [0, 64], sizes = [16, 32], strides = [1, 1]} : vector<16x96xf32> to vector<16x32xf32>
    %193 = vector.extract_strided_slice %179 {offsets = [0, 64], sizes = [16, 32], strides = [1, 1]} : vector<16x96xf32> to vector<16x32xf32>
    %194 = arith.mulf %190, %193 : vector<16x32xf32>
    %195 = arith.addf %192, %194 : vector<16x32xf32>
    %196 = math.tanh %195 : vector<16x32xf32>
    %cst_102 = arith.constant 1.000000e+00 : f32
    %197 = vector.broadcast %cst_102 : f32 to vector<16x32xf32>
    %198 = arith.subf %197, %191 : vector<16x32xf32>
    %199 = arith.mulf %198, %196 : vector<16x32xf32>
    %200 = arith.mulf %191, %5 : vector<16x32xf32>
    %201 = arith.addf %199, %200 : vector<16x32xf32>
    %c0_103 = arith.constant 0 : index
    %c0_104 = arith.constant 0 : index
    %202 = vector.load %arg23[%c0_103, %c0_104] : memref<32x128xf32, #tpu.memory_space<vmem>>, vector<32x128xf32>
    %cst_105 = arith.constant dense<0.000000e+00> : vector<16x128xf32>
    %203 = tpu.matmul %201, %202, %cst_105 {dimension_numbers = #tpu.dot_dimension_numbers<[1], [0], [0], [1], [0, 0, 1, 1], [], []>} : vector<16x32xf32>, vector<32x128xf32>, vector<16x128xf32> -> vector<16x128xf32>
    %c0_106 = arith.constant 0 : index
    %c0_107 = arith.constant 0 : index
    %204 = vector.load %arg24[%c0_106, %c0_107] : memref<32x128xf32, #tpu.memory_space<vmem>>, vector<32x128xf32>
    %cst_108 = arith.constant dense<0.000000e+00> : vector<16x128xf32>
    %205 = tpu.matmul %58, %204, %cst_108 {dimension_numbers = #tpu.dot_dimension_numbers<[1], [0], [0], [1], [0, 0, 1, 1], [], []>} : vector<16x32xf32>, vector<32x128xf32>, vector<16x128xf32> -> vector<16x128xf32>
    %206 = arith.addf %203, %205 : vector<16x128xf32>
    %c0_109 = arith.constant 0 : index
    %c0_110 = arith.constant 0 : index
    %207 = vector.load %arg25[%c0_109, %c0_110] : memref<1x128xf32, #tpu.memory_space<vmem>>, vector<1x128xf32>
    %208 = vector.broadcast %207 : vector<1x128xf32> to vector<16x128xf32>
    %209 = arith.addf %206, %208 : vector<16x128xf32>
    %cst_111 = arith.constant 5.000000e-01 : f32
    %210 = vector.broadcast %cst_111 : f32 to vector<16x128xf32>
    %211 = arith.mulf %210, %209 : vector<16x128xf32>
    %212 = math.tanh %211 : vector<16x128xf32>
    %cst_112 = arith.constant 1.000000e+00 : f32
    %213 = vector.broadcast %cst_112 : f32 to vector<16x128xf32>
    %214 = arith.addf %212, %213 : vector<16x128xf32>
    %cst_113 = arith.constant 5.000000e-01 : f32
    %215 = vector.broadcast %cst_113 : f32 to vector<16x128xf32>
    %216 = arith.mulf %215, %214 : vector<16x128xf32>
    %217 = arith.mulf %209, %216 : vector<16x128xf32>
    %c0_114 = arith.constant 0 : index
    %c0_115 = arith.constant 0 : index
    %218 = vector.load %arg26[%c0_114, %c0_115] : memref<128x32xf32, #tpu.memory_space<vmem>>, vector<128x32xf32>
    %cst_116 = arith.constant dense<0.000000e+00> : vector<16x32xf32>
    %219 = tpu.matmul %217, %218, %cst_116 {dimension_numbers = #tpu.dot_dimension_numbers<[1], [0], [0], [1], [0, 0, 1, 1], [], []>} : vector<16x128xf32>, vector<128x32xf32>, vector<16x32xf32> -> vector<16x32xf32>
    %c0_117 = arith.constant 0 : index
    %c0_118 = arith.constant 0 : index
    %220 = vector.load %arg27[%c0_117, %c0_118] : memref<1x32xf32, #tpu.memory_space<vmem>>, vector<1x32xf32>
    %221 = vector.broadcast %220 : vector<1x32xf32> to vector<16x32xf32>
    %222 = arith.addf %219, %221 : vector<16x32xf32>
    %c0_119 = arith.constant 0 : index
    %c0_120 = arith.constant 0 : index
    %223 = vector.load %arg9[%c0_119, %c0_120] : memref<8x16xf32, #tpu.memory_space<vmem>>, vector<8x16xf32>
    %224 = arith.addf %58, %222 : vector<16x32xf32>
    %cst_121 = arith.constant dense<0.000000e+00> : vector<8x32xf32>
    %225 = tpu.matmul %223, %224, %cst_121 {dimension_numbers = #tpu.dot_dimension_numbers<[1], [0], [0], [1], [0, 0, 1, 1], [], []>} : vector<8x16xf32>, vector<16x32xf32>, vector<8x32xf32> -> vector<8x32xf32>
    %c0_122 = arith.constant 0 : index
    %c0_123 = arith.constant 0 : index
    %226 = vector.load %arg19[%c0_122, %c0_123] : memref<32x128xf32, #tpu.memory_space<vmem>>, vector<32x128xf32>
    %cst_124 = arith.constant dense<0.000000e+00> : vector<8x128xf32>
    %227 = tpu.matmul %225, %226, %cst_124 {dimension_numbers = #tpu.dot_dimension_numbers<[1], [0], [0], [1], [0, 0, 1, 1], [], []>} : vector<8x32xf32>, vector<32x128xf32>, vector<8x128xf32> -> vector<8x128xf32>
    %c0_125 = arith.constant 0 : index
    %c0_126 = arith.constant 0 : index
    %228 = vector.load %arg20[%c0_125, %c0_126] : memref<1x128xf32, #tpu.memory_space<vmem>>, vector<1x128xf32>
    %229 = vector.broadcast %228 : vector<1x128xf32> to vector<8x128xf32>
    %230 = arith.addf %227, %229 : vector<8x128xf32>
    %cst_127 = arith.constant 5.000000e-01 : f32
    %231 = vector.broadcast %cst_127 : f32 to vector<8x128xf32>
    %232 = arith.mulf %231, %230 : vector<8x128xf32>
    %233 = math.tanh %232 : vector<8x128xf32>
    %cst_128 = arith.constant 1.000000e+00 : f32
    %234 = vector.broadcast %cst_128 : f32 to vector<8x128xf32>
    %235 = arith.addf %233, %234 : vector<8x128xf32>
    %cst_129 = arith.constant 5.000000e-01 : f32
    %236 = vector.broadcast %cst_129 : f32 to vector<8x128xf32>
    %237 = arith.mulf %236, %235 : vector<8x128xf32>
    %238 = arith.mulf %230, %237 : vector<8x128xf32>
    %c0_130 = arith.constant 0 : index
    %c0_131 = arith.constant 0 : index
    %239 = vector.load %arg21[%c0_130, %c0_131] : memref<128x32xf32, #tpu.memory_space<vmem>>, vector<128x32xf32>
    %cst_132 = arith.constant dense<0.000000e+00> : vector<8x32xf32>
    %240 = tpu.matmul %238, %239, %cst_132 {dimension_numbers = #tpu.dot_dimension_numbers<[1], [0], [0], [1], [0, 0, 1, 1], [], []>} : vector<8x128xf32>, vector<128x32xf32>, vector<8x32xf32> -> vector<8x32xf32>
    %c0_133 = arith.constant 0 : index
    %c0_134 = arith.constant 0 : index
    %241 = vector.load %arg22[%c0_133, %c0_134] : memref<1x32xf32, #tpu.memory_space<vmem>>, vector<1x32xf32>
    %242 = vector.broadcast %241 : vector<1x32xf32> to vector<8x32xf32>
    %243 = arith.addf %240, %242 : vector<8x32xf32>
    %c0_135 = arith.constant 0 : index
    %c0_136 = arith.constant 0 : index
    %244 = vector.load %arg10[%c0_135, %c0_136] : memref<16x8xf32, #tpu.memory_space<vmem>>, vector<16x8xf32>
    %cst_137 = arith.constant dense<0.000000e+00> : vector<16x32xf32>
    %245 = tpu.matmul %244, %243, %cst_137 {dimension_numbers = #tpu.dot_dimension_numbers<[1], [0], [0], [1], [0, 0, 1, 1], [], []>} : vector<16x8xf32>, vector<8x32xf32>, vector<16x32xf32> -> vector<16x32xf32>
    %246 = arith.addf %201, %245 : vector<16x32xf32>
    %c1 = arith.constant 1 : index
    %c0_138 = arith.constant 0 : index
    %c0_139 = arith.constant 0 : index
    %247 = vector.load %arg0[%c1, %c0_138, %c0_139] : memref<4x32x32xf32, #tpu.memory_space<vmem>>, vector<1x32x32xf32>
    %248 = vector.shape_cast %247 : vector<1x32x32xf32> to vector<32x32xf32>
    %cst_140 = arith.constant dense<0.000000e+00> : vector<16x32xf32>
    %249 = tpu.matmul %36, %248, %cst_140 {dimension_numbers = #tpu.dot_dimension_numbers<[1], [0], [0], [1], [0, 0, 1, 1], [], []>} : vector<16x32xf32>, vector<32x32xf32>, vector<16x32xf32> -> vector<16x32xf32>
    %c1_141 = arith.constant 1 : index
    %c0_142 = arith.constant 0 : index
    %c0_143 = arith.constant 0 : index
    %250 = vector.load %arg1[%c1_141, %c0_142, %c0_143] : memref<4x1x32xf32, #tpu.memory_space<vmem>>, vector<1x1x32xf32>
    %251 = vector.shape_cast %250 : vector<1x1x32xf32> to vector<1x32xf32>
    %252 = vector.broadcast %251 : vector<1x32xf32> to vector<16x32xf32>
    %253 = arith.addf %249, %252 : vector<16x32xf32>
    %c1_144 = arith.constant 1 : index
    %c0_145 = arith.constant 0 : index
    %c0_146 = arith.constant 0 : index
    %254 = vector.load %arg2[%c1_144, %c0_145, %c0_146] : memref<4x32x416xf32, #tpu.memory_space<vmem>>, vector<1x32x416xf32>
    %255 = vector.shape_cast %254 : vector<1x32x416xf32> to vector<32x416xf32>
    %cst_147 = arith.constant dense<0.000000e+00> : vector<16x416xf32>
    %256 = tpu.matmul %246, %255, %cst_147 {dimension_numbers = #tpu.dot_dimension_numbers<[1], [0], [0], [1], [0, 0, 1, 1], [], []>} : vector<16x32xf32>, vector<32x416xf32>, vector<16x416xf32> -> vector<16x416xf32>
    %c1_148 = arith.constant 1 : index
    %c0_149 = arith.constant 0 : index
    %c0_150 = arith.constant 0 : index
    %257 = vector.load %arg3[%c1_148, %c0_149, %c0_150] : memref<4x32x416xf32, #tpu.memory_space<vmem>>, vector<1x32x416xf32>
    %258 = vector.shape_cast %257 : vector<1x32x416xf32> to vector<32x416xf32>
    %cst_151 = arith.constant dense<0.000000e+00> : vector<16x416xf32>
    %259 = tpu.matmul %253, %258, %cst_151 {dimension_numbers = #tpu.dot_dimension_numbers<[1], [0], [0], [1], [0, 0, 1, 1], [], []>} : vector<16x32xf32>, vector<32x416xf32>, vector<16x416xf32> -> vector<16x416xf32>
    %260 = arith.addf %256, %259 : vector<16x416xf32>
    %c1_152 = arith.constant 1 : index
    %c0_153 = arith.constant 0 : index
    %c0_154 = arith.constant 0 : index
    %261 = vector.load %arg4[%c1_152, %c0_153, %c0_154] : memref<4x1x416xf32, #tpu.memory_space<vmem>>, vector<1x1x416xf32>
    %262 = vector.shape_cast %261 : vector<1x1x416xf32> to vector<1x416xf32>
    %263 = vector.broadcast %262 : vector<1x416xf32> to vector<16x416xf32>
    %264 = arith.addf %260, %263 : vector<16x416xf32>
    %cst_155 = arith.constant 0.000000e+00 : f32
    %265 = vector.broadcast %cst_155 : f32 to vector<16x32xf32>
    %266 = vector.extract_strided_slice %264 {offsets = [0, 0], sizes = [16, 32], strides = [1, 1]} : vector<16x416xf32> to vector<16x32xf32>
    %267 = vector.extract_strided_slice %264 {offsets = [0, 128], sizes = [16, 32], strides = [1, 1]} : vector<16x416xf32> to vector<16x32xf32>
    %268 = vector.extract_strided_slice %264 {offsets = [0, 256], sizes = [16, 32], strides = [1, 1]} : vector<16x416xf32> to vector<16x32xf32>
    %cst_156 = arith.constant dense<0.000000e+00> : vector<16x16xf32>
    %269 = tpu.matmul %266, %267, %cst_156 {dimension_numbers = #tpu.dot_dimension_numbers<[1], [1], [0], [0], [0, 0, 1, 0], [], []>} : vector<16x32xf32>, vector<16x32xf32>, vector<16x16xf32> -> vector<16x16xf32>
    %cst_157 = arith.constant 0.176776692 : f32
    %270 = vector.broadcast %cst_157 : f32 to vector<16x16xf32>
    %271 = arith.mulf %269, %270 : vector<16x16xf32>
    %272 = arith.addf %271, %59 : vector<16x16xf32>
    %cst_158 = arith.constant dense<0xFF800000> : vector<16xf32>
    %273 = vector.multi_reduction <maximumf>, %272, %cst_158 [1] : vector<16x16xf32> to vector<16xf32>
    %274 = vector.shape_cast %273 : vector<16xf32> to vector<16x1xf32>
    %275 = vector.broadcast %274 : vector<16x1xf32> to vector<16x16xf32>
    %276 = arith.subf %272, %275 : vector<16x16xf32>
    %277 = math.exp %276 : vector<16x16xf32>
    %cst_159 = arith.constant dense<0.000000e+00> : vector<16xf32>
    %278 = vector.multi_reduction <add>, %277, %cst_159 [1] : vector<16x16xf32> to vector<16xf32>
    %279 = vector.shape_cast %278 : vector<16xf32> to vector<16x1xf32>
    %280 = tpu.reciprocal %279 {approx = true} : vector<16x1xf32> -> vector<16x1xf32>
    %cst_160 = arith.constant dense<0.000000e+00> : vector<16x32xf32>
    %281 = tpu.matmul %277, %268, %cst_160 {dimension_numbers = #tpu.dot_dimension_numbers<[1], [0], [0], [1], [0, 0, 1, 1], [], []>} : vector<16x16xf32>, vector<16x32xf32>, vector<16x32xf32> -> vector<16x32xf32>
    %282 = vector.broadcast %280 : vector<16x1xf32> to vector<16x32xf32>
    %283 = arith.mulf %281, %282 : vector<16x32xf32>
    %284 = arith.addf %265, %283 : vector<16x32xf32>
    %285 = vector.extract_strided_slice %264 {offsets = [0, 32], sizes = [16, 32], strides = [1, 1]} : vector<16x416xf32> to vector<16x32xf32>
    %286 = vector.extract_strided_slice %264 {offsets = [0, 160], sizes = [16, 32], strides = [1, 1]} : vector<16x416xf32> to vector<16x32xf32>
    %287 = vector.extract_strided_slice %264 {offsets = [0, 288], sizes = [16, 32], strides = [1, 1]} : vector<16x416xf32> to vector<16x32xf32>
    %cst_161 = arith.constant dense<0.000000e+00> : vector<16x16xf32>
    %288 = tpu.matmul %285, %286, %cst_161 {dimension_numbers = #tpu.dot_dimension_numbers<[1], [1], [0], [0], [0, 0, 1, 0], [], []>} : vector<16x32xf32>, vector<16x32xf32>, vector<16x16xf32> -> vector<16x16xf32>
    %cst_162 = arith.constant 0.176776692 : f32
    %289 = vector.broadcast %cst_162 : f32 to vector<16x16xf32>
    %290 = arith.mulf %288, %289 : vector<16x16xf32>
    %291 = arith.addf %290, %59 : vector<16x16xf32>
    %cst_163 = arith.constant dense<0xFF800000> : vector<16xf32>
    %292 = vector.multi_reduction <maximumf>, %291, %cst_163 [1] : vector<16x16xf32> to vector<16xf32>
    %293 = vector.shape_cast %292 : vector<16xf32> to vector<16x1xf32>
    %294 = vector.broadcast %293 : vector<16x1xf32> to vector<16x16xf32>
    %295 = arith.subf %291, %294 : vector<16x16xf32>
    %296 = math.exp %295 : vector<16x16xf32>
    %cst_164 = arith.constant dense<0.000000e+00> : vector<16xf32>
    %297 = vector.multi_reduction <add>, %296, %cst_164 [1] : vector<16x16xf32> to vector<16xf32>
    %298 = vector.shape_cast %297 : vector<16xf32> to vector<16x1xf32>
    %299 = tpu.reciprocal %298 {approx = true} : vector<16x1xf32> -> vector<16x1xf32>
    %cst_165 = arith.constant dense<0.000000e+00> : vector<16x32xf32>
    %300 = tpu.matmul %296, %287, %cst_165 {dimension_numbers = #tpu.dot_dimension_numbers<[1], [0], [0], [1], [0, 0, 1, 1], [], []>} : vector<16x16xf32>, vector<16x32xf32>, vector<16x32xf32> -> vector<16x32xf32>
    %301 = vector.broadcast %299 : vector<16x1xf32> to vector<16x32xf32>
    %302 = arith.mulf %300, %301 : vector<16x32xf32>
    %303 = arith.addf %284, %302 : vector<16x32xf32>
    %304 = vector.extract_strided_slice %264 {offsets = [0, 64], sizes = [16, 32], strides = [1, 1]} : vector<16x416xf32> to vector<16x32xf32>
    %305 = vector.extract_strided_slice %264 {offsets = [0, 192], sizes = [16, 32], strides = [1, 1]} : vector<16x416xf32> to vector<16x32xf32>
    %306 = vector.extract_strided_slice %264 {offsets = [0, 320], sizes = [16, 32], strides = [1, 1]} : vector<16x416xf32> to vector<16x32xf32>
    %cst_166 = arith.constant dense<0.000000e+00> : vector<16x16xf32>
    %307 = tpu.matmul %304, %305, %cst_166 {dimension_numbers = #tpu.dot_dimension_numbers<[1], [1], [0], [0], [0, 0, 1, 0], [], []>} : vector<16x32xf32>, vector<16x32xf32>, vector<16x16xf32> -> vector<16x16xf32>
    %cst_167 = arith.constant 0.176776692 : f32
    %308 = vector.broadcast %cst_167 : f32 to vector<16x16xf32>
    %309 = arith.mulf %307, %308 : vector<16x16xf32>
    %310 = arith.addf %309, %59 : vector<16x16xf32>
    %cst_168 = arith.constant dense<0xFF800000> : vector<16xf32>
    %311 = vector.multi_reduction <maximumf>, %310, %cst_168 [1] : vector<16x16xf32> to vector<16xf32>
    %312 = vector.shape_cast %311 : vector<16xf32> to vector<16x1xf32>
    %313 = vector.broadcast %312 : vector<16x1xf32> to vector<16x16xf32>
    %314 = arith.subf %310, %313 : vector<16x16xf32>
    %315 = math.exp %314 : vector<16x16xf32>
    %cst_169 = arith.constant dense<0.000000e+00> : vector<16xf32>
    %316 = vector.multi_reduction <add>, %315, %cst_169 [1] : vector<16x16xf32> to vector<16xf32>
    %317 = vector.shape_cast %316 : vector<16xf32> to vector<16x1xf32>
    %318 = tpu.reciprocal %317 {approx = true} : vector<16x1xf32> -> vector<16x1xf32>
    %cst_170 = arith.constant dense<0.000000e+00> : vector<16x32xf32>
    %319 = tpu.matmul %315, %306, %cst_170 {dimension_numbers = #tpu.dot_dimension_numbers<[1], [0], [0], [1], [0, 0, 1, 1], [], []>} : vector<16x16xf32>, vector<16x32xf32>, vector<16x32xf32> -> vector<16x32xf32>
    %320 = vector.broadcast %318 : vector<16x1xf32> to vector<16x32xf32>
    %321 = arith.mulf %319, %320 : vector<16x32xf32>
    %322 = arith.addf %303, %321 : vector<16x32xf32>
    %323 = vector.extract_strided_slice %264 {offsets = [0, 96], sizes = [16, 32], strides = [1, 1]} : vector<16x416xf32> to vector<16x32xf32>
    %324 = vector.extract_strided_slice %264 {offsets = [0, 224], sizes = [16, 32], strides = [1, 1]} : vector<16x416xf32> to vector<16x32xf32>
    %325 = vector.extract_strided_slice %264 {offsets = [0, 352], sizes = [16, 32], strides = [1, 1]} : vector<16x416xf32> to vector<16x32xf32>
    %cst_171 = arith.constant dense<0.000000e+00> : vector<16x16xf32>
    %326 = tpu.matmul %323, %324, %cst_171 {dimension_numbers = #tpu.dot_dimension_numbers<[1], [1], [0], [0], [0, 0, 1, 0], [], []>} : vector<16x32xf32>, vector<16x32xf32>, vector<16x16xf32> -> vector<16x16xf32>
    %cst_172 = arith.constant 0.176776692 : f32
    %327 = vector.broadcast %cst_172 : f32 to vector<16x16xf32>
    %328 = arith.mulf %326, %327 : vector<16x16xf32>
    %329 = arith.addf %328, %59 : vector<16x16xf32>
    %cst_173 = arith.constant dense<0xFF800000> : vector<16xf32>
    %330 = vector.multi_reduction <maximumf>, %329, %cst_173 [1] : vector<16x16xf32> to vector<16xf32>
    %331 = vector.shape_cast %330 : vector<16xf32> to vector<16x1xf32>
    %332 = vector.broadcast %331 : vector<16x1xf32> to vector<16x16xf32>
    %333 = arith.subf %329, %332 : vector<16x16xf32>
    %334 = math.exp %333 : vector<16x16xf32>
    %cst_174 = arith.constant dense<0.000000e+00> : vector<16xf32>
    %335 = vector.multi_reduction <add>, %334, %cst_174 [1] : vector<16x16xf32> to vector<16xf32>
    %336 = vector.shape_cast %335 : vector<16xf32> to vector<16x1xf32>
    %337 = tpu.reciprocal %336 {approx = true} : vector<16x1xf32> -> vector<16x1xf32>
    %cst_175 = arith.constant dense<0.000000e+00> : vector<16x32xf32>
    %338 = tpu.matmul %334, %325, %cst_175 {dimension_numbers = #tpu.dot_dimension_numbers<[1], [0], [0], [1], [0, 0, 1, 1], [], []>} : vector<16x16xf32>, vector<16x32xf32>, vector<16x32xf32> -> vector<16x32xf32>
    %339 = vector.broadcast %337 : vector<16x1xf32> to vector<16x32xf32>
    %340 = arith.mulf %338, %339 : vector<16x32xf32>
    %341 = arith.addf %322, %340 : vector<16x32xf32>
    %342 = vector.extract_strided_slice %264 {offsets = [0, 384], sizes = [16, 32], strides = [1, 1]} : vector<16x416xf32> to vector<16x32xf32>
    %343 = vector.broadcast %62 : vector<16x1xf32> to vector<16x32xf32>
    %344 = arith.mulf %341, %343 : vector<16x32xf32>
    %345 = arith.addf %344, %342 : vector<16x32xf32>
    %cst_176 = arith.constant 5.000000e-01 : f32
    %346 = vector.broadcast %cst_176 : f32 to vector<16x32xf32>
    %347 = arith.mulf %346, %345 : vector<16x32xf32>
    %348 = math.tanh %347 : vector<16x32xf32>
    %cst_177 = arith.constant 1.000000e+00 : f32
    %349 = vector.broadcast %cst_177 : f32 to vector<16x32xf32>
    %350 = arith.addf %348, %349 : vector<16x32xf32>
    %cst_178 = arith.constant 5.000000e-01 : f32
    %351 = vector.broadcast %cst_178 : f32 to vector<16x32xf32>
    %352 = arith.mulf %351, %350 : vector<16x32xf32>
    %353 = arith.mulf %345, %352 : vector<16x32xf32>
    %c0_179 = arith.constant 0 : index
    %c0_180 = arith.constant 0 : index
    %354 = vector.load %arg28[%c0_179, %c0_180] : memref<32x96xf32, #tpu.memory_space<vmem>>, vector<32x96xf32>
    %cst_181 = arith.constant dense<0.000000e+00> : vector<16x96xf32>
    %355 = tpu.matmul %353, %354, %cst_181 {dimension_numbers = #tpu.dot_dimension_numbers<[1], [0], [0], [1], [0, 0, 1, 1], [], []>} : vector<16x32xf32>, vector<32x96xf32>, vector<16x96xf32> -> vector<16x96xf32>
    %c0_182 = arith.constant 0 : index
    %c0_183 = arith.constant 0 : index
    %356 = vector.load %arg30[%c0_182, %c0_183] : memref<1x96xf32, #tpu.memory_space<vmem>>, vector<1x96xf32>
    %357 = vector.broadcast %356 : vector<1x96xf32> to vector<16x96xf32>
    %358 = arith.addf %355, %357 : vector<16x96xf32>
    %c0_184 = arith.constant 0 : index
    %c0_185 = arith.constant 0 : index
    %359 = vector.load %arg29[%c0_184, %c0_185] : memref<32x96xf32, #tpu.memory_space<vmem>>, vector<32x96xf32>
    %cst_186 = arith.constant dense<0.000000e+00> : vector<16x96xf32>
    %360 = tpu.matmul %201, %359, %cst_186 {dimension_numbers = #tpu.dot_dimension_numbers<[1], [0], [0], [1], [0, 0, 1, 1], [], []>} : vector<16x32xf32>, vector<32x96xf32>, vector<16x96xf32> -> vector<16x96xf32>
    %c0_187 = arith.constant 0 : index
    %c0_188 = arith.constant 0 : index
    %361 = vector.load %arg31[%c0_187, %c0_188] : memref<1x96xf32, #tpu.memory_space<vmem>>, vector<1x96xf32>
    %362 = vector.broadcast %361 : vector<1x96xf32> to vector<16x96xf32>
    %363 = arith.addf %360, %362 : vector<16x96xf32>
    %364 = vector.extract_strided_slice %358 {offsets = [0, 0], sizes = [16, 64], strides = [1, 1]} : vector<16x96xf32> to vector<16x64xf32>
    %365 = vector.extract_strided_slice %363 {offsets = [0, 0], sizes = [16, 64], strides = [1, 1]} : vector<16x96xf32> to vector<16x64xf32>
    %366 = arith.addf %364, %365 : vector<16x64xf32>
    %cst_189 = arith.constant 5.000000e-01 : f32
    %367 = vector.broadcast %cst_189 : f32 to vector<16x64xf32>
    %368 = arith.mulf %367, %366 : vector<16x64xf32>
    %369 = math.tanh %368 : vector<16x64xf32>
    %cst_190 = arith.constant 1.000000e+00 : f32
    %370 = vector.broadcast %cst_190 : f32 to vector<16x64xf32>
    %371 = arith.addf %369, %370 : vector<16x64xf32>
    %cst_191 = arith.constant 5.000000e-01 : f32
    %372 = vector.broadcast %cst_191 : f32 to vector<16x64xf32>
    %373 = arith.mulf %372, %371 : vector<16x64xf32>
    %374 = vector.extract_strided_slice %373 {offsets = [0, 0], sizes = [16, 32], strides = [1, 1]} : vector<16x64xf32> to vector<16x32xf32>
    %375 = vector.extract_strided_slice %373 {offsets = [0, 32], sizes = [16, 32], strides = [1, 1]} : vector<16x64xf32> to vector<16x32xf32>
    %376 = vector.extract_strided_slice %358 {offsets = [0, 64], sizes = [16, 32], strides = [1, 1]} : vector<16x96xf32> to vector<16x32xf32>
    %377 = vector.extract_strided_slice %363 {offsets = [0, 64], sizes = [16, 32], strides = [1, 1]} : vector<16x96xf32> to vector<16x32xf32>
    %378 = arith.mulf %374, %377 : vector<16x32xf32>
    %379 = arith.addf %376, %378 : vector<16x32xf32>
    %380 = math.tanh %379 : vector<16x32xf32>
    %cst_192 = arith.constant 1.000000e+00 : f32
    %381 = vector.broadcast %cst_192 : f32 to vector<16x32xf32>
    %382 = arith.subf %381, %375 : vector<16x32xf32>
    %383 = arith.mulf %382, %380 : vector<16x32xf32>
    %384 = arith.mulf %375, %201 : vector<16x32xf32>
    %385 = arith.addf %383, %384 : vector<16x32xf32>
    %c0_193 = arith.constant 0 : index
    %c0_194 = arith.constant 0 : index
    %386 = vector.load %arg23[%c0_193, %c0_194] : memref<32x128xf32, #tpu.memory_space<vmem>>, vector<32x128xf32>
    %cst_195 = arith.constant dense<0.000000e+00> : vector<16x128xf32>
    %387 = tpu.matmul %385, %386, %cst_195 {dimension_numbers = #tpu.dot_dimension_numbers<[1], [0], [0], [1], [0, 0, 1, 1], [], []>} : vector<16x32xf32>, vector<32x128xf32>, vector<16x128xf32> -> vector<16x128xf32>
    %c0_196 = arith.constant 0 : index
    %c0_197 = arith.constant 0 : index
    %388 = vector.load %arg24[%c0_196, %c0_197] : memref<32x128xf32, #tpu.memory_space<vmem>>, vector<32x128xf32>
    %cst_198 = arith.constant dense<0.000000e+00> : vector<16x128xf32>
    %389 = tpu.matmul %245, %388, %cst_198 {dimension_numbers = #tpu.dot_dimension_numbers<[1], [0], [0], [1], [0, 0, 1, 1], [], []>} : vector<16x32xf32>, vector<32x128xf32>, vector<16x128xf32> -> vector<16x128xf32>
    %390 = arith.addf %387, %389 : vector<16x128xf32>
    %c0_199 = arith.constant 0 : index
    %c0_200 = arith.constant 0 : index
    %391 = vector.load %arg25[%c0_199, %c0_200] : memref<1x128xf32, #tpu.memory_space<vmem>>, vector<1x128xf32>
    %392 = vector.broadcast %391 : vector<1x128xf32> to vector<16x128xf32>
    %393 = arith.addf %390, %392 : vector<16x128xf32>
    %cst_201 = arith.constant 5.000000e-01 : f32
    %394 = vector.broadcast %cst_201 : f32 to vector<16x128xf32>
    %395 = arith.mulf %394, %393 : vector<16x128xf32>
    %396 = math.tanh %395 : vector<16x128xf32>
    %cst_202 = arith.constant 1.000000e+00 : f32
    %397 = vector.broadcast %cst_202 : f32 to vector<16x128xf32>
    %398 = arith.addf %396, %397 : vector<16x128xf32>
    %cst_203 = arith.constant 5.000000e-01 : f32
    %399 = vector.broadcast %cst_203 : f32 to vector<16x128xf32>
    %400 = arith.mulf %399, %398 : vector<16x128xf32>
    %401 = arith.mulf %393, %400 : vector<16x128xf32>
    %c0_204 = arith.constant 0 : index
    %c0_205 = arith.constant 0 : index
    %402 = vector.load %arg26[%c0_204, %c0_205] : memref<128x32xf32, #tpu.memory_space<vmem>>, vector<128x32xf32>
    %cst_206 = arith.constant dense<0.000000e+00> : vector<16x32xf32>
    %403 = tpu.matmul %401, %402, %cst_206 {dimension_numbers = #tpu.dot_dimension_numbers<[1], [0], [0], [1], [0, 0, 1, 1], [], []>} : vector<16x128xf32>, vector<128x32xf32>, vector<16x32xf32> -> vector<16x32xf32>
    %c0_207 = arith.constant 0 : index
    %c0_208 = arith.constant 0 : index
    %404 = vector.load %arg27[%c0_207, %c0_208] : memref<1x32xf32, #tpu.memory_space<vmem>>, vector<1x32xf32>
    %405 = vector.broadcast %404 : vector<1x32xf32> to vector<16x32xf32>
    %406 = arith.addf %403, %405 : vector<16x32xf32>
    %c0_209 = arith.constant 0 : index
    %c0_210 = arith.constant 0 : index
    %407 = vector.load %arg9[%c0_209, %c0_210] : memref<8x16xf32, #tpu.memory_space<vmem>>, vector<8x16xf32>
    %408 = arith.addf %245, %406 : vector<16x32xf32>
    %cst_211 = arith.constant dense<0.000000e+00> : vector<8x32xf32>
    %409 = tpu.matmul %407, %408, %cst_211 {dimension_numbers = #tpu.dot_dimension_numbers<[1], [0], [0], [1], [0, 0, 1, 1], [], []>} : vector<8x16xf32>, vector<16x32xf32>, vector<8x32xf32> -> vector<8x32xf32>
    %c0_212 = arith.constant 0 : index
    %c0_213 = arith.constant 0 : index
    %410 = vector.load %arg19[%c0_212, %c0_213] : memref<32x128xf32, #tpu.memory_space<vmem>>, vector<32x128xf32>
    %cst_214 = arith.constant dense<0.000000e+00> : vector<8x128xf32>
    %411 = tpu.matmul %409, %410, %cst_214 {dimension_numbers = #tpu.dot_dimension_numbers<[1], [0], [0], [1], [0, 0, 1, 1], [], []>} : vector<8x32xf32>, vector<32x128xf32>, vector<8x128xf32> -> vector<8x128xf32>
    %c0_215 = arith.constant 0 : index
    %c0_216 = arith.constant 0 : index
    %412 = vector.load %arg20[%c0_215, %c0_216] : memref<1x128xf32, #tpu.memory_space<vmem>>, vector<1x128xf32>
    %413 = vector.broadcast %412 : vector<1x128xf32> to vector<8x128xf32>
    %414 = arith.addf %411, %413 : vector<8x128xf32>
    %cst_217 = arith.constant 5.000000e-01 : f32
    %415 = vector.broadcast %cst_217 : f32 to vector<8x128xf32>
    %416 = arith.mulf %415, %414 : vector<8x128xf32>
    %417 = math.tanh %416 : vector<8x128xf32>
    %cst_218 = arith.constant 1.000000e+00 : f32
    %418 = vector.broadcast %cst_218 : f32 to vector<8x128xf32>
    %419 = arith.addf %417, %418 : vector<8x128xf32>
    %cst_219 = arith.constant 5.000000e-01 : f32
    %420 = vector.broadcast %cst_219 : f32 to vector<8x128xf32>
    %421 = arith.mulf %420, %419 : vector<8x128xf32>
    %422 = arith.mulf %414, %421 : vector<8x128xf32>
    %c0_220 = arith.constant 0 : index
    %c0_221 = arith.constant 0 : index
    %423 = vector.load %arg21[%c0_220, %c0_221] : memref<128x32xf32, #tpu.memory_space<vmem>>, vector<128x32xf32>
    %cst_222 = arith.constant dense<0.000000e+00> : vector<8x32xf32>
    %424 = tpu.matmul %422, %423, %cst_222 {dimension_numbers = #tpu.dot_dimension_numbers<[1], [0], [0], [1], [0, 0, 1, 1], [], []>} : vector<8x128xf32>, vector<128x32xf32>, vector<8x32xf32> -> vector<8x32xf32>
    %c0_223 = arith.constant 0 : index
    %c0_224 = arith.constant 0 : index
    %425 = vector.load %arg22[%c0_223, %c0_224] : memref<1x32xf32, #tpu.memory_space<vmem>>, vector<1x32xf32>
    %426 = vector.broadcast %425 : vector<1x32xf32> to vector<8x32xf32>
    %427 = arith.addf %424, %426 : vector<8x32xf32>
    %c0_225 = arith.constant 0 : index
    %c0_226 = arith.constant 0 : index
    %428 = vector.load %arg10[%c0_225, %c0_226] : memref<16x8xf32, #tpu.memory_space<vmem>>, vector<16x8xf32>
    %cst_227 = arith.constant dense<0.000000e+00> : vector<16x32xf32>
    %429 = tpu.matmul %428, %427, %cst_227 {dimension_numbers = #tpu.dot_dimension_numbers<[1], [0], [0], [1], [0, 0, 1, 1], [], []>} : vector<16x8xf32>, vector<8x32xf32>, vector<16x32xf32> -> vector<16x32xf32>
    %430 = arith.addf %385, %429 : vector<16x32xf32>
    %c2 = arith.constant 2 : index
    %c0_228 = arith.constant 0 : index
    %c0_229 = arith.constant 0 : index
    %431 = vector.load %arg0[%c2, %c0_228, %c0_229] : memref<4x32x32xf32, #tpu.memory_space<vmem>>, vector<1x32x32xf32>
    %432 = vector.shape_cast %431 : vector<1x32x32xf32> to vector<32x32xf32>
    %cst_230 = arith.constant dense<0.000000e+00> : vector<16x32xf32>
    %433 = tpu.matmul %36, %432, %cst_230 {dimension_numbers = #tpu.dot_dimension_numbers<[1], [0], [0], [1], [0, 0, 1, 1], [], []>} : vector<16x32xf32>, vector<32x32xf32>, vector<16x32xf32> -> vector<16x32xf32>
    %c2_231 = arith.constant 2 : index
    %c0_232 = arith.constant 0 : index
    %c0_233 = arith.constant 0 : index
    %434 = vector.load %arg1[%c2_231, %c0_232, %c0_233] : memref<4x1x32xf32, #tpu.memory_space<vmem>>, vector<1x1x32xf32>
    %435 = vector.shape_cast %434 : vector<1x1x32xf32> to vector<1x32xf32>
    %436 = vector.broadcast %435 : vector<1x32xf32> to vector<16x32xf32>
    %437 = arith.addf %433, %436 : vector<16x32xf32>
    %c2_234 = arith.constant 2 : index
    %c0_235 = arith.constant 0 : index
    %c0_236 = arith.constant 0 : index
    %438 = vector.load %arg2[%c2_234, %c0_235, %c0_236] : memref<4x32x416xf32, #tpu.memory_space<vmem>>, vector<1x32x416xf32>
    %439 = vector.shape_cast %438 : vector<1x32x416xf32> to vector<32x416xf32>
    %cst_237 = arith.constant dense<0.000000e+00> : vector<16x416xf32>
    %440 = tpu.matmul %430, %439, %cst_237 {dimension_numbers = #tpu.dot_dimension_numbers<[1], [0], [0], [1], [0, 0, 1, 1], [], []>} : vector<16x32xf32>, vector<32x416xf32>, vector<16x416xf32> -> vector<16x416xf32>
    %c2_238 = arith.constant 2 : index
    %c0_239 = arith.constant 0 : index
    %c0_240 = arith.constant 0 : index
    %441 = vector.load %arg3[%c2_238, %c0_239, %c0_240] : memref<4x32x416xf32, #tpu.memory_space<vmem>>, vector<1x32x416xf32>
    %442 = vector.shape_cast %441 : vector<1x32x416xf32> to vector<32x416xf32>
    %cst_241 = arith.constant dense<0.000000e+00> : vector<16x416xf32>
    %443 = tpu.matmul %437, %442, %cst_241 {dimension_numbers = #tpu.dot_dimension_numbers<[1], [0], [0], [1], [0, 0, 1, 1], [], []>} : vector<16x32xf32>, vector<32x416xf32>, vector<16x416xf32> -> vector<16x416xf32>
    %444 = arith.addf %440, %443 : vector<16x416xf32>
    %c2_242 = arith.constant 2 : index
    %c0_243 = arith.constant 0 : index
    %c0_244 = arith.constant 0 : index
    %445 = vector.load %arg4[%c2_242, %c0_243, %c0_244] : memref<4x1x416xf32, #tpu.memory_space<vmem>>, vector<1x1x416xf32>
    %446 = vector.shape_cast %445 : vector<1x1x416xf32> to vector<1x416xf32>
    %447 = vector.broadcast %446 : vector<1x416xf32> to vector<16x416xf32>
    %448 = arith.addf %444, %447 : vector<16x416xf32>
    %cst_245 = arith.constant 0.000000e+00 : f32
    %449 = vector.broadcast %cst_245 : f32 to vector<16x32xf32>
    %450 = vector.extract_strided_slice %448 {offsets = [0, 0], sizes = [16, 32], strides = [1, 1]} : vector<16x416xf32> to vector<16x32xf32>
    %451 = vector.extract_strided_slice %448 {offsets = [0, 128], sizes = [16, 32], strides = [1, 1]} : vector<16x416xf32> to vector<16x32xf32>
    %452 = vector.extract_strided_slice %448 {offsets = [0, 256], sizes = [16, 32], strides = [1, 1]} : vector<16x416xf32> to vector<16x32xf32>
    %cst_246 = arith.constant dense<0.000000e+00> : vector<16x16xf32>
    %453 = tpu.matmul %450, %451, %cst_246 {dimension_numbers = #tpu.dot_dimension_numbers<[1], [1], [0], [0], [0, 0, 1, 0], [], []>} : vector<16x32xf32>, vector<16x32xf32>, vector<16x16xf32> -> vector<16x16xf32>
    %cst_247 = arith.constant 0.176776692 : f32
    %454 = vector.broadcast %cst_247 : f32 to vector<16x16xf32>
    %455 = arith.mulf %453, %454 : vector<16x16xf32>
    %456 = arith.addf %455, %59 : vector<16x16xf32>
    %cst_248 = arith.constant dense<0xFF800000> : vector<16xf32>
    %457 = vector.multi_reduction <maximumf>, %456, %cst_248 [1] : vector<16x16xf32> to vector<16xf32>
    %458 = vector.shape_cast %457 : vector<16xf32> to vector<16x1xf32>
    %459 = vector.broadcast %458 : vector<16x1xf32> to vector<16x16xf32>
    %460 = arith.subf %456, %459 : vector<16x16xf32>
    %461 = math.exp %460 : vector<16x16xf32>
    %cst_249 = arith.constant dense<0.000000e+00> : vector<16xf32>
    %462 = vector.multi_reduction <add>, %461, %cst_249 [1] : vector<16x16xf32> to vector<16xf32>
    %463 = vector.shape_cast %462 : vector<16xf32> to vector<16x1xf32>
    %464 = tpu.reciprocal %463 {approx = true} : vector<16x1xf32> -> vector<16x1xf32>
    %cst_250 = arith.constant dense<0.000000e+00> : vector<16x32xf32>
    %465 = tpu.matmul %461, %452, %cst_250 {dimension_numbers = #tpu.dot_dimension_numbers<[1], [0], [0], [1], [0, 0, 1, 1], [], []>} : vector<16x16xf32>, vector<16x32xf32>, vector<16x32xf32> -> vector<16x32xf32>
    %466 = vector.broadcast %464 : vector<16x1xf32> to vector<16x32xf32>
    %467 = arith.mulf %465, %466 : vector<16x32xf32>
    %468 = arith.addf %449, %467 : vector<16x32xf32>
    %469 = vector.extract_strided_slice %448 {offsets = [0, 32], sizes = [16, 32], strides = [1, 1]} : vector<16x416xf32> to vector<16x32xf32>
    %470 = vector.extract_strided_slice %448 {offsets = [0, 160], sizes = [16, 32], strides = [1, 1]} : vector<16x416xf32> to vector<16x32xf32>
    %471 = vector.extract_strided_slice %448 {offsets = [0, 288], sizes = [16, 32], strides = [1, 1]} : vector<16x416xf32> to vector<16x32xf32>
    %cst_251 = arith.constant dense<0.000000e+00> : vector<16x16xf32>
    %472 = tpu.matmul %469, %470, %cst_251 {dimension_numbers = #tpu.dot_dimension_numbers<[1], [1], [0], [0], [0, 0, 1, 0], [], []>} : vector<16x32xf32>, vector<16x32xf32>, vector<16x16xf32> -> vector<16x16xf32>
    %cst_252 = arith.constant 0.176776692 : f32
    %473 = vector.broadcast %cst_252 : f32 to vector<16x16xf32>
    %474 = arith.mulf %472, %473 : vector<16x16xf32>
    %475 = arith.addf %474, %59 : vector<16x16xf32>
    %cst_253 = arith.constant dense<0xFF800000> : vector<16xf32>
    %476 = vector.multi_reduction <maximumf>, %475, %cst_253 [1] : vector<16x16xf32> to vector<16xf32>
    %477 = vector.shape_cast %476 : vector<16xf32> to vector<16x1xf32>
    %478 = vector.broadcast %477 : vector<16x1xf32> to vector<16x16xf32>
    %479 = arith.subf %475, %478 : vector<16x16xf32>
    %480 = math.exp %479 : vector<16x16xf32>
    %cst_254 = arith.constant dense<0.000000e+00> : vector<16xf32>
    %481 = vector.multi_reduction <add>, %480, %cst_254 [1] : vector<16x16xf32> to vector<16xf32>
    %482 = vector.shape_cast %481 : vector<16xf32> to vector<16x1xf32>
    %483 = tpu.reciprocal %482 {approx = true} : vector<16x1xf32> -> vector<16x1xf32>
    %cst_255 = arith.constant dense<0.000000e+00> : vector<16x32xf32>
    %484 = tpu.matmul %480, %471, %cst_255 {dimension_numbers = #tpu.dot_dimension_numbers<[1], [0], [0], [1], [0, 0, 1, 1], [], []>} : vector<16x16xf32>, vector<16x32xf32>, vector<16x32xf32> -> vector<16x32xf32>
    %485 = vector.broadcast %483 : vector<16x1xf32> to vector<16x32xf32>
    %486 = arith.mulf %484, %485 : vector<16x32xf32>
    %487 = arith.addf %468, %486 : vector<16x32xf32>
    %488 = vector.extract_strided_slice %448 {offsets = [0, 64], sizes = [16, 32], strides = [1, 1]} : vector<16x416xf32> to vector<16x32xf32>
    %489 = vector.extract_strided_slice %448 {offsets = [0, 192], sizes = [16, 32], strides = [1, 1]} : vector<16x416xf32> to vector<16x32xf32>
    %490 = vector.extract_strided_slice %448 {offsets = [0, 320], sizes = [16, 32], strides = [1, 1]} : vector<16x416xf32> to vector<16x32xf32>
    %cst_256 = arith.constant dense<0.000000e+00> : vector<16x16xf32>
    %491 = tpu.matmul %488, %489, %cst_256 {dimension_numbers = #tpu.dot_dimension_numbers<[1], [1], [0], [0], [0, 0, 1, 0], [], []>} : vector<16x32xf32>, vector<16x32xf32>, vector<16x16xf32> -> vector<16x16xf32>
    %cst_257 = arith.constant 0.176776692 : f32
    %492 = vector.broadcast %cst_257 : f32 to vector<16x16xf32>
    %493 = arith.mulf %491, %492 : vector<16x16xf32>
    %494 = arith.addf %493, %59 : vector<16x16xf32>
    %cst_258 = arith.constant dense<0xFF800000> : vector<16xf32>
    %495 = vector.multi_reduction <maximumf>, %494, %cst_258 [1] : vector<16x16xf32> to vector<16xf32>
    %496 = vector.shape_cast %495 : vector<16xf32> to vector<16x1xf32>
    %497 = vector.broadcast %496 : vector<16x1xf32> to vector<16x16xf32>
    %498 = arith.subf %494, %497 : vector<16x16xf32>
    %499 = math.exp %498 : vector<16x16xf32>
    %cst_259 = arith.constant dense<0.000000e+00> : vector<16xf32>
    %500 = vector.multi_reduction <add>, %499, %cst_259 [1] : vector<16x16xf32> to vector<16xf32>
    %501 = vector.shape_cast %500 : vector<16xf32> to vector<16x1xf32>
    %502 = tpu.reciprocal %501 {approx = true} : vector<16x1xf32> -> vector<16x1xf32>
    %cst_260 = arith.constant dense<0.000000e+00> : vector<16x32xf32>
    %503 = tpu.matmul %499, %490, %cst_260 {dimension_numbers = #tpu.dot_dimension_numbers<[1], [0], [0], [1], [0, 0, 1, 1], [], []>} : vector<16x16xf32>, vector<16x32xf32>, vector<16x32xf32> -> vector<16x32xf32>
    %504 = vector.broadcast %502 : vector<16x1xf32> to vector<16x32xf32>
    %505 = arith.mulf %503, %504 : vector<16x32xf32>
    %506 = arith.addf %487, %505 : vector<16x32xf32>
    %507 = vector.extract_strided_slice %448 {offsets = [0, 96], sizes = [16, 32], strides = [1, 1]} : vector<16x416xf32> to vector<16x32xf32>
    %508 = vector.extract_strided_slice %448 {offsets = [0, 224], sizes = [16, 32], strides = [1, 1]} : vector<16x416xf32> to vector<16x32xf32>
    %509 = vector.extract_strided_slice %448 {offsets = [0, 352], sizes = [16, 32], strides = [1, 1]} : vector<16x416xf32> to vector<16x32xf32>
    %cst_261 = arith.constant dense<0.000000e+00> : vector<16x16xf32>
    %510 = tpu.matmul %507, %508, %cst_261 {dimension_numbers = #tpu.dot_dimension_numbers<[1], [1], [0], [0], [0, 0, 1, 0], [], []>} : vector<16x32xf32>, vector<16x32xf32>, vector<16x16xf32> -> vector<16x16xf32>
    %cst_262 = arith.constant 0.176776692 : f32
    %511 = vector.broadcast %cst_262 : f32 to vector<16x16xf32>
    %512 = arith.mulf %510, %511 : vector<16x16xf32>
    %513 = arith.addf %512, %59 : vector<16x16xf32>
    %cst_263 = arith.constant dense<0xFF800000> : vector<16xf32>
    %514 = vector.multi_reduction <maximumf>, %513, %cst_263 [1] : vector<16x16xf32> to vector<16xf32>
    %515 = vector.shape_cast %514 : vector<16xf32> to vector<16x1xf32>
    %516 = vector.broadcast %515 : vector<16x1xf32> to vector<16x16xf32>
    %517 = arith.subf %513, %516 : vector<16x16xf32>
    %518 = math.exp %517 : vector<16x16xf32>
    %cst_264 = arith.constant dense<0.000000e+00> : vector<16xf32>
    %519 = vector.multi_reduction <add>, %518, %cst_264 [1] : vector<16x16xf32> to vector<16xf32>
    %520 = vector.shape_cast %519 : vector<16xf32> to vector<16x1xf32>
    %521 = tpu.reciprocal %520 {approx = true} : vector<16x1xf32> -> vector<16x1xf32>
    %cst_265 = arith.constant dense<0.000000e+00> : vector<16x32xf32>
    %522 = tpu.matmul %518, %509, %cst_265 {dimension_numbers = #tpu.dot_dimension_numbers<[1], [0], [0], [1], [0, 0, 1, 1], [], []>} : vector<16x16xf32>, vector<16x32xf32>, vector<16x32xf32> -> vector<16x32xf32>
    %523 = vector.broadcast %521 : vector<16x1xf32> to vector<16x32xf32>
    %524 = arith.mulf %522, %523 : vector<16x32xf32>
    %525 = arith.addf %506, %524 : vector<16x32xf32>
    %526 = vector.extract_strided_slice %448 {offsets = [0, 384], sizes = [16, 32], strides = [1, 1]} : vector<16x416xf32> to vector<16x32xf32>
    %527 = vector.broadcast %62 : vector<16x1xf32> to vector<16x32xf32>
    %528 = arith.mulf %525, %527 : vector<16x32xf32>
    %529 = arith.addf %528, %526 : vector<16x32xf32>
    %cst_266 = arith.constant 5.000000e-01 : f32
    %530 = vector.broadcast %cst_266 : f32 to vector<16x32xf32>
    %531 = arith.mulf %530, %529 : vector<16x32xf32>
    %532 = math.tanh %531 : vector<16x32xf32>
    %cst_267 = arith.constant 1.000000e+00 : f32
    %533 = vector.broadcast %cst_267 : f32 to vector<16x32xf32>
    %534 = arith.addf %532, %533 : vector<16x32xf32>
    %cst_268 = arith.constant 5.000000e-01 : f32
    %535 = vector.broadcast %cst_268 : f32 to vector<16x32xf32>
    %536 = arith.mulf %535, %534 : vector<16x32xf32>
    %537 = arith.mulf %529, %536 : vector<16x32xf32>
    %c0_269 = arith.constant 0 : index
    %c0_270 = arith.constant 0 : index
    %538 = vector.load %arg28[%c0_269, %c0_270] : memref<32x96xf32, #tpu.memory_space<vmem>>, vector<32x96xf32>
    %cst_271 = arith.constant dense<0.000000e+00> : vector<16x96xf32>
    %539 = tpu.matmul %537, %538, %cst_271 {dimension_numbers = #tpu.dot_dimension_numbers<[1], [0], [0], [1], [0, 0, 1, 1], [], []>} : vector<16x32xf32>, vector<32x96xf32>, vector<16x96xf32> -> vector<16x96xf32>
    %c0_272 = arith.constant 0 : index
    %c0_273 = arith.constant 0 : index
    %540 = vector.load %arg30[%c0_272, %c0_273] : memref<1x96xf32, #tpu.memory_space<vmem>>, vector<1x96xf32>
    %541 = vector.broadcast %540 : vector<1x96xf32> to vector<16x96xf32>
    %542 = arith.addf %539, %541 : vector<16x96xf32>
    %c0_274 = arith.constant 0 : index
    %c0_275 = arith.constant 0 : index
    %543 = vector.load %arg29[%c0_274, %c0_275] : memref<32x96xf32, #tpu.memory_space<vmem>>, vector<32x96xf32>
    %cst_276 = arith.constant dense<0.000000e+00> : vector<16x96xf32>
    %544 = tpu.matmul %385, %543, %cst_276 {dimension_numbers = #tpu.dot_dimension_numbers<[1], [0], [0], [1], [0, 0, 1, 1], [], []>} : vector<16x32xf32>, vector<32x96xf32>, vector<16x96xf32> -> vector<16x96xf32>
    %c0_277 = arith.constant 0 : index
    %c0_278 = arith.constant 0 : index
    %545 = vector.load %arg31[%c0_277, %c0_278] : memref<1x96xf32, #tpu.memory_space<vmem>>, vector<1x96xf32>
    %546 = vector.broadcast %545 : vector<1x96xf32> to vector<16x96xf32>
    %547 = arith.addf %544, %546 : vector<16x96xf32>
    %548 = vector.extract_strided_slice %542 {offsets = [0, 0], sizes = [16, 64], strides = [1, 1]} : vector<16x96xf32> to vector<16x64xf32>
    %549 = vector.extract_strided_slice %547 {offsets = [0, 0], sizes = [16, 64], strides = [1, 1]} : vector<16x96xf32> to vector<16x64xf32>
    %550 = arith.addf %548, %549 : vector<16x64xf32>
    %cst_279 = arith.constant 5.000000e-01 : f32
    %551 = vector.broadcast %cst_279 : f32 to vector<16x64xf32>
    %552 = arith.mulf %551, %550 : vector<16x64xf32>
    %553 = math.tanh %552 : vector<16x64xf32>
    %cst_280 = arith.constant 1.000000e+00 : f32
    %554 = vector.broadcast %cst_280 : f32 to vector<16x64xf32>
    %555 = arith.addf %553, %554 : vector<16x64xf32>
    %cst_281 = arith.constant 5.000000e-01 : f32
    %556 = vector.broadcast %cst_281 : f32 to vector<16x64xf32>
    %557 = arith.mulf %556, %555 : vector<16x64xf32>
    %558 = vector.extract_strided_slice %557 {offsets = [0, 0], sizes = [16, 32], strides = [1, 1]} : vector<16x64xf32> to vector<16x32xf32>
    %559 = vector.extract_strided_slice %557 {offsets = [0, 32], sizes = [16, 32], strides = [1, 1]} : vector<16x64xf32> to vector<16x32xf32>
    %560 = vector.extract_strided_slice %542 {offsets = [0, 64], sizes = [16, 32], strides = [1, 1]} : vector<16x96xf32> to vector<16x32xf32>
    %561 = vector.extract_strided_slice %547 {offsets = [0, 64], sizes = [16, 32], strides = [1, 1]} : vector<16x96xf32> to vector<16x32xf32>
    %562 = arith.mulf %558, %561 : vector<16x32xf32>
    %563 = arith.addf %560, %562 : vector<16x32xf32>
    %564 = math.tanh %563 : vector<16x32xf32>
    %cst_282 = arith.constant 1.000000e+00 : f32
    %565 = vector.broadcast %cst_282 : f32 to vector<16x32xf32>
    %566 = arith.subf %565, %559 : vector<16x32xf32>
    %567 = arith.mulf %566, %564 : vector<16x32xf32>
    %568 = arith.mulf %559, %385 : vector<16x32xf32>
    %569 = arith.addf %567, %568 : vector<16x32xf32>
    %c0_283 = arith.constant 0 : index
    %c0_284 = arith.constant 0 : index
    %570 = vector.load %arg23[%c0_283, %c0_284] : memref<32x128xf32, #tpu.memory_space<vmem>>, vector<32x128xf32>
    %cst_285 = arith.constant dense<0.000000e+00> : vector<16x128xf32>
    %571 = tpu.matmul %569, %570, %cst_285 {dimension_numbers = #tpu.dot_dimension_numbers<[1], [0], [0], [1], [0, 0, 1, 1], [], []>} : vector<16x32xf32>, vector<32x128xf32>, vector<16x128xf32> -> vector<16x128xf32>
    %c0_286 = arith.constant 0 : index
    %c0_287 = arith.constant 0 : index
    %572 = vector.load %arg24[%c0_286, %c0_287] : memref<32x128xf32, #tpu.memory_space<vmem>>, vector<32x128xf32>
    %cst_288 = arith.constant dense<0.000000e+00> : vector<16x128xf32>
    %573 = tpu.matmul %429, %572, %cst_288 {dimension_numbers = #tpu.dot_dimension_numbers<[1], [0], [0], [1], [0, 0, 1, 1], [], []>} : vector<16x32xf32>, vector<32x128xf32>, vector<16x128xf32> -> vector<16x128xf32>
    %574 = arith.addf %571, %573 : vector<16x128xf32>
    %c0_289 = arith.constant 0 : index
    %c0_290 = arith.constant 0 : index
    %575 = vector.load %arg25[%c0_289, %c0_290] : memref<1x128xf32, #tpu.memory_space<vmem>>, vector<1x128xf32>
    %576 = vector.broadcast %575 : vector<1x128xf32> to vector<16x128xf32>
    %577 = arith.addf %574, %576 : vector<16x128xf32>
    %cst_291 = arith.constant 5.000000e-01 : f32
    %578 = vector.broadcast %cst_291 : f32 to vector<16x128xf32>
    %579 = arith.mulf %578, %577 : vector<16x128xf32>
    %580 = math.tanh %579 : vector<16x128xf32>
    %cst_292 = arith.constant 1.000000e+00 : f32
    %581 = vector.broadcast %cst_292 : f32 to vector<16x128xf32>
    %582 = arith.addf %580, %581 : vector<16x128xf32>
    %cst_293 = arith.constant 5.000000e-01 : f32
    %583 = vector.broadcast %cst_293 : f32 to vector<16x128xf32>
    %584 = arith.mulf %583, %582 : vector<16x128xf32>
    %585 = arith.mulf %577, %584 : vector<16x128xf32>
    %c0_294 = arith.constant 0 : index
    %c0_295 = arith.constant 0 : index
    %586 = vector.load %arg26[%c0_294, %c0_295] : memref<128x32xf32, #tpu.memory_space<vmem>>, vector<128x32xf32>
    %cst_296 = arith.constant dense<0.000000e+00> : vector<16x32xf32>
    %587 = tpu.matmul %585, %586, %cst_296 {dimension_numbers = #tpu.dot_dimension_numbers<[1], [0], [0], [1], [0, 0, 1, 1], [], []>} : vector<16x128xf32>, vector<128x32xf32>, vector<16x32xf32> -> vector<16x32xf32>
    %c0_297 = arith.constant 0 : index
    %c0_298 = arith.constant 0 : index
    %588 = vector.load %arg27[%c0_297, %c0_298] : memref<1x32xf32, #tpu.memory_space<vmem>>, vector<1x32xf32>
    %589 = vector.broadcast %588 : vector<1x32xf32> to vector<16x32xf32>
    %590 = arith.addf %587, %589 : vector<16x32xf32>
    %c0_299 = arith.constant 0 : index
    %c0_300 = arith.constant 0 : index
    %591 = vector.load %arg9[%c0_299, %c0_300] : memref<8x16xf32, #tpu.memory_space<vmem>>, vector<8x16xf32>
    %592 = arith.addf %429, %590 : vector<16x32xf32>
    %cst_301 = arith.constant dense<0.000000e+00> : vector<8x32xf32>
    %593 = tpu.matmul %591, %592, %cst_301 {dimension_numbers = #tpu.dot_dimension_numbers<[1], [0], [0], [1], [0, 0, 1, 1], [], []>} : vector<8x16xf32>, vector<16x32xf32>, vector<8x32xf32> -> vector<8x32xf32>
    %c0_302 = arith.constant 0 : index
    %c0_303 = arith.constant 0 : index
    %594 = vector.load %arg19[%c0_302, %c0_303] : memref<32x128xf32, #tpu.memory_space<vmem>>, vector<32x128xf32>
    %cst_304 = arith.constant dense<0.000000e+00> : vector<8x128xf32>
    %595 = tpu.matmul %593, %594, %cst_304 {dimension_numbers = #tpu.dot_dimension_numbers<[1], [0], [0], [1], [0, 0, 1, 1], [], []>} : vector<8x32xf32>, vector<32x128xf32>, vector<8x128xf32> -> vector<8x128xf32>
    %c0_305 = arith.constant 0 : index
    %c0_306 = arith.constant 0 : index
    %596 = vector.load %arg20[%c0_305, %c0_306] : memref<1x128xf32, #tpu.memory_space<vmem>>, vector<1x128xf32>
    %597 = vector.broadcast %596 : vector<1x128xf32> to vector<8x128xf32>
    %598 = arith.addf %595, %597 : vector<8x128xf32>
    %cst_307 = arith.constant 5.000000e-01 : f32
    %599 = vector.broadcast %cst_307 : f32 to vector<8x128xf32>
    %600 = arith.mulf %599, %598 : vector<8x128xf32>
    %601 = math.tanh %600 : vector<8x128xf32>
    %cst_308 = arith.constant 1.000000e+00 : f32
    %602 = vector.broadcast %cst_308 : f32 to vector<8x128xf32>
    %603 = arith.addf %601, %602 : vector<8x128xf32>
    %cst_309 = arith.constant 5.000000e-01 : f32
    %604 = vector.broadcast %cst_309 : f32 to vector<8x128xf32>
    %605 = arith.mulf %604, %603 : vector<8x128xf32>
    %606 = arith.mulf %598, %605 : vector<8x128xf32>
    %c0_310 = arith.constant 0 : index
    %c0_311 = arith.constant 0 : index
    %607 = vector.load %arg21[%c0_310, %c0_311] : memref<128x32xf32, #tpu.memory_space<vmem>>, vector<128x32xf32>
    %cst_312 = arith.constant dense<0.000000e+00> : vector<8x32xf32>
    %608 = tpu.matmul %606, %607, %cst_312 {dimension_numbers = #tpu.dot_dimension_numbers<[1], [0], [0], [1], [0, 0, 1, 1], [], []>} : vector<8x128xf32>, vector<128x32xf32>, vector<8x32xf32> -> vector<8x32xf32>
    %c0_313 = arith.constant 0 : index
    %c0_314 = arith.constant 0 : index
    %609 = vector.load %arg22[%c0_313, %c0_314] : memref<1x32xf32, #tpu.memory_space<vmem>>, vector<1x32xf32>
    %610 = vector.broadcast %609 : vector<1x32xf32> to vector<8x32xf32>
    %611 = arith.addf %608, %610 : vector<8x32xf32>
    %c0_315 = arith.constant 0 : index
    %c0_316 = arith.constant 0 : index
    %612 = vector.load %arg10[%c0_315, %c0_316] : memref<16x8xf32, #tpu.memory_space<vmem>>, vector<16x8xf32>
    %cst_317 = arith.constant dense<0.000000e+00> : vector<16x32xf32>
    %613 = tpu.matmul %612, %611, %cst_317 {dimension_numbers = #tpu.dot_dimension_numbers<[1], [0], [0], [1], [0, 0, 1, 1], [], []>} : vector<16x8xf32>, vector<8x32xf32>, vector<16x32xf32> -> vector<16x32xf32>
    %614 = arith.addf %569, %613 : vector<16x32xf32>
    %c3 = arith.constant 3 : index
    %c0_318 = arith.constant 0 : index
    %c0_319 = arith.constant 0 : index
    %615 = vector.load %arg0[%c3, %c0_318, %c0_319] : memref<4x32x32xf32, #tpu.memory_space<vmem>>, vector<1x32x32xf32>
    %616 = vector.shape_cast %615 : vector<1x32x32xf32> to vector<32x32xf32>
    %cst_320 = arith.constant dense<0.000000e+00> : vector<16x32xf32>
    %617 = tpu.matmul %36, %616, %cst_320 {dimension_numbers = #tpu.dot_dimension_numbers<[1], [0], [0], [1], [0, 0, 1, 1], [], []>} : vector<16x32xf32>, vector<32x32xf32>, vector<16x32xf32> -> vector<16x32xf32>
    %c3_321 = arith.constant 3 : index
    %c0_322 = arith.constant 0 : index
    %c0_323 = arith.constant 0 : index
    %618 = vector.load %arg1[%c3_321, %c0_322, %c0_323] : memref<4x1x32xf32, #tpu.memory_space<vmem>>, vector<1x1x32xf32>
    %619 = vector.shape_cast %618 : vector<1x1x32xf32> to vector<1x32xf32>
    %620 = vector.broadcast %619 : vector<1x32xf32> to vector<16x32xf32>
    %621 = arith.addf %617, %620 : vector<16x32xf32>
    %c3_324 = arith.constant 3 : index
    %c0_325 = arith.constant 0 : index
    %c0_326 = arith.constant 0 : index
    %622 = vector.load %arg2[%c3_324, %c0_325, %c0_326] : memref<4x32x416xf32, #tpu.memory_space<vmem>>, vector<1x32x416xf32>
    %623 = vector.shape_cast %622 : vector<1x32x416xf32> to vector<32x416xf32>
    %cst_327 = arith.constant dense<0.000000e+00> : vector<16x416xf32>
    %624 = tpu.matmul %614, %623, %cst_327 {dimension_numbers = #tpu.dot_dimension_numbers<[1], [0], [0], [1], [0, 0, 1, 1], [], []>} : vector<16x32xf32>, vector<32x416xf32>, vector<16x416xf32> -> vector<16x416xf32>
    %c3_328 = arith.constant 3 : index
    %c0_329 = arith.constant 0 : index
    %c0_330 = arith.constant 0 : index
    %625 = vector.load %arg3[%c3_328, %c0_329, %c0_330] : memref<4x32x416xf32, #tpu.memory_space<vmem>>, vector<1x32x416xf32>
    %626 = vector.shape_cast %625 : vector<1x32x416xf32> to vector<32x416xf32>
    %cst_331 = arith.constant dense<0.000000e+00> : vector<16x416xf32>
    %627 = tpu.matmul %621, %626, %cst_331 {dimension_numbers = #tpu.dot_dimension_numbers<[1], [0], [0], [1], [0, 0, 1, 1], [], []>} : vector<16x32xf32>, vector<32x416xf32>, vector<16x416xf32> -> vector<16x416xf32>
    %628 = arith.addf %624, %627 : vector<16x416xf32>
    %c3_332 = arith.constant 3 : index
    %c0_333 = arith.constant 0 : index
    %c0_334 = arith.constant 0 : index
    %629 = vector.load %arg4[%c3_332, %c0_333, %c0_334] : memref<4x1x416xf32, #tpu.memory_space<vmem>>, vector<1x1x416xf32>
    %630 = vector.shape_cast %629 : vector<1x1x416xf32> to vector<1x416xf32>
    %631 = vector.broadcast %630 : vector<1x416xf32> to vector<16x416xf32>
    %632 = arith.addf %628, %631 : vector<16x416xf32>
    %cst_335 = arith.constant 0.000000e+00 : f32
    %633 = vector.broadcast %cst_335 : f32 to vector<16x32xf32>
    %634 = vector.extract_strided_slice %632 {offsets = [0, 0], sizes = [16, 32], strides = [1, 1]} : vector<16x416xf32> to vector<16x32xf32>
    %635 = vector.extract_strided_slice %632 {offsets = [0, 128], sizes = [16, 32], strides = [1, 1]} : vector<16x416xf32> to vector<16x32xf32>
    %636 = vector.extract_strided_slice %632 {offsets = [0, 256], sizes = [16, 32], strides = [1, 1]} : vector<16x416xf32> to vector<16x32xf32>
    %cst_336 = arith.constant dense<0.000000e+00> : vector<16x16xf32>
    %637 = tpu.matmul %634, %635, %cst_336 {dimension_numbers = #tpu.dot_dimension_numbers<[1], [1], [0], [0], [0, 0, 1, 0], [], []>} : vector<16x32xf32>, vector<16x32xf32>, vector<16x16xf32> -> vector<16x16xf32>
    %cst_337 = arith.constant 0.176776692 : f32
    %638 = vector.broadcast %cst_337 : f32 to vector<16x16xf32>
    %639 = arith.mulf %637, %638 : vector<16x16xf32>
    %640 = arith.addf %639, %59 : vector<16x16xf32>
    %cst_338 = arith.constant dense<0xFF800000> : vector<16xf32>
    %641 = vector.multi_reduction <maximumf>, %640, %cst_338 [1] : vector<16x16xf32> to vector<16xf32>
    %642 = vector.shape_cast %641 : vector<16xf32> to vector<16x1xf32>
    %643 = vector.broadcast %642 : vector<16x1xf32> to vector<16x16xf32>
    %644 = arith.subf %640, %643 : vector<16x16xf32>
    %645 = math.exp %644 : vector<16x16xf32>
    %cst_339 = arith.constant dense<0.000000e+00> : vector<16xf32>
    %646 = vector.multi_reduction <add>, %645, %cst_339 [1] : vector<16x16xf32> to vector<16xf32>
    %647 = vector.shape_cast %646 : vector<16xf32> to vector<16x1xf32>
    %648 = tpu.reciprocal %647 {approx = true} : vector<16x1xf32> -> vector<16x1xf32>
    %cst_340 = arith.constant dense<0.000000e+00> : vector<16x32xf32>
    %649 = tpu.matmul %645, %636, %cst_340 {dimension_numbers = #tpu.dot_dimension_numbers<[1], [0], [0], [1], [0, 0, 1, 1], [], []>} : vector<16x16xf32>, vector<16x32xf32>, vector<16x32xf32> -> vector<16x32xf32>
    %650 = vector.broadcast %648 : vector<16x1xf32> to vector<16x32xf32>
    %651 = arith.mulf %649, %650 : vector<16x32xf32>
    %652 = arith.addf %633, %651 : vector<16x32xf32>
    %653 = vector.extract_strided_slice %632 {offsets = [0, 32], sizes = [16, 32], strides = [1, 1]} : vector<16x416xf32> to vector<16x32xf32>
    %654 = vector.extract_strided_slice %632 {offsets = [0, 160], sizes = [16, 32], strides = [1, 1]} : vector<16x416xf32> to vector<16x32xf32>
    %655 = vector.extract_strided_slice %632 {offsets = [0, 288], sizes = [16, 32], strides = [1, 1]} : vector<16x416xf32> to vector<16x32xf32>
    %cst_341 = arith.constant dense<0.000000e+00> : vector<16x16xf32>
    %656 = tpu.matmul %653, %654, %cst_341 {dimension_numbers = #tpu.dot_dimension_numbers<[1], [1], [0], [0], [0, 0, 1, 0], [], []>} : vector<16x32xf32>, vector<16x32xf32>, vector<16x16xf32> -> vector<16x16xf32>
    %cst_342 = arith.constant 0.176776692 : f32
    %657 = vector.broadcast %cst_342 : f32 to vector<16x16xf32>
    %658 = arith.mulf %656, %657 : vector<16x16xf32>
    %659 = arith.addf %658, %59 : vector<16x16xf32>
    %cst_343 = arith.constant dense<0xFF800000> : vector<16xf32>
    %660 = vector.multi_reduction <maximumf>, %659, %cst_343 [1] : vector<16x16xf32> to vector<16xf32>
    %661 = vector.shape_cast %660 : vector<16xf32> to vector<16x1xf32>
    %662 = vector.broadcast %661 : vector<16x1xf32> to vector<16x16xf32>
    %663 = arith.subf %659, %662 : vector<16x16xf32>
    %664 = math.exp %663 : vector<16x16xf32>
    %cst_344 = arith.constant dense<0.000000e+00> : vector<16xf32>
    %665 = vector.multi_reduction <add>, %664, %cst_344 [1] : vector<16x16xf32> to vector<16xf32>
    %666 = vector.shape_cast %665 : vector<16xf32> to vector<16x1xf32>
    %667 = tpu.reciprocal %666 {approx = true} : vector<16x1xf32> -> vector<16x1xf32>
    %cst_345 = arith.constant dense<0.000000e+00> : vector<16x32xf32>
    %668 = tpu.matmul %664, %655, %cst_345 {dimension_numbers = #tpu.dot_dimension_numbers<[1], [0], [0], [1], [0, 0, 1, 1], [], []>} : vector<16x16xf32>, vector<16x32xf32>, vector<16x32xf32> -> vector<16x32xf32>
    %669 = vector.broadcast %667 : vector<16x1xf32> to vector<16x32xf32>
    %670 = arith.mulf %668, %669 : vector<16x32xf32>
    %671 = arith.addf %652, %670 : vector<16x32xf32>
    %672 = vector.extract_strided_slice %632 {offsets = [0, 64], sizes = [16, 32], strides = [1, 1]} : vector<16x416xf32> to vector<16x32xf32>
    %673 = vector.extract_strided_slice %632 {offsets = [0, 192], sizes = [16, 32], strides = [1, 1]} : vector<16x416xf32> to vector<16x32xf32>
    %674 = vector.extract_strided_slice %632 {offsets = [0, 320], sizes = [16, 32], strides = [1, 1]} : vector<16x416xf32> to vector<16x32xf32>
    %cst_346 = arith.constant dense<0.000000e+00> : vector<16x16xf32>
    %675 = tpu.matmul %672, %673, %cst_346 {dimension_numbers = #tpu.dot_dimension_numbers<[1], [1], [0], [0], [0, 0, 1, 0], [], []>} : vector<16x32xf32>, vector<16x32xf32>, vector<16x16xf32> -> vector<16x16xf32>
    %cst_347 = arith.constant 0.176776692 : f32
    %676 = vector.broadcast %cst_347 : f32 to vector<16x16xf32>
    %677 = arith.mulf %675, %676 : vector<16x16xf32>
    %678 = arith.addf %677, %59 : vector<16x16xf32>
    %cst_348 = arith.constant dense<0xFF800000> : vector<16xf32>
    %679 = vector.multi_reduction <maximumf>, %678, %cst_348 [1] : vector<16x16xf32> to vector<16xf32>
    %680 = vector.shape_cast %679 : vector<16xf32> to vector<16x1xf32>
    %681 = vector.broadcast %680 : vector<16x1xf32> to vector<16x16xf32>
    %682 = arith.subf %678, %681 : vector<16x16xf32>
    %683 = math.exp %682 : vector<16x16xf32>
    %cst_349 = arith.constant dense<0.000000e+00> : vector<16xf32>
    %684 = vector.multi_reduction <add>, %683, %cst_349 [1] : vector<16x16xf32> to vector<16xf32>
    %685 = vector.shape_cast %684 : vector<16xf32> to vector<16x1xf32>
    %686 = tpu.reciprocal %685 {approx = true} : vector<16x1xf32> -> vector<16x1xf32>
    %cst_350 = arith.constant dense<0.000000e+00> : vector<16x32xf32>
    %687 = tpu.matmul %683, %674, %cst_350 {dimension_numbers = #tpu.dot_dimension_numbers<[1], [0], [0], [1], [0, 0, 1, 1], [], []>} : vector<16x16xf32>, vector<16x32xf32>, vector<16x32xf32> -> vector<16x32xf32>
    %688 = vector.broadcast %686 : vector<16x1xf32> to vector<16x32xf32>
    %689 = arith.mulf %687, %688 : vector<16x32xf32>
    %690 = arith.addf %671, %689 : vector<16x32xf32>
    %691 = vector.extract_strided_slice %632 {offsets = [0, 96], sizes = [16, 32], strides = [1, 1]} : vector<16x416xf32> to vector<16x32xf32>
    %692 = vector.extract_strided_slice %632 {offsets = [0, 224], sizes = [16, 32], strides = [1, 1]} : vector<16x416xf32> to vector<16x32xf32>
    %693 = vector.extract_strided_slice %632 {offsets = [0, 352], sizes = [16, 32], strides = [1, 1]} : vector<16x416xf32> to vector<16x32xf32>
    %cst_351 = arith.constant dense<0.000000e+00> : vector<16x16xf32>
    %694 = tpu.matmul %691, %692, %cst_351 {dimension_numbers = #tpu.dot_dimension_numbers<[1], [1], [0], [0], [0, 0, 1, 0], [], []>} : vector<16x32xf32>, vector<16x32xf32>, vector<16x16xf32> -> vector<16x16xf32>
    %cst_352 = arith.constant 0.176776692 : f32
    %695 = vector.broadcast %cst_352 : f32 to vector<16x16xf32>
    %696 = arith.mulf %694, %695 : vector<16x16xf32>
    %697 = arith.addf %696, %59 : vector<16x16xf32>
    %cst_353 = arith.constant dense<0xFF800000> : vector<16xf32>
    %698 = vector.multi_reduction <maximumf>, %697, %cst_353 [1] : vector<16x16xf32> to vector<16xf32>
    %699 = vector.shape_cast %698 : vector<16xf32> to vector<16x1xf32>
    %700 = vector.broadcast %699 : vector<16x1xf32> to vector<16x16xf32>
    %701 = arith.subf %697, %700 : vector<16x16xf32>
    %702 = math.exp %701 : vector<16x16xf32>
    %cst_354 = arith.constant dense<0.000000e+00> : vector<16xf32>
    %703 = vector.multi_reduction <add>, %702, %cst_354 [1] : vector<16x16xf32> to vector<16xf32>
    %704 = vector.shape_cast %703 : vector<16xf32> to vector<16x1xf32>
    %705 = tpu.reciprocal %704 {approx = true} : vector<16x1xf32> -> vector<16x1xf32>
    %cst_355 = arith.constant dense<0.000000e+00> : vector<16x32xf32>
    %706 = tpu.matmul %702, %693, %cst_355 {dimension_numbers = #tpu.dot_dimension_numbers<[1], [0], [0], [1], [0, 0, 1, 1], [], []>} : vector<16x16xf32>, vector<16x32xf32>, vector<16x32xf32> -> vector<16x32xf32>
    %707 = vector.broadcast %705 : vector<16x1xf32> to vector<16x32xf32>
    %708 = arith.mulf %706, %707 : vector<16x32xf32>
    %709 = arith.addf %690, %708 : vector<16x32xf32>
    %710 = vector.extract_strided_slice %632 {offsets = [0, 384], sizes = [16, 32], strides = [1, 1]} : vector<16x416xf32> to vector<16x32xf32>
    %711 = vector.broadcast %62 : vector<16x1xf32> to vector<16x32xf32>
    %712 = arith.mulf %709, %711 : vector<16x32xf32>
    %713 = arith.addf %712, %710 : vector<16x32xf32>
    %cst_356 = arith.constant 5.000000e-01 : f32
    %714 = vector.broadcast %cst_356 : f32 to vector<16x32xf32>
    %715 = arith.mulf %714, %713 : vector<16x32xf32>
    %716 = math.tanh %715 : vector<16x32xf32>
    %cst_357 = arith.constant 1.000000e+00 : f32
    %717 = vector.broadcast %cst_357 : f32 to vector<16x32xf32>
    %718 = arith.addf %716, %717 : vector<16x32xf32>
    %cst_358 = arith.constant 5.000000e-01 : f32
    %719 = vector.broadcast %cst_358 : f32 to vector<16x32xf32>
    %720 = arith.mulf %719, %718 : vector<16x32xf32>
    %721 = arith.mulf %713, %720 : vector<16x32xf32>
    %c0_359 = arith.constant 0 : index
    %c0_360 = arith.constant 0 : index
    %722 = vector.load %arg28[%c0_359, %c0_360] : memref<32x96xf32, #tpu.memory_space<vmem>>, vector<32x96xf32>
    %cst_361 = arith.constant dense<0.000000e+00> : vector<16x96xf32>
    %723 = tpu.matmul %721, %722, %cst_361 {dimension_numbers = #tpu.dot_dimension_numbers<[1], [0], [0], [1], [0, 0, 1, 1], [], []>} : vector<16x32xf32>, vector<32x96xf32>, vector<16x96xf32> -> vector<16x96xf32>
    %c0_362 = arith.constant 0 : index
    %c0_363 = arith.constant 0 : index
    %724 = vector.load %arg30[%c0_362, %c0_363] : memref<1x96xf32, #tpu.memory_space<vmem>>, vector<1x96xf32>
    %725 = vector.broadcast %724 : vector<1x96xf32> to vector<16x96xf32>
    %726 = arith.addf %723, %725 : vector<16x96xf32>
    %c0_364 = arith.constant 0 : index
    %c0_365 = arith.constant 0 : index
    %727 = vector.load %arg29[%c0_364, %c0_365] : memref<32x96xf32, #tpu.memory_space<vmem>>, vector<32x96xf32>
    %cst_366 = arith.constant dense<0.000000e+00> : vector<16x96xf32>
    %728 = tpu.matmul %569, %727, %cst_366 {dimension_numbers = #tpu.dot_dimension_numbers<[1], [0], [0], [1], [0, 0, 1, 1], [], []>} : vector<16x32xf32>, vector<32x96xf32>, vector<16x96xf32> -> vector<16x96xf32>
    %c0_367 = arith.constant 0 : index
    %c0_368 = arith.constant 0 : index
    %729 = vector.load %arg31[%c0_367, %c0_368] : memref<1x96xf32, #tpu.memory_space<vmem>>, vector<1x96xf32>
    %730 = vector.broadcast %729 : vector<1x96xf32> to vector<16x96xf32>
    %731 = arith.addf %728, %730 : vector<16x96xf32>
    %732 = vector.extract_strided_slice %726 {offsets = [0, 0], sizes = [16, 64], strides = [1, 1]} : vector<16x96xf32> to vector<16x64xf32>
    %733 = vector.extract_strided_slice %731 {offsets = [0, 0], sizes = [16, 64], strides = [1, 1]} : vector<16x96xf32> to vector<16x64xf32>
    %734 = arith.addf %732, %733 : vector<16x64xf32>
    %cst_369 = arith.constant 5.000000e-01 : f32
    %735 = vector.broadcast %cst_369 : f32 to vector<16x64xf32>
    %736 = arith.mulf %735, %734 : vector<16x64xf32>
    %737 = math.tanh %736 : vector<16x64xf32>
    %cst_370 = arith.constant 1.000000e+00 : f32
    %738 = vector.broadcast %cst_370 : f32 to vector<16x64xf32>
    %739 = arith.addf %737, %738 : vector<16x64xf32>
    %cst_371 = arith.constant 5.000000e-01 : f32
    %740 = vector.broadcast %cst_371 : f32 to vector<16x64xf32>
    %741 = arith.mulf %740, %739 : vector<16x64xf32>
    %742 = vector.extract_strided_slice %741 {offsets = [0, 0], sizes = [16, 32], strides = [1, 1]} : vector<16x64xf32> to vector<16x32xf32>
    %743 = vector.extract_strided_slice %741 {offsets = [0, 32], sizes = [16, 32], strides = [1, 1]} : vector<16x64xf32> to vector<16x32xf32>
    %744 = vector.extract_strided_slice %726 {offsets = [0, 64], sizes = [16, 32], strides = [1, 1]} : vector<16x96xf32> to vector<16x32xf32>
    %745 = vector.extract_strided_slice %731 {offsets = [0, 64], sizes = [16, 32], strides = [1, 1]} : vector<16x96xf32> to vector<16x32xf32>
    %746 = arith.mulf %742, %745 : vector<16x32xf32>
    %747 = arith.addf %744, %746 : vector<16x32xf32>
    %748 = math.tanh %747 : vector<16x32xf32>
    %cst_372 = arith.constant 1.000000e+00 : f32
    %749 = vector.broadcast %cst_372 : f32 to vector<16x32xf32>
    %750 = arith.subf %749, %743 : vector<16x32xf32>
    %751 = arith.mulf %750, %748 : vector<16x32xf32>
    %752 = arith.mulf %743, %569 : vector<16x32xf32>
    %753 = arith.addf %751, %752 : vector<16x32xf32>
    %c0_373 = arith.constant 0 : index
    %c0_374 = arith.constant 0 : index
    %754 = vector.load %arg23[%c0_373, %c0_374] : memref<32x128xf32, #tpu.memory_space<vmem>>, vector<32x128xf32>
    %cst_375 = arith.constant dense<0.000000e+00> : vector<16x128xf32>
    %755 = tpu.matmul %753, %754, %cst_375 {dimension_numbers = #tpu.dot_dimension_numbers<[1], [0], [0], [1], [0, 0, 1, 1], [], []>} : vector<16x32xf32>, vector<32x128xf32>, vector<16x128xf32> -> vector<16x128xf32>
    %c0_376 = arith.constant 0 : index
    %c0_377 = arith.constant 0 : index
    %756 = vector.load %arg24[%c0_376, %c0_377] : memref<32x128xf32, #tpu.memory_space<vmem>>, vector<32x128xf32>
    %cst_378 = arith.constant dense<0.000000e+00> : vector<16x128xf32>
    %757 = tpu.matmul %613, %756, %cst_378 {dimension_numbers = #tpu.dot_dimension_numbers<[1], [0], [0], [1], [0, 0, 1, 1], [], []>} : vector<16x32xf32>, vector<32x128xf32>, vector<16x128xf32> -> vector<16x128xf32>
    %758 = arith.addf %755, %757 : vector<16x128xf32>
    %c0_379 = arith.constant 0 : index
    %c0_380 = arith.constant 0 : index
    %759 = vector.load %arg25[%c0_379, %c0_380] : memref<1x128xf32, #tpu.memory_space<vmem>>, vector<1x128xf32>
    %760 = vector.broadcast %759 : vector<1x128xf32> to vector<16x128xf32>
    %761 = arith.addf %758, %760 : vector<16x128xf32>
    %cst_381 = arith.constant 5.000000e-01 : f32
    %762 = vector.broadcast %cst_381 : f32 to vector<16x128xf32>
    %763 = arith.mulf %762, %761 : vector<16x128xf32>
    %764 = math.tanh %763 : vector<16x128xf32>
    %cst_382 = arith.constant 1.000000e+00 : f32
    %765 = vector.broadcast %cst_382 : f32 to vector<16x128xf32>
    %766 = arith.addf %764, %765 : vector<16x128xf32>
    %cst_383 = arith.constant 5.000000e-01 : f32
    %767 = vector.broadcast %cst_383 : f32 to vector<16x128xf32>
    %768 = arith.mulf %767, %766 : vector<16x128xf32>
    %769 = arith.mulf %761, %768 : vector<16x128xf32>
    %c0_384 = arith.constant 0 : index
    %c0_385 = arith.constant 0 : index
    %770 = vector.load %arg26[%c0_384, %c0_385] : memref<128x32xf32, #tpu.memory_space<vmem>>, vector<128x32xf32>
    %cst_386 = arith.constant dense<0.000000e+00> : vector<16x32xf32>
    %771 = tpu.matmul %769, %770, %cst_386 {dimension_numbers = #tpu.dot_dimension_numbers<[1], [0], [0], [1], [0, 0, 1, 1], [], []>} : vector<16x128xf32>, vector<128x32xf32>, vector<16x32xf32> -> vector<16x32xf32>
    %c0_387 = arith.constant 0 : index
    %c0_388 = arith.constant 0 : index
    %772 = vector.load %arg27[%c0_387, %c0_388] : memref<1x32xf32, #tpu.memory_space<vmem>>, vector<1x32xf32>
    %773 = vector.broadcast %772 : vector<1x32xf32> to vector<16x32xf32>
    %774 = arith.addf %771, %773 : vector<16x32xf32>
    %c0_389 = arith.constant 0 : index
    %c0_390 = arith.constant 0 : index
    %775 = vector.load %arg9[%c0_389, %c0_390] : memref<8x16xf32, #tpu.memory_space<vmem>>, vector<8x16xf32>
    %776 = arith.addf %613, %774 : vector<16x32xf32>
    %cst_391 = arith.constant dense<0.000000e+00> : vector<8x32xf32>
    %777 = tpu.matmul %775, %776, %cst_391 {dimension_numbers = #tpu.dot_dimension_numbers<[1], [0], [0], [1], [0, 0, 1, 1], [], []>} : vector<8x16xf32>, vector<16x32xf32>, vector<8x32xf32> -> vector<8x32xf32>
    %c0_392 = arith.constant 0 : index
    %c0_393 = arith.constant 0 : index
    %778 = vector.load %arg19[%c0_392, %c0_393] : memref<32x128xf32, #tpu.memory_space<vmem>>, vector<32x128xf32>
    %cst_394 = arith.constant dense<0.000000e+00> : vector<8x128xf32>
    %779 = tpu.matmul %777, %778, %cst_394 {dimension_numbers = #tpu.dot_dimension_numbers<[1], [0], [0], [1], [0, 0, 1, 1], [], []>} : vector<8x32xf32>, vector<32x128xf32>, vector<8x128xf32> -> vector<8x128xf32>
    %c0_395 = arith.constant 0 : index
    %c0_396 = arith.constant 0 : index
    %780 = vector.load %arg20[%c0_395, %c0_396] : memref<1x128xf32, #tpu.memory_space<vmem>>, vector<1x128xf32>
    %781 = vector.broadcast %780 : vector<1x128xf32> to vector<8x128xf32>
    %782 = arith.addf %779, %781 : vector<8x128xf32>
    %cst_397 = arith.constant 5.000000e-01 : f32
    %783 = vector.broadcast %cst_397 : f32 to vector<8x128xf32>
    %784 = arith.mulf %783, %782 : vector<8x128xf32>
    %785 = math.tanh %784 : vector<8x128xf32>
    %cst_398 = arith.constant 1.000000e+00 : f32
    %786 = vector.broadcast %cst_398 : f32 to vector<8x128xf32>
    %787 = arith.addf %785, %786 : vector<8x128xf32>
    %cst_399 = arith.constant 5.000000e-01 : f32
    %788 = vector.broadcast %cst_399 : f32 to vector<8x128xf32>
    %789 = arith.mulf %788, %787 : vector<8x128xf32>
    %790 = arith.mulf %782, %789 : vector<8x128xf32>
    %c0_400 = arith.constant 0 : index
    %c0_401 = arith.constant 0 : index
    %791 = vector.load %arg21[%c0_400, %c0_401] : memref<128x32xf32, #tpu.memory_space<vmem>>, vector<128x32xf32>
    %cst_402 = arith.constant dense<0.000000e+00> : vector<8x32xf32>
    %792 = tpu.matmul %790, %791, %cst_402 {dimension_numbers = #tpu.dot_dimension_numbers<[1], [0], [0], [1], [0, 0, 1, 1], [], []>} : vector<8x128xf32>, vector<128x32xf32>, vector<8x32xf32> -> vector<8x32xf32>
    %c0_403 = arith.constant 0 : index
    %c0_404 = arith.constant 0 : index
    %793 = vector.load %arg22[%c0_403, %c0_404] : memref<1x32xf32, #tpu.memory_space<vmem>>, vector<1x32xf32>
    %794 = vector.broadcast %793 : vector<1x32xf32> to vector<8x32xf32>
    %795 = arith.addf %792, %794 : vector<8x32xf32>
    %c0_405 = arith.constant 0 : index
    %c0_406 = arith.constant 0 : index
    %796 = vector.load %arg10[%c0_405, %c0_406] : memref<16x8xf32, #tpu.memory_space<vmem>>, vector<16x8xf32>
    %cst_407 = arith.constant dense<0.000000e+00> : vector<16x32xf32>
    %797 = tpu.matmul %796, %795, %cst_407 {dimension_numbers = #tpu.dot_dimension_numbers<[1], [0], [0], [1], [0, 0, 1, 1], [], []>} : vector<16x8xf32>, vector<8x32xf32>, vector<16x32xf32> -> vector<16x32xf32>
    %798 = arith.addf %753, %797 : vector<16x32xf32>
    %c0_408 = arith.constant 0 : index
    %c0_409 = arith.constant 0 : index
    %799 = vector.load %arg38[%c0_408, %c0_409] : memref<16x32xf32, #tpu.memory_space<vmem>>, vector<16x32xf32>
    tpu.vector_store %arg38[%c0_408, %c0_409], %798 {strides = array<i32>} : memref<16x32xf32, #tpu.memory_space<vmem>>, vector<16x32xf32>,
    %c0_410 = arith.constant 0 : index
    %c0_411 = arith.constant 0 : index
    %800 = vector.load %arg32[%c0_410, %c0_411] : memref<32x32xf32, #tpu.memory_space<vmem>>, vector<32x32xf32>
    %cst_412 = arith.constant dense<0.000000e+00> : vector<16x32xf32>
    %801 = tpu.matmul %798, %800, %cst_412 {dimension_numbers = #tpu.dot_dimension_numbers<[1], [0], [0], [1], [0, 0, 1, 1], [], []>} : vector<16x32xf32>, vector<32x32xf32>, vector<16x32xf32> -> vector<16x32xf32>
    %c0_413 = arith.constant 0 : index
    %c0_414 = arith.constant 0 : index
    %802 = vector.load %arg33[%c0_413, %c0_414] : memref<32x32xf32, #tpu.memory_space<vmem>>, vector<32x32xf32>
    %cst_415 = arith.constant dense<0.000000e+00> : vector<16x32xf32>
    %803 = tpu.matmul %798, %802, %cst_415 {dimension_numbers = #tpu.dot_dimension_numbers<[1], [0], [0], [1], [0, 0, 1, 1], [], []>} : vector<16x32xf32>, vector<32x32xf32>, vector<16x32xf32> -> vector<16x32xf32>
    %c0_416 = arith.constant 0 : index
    %c0_417 = arith.constant 0 : index
    %804 = vector.load %arg11[%c0_416, %c0_417] : memref<112x16xf32, #tpu.memory_space<vmem>>, vector<112x16xf32>
    %cst_418 = arith.constant dense<0.000000e+00> : vector<112x32xf32>
    %805 = tpu.matmul %804, %801, %cst_418 {dimension_numbers = #tpu.dot_dimension_numbers<[1], [0], [0], [1], [0, 0, 1, 1], [], []>} : vector<112x16xf32>, vector<16x32xf32>, vector<112x32xf32> -> vector<112x32xf32>
    %c0_419 = arith.constant 0 : index
    %c0_420 = arith.constant 0 : index
    %806 = vector.load %arg12[%c0_419, %c0_420] : memref<112x16xf32, #tpu.memory_space<vmem>>, vector<112x16xf32>
    %cst_421 = arith.constant dense<0.000000e+00> : vector<112x32xf32>
    %807 = tpu.matmul %806, %803, %cst_421 {dimension_numbers = #tpu.dot_dimension_numbers<[1], [0], [0], [1], [0, 0, 1, 1], [], []>} : vector<112x16xf32>, vector<16x32xf32>, vector<112x32xf32> -> vector<112x32xf32>
    %808 = arith.addf %805, %807 : vector<112x32xf32>
    %c0_422 = arith.constant 0 : index
    %c0_423 = arith.constant 0 : index
    %809 = vector.load %arg34[%c0_422, %c0_423] : memref<1x32xf32, #tpu.memory_space<vmem>>, vector<1x32xf32>
    %810 = vector.broadcast %809 : vector<1x32xf32> to vector<112x32xf32>
    %811 = arith.addf %808, %810 : vector<112x32xf32>
    %cst_424 = arith.constant 5.000000e-01 : f32
    %812 = vector.broadcast %cst_424 : f32 to vector<112x32xf32>
    %813 = arith.mulf %812, %811 : vector<112x32xf32>
    %814 = math.tanh %813 : vector<112x32xf32>
    %cst_425 = arith.constant 1.000000e+00 : f32
    %815 = vector.broadcast %cst_425 : f32 to vector<112x32xf32>
    %816 = arith.addf %814, %815 : vector<112x32xf32>
    %cst_426 = arith.constant 5.000000e-01 : f32
    %817 = vector.broadcast %cst_426 : f32 to vector<112x32xf32>
    %818 = arith.mulf %817, %816 : vector<112x32xf32>
    %819 = arith.mulf %811, %818 : vector<112x32xf32>
    %c0_427 = arith.constant 0 : index
    %c0_428 = arith.constant 0 : index
    %820 = vector.load %arg35[%c0_427, %c0_428] : memref<32x2xf32, #tpu.memory_space<vmem>>, vector<32x2xf32>
    %cst_429 = arith.constant dense<0.000000e+00> : vector<112x2xf32>
    %821 = tpu.matmul %819, %820, %cst_429 {dimension_numbers = #tpu.dot_dimension_numbers<[1], [0], [0], [1], [0, 0, 1, 1], [], []>} : vector<112x32xf32>, vector<32x2xf32>, vector<112x2xf32> -> vector<112x2xf32>
    %c0_430 = arith.constant 0 : index
    %c0_431 = arith.constant 0 : index
    %822 = vector.load %arg36[%c0_430, %c0_431] : memref<1x2xf32, #tpu.memory_space<vmem>>, vector<1x2xf32>
    %823 = vector.broadcast %822 : vector<1x2xf32> to vector<112x2xf32>
    %824 = arith.addf %821, %823 : vector<112x2xf32>
    %c0_432 = arith.constant 0 : index
    %c0_433 = arith.constant 0 : index
    %825 = vector.load %arg37[%c0_432, %c0_433] : memref<112x2xf32, #tpu.memory_space<vmem>>, vector<112x2xf32>
    tpu.vector_store %arg37[%c0_432, %c0_433], %824 {strides = array<i32>} : memref<112x2xf32, #tpu.memory_space<vmem>>, vector<112x2xf32>,
    return
  }
}

</mosaic_0001>

<bundles_post_ra>
// kernel: tpu_custom_call.1
= control target key start
LH: loop header
LB: loop body
LE: loop exit
PB: predicated region body
PF: predicated region fallthrough
CT: control target
= control target key end

     0   :  { %s6012_s6 = smov 1   ;;  %s6013_s10 = smov 2   ;;  %s7566_s0 = inlined_call_operand.smem [shape: u32[39], index: -1, kind: input, shape index: {}] }
   0x1   :  { %s6068_s5 = sld [smem:[%s7566_s0]]   ;;  %s6014_s14 = smov 3  }
   0x2   :  { %s6073_s9 = sld [smem:[%s7566_s0 + %s6012_s6]]   ;;  %s6015_s18 = smov 4  }
   0x3   :  { %s6078_s13 = sld [smem:[%s7566_s0 + %s6013_s10]]   ;;  %s6016_s22 = smov 5  }
   0x4   :  { %s6083_s17 = sld [smem:[%s7566_s0 + %s6014_s14]]   ;;  %s6017_s26 = smov 6  }
   0x5   :  { %s6088_s21 = sld [smem:[%s7566_s0 + %s6015_s18]]   ;;  %s6018_s30 = smov 7  }
   0x6   :  { %s6093_s25 = sld [smem:[%s7566_s0 + %s6016_s22]]   ;;  %s6019_s4 = smov 8  }
   0x7   :  { %s6098_s29 = sld [smem:[%s7566_s0 + %s6017_s26]]   ;;  %s6020_s10 = smov 9  }
   0x8   :  { %7599 = sst [smem:[#allocation11_spill]] %s6073_s9  ;;  %s6021_s15 = smov 10  }
   0x9   :  { %s6103_s3 = sld [smem:[%s7566_s0 + %s6018_s30]]   ;;  %s6022_s20 = smov 11  }
   0xa   :  { %s6108_s8 = sld [smem:[%s7566_s0 + %s6019_s4]]   ;;  %s6023_s26 = smov 12  }
   0xb   :  { %7600 = sst [smem:[#allocation12_spill]] %s6088_s21  ;;  %s6024_s1 = smov 13  }
   0xc   :  { %s6113_s14 = sld [smem:[%s7566_s0 + %s6020_s10]]   ;;  %s6025_s7 = smov 14  }
   0xd   :  { %s6118_s19 = sld [smem:[%s7566_s0 + %s6021_s15]]   ;;  %s6026_s15 = smov 15  }
   0xe   :  { %s6123_s24 = sld [smem:[%s7566_s0 + %s6022_s20]]   ;;  %s6027_s22 = smov 16  }
   0xf   :  { %7601 = sst [smem:[#allocation13_spill]] %s6103_s3  ;;  %s6028_s28 = smov 17  }
  0x10   :  { %7602 = sst [smem:[#allocation14_spill]] %s6108_s8 }
  0x11   :  { %s6128_s30 = sld [smem:[%s7566_s0 + %s6023_s26]]  }
  0x12   :  { %s6133_s6 = sld [smem:[%s7566_s0 + %s6024_s1]]  }
  0x13   :  { %7603 = sst [smem:[#allocation15_spill]] %s6118_s19 }
  0x14   :  { %7604 = sst [smem:[#allocation16_spill]] %s6123_s24 }
  0x15   :  { %s6138_s12 = sld [smem:[%s7566_s0 + %s6025_s7]]   ;;  %s6029_s7 = smov 18  }
  0x16   :  { %s6143_s20 = sld [smem:[%s7566_s0 + %s6026_s15]]   ;;  %s6030_s15 = smov 19  }
  0x17   :  { %7605 = sst [smem:[#allocation17_spill]] %s6128_s30 }
  0x18   :  { %s6148_s27 = sld [smem:[%s7566_s0 + %s6027_s22]]   ;;  %s6031_s22 = smov 20  }
  0x19   :  { %s6153_s4 = sld [smem:[%s7566_s0 + %s6028_s28]]   ;;  %s6032_s28 = smov 21  }
  0x1a   :  { %s6158_s24 = sld [smem:[%s7566_s0 + %s6029_s7]]   ;;  %s6033_s7 = smov 22  }
  0x1b   :  { %s6163_s30 = sld [smem:[%s7566_s0 + %s6030_s15]]   ;;  %s6034_s15 = smov 23  }
  0x1c   :  { %s6168_s8 = sld [smem:[%s7566_s0 + %s6031_s22]]   ;;  %s6035_s22 = smov 24  }
  0x1d   :  { %s6173_s3 = sld [smem:[%s7566_s0 + %s6032_s28]]   ;;  %s6036_s28 = smov 25  }
  0x1e   :  { %s6178_s21 = sld [smem:[%s7566_s0 + %s6033_s7]]   ;;  %s6037_s7 = smov 26  }
  0x1f   :  { %s6183_s9 = sld [smem:[%s7566_s0 + %s6034_s15]]   ;;  %s6038_s15 = smov 27  }
  0x20   :  { %s6188_s19 = sld [smem:[%s7566_s0 + %s6035_s22]]   ;;  %s6039_s22 = smov 28  }
  0x22   :  { %7606 = sst [smem:[#allocation18_spill]] %s6168_s8 }
  0x23   :  { %s6193_s8 = sld [smem:[%s7566_s0 + %s6036_s28]]   ;;  %s6040_s28 = smov 29  }
  0x24   :  { %7607 = sst [smem:[#allocation19_spill]] %s6178_s21 }
  0x25   :  { %7608 = sst [smem:[#allocation20_spill]] %s6183_s9 }
  0x26   :  { %7609 = sst [smem:[#allocation21_spill]] %s6188_s19 }
  0x27   :  { %s6198_s21 = sld [smem:[%s7566_s0 + %s6037_s7]]   ;;  %s6041_s7 = smov 30  }
  0x28   :  { %s6203_s9 = sld [smem:[%s7566_s0 + %s6038_s15]]   ;;  %s6042_s15 = smov 31  }
  0x29   :  { %7610 = sst [smem:[#allocation22_spill]] %s6193_s8 }
  0x2a   :  { %s6208_s19 = sld [smem:[%s7566_s0 + %s6039_s22]]   ;;  %s6043_s22 = smov 32  }
  0x2b   :  { %s6213_s8 = sld [smem:[%s7566_s0 + %s6040_s28]]   ;;  %s6044_s28 = smov 33  }
  0x2d   :  { %7611 = sst [smem:[#allocation23_spill]] %s6198_s21 }
  0x2e   :  { %7612 = sst [smem:[#allocation24_spill]] %s6203_s9 }
  0x2f   :  { %s6218_s21 = sld [smem:[%s7566_s0 + %s6041_s7]]   ;;  %s6045_s7 = smov 34  }
  0x30   :  { %7613 = sst [smem:[#allocation25_spill]] %s6208_s19 }
  0x31   :  { %7614 = sst [smem:[#allocation26_spill]] %s6213_s8 }
  0x32   :  { %s6223_s9 = sld [smem:[%s7566_s0 + %s6042_s15]]   ;;  %s6046_s15 = smov 35  }
  0x33   :  { %s6228_s19 = sld [smem:[%s7566_s0 + %s6043_s22]]   ;;  %s6047_s22 = smov 36  }
  0x34   :  { %s6233_s8 = sld [smem:[%s7566_s0 + %s6044_s28]]   ;;  %s6048_s28 = smov 37  }
  0x35   :  { %7615 = sst [smem:[#allocation27_spill]] %s6218_s21 }
  0x36   :  { %s6238_s21 = sld [smem:[%s7566_s0 + %s6045_s7]]   ;;  %s6049_s7 = smov 38  }
  0x38   :  { %7616 = sst [smem:[#allocation28_spill]] %s6223_s9 }
  0x39   :  { %7617 = sst [smem:[#allocation29_spill]] %s6228_s19 }
  0x3a   :  { %7618 = sst [smem:[#allocation30_spill]] %s6233_s8 }
  0x3b   :  { %s6243_s9 = sld [smem:[%s7566_s0 + %s6046_s15]]  }
  0x3c   :  { %7619 = sst [smem:[#allocation31_spill]] %s6238_s21 }
  0x3d   :  { %s6248_s19 = sld [smem:[%s7566_s0 + %s6047_s22]]  }
  0x3e   :  { %s6253_s8 = sld [smem:[%s7566_s0 + %s6048_s28]]  }
  0x3f   :  { %s6258_s21 = sld [smem:[%s7566_s0 + %s6049_s7]]  }
  0x40   :  { %83 = vsyncpa [#allocation3], 0 }
  0x41   :  { %84 = vsyncpa [#allocation6], 0 }
  0x42   :  { %85 = vsyncpa [#allocation4], 0  ;;  %s94_s15 = sshll.u32 %s6078_s13, 4  ;;  %s6050_s16 = smov [#allocation2]   ;;  %s95_s15 = int_to_ptr.hbm [resolvable:$true] %s94_s15 }
  0x43   :  { %s96_s18 = sshll.u32 %s6050_s16, 4  ;;  %s107_s22 = sshll.u32 %s6083_s17, 4  ;;  %s97_s18 = int_to_ptr.vmem [resolvable:$true] %s96_s18  ;;  %s108_s22 = int_to_ptr.hbm [resolvable:$true] %s107_s22 }
  0x44   :  { %s5934_s23 = sshra.s32 %s95_s15, 4  ;;  %s5938_s28 = scalar_lea.hbm %s6078_s13, 512  ;;  %s5935_s23 = int_to_ptr.hbm [resolvable:$true] %s5934_s23 }
  0x45   :  { %s5936_s26 = scalar_lea.hbm %s5935_s23, 512  ;;  %p5939_p1 = scmp.lt.s32.totalorder %s5935_s23, %s6078_s13 }
  0x46   :  { %p5937_p0 = scmp.ne.s32.totalorder %s5935_s23, %s5936_s26  ;;  %p5940_p2 = scmp.lt.s32.totalorder %s5938_s28, %s5936_s26 }
  0x48   :  { %p5941_p3 = por %p5940_p2, %p5939_p1 }
  0x4a   :  { %p5942_p4 = pnand %p5941_p3, %p5937_p0 }
  0x4c   :  { %5945 = shalt.err (!%p5942_p4)
}
  0x4d   :  { %s6051_s0 = smov 512   ;;  %s6052_s1 = smov 32  }
  0x4e   :  { %102 = dma.hbm_to_vmem [thread:$0]  %s95_s15, 8192, %s97_s18, [#allocation3], %s6051_s0, %s6051_s0, %s6052_s1  }
  0x4f   :  { %s6053_s2 = smov [#allocation5]   ;;  %s5958_s10 = sshra.s32 %s108_s22, 4  ;;  %s5959_s10 = int_to_ptr.hbm [resolvable:$true] %s5958_s10 }
  0x50   :  { %s109_s7 = sshll.u32 %s6053_s2, 4  ;;  %s5960_s11 = scalar_lea.hbm %s5959_s10, 512  ;;  %s110_s7 = int_to_ptr.vmem [resolvable:$true] %s109_s7 }
  0x51   :  { %p5961_p5 = scmp.ne.s32.totalorder %s5959_s10, %s5960_s11  ;;  %s5962_s16 = scalar_lea.hbm %s6083_s17, 512 }
  0x52   :  { %p5963_p6 = scmp.lt.s32.totalorder %s5959_s10, %s6083_s17  ;;  %p5964_p7 = scmp.lt.s32.totalorder %s5962_s16, %s5960_s11 }
  0x54   :  { %p5965_p8 = por %p5964_p7, %p5963_p6 }
  0x56   :  { %p5966_p9 = pnand %p5965_p8, %p5961_p5 }
  0x58   :  { %5969 = shalt.err (!%p5966_p9)
}
  0x59   :  { %115 = dma.hbm_to_vmem [thread:$0]  %s108_s22, 8192, %s110_s7, [#allocation6], %s6051_s0, %s6051_s0, %s6052_s1  }
  0x5a   :  { %6006 = dma.done.wait [#allocation3], 8192  }
  0x5b   :  { %6007 = vsyncadd [#allocation3], 4294959104 }
  0x5c   :  { %6008 = dma.done.wait [#allocation6], 8192  }
  0x5d   :  { %6009 = vsyncadd [#allocation6], 4294959104  ;;  %vm197_vm0 = vcmask 64512   ;;  %v192_v0 = vld [vmem:[%s6133_s6] sm:$0xff]  ;;  %v232_v1 = vld [vmem:[%s6143_s20 + $0x18] sm:$0xff]  ;;  %vm237_vm1 = vcmask 261120  }
  0x5e   :  { %v190_v2 = vld [vmem:[%s6093_s25] sm:$0xff]  ;;  %219 = vmatpush.msra.mxu0 %v192_v0  ;;  %256 = vmatpush.msra.mxu1 %v232_v1  ;;  %v231_v3 = vld [vmem:[%s6143_s20 + $0x10] sm:$0xff]  ;;  %v230_v4 = vld [vmem:[%s6143_s20 + $0x8] sm:$0xff]  ;;  %vm343_vm2 = vcmask 130048   ;;  %s7621_s13 = sld [smem:[#allocation18_spill]]  ;;  %s6054_s6 = smov 96  }
  0x5f   :  { %5107 = vmatmul.msk.f32.vlgmr.msra.gmra.mxu0 %vm197_vm0, %v190_v2  ;;  %v229_v5 = vld [vmem:[%s6143_s20] sm:$0xff]  ;;  %v292_v6 = vld [vmem:[%s6153_s4 + $0x78] sm:$0xff]  ;;  %v291_v7 = vld [vmem:[%s6153_s4 + $0x70] sm:$0xff]  ;;  %s7623_s17 = sld [smem:[#allocation19_spill]]  ;;  %s5053_s10 = sshll.u32 %s6258_s21, 4  ;;  %s5054_s10 = int_to_ptr.hbm [resolvable:$true] %s5053_s10 }
  0x60   :  { %257 = vmatpush.msra.mxu1 %v231_v3  ;;  %v227_v8 = vld [vmem:[%s6098_s29] sm:$0xff]  ;;  %297 = vmatpush.msra.mxu2 %v292_v6  ;;  %v290_v9 = vld [vmem:[%s6153_s4 + $0x68] sm:$0xff]  ;;  %v288_v13 = vld [vmem:[%s6153_s4 + $0x58] sm:$0xff]  ;;  %s7627_s20 = sld [smem:[#allocation21_spill]]  ;;  %s5994_s11 = sshra.s32 %s5054_s10, 4  ;;  %s5995_s11 = int_to_ptr.hbm [resolvable:$true] %s5994_s11 }
  0x61   :  { %v191_v10 = vld [vmem:[%s6093_s25 + $0x8] sm:$0xff]  ;;  %v289_v11 = vld [vmem:[%s6153_s4 + $0x60] sm:$0xff]  ;;  %v287_v14 = vld [vmem:[%s6153_s4 + $0x50] sm:$0xff]  ;;  %s7624_s25 = sld [smem:[#allocation15_spill]]  ;;  %s5996_s16 = scalar_lea.hbm %s5995_s11, 16 }
  0x62   :  { %258 = vmatpush.msra.mxu1 %v230_v4  ;;  %298 = vmatpush.msra.mxu2 %v291_v7  ;;  %v228_v12 = vld [vmem:[%s6098_s29 + $0x8] sm:$0xff]  ;;  %v285_v16 = vld [vmem:[%s6153_s4 + $0x40] sm:$0xff]  ;;  %v284_v17 = vld [vmem:[%s6153_s4 + $0x38] sm:$0xff]  ;;  %s7625_s29 = sld [smem:[#allocation11_spill]]  ;;  %p5997_p10 = scmp.ne.s32.totalorder %s5995_s11, %s5996_s16 }
  0x63   :  { %v286_v15 = vld [vmem:[%s6153_s4 + $0x48] sm:$0xff]  ;;  %v283_v18 = vld [vmem:[%s6153_s4 + $0x30] sm:$0xff]  ;;  %v281_v20 = vld [vmem:[%s6153_s4 + $0x20] sm:$0xff]  ;;  %s7630_s15 = sld [smem:[#allocation14_spill]]  ;;  %p5999_p11 = scmp.lt.s32.totalorder %s5995_s11, %s6258_s21 }
  0x64   :  { %259 = vmatpush.msra.mxu1 %v229_v5  ;;  %299 = vmatpush.msra.mxu2 %v290_v9  ;;  %v282_v19 = vld [vmem:[%s6153_s4 + $0x28] sm:$0xff]  ;;  %v280_v21 = vld [vmem:[%s6153_s4 + $0x18] sm:$0xff]  ;;  %v279_v22 = vld [vmem:[%s6153_s4 + $0x10] sm:$0xff]  ;;  %s7631_s18 = sld [smem:[#allocation28_spill]] }
  0x65   :  { %5109 = vmatmul.msk.f32.vlgmr.msra.gmra.mxu1 %vm237_vm1, %v227_v8  ;;  %v278_v23 = vld [vmem:[%s6153_s4 + $0x8] sm:$0xff]  ;;  %v277_v24 = vld [vmem:[%s6153_s4] sm:$0xff]  ;;  %v6297_v26 = vld [vmem:[#allocation2 + $0x78] sm:$0xff]  ;;  %s7629_s4 = sld [smem:[#allocation26_spill]] }
  0x66   :  { %300 = vmatpush.msra.mxu2 %v289_v11  ;;  %v6299_v27 = vld [vmem:[#allocation2 + $0x58] sm:$0xff]  ;;  %v5515_v29 = vld [vmem:[%s6148_s27] ss:$0 sm:$0xff]  ;;  %v6323_v41 = vld [vmem:[%s6163_s30 + $0x10] sm:$0xff]  ;;  %s7628_s27 = sld [smem:[#allocation13_spill]] }
  0x67   :  { %5108 = vmatmul.msk.f32.gmra.mxu0 %vm197_vm0, %v191_v10  ;;  %v6302_v28 = vld [vmem:[#allocation2 + $0x38] sm:$0xff]  ;;  %v5514_v32 = vld [vmem:[%s6138_s12] ss:$0 sm:$0xff]  ;;  %v6327_v43 = vld [vmem:[%s6163_s30 + $0x8] sm:$0xff]  ;;  %s6055_s12 = smov 64   ;;  %s7632_s22 = sld [smem:[#allocation25_spill]] }
  0x68   :  { %301 = vmatpush.msra.mxu2 %v288_v13  ;;  %v6306_v30 = vld [vmem:[#allocation2 + $0x18] sm:$0xff]  ;;  %v342_v38 = vld [vmem:[%s6113_s14] sm:$0xff]  ;;  %v482_v61 = vld [vmem:[%s6068_s5 + $0x10] sm:$0xff]  ;;  %s7635_s23 = sld [smem:[#allocation27_spill]] }
  0x69   :  { %v6318_v39 = vld [vmem:[%s6163_s30 + $0x18] sm:$0xff]  ;;  %v6334_v53 = vld [vmem:[%s6163_s30] sm:$0xff]  ;;  %v481_v0 = vld [vmem:[%s6068_s5 + $0x8] sm:$0xff]  ;;  %s7636_s26 = sld [smem:[#allocation20_spill]] }
  0x6a   :  { %302 = vmatpush.msra.mxu2 %v287_v14  ;;  %v5516_v56 = vld [vmem:[%s6158_s24] ss:$0 sm:$0xff]  ;;  %v483_v60 = vld [vmem:[%s6068_s5 + $0x18] sm:$0xff]  ;;  %v417_v1 = vld [vmem:[%s6173_s3 + $0x70] sm:$0xff]  ;;  %s7626_s24 = sld [smem:[#allocation12_spill]] }
  0x6b   :  { %5395 = vmatpush.msrb.mxu1 %v483_v60  ;;  %v418_v63 = vld [vmem:[%s6173_s3 + $0x78] sm:$0xff]  ;;  %v416_v3 = vld [vmem:[%s6173_s3 + $0x68] sm:$0xff]  ;;  %v480_v4 = vld [vmem:[%s6068_s5] sm:$0xff]  ;;  %s7638_s28 = sld [smem:[#allocation23_spill]] }
  0x6c   :  { %303 = vmatpush.msra.mxu2 %v286_v15  ;;  %423 = vmatpush.msrb.mxu0 %v418_v63  ;;  %v415_v5 = vld [vmem:[%s6173_s3 + $0x60] sm:$0xff]  ;;  %v414_v6 = vld [vmem:[%s6173_s3 + $0x58] sm:$0xff]  ;;  %v413_v7 = vld [vmem:[%s6173_s3 + $0x50] sm:$0xff]  ;;  %s7642_s0 = sld [smem:[#allocation22_spill]] }
  0x6d   :  { %5110 = vmatmul.msk.f32.gmra.mxu1 %vm237_vm1, %v228_v12  ;;  %v412_v9 = vld [vmem:[%s6173_s3 + $0x48] sm:$0xff]  ;;  %v535_v63 = vld [vmem:[#allocation5 + $0x10] sm:$0xff]  ;;  %s7643_s2 = sld [smem:[#allocation24_spill]] }
  0x6e   :  { %304 = vmatpush.msra.mxu2 %v285_v16  ;;  %5396 = vmatpush.msrb.mxu1 %v482_v61 }
  0x6f   :  { %424 = vmatpush.msrb.mxu0 %v417_v1  ;;  %v531_v1 = vld [vmem:[#allocation2 + $0x70] sm:$0xff] }
  0x70   :  { %305 = vmatpush.msra.mxu2 %v284_v17  ;;  %5397 = vmatpush.msrb.mxu1 %v481_v0  ;;  %v411_v17 = vld [vmem:[%s6173_s3 + $0x40] sm:$0xff] }
  0x71   :  { %425 = vmatpush.msrb.mxu0 %v416_v3  ;;  %v527_v3 = vld [vmem:[#allocation2 + $0x50] sm:$0xff] }
  0x72   :  { %306 = vmatpush.msra.mxu2 %v283_v18  ;;  %5398 = vmatpush.msrb.mxu1 %v480_v4 }
  0x73   :  { %426 = vmatpush.msrb.mxu0 %v415_v5  ;;  %v523_v5 = vld [vmem:[#allocation2 + $0x30] sm:$0xff] }
  0x74   :  { %307 = vmatpush.msra.mxu2 %v282_v19  ;;  %v410_v19 = vld [vmem:[%s6173_s3 + $0x38] sm:$0xff] }
  0x75   :  { %427 = vmatpush.msrb.mxu0 %v414_v6  ;;  %v536_v6 = vld [vmem:[#allocation5 + $0x18] sm:$0xff] }
  0x76   :  { %308 = vmatpush.msra.mxu2 %v281_v20  ;;  %v409_v20 = vld [vmem:[%s6173_s3 + $0x30] sm:$0xff] }
  0x77   :  { %428 = vmatpush.msrb.mxu0 %v413_v7  ;;  %v519_v7 = vld [vmem:[#allocation2 + $0x10] sm:$0xff] }
  0x78   :  { %309 = vmatpush.msra.mxu2 %v280_v21 }
  0x79   :  { %429 = vmatpush.msrb.mxu0 %v412_v9 }
  0x7a   :  { %310 = vmatpush.msra.mxu2 %v279_v22  ;;  %v408_v22 = vld [vmem:[%s6173_s3 + $0x28] sm:$0xff] }
  0x7b   :  { %430 = vmatpush.msrb.mxu0 %v411_v17 }
  0x7c   :  { %311 = vmatpush.msra.mxu2 %v278_v23  ;;  %v407_v23 = vld [vmem:[%s6173_s3 + $0x20] sm:$0xff] }
  0x7d   :  { %431 = vmatpush.msrb.mxu0 %v410_v19  ;;  %v444_v19 = vld [vmem:[%s7624_s25 + $0x8] sm:$0xff] }
  0x7e   :  { %312 = vmatpush.msra.mxu2 %v277_v24 }
  0x7f   :  { %432 = vmatpush.msrb.mxu0 %v409_v20  ;;  %v530_v20 = vld [vmem:[#allocation2 + $0x68] sm:$0xff] }
  0x80   :  { %734 = vmatpush.msrb.mxu2 %v6297_v26 }
  0x81   :  { %433 = vmatpush.msrb.mxu0 %v408_v22  ;;  %v529_v22 = vld [vmem:[#allocation2 + $0x60] sm:$0xff] }
  0x82   :  { %735 = vmatpush.msrb.mxu2 %v6299_v27 }
  0x83   :  { %434 = vmatpush.msrb.mxu0 %v407_v23  ;;  %v526_v23 = vld [vmem:[#allocation2 + $0x48] sm:$0xff] }
  0x84   :  { %736 = vmatpush.msrb.mxu2 %v6302_v28 }
  0x86   :  { %737 = vmatpush.msrb.mxu2 %v6306_v30 }
  0xdc   :  { %v221_v25 = vpop.f32.mrf.mxu0 }
  0xdd   :  { %v6313_v37 = vadd.f32 %v5514_v32, %v221_v25  ;;  %v406_v25 = vld [vmem:[%s6173_s3 + $0x18] sm:$0xff] }
  0xde   :  { %435 = vmatpush.msrb.mxu0 %v406_v25  ;;  %v522_v25 = vld [vmem:[#allocation2 + $0x28] sm:$0xff] }
  0xe2   :  { %v261_v31 = vpop.f32.mrf.mxu1 }
  0xe3   :  { %v262_v33 = vadd.f32 %v5515_v29, %v261_v31 }
  0xe4   :  { %v224_v34 = vpop.f32.mrf.mxu0 }
  0xe5   :  { %v267_v35 = vmul.f32 0.5, %v262_v33  ;;  %v6311_v36 = vadd.f32 %v5514_v32, %v224_v34  ;;  %v404_v32 = vld [vmem:[%s6173_s3 + $0x8] sm:$0xff] }
  0xe7   :  { %5529 = vtanh.f32 %v267_v35  ;;  %361 = vmatpush.msra.mxu3 %v6311_v36 }
  0xe9   :  { %362 = vmatpush.msra.mxu3 %v6313_v37 }
  0xea   :  { %v264_v40 = vpop.f32.mrf.mxu1  ;;  %5111 = vmatmul.msk.f32.vlgmr.msra.gmra.mxu3 %vm343_vm2, %v342_v38  ;;  %v5517_v38 = vld [vmem:[%s7621_s13] ss:$0 sm:$0xff] }
  0xeb   :  { %v265_v42 = vadd.f32 %v5515_v29, %v264_v40  ;;  %390 = vmatpush.msrb.mxu3 %v6318_v39  ;;  %v405_v29 = vld [vmem:[%s6173_s3 + $0x10] sm:$0xff] }
  0xec   :  { %436 = vmatpush.msrb.mxu0 %v405_v29 }
  0xed   :  { %v5530_v44 = vpop.eup %5529  ;;  %v268_v45 = vmul.f32 0.5, %v265_v42  ;;  %391 = vmatpush.msrb.mxu3 %v6323_v41 }
  0xee   :  { %v271_v46 = vadd.f32 1.0, %v5530_v44  ;;  %437 = vmatpush.msrb.mxu0 %v404_v32  ;;  %v518_v32 = vld [vmem:[#allocation2 + $0x8] sm:$0xff] }
  0xef   :  { %5531 = vtanh.f32 %v268_v45  ;;  %392 = vmatpush.msrb.mxu3 %v6327_v43 }
  0xf0   :  { %v273_v47 = vmul.f32 0.5, %v271_v46 }
  0xf1   :  { %393 = vmatpush.msrb.mxu3 %v6334_v53 }
  0xf2   :  { %v275_v48 = vmul.f32 %v273_v47, %v262_v33  ;;  %v403_v33 = vld [vmem:[%s6173_s3] sm:$0xff] }
  0xf3   :  { %438 = vmatpush.msrb.mxu0 %v403_v33 }
  0xf4   :  { %313 = vmatmul.f32.vlgmr.msra.gmra.mxu2 %v275_v48 }
  0xf5   :  { %v5532_v49 = vpop.eup %5531  ;;  %506 = vmatpush.msra.mxu0 %v483_v60  ;;  %v538_v60 = vld [vmem:[#allocation5 + $0x28] sm:$0xff] }
  0xf6   :  { %v272_v50 = vadd.f32 1.0, %v5532_v49 }
  0xf7   :  { %507 = vmatpush.msra.mxu0 %v482_v61  ;;  %v539_v61 = vld [vmem:[#allocation5 + $0x30] sm:$0xff] }
  0xf8   :  { %v274_v51 = vmul.f32 0.5, %v272_v50 }
  0xf9   :  { %508 = vmatpush.msra.mxu0 %v481_v0  ;;  %v548_v0 = vld [vmem:[#allocation5 + $0x78] sm:$0xff] }
  0xfa   :  { %v276_v52 = vmul.f32 %v274_v51, %v265_v42 }
  0xfb   :  { %509 = vmatpush.msra.mxu0 %v480_v4  ;;  %v540_v4 = vld [vmem:[#allocation5 + $0x38] sm:$0xff] }
  0xfc   :  { %316 = vmatmul.f32.gmra.mxu2 %v276_v52 }
 0x104   :  { %5131 = vmatmul.msk.f32.vlgmr.msrb.gmra.mxu2 %vm237_vm1, %v6313_v37 }
 0x16d   :  { %v364_v54 = vpop.f32.mrf.mxu3 }
 0x16e   :  { %5112 = vmatmul.msk.f32.vlgmr.msrb.gmra.mxu3 %vm237_vm1, %v364_v54 }
 0x177   :  { %v314_v55 = vpop.f32.mrf.mxu2 }
 0x178   :  { %v315_v18 = vadd.f32 %v5516_v56, %v314_v55 }
 0x17a   :  { %v322_v21 = vand.u32 2147483647, %v315_v18  ;;  %v320_v46 = vmax.f32 %v315_v18, 0.0 }
 0x17c   :  { %v324_v24 = vsub.f32 0.0, %v322_v21  ;;  %v533_v21 = vld [vmem:[#allocation5] sm:$0xff] }
 0x17e   :  { %v326_v31 = vmul.f32 1.442695, %v324_v24  ;;  %v525_v24 = vld [vmem:[#allocation2 + $0x40] sm:$0xff] }
 0x17f   :  { %v317_v57 = vpop.f32.mrf.mxu2 }
 0x180   :  { %v318_v58 = vadd.f32 %v5516_v56, %v317_v57  ;;  %v546_v56 = vld [vmem:[#allocation5 + $0x68] sm:$0xff]  ;;  %v547_v57 = vld [vmem:[#allocation5 + $0x70] sm:$0xff] }
 0x181   :  { %590 = vmatpush.msra.mxu1 %v546_v56 }
 0x182   :  { %v323_v59 = vand.u32 2147483647, %v318_v58  ;;  %v321_v11 = vmax.f32 %v318_v58, 0.0 }
 0x184   :  { %v325_v62 = vsub.f32 0.0, %v323_v59  ;;  %v543_v59 = vld [vmem:[#allocation5 + $0x50] sm:$0xff] }
 0x186   :  { %v328_v2 = vmul.f32 1.442695, %v325_v62  ;;  %v534_v62 = vld [vmem:[#allocation5 + $0x8] sm:$0xff] }
 0x188   :  { %5533 = vpow2.f32 %v328_v2  ;;  %v544_v2 = vld [vmem:[#allocation5 + $0x58] sm:$0xff] }
 0x18e   :  { %v5534_v8 = vpop.eup %5533 }
 0x18f   :  { %v331_v10 = vadd.f32 1.0, %v5534_v8  ;;  %v5519_v8 = vld [vmem:[%s7623_s17] ss:$0 sm:$0xff] }
 0x191   :  { %5535 = vlog2.f32 %v331_v10 }
 0x197   :  { %v5536_v12 = vpop.eup %5535 }
 0x198   :  { %v335_v13 = vmul.f32 0.6931472, %v5536_v12  ;;  %v545_v12 = vld [vmem:[#allocation5 + $0x60] sm:$0xff] }
 0x19a   :  { %v337_v14 = vadd.f32 %v335_v13, %v321_v11  ;;  %v443_v11 = vld [vmem:[%s7624_s25] sm:$0xff] }
 0x19b   :  { %v541_v13 = vld [vmem:[#allocation5 + $0x40] sm:$0xff] }
 0x19c   :  { %5537 = vtanh.f32 %v337_v14  ;;  %v537_v14 = vld [vmem:[#allocation5 + $0x20] sm:$0xff] }
 0x19d   :  { %5539 = vpow2.f32 %v326_v31  ;;  %v521_v31 = vld [vmem:[#allocation2 + $0x20] sm:$0xff] }
 0x1a2   :  { %v5538_v15 = vpop.eup %5537 }
 0x1a3   :  { %v6350_v16 = vmul.f32 %v5538_v15, %v318_v58  ;;  %v5540_v34 = vpop.eup %5539  ;;  %v542_v58 = vld [vmem:[#allocation5 + $0x48] sm:$0xff]  ;;  %v5518_v15 = vld [vmem:[%s7625_s29] ss:$0 sm:$0xff] }
 0x1a4   :  { %v330_v35 = vadd.f32 1.0, %v5540_v34  ;;  %591 = vmatpush.msra.mxu1 %v542_v58  ;;  %v517_v34 = vld [vmem:[#allocation2] sm:$0xff] }
 0x1a5   :  { %7620 = vst [vmem:[#allocation32_spill] sm:$0xff] %v6350_v16  ;;  %5116 = vmatmul.msk.f32.vlgmr.msrb.gmra.mxu1 %vm237_vm1, %v6350_v16 }
 0x1a6   :  { %5541 = vlog2.f32 %v330_v35  ;;  %592 = vmatpush.msra.mxu1 %v538_v60 }
 0x1a8   :  { %593 = vmatpush.msra.mxu1 %v534_v62 }
 0x1aa   :  { %636 = vmatpush.msrb.mxu1 %v548_v0 }
 0x1ac   :  { %v5542_v45 = vpop.eup %5541  ;;  %637 = vmatpush.msrb.mxu1 %v544_v2 }
 0x1ad   :  { %v333_v47 = vmul.f32 0.6931472, %v5542_v45  ;;  %v6407_v45 = vld [vmem:[%s7626_s24] sm:$0xf] }
 0x1ae   :  { %638 = vmatpush.msrb.mxu1 %v540_v4 }
 0x1af   :  { %v336_v49 = vadd.f32 %v333_v47, %v320_v46  ;;  %v749_v47 = vperm.slane %v6407_v45, 2 }
 0x1b0   :  { %639 = vmatpush.msrb.mxu1 %v536_v6 }
 0x1f1   :  { %v395_v40 = vpop.f32.mrf.mxu3 }
 0x1f2   :  { %v396_v42 = vadd.f32 %v5517_v38, %v395_v40 }
 0x1f4   :  { %v398_v44 = vmul.f32 0.5, %v396_v42 }
 0x1f6   :  { %5543 = vtanh.f32 %v398_v44 }
 0x1f7   :  { %5545 = vtanh.f32 %v336_v49 }
 0x1fc   :  { %v5544_v48 = vpop.eup %5543 }
 0x1fd   :  { %v400_v50 = vadd.f32 1.0, %v5544_v48  ;;  %v5546_v54 = vpop.eup %5545 }
 0x1fe   :  { %v6364_v55 = vmul.f32 %v5546_v54, %v315_v18 }
 0x1ff   :  { %v401_v51 = vmul.f32 0.5, %v400_v50 }
 0x200   :  { %7622 = vst [vmem:[#allocation33_spill] sm:$0xff] %v6364_v55 }
 0x201   :  { %v402_v52 = vmul.f32 %v401_v51, %v396_v42 }
 0x203   :  { %439 = vmatmul.f32.vlgmr.msrb.gmra.mxu0 %v402_v52 }
 0x204   :  { %613 = vmatpush.msrb.mxu0 %v547_v57  ;;  %v747_v57 = vperm.slane %v6407_v45, 0 }
 0x206   :  { %614 = vmatpush.msrb.mxu0 %v543_v59 }
 0x208   :  { %615 = vmatpush.msrb.mxu0 %v539_v61 }
 0x20a   :  { %616 = vmatpush.msrb.mxu0 %v535_v63 }
 0x20b   :  { %5115 = vmatmul.msk.f32.vlgmr.msra.gmra.mxu0 %vm237_vm1, %v6364_v55 }
 0x20c   :  { %711 = vmatpush.msra.mxu0 %v531_v1  ;;  %v748_v1 = vperm.slane %v6407_v45, 1 }
 0x20e   :  { %712 = vmatpush.msra.mxu0 %v527_v3 }
 0x210   :  { %713 = vmatpush.msra.mxu0 %v523_v5 }
 0x212   :  { %714 = vmatpush.msra.mxu0 %v519_v7 }
 0x222   :  { %v514_v29 = vpop.f32.mrf.mxu1 }
 0x223   :  { %v515_v33 = vadd.f32 %v5518_v15, %v514_v29 }
 0x280   :  { %v440_v9 = vpop.f32.mrf.mxu0 }
 0x281   :  { %v441_v10 = vadd.f32 %v5519_v8, %v440_v9 }
 0x283   :  { %466 = vmatpush.msra.mxu3 %v441_v10 }
 0x284   :  { %5113 = vmatmul.msk.f32.vlgmr.msra.gmra.mxu3 %vm197_vm0, %v443_v11 }
 0x285   :  { %567 = vmatpush.msrb.mxu3 %v545_v12 }
 0x287   :  { %568 = vmatpush.msrb.mxu3 %v541_v13 }
 0x288   :  { %v511_v17 = vpop.f32.mrf.mxu0 }
 0x289   :  { %v512_v18 = vadd.f32 %v5518_v15, %v511_v17  ;;  %569 = vmatpush.msrb.mxu3 %v537_v14 }
 0x28b   :  { %5119 = vmatmul.msk.f32.vlgmr.msra.gmra.mxu1 %vm237_vm1, %v512_v18  ;;  %5121 = vmatmul.msk.f32.vlgmr.msrb.gmra.mxu0 %vm237_vm1, %v512_v18 }
 0x28c   :  { %5114 = vmatmul.msk.f32.gmra.mxu3 %vm197_vm0, %v444_v19  ;;  %688 = vmatpush.msra.mxu1 %v530_v20  ;;  %v1316_v19 = vld [vmem:[%s7627_s20 + $0x18] sm:$0xff] }
 0x28d   :  { %570 = vmatpush.msrb.mxu3 %v533_v21  ;;  %v1315_v21 = vld [vmem:[%s7627_s20 + $0x10] sm:$0xff] }
 0x28e   :  { %689 = vmatpush.msra.mxu1 %v526_v23 }
 0x28f   :  { %665 = vmatpush.msra.mxu3 %v529_v22 }
 0x290   :  { %690 = vmatpush.msra.mxu1 %v522_v25  ;;  %v1313_v25 = vld [vmem:[%s7627_s20] sm:$0xff] }
 0x291   :  { %666 = vmatpush.msra.mxu3 %v525_v24  ;;  %v1314_v24 = vld [vmem:[%s7627_s20 + $0x8] sm:$0xff] }
 0x292   :  { %691 = vmatpush.msra.mxu1 %v518_v32 }
 0x293   :  { %667 = vmatpush.msra.mxu3 %v521_v31  ;;  %5120 = vmatmul.msk.f32.gmra.mxu1 %vm237_vm1, %v515_v33  ;;  %v474_v31 = vld [vmem:[%s7628_s27] sm:$0xff] }
 0x294   :  { %5122 = vmatmul.msk.f32.gmra.mxu0 %vm237_vm1, %v515_v33  ;;  %5117 = vmatmul.msk.f32.vlgmr.msrb.gmra.mxu3 %vm237_vm1, %v512_v18 }
 0x295   :  { %668 = vmatpush.msra.mxu3 %v517_v34 }
 0x297   :  { %5399 = vmatpush.msrb.mxu3 %v6297_v26 }
 0x299   :  { %5400 = vmatpush.msrb.mxu3 %v6299_v27 }
 0x29b   :  { %5401 = vmatpush.msrb.mxu3 %v6302_v28  ;;  %5123 = vmatmul.msk.f32.vlgmr.msrb.gmra.mxu1 %vm237_vm1, %v512_v18 }
 0x29c   :  { %5129 = vmatmul.msk.f32.vlgmr.msra.gmra.mxu0 %vm237_vm1, %v6313_v37  ;;  %5118 = vmatmul.msk.f32.gmra.mxu3 %vm237_vm1, %v515_v33 }
 0x29d   :  { %5402 = vmatpush.msrb.mxu3 %v6306_v30 }
 0x2a3   :  { %5124 = vmatmul.msk.f32.gmra.mxu1 %vm237_vm1, %v515_v33 }
 0x2a4   :  { %5130 = vmatmul.msk.f32.gmra.mxu0 %vm237_vm1, %v6311_v36  ;;  %5125 = vmatmul.msk.f32.vlgmr.msra.gmra.mxu3 %vm237_vm1, %v6313_v37 }
 0x2ab   :  { %5127 = vmatmul.msk.f32.vlgmr.msra.gmra.mxu1 %vm237_vm1, %v6313_v37 }
 0x2ac   :  { %5126 = vmatmul.msk.f32.gmra.mxu3 %vm237_vm1, %v6311_v36 }
 0x2b3   :  { %5128 = vmatmul.msk.f32.gmra.mxu1 %vm237_vm1, %v6311_v36 }
 0x2b4   :  { %5132 = vmatmul.msk.f32.vlgmr.msrb.gmra.mxu3 %vm237_vm1, %v6311_v36 }
 0x307   :  { %v6400_v26 = vpop.f32.mrf.mxu3 }
 0x308   :  { %v595_v27 = vpop.f32.mrf.mxu1  ;;  %v618_v28 = vpop.f32.mrf.mxu0 }
 0x30f   :  { %v6402_v30 = vpop.f32.mrf.mxu3 }
 0x310   :  { %v598_v35 = vpop.f32.mrf.mxu1 }
 0x311   :  { %v621_v38 = vpop.f32.mrf.mxu0 }
 0x317   :  { %v572_v40 = vpop.f32.mrf.mxu3 }
 0x318   :  { %v6404_v42 = vpop.f32.mrf.mxu1 }
 0x319   :  { %v716_v44 = vpop.f32.mrf.mxu0 }
 0x31a   :  { %v717_v46 = vadd.f32 %v716_v44, %v618_v28 }
 0x31c   :  { %v757_v52 = vadd.f32 %v749_v47, %v717_v46 }
 0x31f   :  { %v575_v48 = vpop.f32.mrf.mxu3 }
 0x320   :  { %v6410_v49 = vpop.f32.mrf.mxu1 }
 0x321   :  { %v719_v50 = vpop.f32.mrf.mxu0 }
 0x322   :  { %v720_v51 = vadd.f32 %v719_v50, %v621_v38  ;;  %v475_v38 = vld [vmem:[%s7628_s27 + $0x8] sm:$0xff] }
 0x324   :  { %v761_v54 = vadd.f32 %v749_v47, %v720_v51 }
 0x326   :  { %842 = vmatpush.msrb.mxu1 %v761_v54  ;;  %v6412_v56 = vpack.i.bf16 %v757_v52, %v761_v54 }
 0x327   :  { %v670_v58 = vpop.f32.mrf.mxu3 }
 0x328   :  { %843 = vmatpush.msrb.mxu1 %v757_v52  ;;  %v671_v59 = vadd.f32 %v670_v58, %v572_v40  ;;  %v693_v60 = vpop.f32.mrf.mxu1 }
 0x329   :  { %v694_v4 = vadd.f32 %v693_v60, %v595_v27 }
 0x32a   :  { %v755_v61 = vadd.f32 %v747_v57, %v671_v59 }
 0x32b   :  { %v756_v6 = vadd.f32 %v748_v1, %v694_v4 }
 0x32c   :  { %855 = vrot.lane.b32.xlu1 %v755_v61, %s6054_s6 }
 0x32f   :  { %v673_v62 = vpop.f32.mrf.mxu3 }
 0x330   :  { %v674_v63 = vadd.f32 %v673_v62, %v575_v48  ;;  %v696_v0 = vpop.f32.mrf.mxu1 }
 0x331   :  { %v697_v2 = vadd.f32 %v696_v0, %v598_v35 }
 0x332   :  { %v759_v3 = vadd.f32 %v747_v57, %v674_v63 }
 0x333   :  { %v760_v5 = vadd.f32 %v748_v1, %v697_v2 }
 0x334   :  { %857 = vrot.lane.b32.xlu2 %v759_v3, %s6054_s6 }
 0x335   :  { %861 = vrot.lane.b32.xlu0 %v760_v5, %s6054_s6  ;;  %5133 = vmatpush.xpose.msk.msra.mxu3 %vm237_vm1, %v760_v5 }
 0x336   :  { %965 = vrot.lane.b32.xlu1 %v760_v5, %s6055_s12 }
 0x337   :  { %v6442_v22 = vpop.f32.mrf.mxu3 }
 0x339   :  { %5134 = vmatpush.xpose.msk.msra.mxu3 %vm237_vm1, %v756_v6 }
 0x33c   :  { %1067 = vrot.lane.b32.xlu2 %v760_v5, %s6052_s1  ;;  %5135 = vmatmul.msk.f32.vlgmr.msra.gmra.mxu3 %vm237_vm1, %v755_v61 }
 0x33d   :  { %859 = vrot.lane.b32.xlu0 %v756_v6, %s6054_s6 }
 0x33e   :  { %1065 = vrot.lane.b32.xlu1 %v756_v6, %s6052_s1 }
 0x344   :  { %959 = vrot.lane.b32.xlu2 %v755_v61, %s6055_s12  ;;  %5136 = vmatmul.msk.f32.gmra.mxu3 %vm237_vm1, %v759_v3 }
 0x345   :  { %963 = vrot.lane.b32.xlu0 %v756_v6, %s6055_s12 }
 0x346   :  { %961 = vrot.lane.b32.xlu1 %v759_v3, %s6055_s12 }
 0x34c   :  { %1063 = vrot.lane.b32.xlu2 %v759_v3, %s6052_s1 }
 0x34d   :  { %1061 = vrot.lane.b32.xlu0 %v755_v61, %s6052_s1 }
 0x354   :  { %5452 = vrot.lane.b32.xlu2 %v6412_v56, %s6054_s6 }
 0x38e   :  { %v858_v7 = vpop.permute.xlu2 %857 }
 0x396   :  { %v1068_v8 = vpop.permute.xlu2 %1067 }
 0x39e   :  { %v960_v9 = vpop.permute.xlu2 %959  ;;  %v856_v10 = vpop.permute.xlu1 %855 }
 0x3a6   :  { %v1064_v11 = vpop.permute.xlu2 %1063 }
 0x3a7   :  { %v862_v12 = vpop.permute.xlu0 %861 }
 0x3a8   :  { %v966_v13 = vpop.permute.xlu1 %965  ;;  %5139 = vmatpush.xpose.msk.msrb.mxu0 %vm237_vm1, %v862_v12 }
 0x3a9   :  { %5145 = vmatpush.xpose.msk.msrb.mxu3 %vm237_vm1, %v966_v13 }
 0x3ae   :  { %v5453_v14 = vpop.permute.xlu2 %5452 }
 0x3af   :  { %v5454_v15 = vunpack.i.l.bf16 %v5453_v14  ;;  %v860_v17 = vpop.permute.xlu0 %859  ;;  %v5455_v18 = vunpack.i.h.bf16 %v5453_v14 }
 0x3b0   :  { %5140 = vmatpush.xpose.msk.msrb.mxu0 %vm237_vm1, %v860_v17  ;;  %v1066_v20 = vpop.permute.xlu1 %1065 }
 0x3b1   :  { %946 = vmatpush.msra.mxu2 %v5454_v15 }
 0x3b3   :  { %5141 = vmatmul.msk.f32.vlgmr.msrb.gmra.mxu0 %vm237_vm1, %v856_v10  ;;  %947 = vmatpush.msra.mxu2 %v5455_v18 }
 0x3b4   :  { %5151 = vmatpush.xpose.msk.msra.mxu0 %vm237_vm1, %v1068_v8 }
 0x3b7   :  { %v964_v23 = vpop.permute.xlu0 %963 }
 0x3b8   :  { %5152 = vmatpush.xpose.msk.msra.mxu0 %vm237_vm1, %v1066_v20  ;;  %5146 = vmatpush.xpose.msk.msrb.mxu3 %vm237_vm1, %v964_v23  ;;  %v962_v33 = vpop.permute.xlu1 %961 }
 0x3bb   :  { %5142 = vmatmul.msk.f32.gmra.mxu0 %vm237_vm1, %v858_v7  ;;  %5147 = vmatmul.msk.f32.vlgmr.msrb.gmra.mxu3 %vm237_vm1, %v960_v9 }
 0x3bc   :  { %1335 = vmatpush.msrb.mxu0 %v1316_v19 }
 0x3be   :  { %1336 = vmatpush.msrb.mxu0 %v1315_v21 }
 0x3bf   :  { %v792_v29 = vpop.f32.mrf.mxu3  ;;  %v1062_v34 = vpop.permute.xlu0 %1061 }
 0x3c0   :  { %1337 = vmatpush.msrb.mxu0 %v1314_v24  ;;  %v798_v32 = vmul.f32 0.17677669, %v792_v29 }
 0x3c2   :  { %1338 = vmatpush.msrb.mxu0 %v1313_v25  ;;  %v800_v27 = vadd.f32 %v798_v32, %v474_v31 }
 0x3c3   :  { %5148 = vmatmul.msk.f32.gmra.mxu3 %vm237_vm1, %v962_v33  ;;  %5153 = vmatmul.msk.f32.vlgmr.msra.gmra.mxu0 %vm237_vm1, %v1062_v34 }
 0x3c4   :  { %v802_v28 = vsel %vm343_vm2, %v800_v27, -inf  ;;  %1475 = vmatpush.msra.mxu0 %v6318_v39 }
 0x3c5   :  { %803 = vmax.xlane.f32.xlu1 %v802_v28 }
 0x3c6   :  { %1476 = vmatpush.msra.mxu0 %v6323_v41 }
 0x3c7   :  { %v795_v35 = vpop.f32.mrf.mxu3 }
 0x3c8   :  { %v799_v40 = vmul.f32 0.17677669, %v795_v35  ;;  %1477 = vmatpush.msra.mxu0 %v6327_v43 }
 0x3ca   :  { %v801_v44 = vadd.f32 %v799_v40, %v475_v38  ;;  %1478 = vmatpush.msra.mxu0 %v6334_v53  ;;  %v1227_v40 = vld [vmem:[%s7629_s4 + $0x18] sm:$0xff] }
 0x3cb   :  { %5154 = vmatmul.msk.f32.gmra.mxu0 %vm237_vm1, %v1064_v11 }
 0x3cc   :  { %v805_v46 = vsel %vm343_vm2, %v801_v44, -inf }
 0x3cd   :  { %806 = vmax.xlane.f32.xlu0 %v805_v46 }
 0x3d3   :  { %5161 = vmatmul.msk.f32.vlgmr.msrb.gmra.mxu0 %vm237_vm1, %v6400_v26 }
 0x3db   :  { %5162 = vmatmul.msk.f32.gmra.mxu0 %vm237_vm1, %v6402_v30 }
 0x430   :  { %v888_v39 = vpop.f32.mrf.mxu0 }
 0x431   :  { %v894_v41 = vmul.f32 0.17677669, %v888_v39  ;;  %v1225_v39 = vld [vmem:[%s7629_s4 + $0x8] sm:$0xff] }
 0x433   :  { %v896_v47 = vadd.f32 %v894_v41, %v474_v31 }
 0x435   :  { %v898_v48 = vsel %vm343_vm2, %v896_v47, -inf }
 0x436   :  { %899 = vmax.xlane.f32.xlu0 %v898_v48  ;;  %v1224_v48 = vld [vmem:[%s7629_s4] sm:$0xff] }
 0x438   :  { %v891_v43 = vpop.f32.mrf.mxu0  ;;  %v804_v50 = vpop.xlane.xlu1 %803 }
 0x439   :  { %v895_v53 = vmul.f32 0.17677669, %v891_v43  ;;  %v808_v51 = vsub.f32 %v800_v27, %v804_v50 }
 0x43b   :  { %v810_v52 = vmul.f32 1.442695, %v808_v51  ;;  %v897_v54 = vadd.f32 %v895_v53, %v475_v38  ;;  %v6056_v53 = vmov 0  }
 0x43c   :  { %5466 = vset.pattern.permute.xlu1 %v6056_v53  ;;  %5467 = vset.pattern.permute.xlu2 %v6056_v53 }
 0x43d   :  { %5547 = vpow2.f32 %v810_v52  ;;  %v901_v57 = vsel %vm343_vm2, %v897_v54, -inf  ;;  %5513 = vset.pattern.permute.xlu0 %v6056_v53 }
 0x43e   :  { %902 = vmax.xlane.f32.xlu2 %v901_v57  ;;  %v992_v58 = vpop.f32.mrf.mxu3 }
 0x43f   :  { %v998_v59 = vmul.f32 0.17677669, %v992_v58 }
 0x440   :  { %v1094_v60 = vpop.f32.mrf.mxu0  ;;  %v807_v61 = vpop.xlane.xlu0 %806 }
 0x441   :  { %v1100_v62 = vmul.f32 0.17677669, %v1094_v60  ;;  %v809_v63 = vsub.f32 %v801_v44, %v807_v61  ;;  %v1000_v0 = vadd.f32 %v998_v59, %v474_v31  ;;  %v1226_v44 = vld [vmem:[%s7629_s4 + $0x10] sm:$0xff] }
 0x443   :  { %v5548_v1 = vpop.eup %5547  ;;  %v812_v2 = vmul.f32 1.442695, %v809_v63  ;;  %v1002_v3 = vsel %vm343_vm2, %v1000_v0, -inf  ;;  %v1102_v4 = vadd.f32 %v1100_v62, %v474_v31 }
 0x444   :  { %5137 = vmatmul.msk.f32.vlgmr.msrb.gmra.mxu1 %vm343_vm2, %v5548_v1  ;;  %1003 = vmax.xlane.f32.xlu0 %v1002_v3  ;;  %v814_v15 = vsel %vm343_vm2, %v5548_v1, 0.0  ;;  %v477_v3 = vld [vmem:[%s7630_s15 + $0x8] sm:$0xff] }
 0x445   :  { %5549 = vpow2.f32 %v812_v2  ;;  %v1104_v5 = vsel %vm343_vm2, %v1102_v4, -inf }
 0x446   :  { %1105 = vmax.xlane.f32.xlu1 %v1104_v5  ;;  %v995_v8 = vpop.f32.mrf.mxu3 }
 0x447   :  { %v999_v11 = vmul.f32 0.17677669, %v995_v8 }
 0x448   :  { %v1097_v6 = vpop.f32.mrf.mxu0 }
 0x449   :  { %v1101_v7 = vmul.f32 0.17677669, %v1097_v6  ;;  %v1001_v13 = vadd.f32 %v999_v11, %v475_v38  ;;  %v476_v6 = vld [vmem:[%s7630_s15] sm:$0xff]  ;;  %v739_v11 = vpop.f32.mrf.mxu2 }
 0x44b   :  { %v6469_v9 = vpop.eup %5549  ;;  %v6471_v10 = vadd.f32 %v1101_v7, %v475_v38  ;;  %v1005_v14 = vsel %vm343_vm2, %v1001_v13, -inf  ;;  %v478_v7 = vmul.f32 0.25, %v476_v6 }
 0x44c   :  { %5138 = vmatmul.msk.f32.gmra.mxu1 %vm343_vm2, %v6469_v9  ;;  %v817_v59 = vsel %vm343_vm2, %v6469_v9, 0.0 }
 0x44d   :  { %v1107_v12 = vsel %vm343_vm2, %v6471_v10, -inf }
 0x44e   :  { %1108 = vmax.xlane.f32.xlu1 %v1107_v12 }
 0x456   :  { %5462 = vrot.lane.b32.xlu2 %v6412_v56, %s6055_s12  ;;  %1006 = vmax.xlane.f32.xlu1 %v1005_v14 }
 0x458   :  { %5457 = vrot.lane.b32.xlu0 %v6412_v56, %s6052_s1 }
 0x45e   :  { %815 = vadd.xlane.f32.xlu1 %v814_v15 }
 0x4a9   :  { %v900_v17 = vpop.xlane.xlu0 %899 }
 0x4aa   :  { %v904_v18 = vsub.f32 %v896_v47, %v900_v17 }
 0x4ac   :  { %v906_v19 = vmul.f32 1.442695, %v904_v18 }
 0x4ae   :  { %5551 = vpow2.f32 %v906_v19 }
 0x4b1   :  { %v903_v20 = vpop.xlane.xlu2 %902 }
 0x4b2   :  { %v905_v21 = vsub.f32 %v897_v54, %v903_v20 }
 0x4b4   :  { %v5552_v23 = vpop.eup %5551  ;;  %v908_v24 = vmul.f32 1.442695, %v905_v21  ;;  %v5520_v21 = vld [vmem:[%s7631_s18] ss:$0 sm:$0xff] }
 0x4b5   :  { %5143 = vmatmul.msk.f32.vlgmr.msra.gmra.mxu2 %vm343_vm2, %v5552_v23  ;;  %v910_v25 = vsel %vm343_vm2, %v5552_v23, 0.0 }
 0x4b6   :  { %5553 = vpow2.f32 %v908_v24  ;;  %911 = vadd.xlane.f32.xlu2 %v910_v25 }
 0x4b7   :  { %v1004_v29 = vpop.xlane.xlu0 %1003 }
 0x4b8   :  { %v1008_v56 = vsub.f32 %v1000_v0, %v1004_v29 }
 0x4b9   :  { %v5463_v31 = vpop.permute.xlu2 %5462  ;;  %v1106_v32 = vpop.xlane.xlu1 %1105 }
 0x4ba   :  { %v1010_v33 = vmul.f32 1.442695, %v1008_v56  ;;  %v5464_v34 = vunpack.i.l.bf16 %v5463_v31  ;;  %v1110_v27 = vsub.f32 %v1102_v4, %v1106_v32  ;;  %v5465_v35 = vunpack.i.h.bf16 %v5463_v31  ;;  %v6512_v31 = vld [vmem:[%s7632_s22 + $0x18] sm:$0xff] }
 0x4bb   :  { %v479_v4 = vmul.f32 0.25, %v477_v3  ;;  %1213 = vmatpush.msra.mxu3 %v6512_v31  ;;  %v750_v3 = vperm.slane %v6407_v45, 3 }
 0x4bc   :  { %v5554_v28 = vpop.eup %5553  ;;  %5555 = vpow2.f32 %v1010_v33  ;;  %v1112_v38 = vmul.f32 1.442695, %v1110_v27  ;;  %1048 = vmatpush.msra.mxu1 %v5464_v34  ;;  %v6518_v34 = vld [vmem:[%s7632_s22 + $0x10] sm:$0xff] }
 0x4bd   :  { %5144 = vmatmul.msk.f32.gmra.mxu2 %vm343_vm2, %v5554_v28  ;;  %v913_v63 = vsel %vm343_vm2, %v5554_v28, 0.0  ;;  %1214 = vmatpush.msra.mxu3 %v6518_v34 }
 0x4be   :  { %5557 = vpow2.f32 %v1112_v38  ;;  %1049 = vmatpush.msra.mxu1 %v5465_v35  ;;  %v6522_v38 = vld [vmem:[%s7632_s22 + $0x8] sm:$0xff] }
 0x4bf   :  { %1215 = vmatpush.msra.mxu3 %v6522_v38 }
 0x4c0   :  { %1244 = vmatpush.msrb.mxu1 %v1227_v40 }
 0x4c1   :  { %v1109_v46 = vpop.xlane.xlu1 %1108 }
 0x4c2   :  { %1245 = vmatpush.msrb.mxu1 %v1226_v44  ;;  %v5556_v41 = vpop.eup %5555  ;;  %v1111_v51 = vsub.f32 %v6471_v10, %v1109_v46  ;;  %v845_v10 = vpop.f32.mrf.mxu1  ;;  %v6526_v44 = vld [vmem:[%s7632_s22] sm:$0xff] }
 0x4c3   :  { %5149 = vmatmul.msk.f32.vlgmr.msra.gmra.mxu1 %vm343_vm2, %v5556_v41  ;;  %v1014_v47 = vsel %vm343_vm2, %v5556_v41, 0.0  ;;  %1216 = vmatpush.msra.mxu3 %v6526_v44 }
 0x4c4   :  { %v5558_v43 = vpop.eup %5557  ;;  %1015 = vadd.xlane.f32.xlu1 %v1014_v47  ;;  %1246 = vmatpush.msrb.mxu1 %v1225_v39  ;;  %v1114_v61 = vmul.f32 1.442695, %v1111_v51 }
 0x4c5   :  { %v1116_v50 = vsel %vm343_vm2, %v5558_v43, 0.0 }
 0x4c6   :  { %1117 = vadd.xlane.f32.xlu0 %v1116_v50  ;;  %1247 = vmatpush.msrb.mxu1 %v1224_v48 }
 0x4c9   :  { %v1007_v52 = vpop.xlane.xlu1 %1006 }
 0x4ca   :  { %v1009_v54 = vsub.f32 %v1001_v13, %v1007_v52  ;;  %v5458_v57 = vpop.permute.xlu0 %5457  ;;  %v848_v13 = vpop.f32.mrf.mxu1 }
 0x4cb   :  { %v5459_v58 = vunpack.i.l.bf16 %v5458_v57  ;;  %v5460_v62 = vunpack.i.h.bf16 %v5458_v57 }
 0x4cc   :  { %v1012_v60 = vmul.f32 1.442695, %v1009_v54  ;;  %818 = vadd.xlane.f32.xlu1 %v817_v59 }
 0x4cd   :  { %1150 = vmatpush.msrb.mxu2 %v5459_v58 }
 0x4ce   :  { %5559 = vpow2.f32 %v1012_v60  ;;  %1170 = vperm.xlu2 %5467, %v479_v4  }
 0x4cf   :  { %1151 = vmatpush.msrb.mxu2 %v5460_v62  ;;  %5561 = vpow2.f32 %v1114_v61 }
 0x4d0   :  { %5155 = vmatmul.msk.f32.vlgmr.msrb.gmra.mxu2 %vm343_vm2, %v5558_v43 }
 0x4d1   :  { %v816_v8 = vpop.xlane.xlu1 %815 }
 0x4d4   :  { %v5560_v0 = vpop.eup %5559  ;;  %914 = vadd.xlane.f32.xlu1 %v913_v63  ;;  %v743_v63 = vadd.f32 %v6442_v22, %v6410_v49 }
 0x4d5   :  { %5150 = vmatmul.msk.f32.gmra.mxu1 %vm343_vm2, %v5560_v0  ;;  %v5562_v1 = vpop.eup %5561  ;;  %v1017_v2 = vsel %vm343_vm2, %v5560_v0, 0.0 }
 0x4d6   :  { %v1119_v5 = vsel %vm343_vm2, %v5562_v1, 0.0  ;;  %v762_v6 = vadd.f32 %v750_v3, %v743_v63 }
 0x4d8   :  { %5156 = vmatmul.msk.f32.gmra.mxu2 %vm343_vm2, %v5562_v1 }
 0x4dc   :  { %1018 = vadd.xlane.f32.xlu1 %v1017_v2  ;;  %v740_v2 = vadd.f32 %v739_v11, %v6404_v42 }
 0x4dd   :  { %5159 = vmatmul.msk.f32.vlgmr.msrb.gmra.mxu1 %vm237_vm1, %v6313_v37 }
 0x4e4   :  { %1120 = vadd.xlane.f32.xlu1 %v1119_v5 }
 0x4e5   :  { %5160 = vmatmul.msk.f32.gmra.mxu1 %vm237_vm1, %v6311_v36 }
 0x4fd   :  { %1165 = vperm.xlu1 %5466, %v478_v7  }
 0x529   :  { %v912_v56 = vpop.xlane.xlu2 %911 }
 0x531   :  { %v6530_v62 = vpop.permute.xlu2 %1170 }
 0x532   :  { %7633 = vst [vmem:[#allocation34_spill] sm:$0xff] %v6530_v62 }
 0x537   :  { %v1016_v9 = vpop.xlane.xlu1 %1015 }
 0x538   :  { %v949_v14 = vpop.f32.mrf.mxu2 }
 0x539   :  { %v1118_v28 = vpop.xlane.xlu0 %1117 }
 0x53f   :  { %v819_v12 = vpop.xlane.xlu1 %818 }
 0x540   :  { %v1051_v17 = vpop.f32.mrf.mxu1  ;;  %v952_v19 = vpop.f32.mrf.mxu2 }
 0x547   :  { %v915_v15 = vpop.xlane.xlu1 %914 }
 0x548   :  { %5563 = vrcp.f32 %v915_v15 }
 0x549   :  { %5565 = vrcp.f32 %v819_v12 }
 0x54e   :  { %v5564_v32 = vpop.eup %5563 }
 0x54f   :  { %v1019_v18 = vpop.xlane.xlu1 %1018  ;;  %v5566_v33 = vpop.eup %5565  ;;  %v956_v35 = vmul.f32 %v5564_v32, %v952_v19 }
 0x550   :  { %5567 = vrcp.f32 %v1019_v18  ;;  %v852_v46 = vmul.f32 %v5566_v33, %v848_v13 }
 0x552   :  { %v1054_v20 = vpop.f32.mrf.mxu1  ;;  %v958_v50 = vadd.f32 %v956_v35, %v852_v46 }
 0x553   :  { %v1153_v24 = vpop.f32.mrf.mxu2 }
 0x556   :  { %v5568_v27 = vpop.eup %5567 }
 0x557   :  { %v1121_v23 = vpop.xlane.xlu1 %1120  ;;  %v1058_v39 = vmul.f32 %v5568_v27, %v1054_v20  ;;  %v5521_v20 = vld [vmem:[%s7635_s23] ss:$0 sm:$0xff] }
 0x558   :  { %5569 = vrcp.f32 %v1121_v23 }
 0x559   :  { %5571 = vrcp.f32 %v816_v8  ;;  %v1060_v54 = vadd.f32 %v1058_v39, %v958_v50 }
 0x55a   :  { %v1249_v25 = vpop.f32.mrf.mxu1  ;;  %5573 = vrcp.f32 %v912_v56 }
 0x55b   :  { %v6509_v29 = vadd.f32 %v5520_v21, %v1249_v25  ;;  %5575 = vrcp.f32 %v1016_v9  ;;  %v1156_v47 = vpop.f32.mrf.mxu2  ;;  %v758_v9 = vadd.f32 %v750_v3, %v740_v2  ;;  %v6568_v2 = vld [vmem:[%s7636_s26] sm:$0xff]  ;;  %v6573_v3 = vld [vmem:[%s6173_s3 + $0x78] sm:$0xff] }
 0x55c   :  { %5577 = vrcp.f32 %v1118_v28 }
 0x55d   :  { %1267 = vrot.lane.b32.xlu0 %v6509_v29, %s6055_s12 }
 0x55e   :  { %v5570_v40 = vpop.eup %5569 }
 0x55f   :  { %v5572_v43 = vpop.eup %5571  ;;  %v1160_v53 = vmul.f32 %v5570_v40, %v1156_v47 }
 0x560   :  { %v5574_v51 = vpop.eup %5573  ;;  %v851_v58 = vmul.f32 %v5572_v43, %v845_v10 }
 0x561   :  { %v955_v52 = vmul.f32 %v5574_v51, %v949_v14  ;;  %v5576_v57 = vpop.eup %5575  ;;  %v1162_v60 = vadd.f32 %v1160_v53, %v1060_v54 }
 0x562   :  { %v1252_v41 = vpop.f32.mrf.mxu1  ;;  %v1057_v59 = vmul.f32 %v5576_v57, %v1051_v17  ;;  %v5578_v61 = vpop.eup %5577 }
 0x563   :  { %v1253_v48 = vadd.f32 %v5520_v21, %v1252_v41  ;;  %v957_v0 = vadd.f32 %v955_v52, %v851_v58  ;;  %v1159_v1 = vmul.f32 %v5578_v61, %v1153_v24  ;;  %v1174_v5 = vmul.f32 %v6530_v62, %v1162_v60 }
 0x565   :  { %1269 = vrot.lane.b32.xlu2 %v1253_v48, %s6055_s12  ;;  %v1059_v4 = vadd.f32 %v1057_v59, %v957_v0  ;;  %v1176_v12 = vadd.f32 %v1174_v5, %v762_v6  ;;  %v6557_v0 = vld [vmem:[%s7636_s26 + $0x18] sm:$0xff]  ;;  %v6581_v5 = vld [vmem:[%s6173_s3 + $0x68] sm:$0xff]  ;;  %v6585_v6 = vld [vmem:[%s6173_s3 + $0x60] sm:$0xff] }
 0x566   :  { %1368 = vmatpush.msra.mxu2 %v6557_v0 }
 0x567   :  { %v1161_v7 = vadd.f32 %v1159_v1, %v1059_v4  ;;  %v1178_v22 = vmul.f32 0.5, %v1176_v12  ;;  %v6564_v1 = vld [vmem:[%s7636_s26 + $0x8] sm:$0xff]  ;;  %v6577_v4 = vld [vmem:[%s6173_s3 + $0x70] sm:$0xff] }
 0x56f   :  { %v6537_v8 = vpop.permute.xlu1 %1165 }
 0x570   :  { %7634 = vst [vmem:[#allocation35_spill] sm:$0xff] %v6537_v8  ;;  %v1173_v10 = vmul.f32 %v6537_v8, %v1161_v7  ;;  %v6589_v7 = vld [vmem:[%s6173_s3 + $0x58] sm:$0xff] }
 0x572   :  { %v1175_v13 = vadd.f32 %v1173_v10, %v758_v9  ;;  %v6593_v9 = vld [vmem:[%s6173_s3 + $0x50] sm:$0xff]  ;;  %v6597_v10 = vld [vmem:[%s6173_s3 + $0x48] sm:$0xff] }
 0x574   :  { %v1177_v49 = vmul.f32 0.5, %v1175_v13 }
 0x576   :  { %5579 = vtanh.f32 %v1177_v49 }
 0x577   :  { %5581 = vtanh.f32 %v1178_v22 }
 0x57c   :  { %v5580_v42 = vpop.eup %5579 }
 0x57d   :  { %v1181_v11 = vadd.f32 1.0, %v5580_v42  ;;  %v5582_v45 = vpop.eup %5581  ;;  %v6609_v42 = vld [vmem:[%s6173_s3 + $0x30] sm:$0xff] }
 0x57e   :  { %v1182_v17 = vadd.f32 1.0, %v5582_v45 }
 0x57f   :  { %v1183_v14 = vmul.f32 0.5, %v1181_v11 }
 0x580   :  { %v1184_v18 = vmul.f32 0.5, %v1182_v17 }
 0x581   :  { %v1185_v15 = vmul.f32 %v1183_v14, %v1175_v13  ;;  %v6605_v13 = vld [vmem:[%s6173_s3 + $0x38] sm:$0xff] }
 0x582   :  { %v1186_v19 = vmul.f32 %v1184_v18, %v1176_v12  ;;  %v6601_v12 = vld [vmem:[%s6173_s3 + $0x40] sm:$0xff] }
 0x583   :  { %5157 = vmatmul.msk.f32.vlgmr.msra.gmra.mxu3 %vm237_vm1, %v1185_v15  ;;  %v6613_v15 = vld [vmem:[%s6173_s3 + $0x28] sm:$0xff]  ;;  %v6619_v18 = vld [vmem:[%s6173_s3 + $0x20] sm:$0xff] }
 0x58b   :  { %5158 = vmatmul.msk.f32.gmra.mxu3 %vm237_vm1, %v1186_v19  ;;  %v6625_v19 = vld [vmem:[%s6173_s3 + $0x18] sm:$0xff] }
 0x5bf   :  { %v1270_v50 = vpop.permute.xlu2 %1269 }
 0x5cf   :  { %v1268_v46 = vpop.permute.xlu0 %1267 }
 0x606   :  { %v1218_v21 = vpop.f32.mrf.mxu3 }
 0x607   :  { %v1219_v23 = vadd.f32 %v5521_v20, %v1218_v21  ;;  %v6633_v21 = vld [vmem:[%s6173_s3 + $0x8] sm:$0xff] }
 0x608   :  { %7640 = vst [vmem:[#allocation38_spill] sm:$0xff] %v6633_v21 }
 0x609   :  { %v1255_v24 = vadd.f32 %v6509_v29, %v1219_v23 }
 0x60b   :  { %v1257_v25 = vmul.f32 0.5, %v1255_v24 }
 0x60d   :  { %5583 = vtanh.f32 %v1257_v25  ;;  %v6645_v25 = vld [vmem:[%s7638_s28 + $0x78] sm:$0xff] }
 0x60e   :  { %v1221_v56 = vpop.f32.mrf.mxu3  ;;  %1415 = vmatpush.msra.mxu1 %v6645_v25 }
 0x60f   :  { %v1222_v32 = vadd.f32 %v5521_v20, %v1221_v56  ;;  %v6629_v20 = vld [vmem:[%s6173_s3 + $0x10] sm:$0xff] }
 0x610   :  { %v6648_v56 = vld [vmem:[%s7638_s28 + $0x70] sm:$0xff] }
 0x611   :  { %v1256_v33 = vadd.f32 %v1253_v48, %v1222_v32  ;;  %1416 = vmatpush.msra.mxu1 %v6648_v56 }
 0x613   :  { %v5584_v27 = vpop.eup %5583  ;;  %v1258_v28 = vmul.f32 0.5, %v1256_v33  ;;  %v6656_v33 = vld [vmem:[%s7638_s28 + $0x60] sm:$0xff] }
 0x614   :  { %v1261_v35 = vadd.f32 1.0, %v5584_v27  ;;  %v6660_v27 = vld [vmem:[%s7638_s28 + $0x58] sm:$0xff] }
 0x615   :  { %5585 = vtanh.f32 %v1258_v28  ;;  %v6664_v28 = vld [vmem:[%s7638_s28 + $0x50] sm:$0xff] }
 0x616   :  { %v1263_v40 = vmul.f32 0.5, %v1261_v35 }
 0x618   :  { %v1273_v39 = vmul.f32 %v1268_v46, %v1263_v40  ;;  %v1287_v58 = vsub.f32 1.0, %v1263_v40  ;;  %v6677_v46 = vld [vmem:[%s7638_s28 + $0x40] sm:$0xff] }
 0x61a   :  { %1277 = vrot.lane.b32.xlu1 %v1273_v39, %s6055_s12  ;;  %v6681_v39 = vld [vmem:[%s7638_s28 + $0x38] sm:$0xff] }
 0x61b   :  { %v5586_v41 = vpop.eup %5585 }
 0x61c   :  { %v1262_v47 = vadd.f32 1.0, %v5586_v41  ;;  %v6685_v41 = vld [vmem:[%s7638_s28 + $0x30] sm:$0xff] }
 0x61e   :  { %v1264_v43 = vmul.f32 0.5, %v1262_v47  ;;  %v6689_v47 = vld [vmem:[%s7638_s28 + $0x28] sm:$0xff] }
 0x620   :  { %v1274_v53 = vmul.f32 %v1270_v50, %v1264_v43  ;;  %v1288_v22 = vsub.f32 1.0, %v1264_v43  ;;  %v6697_v50 = vld [vmem:[%s7638_s28 + $0x18] sm:$0xff] }
 0x622   :  { %1299 = vrot.lane.b32.xlu1 %v6313_v37, %s6052_s1  ;;  %1279 = vrot.lane.b32.xlu0 %v1274_v53, %s6055_s12  ;;  %v6701_v53 = vld [vmem:[%s7638_s28 + $0x10] sm:$0xff] }
 0x68c   :  { %v1278_v29 = vpop.permute.xlu1 %1277 }
 0x68d   :  { %v1283_v48 = vadd.f32 %v1278_v29, %v1219_v23  ;;  %v6637_v23 = vld [vmem:[%s6173_s3] sm:$0xff]  ;;  %v6705_v29 = vld [vmem:[%s7638_s28 + $0x8] sm:$0xff] }
 0x68e   :  { %7641 = vst [vmem:[#allocation39_spill] sm:$0xff] %v6637_v23 }
 0x68f   :  { %5587 = vtanh.f32 %v1283_v48  ;;  %v6709_v48 = vld [vmem:[%s7638_s28] sm:$0xff] }
 0x694   :  { %v1280_v51 = vpop.permute.xlu0 %1279  ;;  %v1300_v37 = vpop.permute.xlu1 %1299 }
 0x695   :  { %v5588_v52 = vpop.eup %5587  ;;  %v1284_v54 = vadd.f32 %v1280_v51, %v1222_v32  ;;  %v1305_v60 = vmul.f32 %v1300_v37, %v1263_v40  ;;  %v6652_v32 = vld [vmem:[%s7638_s28 + $0x68] sm:$0xff]  ;;  %v5522_v51 = vld [vmem:[%s7642_s0] ss:$0 sm:$0xff] }
 0x696   :  { %1291 = vrot.lane.b32.xlu2 %v5588_v52, %s6054_s6  ;;  %1417 = vmatpush.msra.mxu1 %v6652_v32  ;;  %v6673_v40 = vld [vmem:[%s7638_s28 + $0x48] sm:$0xff]  ;;  %v1340_v52 = vpop.f32.mrf.mxu0 }
 0x697   :  { %5589 = vtanh.f32 %v1284_v54 }
 0x698   :  { %1418 = vmatpush.msra.mxu1 %v6656_v33 }
 0x69a   :  { %1419 = vmatpush.msra.mxu1 %v6660_v27 }
 0x69c   :  { %1420 = vmatpush.msra.mxu1 %v6664_v28 }
 0x69d   :  { %v5590_v57 = vpop.eup %5589 }
 0x69e   :  { %1301 = vrot.lane.b32.xlu2 %v6311_v36, %s6052_s1  ;;  %1293 = vrot.lane.b32.xlu0 %v5590_v57, %s6054_s6  ;;  %v6560_v36 = vld [vmem:[%s7636_s26 + $0x10] sm:$0xff] }
 0x69f   :  { %1369 = vmatpush.msra.mxu2 %v6560_v36  ;;  %1421 = vmatpush.msra.mxu1 %v6673_v40 }
 0x6a1   :  { %1370 = vmatpush.msra.mxu2 %v6564_v1  ;;  %1422 = vmatpush.msra.mxu1 %v6677_v46 }
 0x6a3   :  { %1371 = vmatpush.msra.mxu2 %v6568_v2  ;;  %1423 = vmatpush.msra.mxu1 %v6681_v39 }
 0x6a5   :  { %1488 = vmatpush.msrb.mxu2 %v6573_v3  ;;  %1424 = vmatpush.msra.mxu1 %v6685_v41 }
 0x6a7   :  { %1489 = vmatpush.msrb.mxu2 %v6577_v4  ;;  %1425 = vmatpush.msra.mxu1 %v6689_v47 }
 0x6a9   :  { %1490 = vmatpush.msrb.mxu2 %v6581_v5 }
 0x6ab   :  { %1491 = vmatpush.msrb.mxu2 %v6585_v6 }
 0x6ad   :  { %1492 = vmatpush.msrb.mxu2 %v6589_v7 }
 0x6af   :  { %1493 = vmatpush.msrb.mxu2 %v6593_v9 }
 0x6b1   :  { %1494 = vmatpush.msrb.mxu2 %v6597_v10 }
 0x6b3   :  { %1495 = vmatpush.msrb.mxu2 %v6601_v12 }
 0x6b5   :  { %1496 = vmatpush.msrb.mxu2 %v6605_v13 }
 0x6b7   :  { %1497 = vmatpush.msrb.mxu2 %v6609_v42 }
 0x6b9   :  { %1498 = vmatpush.msrb.mxu2 %v6613_v15 }
 0x6bb   :  { %1499 = vmatpush.msrb.mxu2 %v6619_v18 }
 0x6bd   :  { %1500 = vmatpush.msrb.mxu2 %v6625_v19 }
 0x6bf   :  { %1501 = vmatpush.msrb.mxu2 %v6629_v20 }
 0x6c1   :  { %1502 = vmatpush.msrb.mxu2 %v6633_v21 }
 0x6c3   :  { %1503 = vmatpush.msrb.mxu2 %v6637_v23 }
 0x6f0   :  { %v1292_v59 = vpop.permute.xlu2 %1291 }
 0x6f1   :  { %v1297_v61 = vmul.f32 %v1292_v59, %v1287_v58 }
 0x6f3   :  { %v6552_v63 = vadd.f32 %v1305_v60, %v1297_v61 }
 0x6f5   :  { %7637 = vst [vmem:[#allocation36_spill] sm:$0xff] %v6552_v63  ;;  %1348 = vrot.lane.b32.xlu1 %v6552_v63, %s6054_s6 }
 0x6f8   :  { %v1302_v49 = vpop.permute.xlu2 %1301 }
 0x6f9   :  { %v1306_v45 = vmul.f32 %v1302_v49, %v1264_v43  ;;  %v6693_v43 = vld [vmem:[%s7638_s28 + $0x20] sm:$0xff] }
 0x6fa   :  { %1426 = vmatpush.msra.mxu1 %v6693_v43 }
 0x6fc   :  { %1427 = vmatpush.msra.mxu1 %v6697_v50 }
 0x6fe   :  { %1428 = vmatpush.msra.mxu1 %v6701_v53 }
 0x700   :  { %1429 = vmatpush.msra.mxu1 %v6705_v29 }
 0x702   :  { %1430 = vmatpush.msra.mxu1 %v6709_v48 }
 0x710   :  { %v1294_v11 = vpop.permute.xlu0 %1293 }
 0x711   :  { %v1298_v14 = vmul.f32 %v1294_v11, %v1288_v22  ;;  %v1343_v22 = vpop.f32.mrf.mxu0 }
 0x713   :  { %v6616_v17 = vadd.f32 %v1306_v45, %v1298_v14 }
 0x715   :  { %7639 = vst [vmem:[#allocation37_spill] sm:$0xff] %v6616_v17  ;;  %1350 = vrot.lane.b32.xlu0 %v6616_v17, %s6054_s6 }
 0x767   :  { %v6640_v24 = vpop.permute.xlu1 %1348 }
 0x768   :  { %5163 = vmatmul.msk.f32.vlgmr.msra.gmra.mxu2 %vm237_vm1, %v6640_v24 }
 0x787   :  { %v6668_v35 = vpop.permute.xlu0 %1350 }
 0x788   :  { %5164 = vmatmul.msk.f32.gmra.mxu2 %vm237_vm1, %v6668_v35 }
 0x7eb   :  { %v1373_v54 = vpop.f32.mrf.mxu2 }
 0x7ec   :  { %v1374_v57 = vadd.f32 %v1373_v54, %v1340_v52 }
 0x7ee   :  { %v1383_v37 = vadd.f32 %v5522_v51, %v1374_v57 }
 0x7f0   :  { %v1385_v58 = vmul.f32 0.5, %v1383_v37 }
 0x7f2   :  { %5591 = vtanh.f32 %v1385_v58  ;;  %v5523_v58 = vld [vmem:[%s7643_s2] ss:$0 sm:$0xff] }
 0x7f8   :  { %v5592_v59 = vpop.eup %5591 }
 0x7f9   :  { %v1389_v60 = vadd.f32 1.0, %v5592_v59 }
 0x7fb   :  { %v1391_v61 = vmul.f32 0.5, %v1389_v60 }
 0x7fd   :  { %v1393_v49 = vmul.f32 %v1391_v61, %v1383_v37 }
 0x7ff   :  { %1431 = vmatmul.f32.vlgmr.msra.gmra.mxu1 %v1393_v49  ;;  %v5170_v49 = vld [vmem:[%s6068_s5 + $0x28] sm:$0xff] }
 0x80b   :  { %v1376_v11 = vpop.f32.mrf.mxu2 }
 0x80c   :  { %v1377_v45 = vadd.f32 %v1376_v11, %v1343_v22  ;;  %v5169_v22 = vld [vmem:[%s6068_s5 + $0x20] sm:$0xff] }
 0x80e   :  { %v1384_v14 = vadd.f32 %v5522_v51, %v1377_v45  ;;  %v1601_v45 = vld [vmem:[#allocation5 + $0xc8] sm:$0xff] }
 0x810   :  { %v1386_v62 = vmul.f32 0.5, %v1384_v14 }
 0x812   :  { %5593 = vtanh.f32 %v1386_v62  ;;  %v5791_v62 = vld [vmem:[%s6113_s14] sm:$0xff] }
 0x818   :  { %v5594_v8 = vpop.eup %5593 }
 0x819   :  { %v1390_v23 = vadd.f32 1.0, %v5594_v8  ;;  %v5172_v8 = vld [vmem:[%s6068_s5 + $0x38] sm:$0xff] }
 0x81a   :  { %1563 = vmatpush.msrb.mxu0 %v5172_v8 }
 0x81b   :  { %v1392_v52 = vmul.f32 0.5, %v1390_v23  ;;  %v5171_v23 = vld [vmem:[%s6068_s5 + $0x30] sm:$0xff] }
 0x81c   :  { %1564 = vmatpush.msrb.mxu0 %v5171_v23 }
 0x81d   :  { %v1394_v54 = vmul.f32 %v1392_v52, %v1384_v14  ;;  %v1602_v14 = vld [vmem:[#allocation5 + $0xd0] sm:$0xff]  ;;  %v1597_v52 = vld [vmem:[#allocation5 + $0xa8] sm:$0xff] }
 0x81e   :  { %1565 = vmatpush.msrb.mxu0 %v5170_v49  ;;  %v5524_v49 = vld [vmem:[%s7625_s29 + $0x1] ss:$0 sm:$0xff] }
 0x81f   :  { %1434 = vmatmul.f32.gmra.mxu1 %v1394_v54  ;;  %v1598_v54 = vld [vmem:[#allocation5 + $0xb0] sm:$0xff] }
 0x820   :  { %1566 = vmatpush.msrb.mxu0 %v5169_v22 }
 0x87c   :  { %v1432_v57 = vpop.f32.mrf.mxu1 }
 0x87d   :  { %v1433_v59 = vadd.f32 %v5523_v58, %v1432_v57  ;;  %v1593_v57 = vld [vmem:[#allocation5 + $0x88] sm:$0xff] }
 0x87f   :  { %v1438_v51 = vadd.f32 %v1433_v59, %v6400_v26  ;;  %v1605_v26 = vld [vmem:[#allocation5 + $0xe8] sm:$0xff]  ;;  %v1603_v59 = vld [vmem:[#allocation5 + $0xd8] sm:$0xff] }
 0x89c   :  { %v1435_v37 = vpop.f32.mrf.mxu1 }
 0x89d   :  { %v1436_v60 = vadd.f32 %v5523_v58, %v1435_v37  ;;  %v1594_v58 = vld [vmem:[#allocation5 + $0x90] sm:$0xff]  ;;  %v1607_v37 = vld [vmem:[#allocation5 + $0xf8] sm:$0xff] }
 0x89e   :  { %1695 = vmatpush.msra.mxu2 %v1607_v37 }
 0x89f   :  { %v1439_v61 = vadd.f32 %v1436_v60, %v6402_v30  ;;  %v1606_v30 = vld [vmem:[#allocation5 + $0xf0] sm:$0xff]  ;;  %v1599_v60 = vld [vmem:[#allocation5 + $0xb8] sm:$0xff] }
 0x8a0   :  { %1672 = vmatpush.msrb.mxu3 %v1606_v30  ;;  %1696 = vmatpush.msra.mxu2 %v1603_v59  ;;  %v1604_v59 = vld [vmem:[#allocation5 + $0xe0] sm:$0xff] }
 0x8a1   :  { %1454 = vmatpush.msrb.mxu1 %v1439_v61  ;;  %v1595_v61 = vld [vmem:[#allocation5 + $0x98] sm:$0xff] }
 0x8a2   :  { %1673 = vmatpush.msrb.mxu3 %v1602_v14  ;;  %1697 = vmatpush.msra.mxu2 %v1599_v60  ;;  %v5794_v60 = vld [vmem:[%s7624_s25] sm:$0xff] }
 0x8a3   :  { %1455 = vmatpush.msrb.mxu1 %v1438_v51 }
 0x8a4   :  { %5165 = vmatmul.msk.f32.vlgmr.msrb.gmra.mxu1 %vm343_vm2, %v5791_v62  ;;  %1674 = vmatpush.msrb.mxu3 %v1598_v54  ;;  %v5792_v62 = vld [vmem:[%s7621_s13] ss:$0 sm:$0xff] }
 0x8a5   :  { %1698 = vmatpush.msra.mxu2 %v1595_v61  ;;  %v1600_v61 = vld [vmem:[#allocation5 + $0xc0] sm:$0xff] }
 0x8a6   :  { %1675 = vmatpush.msrb.mxu3 %v1594_v58  ;;  %v5793_v58 = vld [vmem:[%s7623_s17] ss:$0 sm:$0xff] }
 0x921   :  { %v1457_v11 = vpop.f32.mrf.mxu1 }
 0x922   :  { %5166 = vmatmul.msk.f32.vlgmr.msra.gmra.mxu0 %vm237_vm1, %v1457_v11 }
 0x923   :  { %1649 = vmatpush.msra.mxu0 %v1605_v26 }
 0x925   :  { %1650 = vmatpush.msra.mxu0 %v1601_v45 }
 0x927   :  { %1651 = vmatpush.msra.mxu0 %v1597_v52 }
 0x929   :  { %1652 = vmatpush.msra.mxu0 %v1593_v57 }
 0x92a   :  { %5174 = vmatmul.msk.f32.vlgmr.msrb.gmra.mxu0 %vm237_vm1, %v6364_v55 }
 0x932   :  { %5175 = vmatmul.msk.f32.gmra.mxu0 %vm237_vm1, %v6350_v16 }
 0x99f   :  { %v1480_v51 = vpop.f32.mrf.mxu0 }
 0x9a0   :  { %v1481_v8 = vadd.f32 %v5792_v62, %v1480_v51  ;;  %v1596_v51 = vld [vmem:[#allocation5 + $0xa0] sm:$0xff] }
 0x9a1   :  { %v1592_v62 = vld [vmem:[#allocation5 + $0x80] sm:$0xff] }
 0x9a2   :  { %v1483_v23 = vmul.f32 0.5, %v1481_v8 }
 0x9a4   :  { %5595 = vtanh.f32 %v1483_v23 }
 0x9a7   :  { %v1568_v22 = vpop.f32.mrf.mxu0 }
 0x9a8   :  { %v1569_v11 = vadd.f32 %v5524_v49, %v1568_v22 }
 0x9aa   :  { %v5596_v26 = vpop.eup %5595  ;;  %5178 = vmatmul.msk.f32.vlgmr.msra.gmra.mxu0 %vm237_vm1, %v1569_v11  ;;  %5180 = vmatmul.msk.f32.vlgmr.msrb.gmra.mxu3 %vm237_vm1, %v1569_v11 }
 0x9ab   :  { %v1485_v30 = vadd.f32 1.0, %v5596_v26 }
 0x9ad   :  { %v1486_v45 = vmul.f32 0.5, %v1485_v30  ;;  %v1587_v30 = vld [vmem:[#allocation2 + $0xe0] sm:$0xff] }
 0x9af   :  { %v1487_v14 = vmul.f32 %v1486_v45, %v1481_v8  ;;  %v1571_v52 = vpop.f32.mrf.mxu0  ;;  %v5795_v8 = vld [vmem:[%s7624_s25 + $0x8] sm:$0xff] }
 0x9b0   :  { %v1572_v54 = vadd.f32 %v5524_v49, %v1571_v52  ;;  %v1588_v45 = vld [vmem:[#allocation2 + $0xe8] sm:$0xff]  ;;  %v1583_v52 = vld [vmem:[#allocation2 + $0xc0] sm:$0xff] }
 0x9b1   :  { %1504 = vmatmul.f32.vlgmr.msrb.gmra.mxu2 %v1487_v14  ;;  %1751 = vmatpush.msrb.mxu0 %v1588_v45  ;;  %v1590_v14 = vld [vmem:[#allocation2 + $0xf8] sm:$0xff] }
 0x9b2   :  { %5179 = vmatmul.msk.f32.gmra.mxu0 %vm237_vm1, %v1572_v54  ;;  %5181 = vmatmul.msk.f32.gmra.mxu3 %vm237_vm1, %v1572_v54 }
 0x9b3   :  { %1797 = vmatpush.msrb.mxu2 %v1590_v14 }
 0x9b9   :  { %5182 = vmatmul.msk.f32.vlgmr.msra.gmra.mxu2 %vm237_vm1, %v1569_v11 }
 0x9c1   :  { %5183 = vmatmul.msk.f32.gmra.mxu2 %vm237_vm1, %v1572_v54 }
 0xa27   :  { %v1654_v14 = vpop.f32.mrf.mxu0 }
 0xa34   :  { %v1505_v57 = vpop.f32.mrf.mxu2 }
 0xa35   :  { %v1506_v37 = vadd.f32 %v5793_v58, %v1505_v57  ;;  %v1585_v57 = vld [vmem:[#allocation2 + $0xd0] sm:$0xff]  ;;  %v1586_v58 = vld [vmem:[#allocation2 + $0xd8] sm:$0xff] }
 0xa36   :  { %1798 = vmatpush.msrb.mxu2 %v1586_v58 }
 0xa37   :  { %1523 = vmatpush.msra.mxu1 %v1506_v37  ;;  %v1579_v37 = vld [vmem:[#allocation2 + $0xa0] sm:$0xff] }
 0xa38   :  { %5167 = vmatmul.msk.f32.vlgmr.msra.gmra.mxu1 %vm197_vm0, %v5794_v60  ;;  %v1581_v60 = vld [vmem:[#allocation2 + $0xb0] sm:$0xff] }
 0xa39   :  { %1626 = vmatpush.msrb.mxu1 %v1604_v59  ;;  %v1580_v59 = vld [vmem:[#allocation2 + $0xa8] sm:$0xff] }
 0xa3b   :  { %1627 = vmatpush.msrb.mxu1 %v1600_v61  ;;  %v1582_v61 = vld [vmem:[#allocation2 + $0xb8] sm:$0xff] }
 0xa3c   :  { %1799 = vmatpush.msrb.mxu2 %v1582_v61 }
 0xa3d   :  { %1628 = vmatpush.msrb.mxu1 %v1596_v51  ;;  %v1575_v51 = vld [vmem:[#allocation2 + $0x80] sm:$0xff] }
 0xa3f   :  { %1629 = vmatpush.msrb.mxu1 %v1592_v62  ;;  %v1576_v62 = vld [vmem:[#allocation2 + $0x88] sm:$0xff] }
 0xa40   :  { %5168 = vmatmul.msk.f32.gmra.mxu1 %vm197_vm0, %v5795_v8  ;;  %v1577_v8 = vld [vmem:[#allocation2 + $0x90] sm:$0xff] }
 0xa41   :  { %1728 = vmatpush.msra.mxu1 %v1587_v30 }
 0xa43   :  { %1729 = vmatpush.msra.mxu1 %v1583_v52 }
 0xa45   :  { %1730 = vmatpush.msra.mxu1 %v1579_v37  ;;  %v6763_v37 = vld [vmem:[%s7626_s24 + $0x4] sm:$0xf] }
 0xa46   :  { %v1812_v61 = vperm.slane %v6763_v37, 1  ;;  %v1813_v21 = vperm.slane %v6763_v37, 2 }
 0xa47   :  { %1731 = vmatpush.msra.mxu1 %v1575_v51 }
 0xa48   :  { %5176 = vmatmul.msk.f32.vlgmr.msrb.gmra.mxu1 %vm237_vm1, %v1569_v11  ;;  %v1589_v11 = vld [vmem:[#allocation2 + $0xf0] sm:$0xff] }
 0xa49   :  { %1774 = vmatpush.msra.mxu3 %v1589_v11 }
 0xa4b   :  { %1775 = vmatpush.msra.mxu3 %v1585_v57  ;;  %v1657_v57 = vpop.f32.mrf.mxu0 }
 0xa4d   :  { %1776 = vmatpush.msra.mxu3 %v1581_v60  ;;  %v1811_v60 = vperm.slane %v6763_v37, 0 }
 0xa4f   :  { %1777 = vmatpush.msra.mxu3 %v1577_v8 }
 0xa50   :  { %5177 = vmatmul.msk.f32.gmra.mxu1 %vm237_vm1, %v1572_v54  ;;  %v1584_v54 = vld [vmem:[#allocation2 + $0xc8] sm:$0xff] }
 0xa51   :  { %1752 = vmatpush.msrb.mxu0 %v1584_v54  ;;  %v1677_v54 = vpop.f32.mrf.mxu3 }
 0xa53   :  { %1753 = vmatpush.msrb.mxu0 %v1580_v59 }
 0xa55   :  { %1754 = vmatpush.msrb.mxu0 %v1576_v62 }
 0xa59   :  { %v1680_v59 = vpop.f32.mrf.mxu3 }
 0xab5   :  { %v6742_v23 = vpop.f32.mrf.mxu1 }
 0xab6   :  { %1533 = vrot.lane.b32.xlu2 %v6742_v23, %s6052_s1 }
 0xabd   :  { %v6746_v49 = vpop.f32.mrf.mxu1 }
 0xabe   :  { %1535 = vrot.lane.b32.xlu1 %v6746_v49, %s6052_s1 }
 0xac5   :  { %v1631_v52 = vpop.f32.mrf.mxu1 }
 0xacd   :  { %v1634_v58 = vpop.f32.mrf.mxu1 }
 0xb10   :  { %v1534_v22 = vpop.permute.xlu2 %1533 }
 0xb11   :  { %v1539_v26 = vadd.f32 %v1534_v22, %v6552_v63  ;;  %v1578_v22 = vld [vmem:[#allocation2 + $0x98] sm:$0xff] }
 0xb12   :  { %1800 = vmatpush.msrb.mxu2 %v1578_v22 }
 0xb13   :  { %1708 = vrot.lane.b32.xlu0 %v1539_v26, %s6054_s6 }
 0xb30   :  { %v1536_v26 = vpop.permute.xlu1 %1535 }
 0xb31   :  { %v1540_v30 = vadd.f32 %v1536_v26, %v6616_v17 }
 0xb33   :  { %1710 = vrot.lane.b32.xlu2 %v1540_v30, %s6054_s6 }
 0xb85   :  { %v1709_v45 = vpop.permute.xlu0 %1708 }
 0xb86   :  { %5184 = vmatmul.msk.f32.vlgmr.msra.gmra.mxu1 %vm237_vm1, %v1709_v45  ;;  %5186 = vmatmul.msk.f32.vlgmr.msrb.gmra.mxu0 %vm237_vm1, %v1709_v45 }
 0xb87   :  { %5188 = vmatmul.msk.f32.vlgmr.msra.gmra.mxu3 %vm237_vm1, %v1709_v45  ;;  %5190 = vmatmul.msk.f32.vlgmr.msrb.gmra.mxu2 %vm237_vm1, %v1709_v45 }
 0xb8d   :  { %v1711_v11 = vpop.permute.xlu2 %1710 }
 0xb8e   :  { %5185 = vmatmul.msk.f32.gmra.mxu1 %vm237_vm1, %v1711_v11  ;;  %5187 = vmatmul.msk.f32.gmra.mxu0 %vm237_vm1, %v1711_v11 }
 0xb8f   :  { %5189 = vmatmul.msk.f32.gmra.mxu3 %vm237_vm1, %v1711_v11  ;;  %5191 = vmatmul.msk.f32.gmra.mxu2 %vm237_vm1, %v1711_v11 }
 0xc03   :  { %v1733_v51 = vpop.f32.mrf.mxu1  ;;  %v1756_v62 = vpop.f32.mrf.mxu0 }
 0xc04   :  { %v1734_v8 = vadd.f32 %v1733_v51, %v1631_v52  ;;  %v1757_v22 = vadd.f32 %v1756_v62, %v1654_v14 }
 0xc06   :  { %v1819_v26 = vadd.f32 %v1811_v60, %v1734_v8  ;;  %v1820_v30 = vadd.f32 %v1812_v61, %v1757_v22  ;;  %v5797_v22 = vld [vmem:[%s7627_s20 + $0x10] sm:$0xff] }
 0xc08   :  { %1923 = vrot.lane.b32.xlu0 %v1820_v30, %s6054_s6  ;;  %1919 = vrot.lane.b32.xlu2 %v1819_v26, %s6054_s6 }
 0xc0a   :  { %v1779_v45 = vpop.f32.mrf.mxu3 }
 0xc0b   :  { %v1759_v11 = vpop.f32.mrf.mxu0  ;;  %v1736_v63 = vpop.f32.mrf.mxu1  ;;  %v1780_v17 = vadd.f32 %v1779_v45, %v1677_v54 }
 0xc0c   :  { %v1760_v16 = vadd.f32 %v1759_v11, %v1657_v57  ;;  %v1737_v52 = vadd.f32 %v1736_v63, %v1634_v58  ;;  %v5799_v11 = vld [vmem:[%s7627_s20] sm:$0xff] }
 0xc0d   :  { %v1821_v62 = vadd.f32 %v1813_v21, %v1780_v17 }
 0xc0e   :  { %v1824_v55 = vadd.f32 %v1812_v61, %v1760_v16  ;;  %v1823_v16 = vadd.f32 %v1811_v60, %v1737_v52  ;;  %v5796_v60 = vld [vmem:[%s7627_s20 + $0x18] sm:$0xff] }
 0xc10   :  { %2131 = vrot.lane.b32.xlu0 %v1824_v55, %s6052_s1  ;;  %1925 = vrot.lane.b32.xlu1 %v1824_v55, %s6054_s6 }
 0xc11   :  { %5193 = vmatpush.xpose.msk.msrb.mxu1 %vm237_vm1, %v1824_v55  ;;  %2129 = vrot.lane.b32.xlu2 %v1820_v30, %s6052_s1 }
 0xc12   :  { %v1782_v14 = vpop.f32.mrf.mxu3 }
 0xc13   :  { %v1783_v51 = vadd.f32 %v1782_v14, %v1680_v59 }
 0xc15   :  { %v1825_v8 = vadd.f32 %v1813_v21, %v1783_v51  ;;  %5194 = vmatpush.xpose.msk.msrb.mxu1 %vm237_vm1, %v1820_v30 }
 0xc17   :  { %1906 = vmatpush.msra.mxu0 %v1825_v8  ;;  %v6775_v57 = vpack.i.bf16 %v1821_v62, %v1825_v8 }
 0xc18   :  { %5195 = vmatmul.msk.f32.vlgmr.msrb.gmra.mxu1 %vm237_vm1, %v1819_v26  ;;  %2029 = vrot.lane.b32.xlu0 %v1824_v55, %s6055_s12 }
 0xc19   :  { %1907 = vmatpush.msra.mxu0 %v1821_v62  ;;  %1921 = vrot.lane.b32.xlu1 %v1823_v16, %s6054_s6 }
 0xc1a   :  { %2027 = vrot.lane.b32.xlu2 %v1820_v30, %s6055_s12 }
 0xc20   :  { %5196 = vmatmul.msk.f32.gmra.mxu1 %vm237_vm1, %v1823_v16  ;;  %2023 = vrot.lane.b32.xlu0 %v1819_v26, %s6055_s12 }
 0xc21   :  { %2125 = vrot.lane.b32.xlu1 %v1819_v26, %s6052_s1  ;;  %v5798_v26 = vld [vmem:[%s7627_s20 + $0x8] sm:$0xff] }
 0xc22   :  { %2025 = vrot.lane.b32.xlu2 %v1823_v16, %s6055_s12 }
 0xc29   :  { %2127 = vrot.lane.b32.xlu1 %v1823_v16, %s6052_s1  ;;  %v6819_v16 = vld [vmem:[%s7628_s27 + $0x8] sm:$0xff] }
 0xc31   :  { %5469 = vrot.lane.b32.xlu1 %v6775_v57, %s6054_s6 }
 0xc62   :  { %v1920_v55 = vpop.permute.xlu2 %1919 }
 0xc6b   :  { %v2130_v54 = vpop.permute.xlu2 %2129 }
 0xc74   :  { %v2028_v61 = vpop.permute.xlu2 %2027 }
 0xc7a   :  { %v1924_v63 = vpop.permute.xlu0 %1923 }
 0xc82   :  { %v2132_v17 = vpop.permute.xlu0 %2131  ;;  %v1926_v21 = vpop.permute.xlu1 %1925 }
 0xc83   :  { %5199 = vmatpush.xpose.msk.msrb.mxu3 %vm237_vm1, %v1926_v21  ;;  %v5805_v21 = vld [vmem:[%s6163_s30] sm:$0xff] }
 0xc87   :  { %5200 = vmatpush.xpose.msk.msrb.mxu3 %vm237_vm1, %v1924_v63  ;;  %v5804_v63 = vld [vmem:[%s6163_s30 + $0x8] sm:$0xff] }
 0xc8a   :  { %v2030_v58 = vpop.permute.xlu0 %2029  ;;  %5201 = vmatmul.msk.f32.vlgmr.msrb.gmra.mxu3 %vm237_vm1, %v1920_v55 }
 0xc8b   :  { %5211 = vmatpush.xpose.msk.msra.mxu3 %vm237_vm1, %v2132_v17  ;;  %v1922_v59 = vpop.permute.xlu1 %1921  ;;  %5205 = vmatpush.xpose.msk.msra.mxu1 %vm237_vm1, %v2030_v58 }
 0xc8f   :  { %5212 = vmatpush.xpose.msk.msra.mxu3 %vm237_vm1, %v2130_v54  ;;  %5206 = vmatpush.xpose.msk.msra.mxu1 %vm237_vm1, %v2028_v61 }
 0xc92   :  { %v2024_v30 = vpop.permute.xlu0 %2023  ;;  %5202 = vmatmul.msk.f32.gmra.mxu3 %vm237_vm1, %v1922_v59 }
 0xc93   :  { %2357 = vmatpush.msrb.mxu3 %v5796_v60  ;;  %2259 = vmatpush.msrb.mxu1 %v6512_v31  ;;  %v2126_v45 = vpop.permute.xlu1 %2125  ;;  %v6807_v31 = vld [vmem:[%s7628_s27] sm:$0xff] }
 0xc94   :  { %5207 = vmatmul.msk.f32.vlgmr.msra.gmra.mxu1 %vm237_vm1, %v2024_v30 }
 0xc95   :  { %2358 = vmatpush.msrb.mxu3 %v5797_v22  ;;  %2260 = vmatpush.msrb.mxu1 %v6518_v34  ;;  %v1856_v14 = vpop.f32.mrf.mxu1  ;;  %v2026_v34 = vpop.permute.xlu2 %2025 }
 0xc96   :  { %v1862_v52 = vmul.f32 0.17677669, %v1856_v14 }
 0xc97   :  { %2359 = vmatpush.msrb.mxu3 %v5798_v26  ;;  %2261 = vmatpush.msrb.mxu1 %v6522_v38 }
 0xc98   :  { %v1864_v51 = vadd.f32 %v6807_v31, %v1862_v52 }
 0xc99   :  { %2360 = vmatpush.msrb.mxu3 %v5799_v11  ;;  %2262 = vmatpush.msrb.mxu1 %v6526_v44  ;;  %v5801_v44 = vld [vmem:[%s6163_s30 + $0x18] sm:$0xff] }
 0xc9a   :  { %5213 = vmatmul.msk.f32.vlgmr.msra.gmra.mxu3 %vm237_vm1, %v2126_v45  ;;  %v1866_v38 = vsel %vm343_vm2, %v1864_v51, -inf }
 0xc9b   :  { %2413 = vmatpush.msra.mxu1 %v6645_v25  ;;  %v2128_v62 = vpop.permute.xlu1 %2127  ;;  %1867 = vmax.xlane.f32.xlu0 %v1866_v38 }
 0xc9c   :  { %5208 = vmatmul.msk.f32.gmra.mxu1 %vm237_vm1, %v2026_v34  ;;  %2473 = vmatpush.msra.mxu3 %v5801_v44 }
 0xc9d   :  { %2414 = vmatpush.msra.mxu1 %v6648_v56  ;;  %v1859_v25 = vpop.f32.mrf.mxu1  ;;  %v5802_v56 = vld [vmem:[%s6163_s30 + $0x10] sm:$0xff] }
 0xc9e   :  { %v1863_v8 = vmul.f32 0.17677669, %v1859_v25  ;;  %2474 = vmatpush.msra.mxu3 %v5802_v56 }
 0xc9f   :  { %2415 = vmatpush.msra.mxu1 %v6652_v32 }
 0xca0   :  { %v1865_v55 = vadd.f32 %v6819_v16, %v1863_v8  ;;  %2475 = vmatpush.msra.mxu3 %v5804_v63 }
 0xca1   :  { %2416 = vmatpush.msra.mxu1 %v6656_v33 }
 0xca2   :  { %5214 = vmatmul.msk.f32.gmra.mxu3 %vm237_vm1, %v2128_v62  ;;  %v1869_v32 = vsel %vm343_vm2, %v1865_v55, -inf }
 0xca3   :  { %2417 = vmatpush.msra.mxu1 %v6660_v27  ;;  %v5470_v17 = vpop.permute.xlu1 %5469  ;;  %1870 = vmax.xlane.f32.xlu0 %v1869_v32 }
 0xca4   :  { %2476 = vmatpush.msra.mxu3 %v5805_v21  ;;  %v5471_v33 = vunpack.i.l.bf16 %v5470_v17  ;;  %v5472_v54 = vunpack.i.h.bf16 %v5470_v17 }
 0xca5   :  { %2418 = vmatpush.msra.mxu1 %v6664_v28 }
 0xca6   :  { %2010 = vmatpush.msra.mxu2 %v5471_v33 }
 0xca7   :  { %2419 = vmatpush.msra.mxu1 %v6673_v40 }
 0xca8   :  { %2011 = vmatpush.msra.mxu2 %v5472_v54 }
 0xca9   :  { %2420 = vmatpush.msra.mxu1 %v6677_v46 }
 0xcaa   :  { %5221 = vmatmul.msk.f32.vlgmr.msrb.gmra.mxu3 %vm237_vm1, %v6742_v23 }
 0xcab   :  { %2421 = vmatpush.msra.mxu1 %v6681_v39 }
 0xcad   :  { %2422 = vmatpush.msra.mxu1 %v6685_v41 }
 0xcaf   :  { %2423 = vmatpush.msra.mxu1 %v6689_v47 }
 0xcb1   :  { %2424 = vmatpush.msra.mxu1 %v6693_v43 }
 0xcb2   :  { %5222 = vmatmul.msk.f32.gmra.mxu3 %vm237_vm1, %v6746_v49 }
 0xcb3   :  { %2425 = vmatpush.msra.mxu1 %v6697_v50 }
 0xcb5   :  { %2426 = vmatpush.msra.mxu1 %v6701_v53 }
 0xcb7   :  { %2427 = vmatpush.msra.mxu1 %v6705_v29 }
 0xcb9   :  { %2428 = vmatpush.msra.mxu1 %v6709_v48 }
 0xd0d   :  { %v1952_v27 = vpop.f32.mrf.mxu3 }
 0xd0e   :  { %v1958_v28 = vmul.f32 0.17677669, %v1952_v27  ;;  %v1868_v40 = vpop.xlane.xlu0 %1867 }
 0xd0f   :  { %v1872_v46 = vsub.f32 %v1864_v51, %v1868_v40 }
 0xd10   :  { %v1960_v41 = vadd.f32 %v6807_v31, %v1958_v28 }
 0xd11   :  { %v2056_v39 = vpop.f32.mrf.mxu1  ;;  %v1874_v47 = vmul.f32 1.442695, %v1872_v46 }
 0xd12   :  { %v2062_v43 = vmul.f32 0.17677669, %v2056_v39  ;;  %v1962_v50 = vsel %vm343_vm2, %v1960_v41, -inf }
 0xd13   :  { %5597 = vpow2.f32 %v1874_v47  ;;  %1963 = vmax.xlane.f32.xlu1 %v1962_v50 }
 0xd14   :  { %v2064_v58 = vadd.f32 %v6807_v31, %v2062_v43 }
 0xd15   :  { %v1955_v53 = vpop.f32.mrf.mxu3 }
 0xd16   :  { %v2066_v29 = vsel %vm343_vm2, %v2064_v58, -inf  ;;  %v1959_v59 = vmul.f32 0.17677669, %v1955_v53  ;;  %v1871_v48 = vpop.xlane.xlu0 %1870 }
 0xd17   :  { %2067 = vmax.xlane.f32.xlu0 %v2066_v29  ;;  %v1873_v60 = vsub.f32 %v1865_v55, %v1871_v48 }
 0xd18   :  { %v1961_v61 = vadd.f32 %v6819_v16, %v1959_v59 }
 0xd19   :  { %v5598_v22 = vpop.eup %5597  ;;  %v1876_v26 = vmul.f32 1.442695, %v1873_v60  ;;  %v2059_v62 = vpop.f32.mrf.mxu1 }
 0xd1a   :  { %5197 = vmatmul.msk.f32.vlgmr.msra.gmra.mxu0 %vm343_vm2, %v5598_v22  ;;  %v1965_v30 = vsel %vm343_vm2, %v1961_v61, -inf  ;;  %v2063_v25 = vmul.f32 0.17677669, %v2059_v62  ;;  %v1878_v55 = vsel %vm343_vm2, %v5598_v22, 0.0  ;;  %v5808_v62 = vld [vmem:[%s7629_s4 + $0x8] sm:$0xff] }
 0xd1b   :  { %5599 = vpow2.f32 %v1876_v26  ;;  %1966 = vmax.xlane.f32.xlu2 %v1965_v30 }
 0xd1d   :  { %v2158_v45 = vpop.f32.mrf.mxu3 }
 0xd1e   :  { %v2164_v11 = vmul.f32 0.17677669, %v2158_v45 }
 0xd20   :  { %v2166_v14 = vadd.f32 %v6807_v31, %v2164_v11  ;;  %v2065_v31 = vadd.f32 %v6819_v16, %v2063_v25  ;;  %v5806_v11 = vld [vmem:[%s7629_s4 + $0x18] sm:$0xff] }
 0xd21   :  { %v5600_v52 = vpop.eup %5599 }
 0xd22   :  { %5198 = vmatmul.msk.f32.gmra.mxu0 %vm343_vm2, %v5600_v52  ;;  %v2168_v51 = vsel %vm343_vm2, %v2166_v14, -inf  ;;  %v2069_v56 = vsel %vm343_vm2, %v2065_v31, -inf  ;;  %v1881_v63 = vsel %vm343_vm2, %v5600_v52, 0.0 }
 0xd23   :  { %2169 = vmax.xlane.f32.xlu2 %v2168_v51  ;;  %v5807_v51 = vld [vmem:[%s7629_s4 + $0x10] sm:$0xff] }
 0xd25   :  { %v2161_v34 = vpop.f32.mrf.mxu3 }
 0xd26   :  { %v2165_v38 = vmul.f32 0.17677669, %v2161_v34 }
 0xd28   :  { %v2167_v44 = vadd.f32 %v6819_v16, %v2165_v38 }
 0xd2a   :  { %v2171_v8 = vsel %vm343_vm2, %v2167_v44, -inf }
 0xd2b   :  { %5474 = vrot.lane.b32.xlu0 %v6775_v57, %s6052_s1  ;;  %2172 = vmax.xlane.f32.xlu2 %v2171_v8 }
 0xd2c   :  { %5479 = vrot.lane.b32.xlu1 %v6775_v57, %s6055_s12 }
 0xd33   :  { %2070 = vmax.xlane.f32.xlu2 %v2069_v56 }
 0xd3b   :  { %1879 = vadd.xlane.f32.xlu2 %v1878_v55 }
 0xd43   :  { %1882 = vadd.xlane.f32.xlu2 %v1881_v63 }
 0xd86   :  { %v1964_v32 = vpop.xlane.xlu1 %1963 }
 0xd87   :  { %v1968_v17 = vsub.f32 %v1960_v41, %v1964_v32 }
 0xd89   :  { %v1970_v21 = vmul.f32 1.442695, %v1968_v17 }
 0xd8a   :  { %v2068_v33 = vpop.xlane.xlu0 %2067 }
 0xd8b   :  { %v2072_v54 = vsub.f32 %v2064_v58, %v2068_v33  ;;  %5601 = vpow2.f32 %v1970_v21  ;;  %v5810_v21 = vld [vmem:[%s7631_s18] ss:$0 sm:$0xff] }
 0xd8d   :  { %v2074_v27 = vmul.f32 1.442695, %v2072_v54 }
 0xd8e   :  { %v1967_v57 = vpop.xlane.xlu2 %1966 }
 0xd8f   :  { %5603 = vpow2.f32 %v2074_v27  ;;  %v1969_v28 = vsub.f32 %v1961_v61, %v1967_v57 }
 0xd91   :  { %v5602_v16 = vpop.eup %5601  ;;  %v1972_v40 = vmul.f32 1.442695, %v1969_v28 }
 0xd92   :  { %5203 = vmatmul.msk.f32.vlgmr.msra.gmra.mxu2 %vm343_vm2, %v5602_v16  ;;  %v1974_v46 = vsel %vm343_vm2, %v5602_v16, 0.0 }
 0xd93   :  { %5605 = vpow2.f32 %v1972_v40  ;;  %1975 = vadd.xlane.f32.xlu1 %v1974_v46 }
 0xd95   :  { %v5604_v39 = vpop.eup %5603 }
 0xd96   :  { %v2078_v47 = vsel %vm343_vm2, %v5604_v39, 0.0  ;;  %v2170_v41 = vpop.xlane.xlu2 %2169 }
 0xd97   :  { %2079 = vadd.xlane.f32.xlu0 %v2078_v47  ;;  %v2174_v43 = vsub.f32 %v2166_v14, %v2170_v41  ;;  %v1814_v47 = vperm.slane %v6763_v37, 3 }
 0xd99   :  { %v5606_v50 = vpop.eup %5605  ;;  %v2176_v58 = vmul.f32 1.442695, %v2174_v43 }
 0xd9a   :  { %5204 = vmatmul.msk.f32.gmra.mxu2 %vm343_vm2, %v5606_v50 }
 0xd9b   :  { %5607 = vpow2.f32 %v2176_v58 }
 0xd9d   :  { %v5475_v53 = vpop.permute.xlu0 %5474 }
 0xd9e   :  { %v5476_v29 = vunpack.i.l.bf16 %v5475_v53  ;;  %v5480_v59 = vpop.permute.xlu1 %5479  ;;  %v2173_v48 = vpop.xlane.xlu2 %2172  ;;  %v5477_v60 = vunpack.i.h.bf16 %v5475_v53 }
 0xd9f   :  { %v5481_v61 = vunpack.i.l.bf16 %v5480_v59  ;;  %v2175_v22 = vsub.f32 %v2167_v44, %v2173_v48  ;;  %v5482_v30 = vunpack.i.h.bf16 %v5480_v59 }
 0xda0   :  { %2214 = vmatpush.msrb.mxu2 %v5476_v29 }
 0xda1   :  { %v5608_v26 = vpop.eup %5607  ;;  %v2178_v45 = vmul.f32 1.442695, %v2175_v22  ;;  %2112 = vmatpush.msrb.mxu0 %v5481_v61 }
 0xda2   :  { %2215 = vmatpush.msrb.mxu2 %v5477_v60 }
 0xda3   :  { %5215 = vmatmul.msk.f32.vlgmr.msrb.gmra.mxu2 %vm343_vm2, %v5608_v26  ;;  %5609 = vpow2.f32 %v2178_v45  ;;  %2113 = vmatpush.msrb.mxu0 %v5482_v30 }
 0xda4   :  { %2390 = vmatpush.msra.mxu2 %v6557_v0  ;;  %5209 = vmatmul.msk.f32.vlgmr.msrb.gmra.mxu0 %vm343_vm2, %v5604_v39  ;;  %v5809_v0 = vld [vmem:[%s7629_s4] sm:$0xff] }
 0xda5   :  { %2282 = vmatpush.msra.mxu0 %v5806_v11 }
 0xda6   :  { %2391 = vmatpush.msra.mxu2 %v6560_v36  ;;  %v2071_v14 = vpop.xlane.xlu2 %2070 }
 0xda7   :  { %v2073_v52 = vsub.f32 %v2065_v31, %v2071_v14  ;;  %2283 = vmatpush.msra.mxu0 %v5807_v51 }
 0xda8   :  { %2392 = vmatpush.msra.mxu2 %v6564_v1 }
 0xda9   :  { %v5610_v34 = vpop.eup %5609  ;;  %v2076_v38 = vmul.f32 1.442695, %v2073_v52  ;;  %2284 = vmatpush.msra.mxu0 %v5808_v62 }
 0xdaa   :  { %2393 = vmatpush.msra.mxu2 %v6568_v2  ;;  %v1977_v2 = vsel %vm343_vm2, %v5606_v50, 0.0 }
 0xdab   :  { %5216 = vmatmul.msk.f32.gmra.mxu2 %vm343_vm2, %v5610_v34  ;;  %5611 = vpow2.f32 %v2076_v38  ;;  %2285 = vmatpush.msra.mxu0 %v5809_v0 }
 0xdac   :  { %2486 = vmatpush.msrb.mxu2 %v6573_v3  ;;  %v2180_v3 = vsel %vm343_vm2, %v5608_v26, 0.0  ;;  %v7646_v26 = vld [vmem:[#allocation35_spill] sm:$0xff] }
 0xdae   :  { %2487 = vmatpush.msrb.mxu2 %v6577_v4  ;;  %v7644_v4 = vld [vmem:[#allocation38_spill] sm:$0xff] }
 0xdb0   :  { %2488 = vmatpush.msrb.mxu2 %v6581_v5  ;;  %v7645_v5 = vld [vmem:[#allocation39_spill] sm:$0xff] }
 0xdb1   :  { %v5612_v36 = vpop.eup %5611 }
 0xdb2   :  { %2489 = vmatpush.msrb.mxu2 %v6585_v6  ;;  %5210 = vmatmul.msk.f32.gmra.mxu0 %vm343_vm2, %v5612_v36  ;;  %v2081_v1 = vsel %vm343_vm2, %v5612_v36, 0.0  ;;  %v2183_v6 = vsel %vm343_vm2, %v5610_v34, 0.0 }
 0xdb3   :  { %2082 = vadd.xlane.f32.xlu2 %v2081_v1  ;;  %v7647_v1 = vld [vmem:[#allocation34_spill] sm:$0xff] }
 0xdb4   :  { %2490 = vmatpush.msrb.mxu2 %v6589_v7  ;;  %v1700_v7 = vpop.f32.mrf.mxu2 }
 0xdb6   :  { %2491 = vmatpush.msrb.mxu2 %v6593_v9 }
 0xdb8   :  { %2492 = vmatpush.msrb.mxu2 %v6597_v10  ;;  %v1880_v10 = vpop.xlane.xlu2 %1879 }
 0xdb9   :  { %5613 = vrcp.f32 %v1880_v10 }
 0xdba   :  { %2493 = vmatpush.msrb.mxu2 %v6601_v12  ;;  %5219 = vmatmul.msk.f32.vlgmr.msra.gmra.mxu0 %vm237_vm1, %v6640_v24 }
 0xdbb   :  { %1978 = vadd.xlane.f32.xlu2 %v1977_v2 }
 0xdbc   :  { %2494 = vmatpush.msrb.mxu2 %v6605_v13  ;;  %v1703_v9 = vpop.f32.mrf.mxu2  ;;  %v1909_v13 = vpop.f32.mrf.mxu0 }
 0xdbe   :  { %2495 = vmatpush.msrb.mxu2 %v6609_v42 }
 0xdbf   :  { %v5614_v56 = vpop.eup %5613 }
 0xdc0   :  { %2496 = vmatpush.msrb.mxu2 %v6613_v15  ;;  %v1883_v42 = vpop.xlane.xlu2 %1882  ;;  %v1915_v27 = vmul.f32 %v5614_v56, %v1909_v13 }
 0xdc2   :  { %2497 = vmatpush.msrb.mxu2 %v6619_v18  ;;  %5220 = vmatmul.msk.f32.gmra.mxu0 %vm237_vm1, %v6668_v35 }
 0xdc3   :  { %2181 = vadd.xlane.f32.xlu2 %v2180_v3 }
 0xdc4   :  { %2498 = vmatpush.msrb.mxu2 %v6625_v19  ;;  %v1802_v12 = vpop.f32.mrf.mxu2  ;;  %v1912_v18 = vpop.f32.mrf.mxu0 }
 0xdc5   :  { %v1803_v41 = vadd.f32 %v1802_v12, %v1700_v7 }
 0xdc6   :  { %2499 = vmatpush.msrb.mxu2 %v6629_v20 }
 0xdc7   :  { %v1822_v61 = vadd.f32 %v1814_v47, %v1803_v41 }
 0xdc8   :  { %2500 = vmatpush.msrb.mxu2 %v7644_v4 }
 0xdca   :  { %2501 = vmatpush.msrb.mxu2 %v7645_v5 }
 0xdcb   :  { %2184 = vadd.xlane.f32.xlu2 %v2183_v6 }
 0xdcc   :  { %v1805_v15 = vpop.f32.mrf.mxu2 }
 0xdcd   :  { %v1806_v51 = vadd.f32 %v1805_v15, %v1703_v9 }
 0xdcf   :  { %v1826_v36 = vadd.f32 %v1814_v47, %v1806_v51 }
 0xe06   :  { %v1976_v44 = vpop.xlane.xlu1 %1975 }
 0xe07   :  { %5615 = vrcp.f32 %v1976_v44 }
 0xe0a   :  { %v2080_v8 = vpop.xlane.xlu0 %2079 }
 0xe0b   :  { %5617 = vrcp.f32 %v2080_v8 }
 0xe0d   :  { %v5616_v63 = vpop.eup %5615 }
 0xe11   :  { %v5618_v54 = vpop.eup %5617 }
 0xe15   :  { %v2013_v35 = vpop.f32.mrf.mxu2 }
 0xe16   :  { %v2019_v17 = vmul.f32 %v5616_v63, %v2013_v35 }
 0xe18   :  { %v2021_v46 = vadd.f32 %v2019_v17, %v1915_v27 }
 0xe1d   :  { %v2016_v31 = vpop.f32.mrf.mxu2 }
 0xe21   :  { %v2115_v19 = vpop.f32.mrf.mxu0 }
 0xe22   :  { %v2121_v57 = vmul.f32 %v5618_v54, %v2115_v19 }
 0xe24   :  { %v2123_v43 = vadd.f32 %v2121_v57, %v2021_v46 }
 0xe26   :  { %v2083_v24 = vpop.xlane.xlu2 %2082  ;;  %v2217_v16 = vpop.f32.mrf.mxu2 }
 0xe2e   :  { %v1979_v20 = vpop.xlane.xlu2 %1978  ;;  %v2220_v52 = vpop.f32.mrf.mxu2 }
 0xe2f   :  { %v2118_v25 = vpop.f32.mrf.mxu0  ;;  %5619 = vrcp.f32 %v1979_v20 }
 0xe30   :  { %5621 = vrcp.f32 %v1883_v42 }
 0xe35   :  { %v5620_v28 = vpop.eup %5619 }
 0xe36   :  { %v2182_v55 = vpop.xlane.xlu2 %2181  ;;  %v5622_v40 = vpop.eup %5621  ;;  %v2020_v50 = vmul.f32 %v5620_v28, %v2016_v31 }
 0xe37   :  { %5623 = vrcp.f32 %v2182_v55  ;;  %v2287_v32 = vpop.f32.mrf.mxu0  ;;  %v1916_v59 = vmul.f32 %v5622_v40, %v1912_v18  ;;  %v5811_v18 = vld [vmem:[%s7635_s23] ss:$0 sm:$0xff] }
 0xe38   :  { %v2288_v33 = vadd.f32 %v5810_v21, %v2287_v32  ;;  %5625 = vrcp.f32 %v2083_v24 }
 0xe39   :  { %v2022_v22 = vadd.f32 %v2020_v50, %v1916_v59 }
 0xe3a   :  { %2305 = vrot.lane.b32.xlu1 %v2288_v33, %s6055_s12 }
 0xe3d   :  { %v5624_v39 = vpop.eup %5623 }
 0xe3e   :  { %v2223_v58 = vmul.f32 %v5624_v39, %v2217_v16  ;;  %v2185_v53 = vpop.xlane.xlu2 %2184  ;;  %v5626_v45 = vpop.eup %5625 }
 0xe3f   :  { %5627 = vrcp.f32 %v2185_v53  ;;  %v2290_v29 = vpop.f32.mrf.mxu0  ;;  %v2122_v11 = vmul.f32 %v5626_v45, %v2118_v25 }
 0xe40   :  { %v2225_v48 = vadd.f32 %v2223_v58, %v2123_v43  ;;  %v2291_v60 = vadd.f32 %v5810_v21, %v2290_v29  ;;  %v7648_v43 = vld [vmem:[#allocation37_spill] sm:$0xff] }
 0xe41   :  { %v2124_v34 = vadd.f32 %v2122_v11, %v2022_v22  ;;  %v2362_v11 = vpop.f32.mrf.mxu3 }
 0xe42   :  { %v2227_v30 = vmul.f32 %v2225_v48, %v7646_v26  ;;  %2307 = vrot.lane.b32.xlu2 %v2291_v60, %s6055_s12  ;;  %v7649_v48 = vld [vmem:[#allocation36_spill] sm:$0xff] }
 0xe44   :  { %v2229_v37 = vadd.f32 %v2227_v30, %v1822_v61 }
 0xe45   :  { %v5628_v14 = vpop.eup %5627 }
 0xe46   :  { %v2231_v38 = vmul.f32 0.5, %v2229_v37  ;;  %v2224_v62 = vmul.f32 %v5628_v14, %v2220_v52  ;;  %v5812_v52 = vld [vmem:[%s7642_s0] ss:$0 sm:$0xff] }
 0xe48   :  { %5629 = vtanh.f32 %v2231_v38  ;;  %v2226_v0 = vadd.f32 %v2224_v62, %v2124_v34 }
 0xe49   :  { %v2365_v38 = vpop.f32.mrf.mxu3 }
 0xe4a   :  { %v2228_v2 = vmul.f32 %v2226_v0, %v7647_v1 }
 0xe4c   :  { %v2230_v3 = vadd.f32 %v2228_v2, %v1826_v36 }
 0xe4e   :  { %v5630_v4 = vpop.eup %5629  ;;  %v2232_v5 = vmul.f32 0.5, %v2230_v3 }
 0xe4f   :  { %v2235_v6 = vadd.f32 1.0, %v5630_v4 }
 0xe50   :  { %5631 = vtanh.f32 %v2232_v5 }
 0xe51   :  { %v2237_v7 = vmul.f32 0.5, %v2235_v6 }
 0xe53   :  { %v2239_v10 = vmul.f32 %v2237_v7, %v2229_v37 }
 0xe55   :  { %5217 = vmatmul.msk.f32.vlgmr.msrb.gmra.mxu1 %vm237_vm1, %v2239_v10 }
 0xe56   :  { %v5632_v12 = vpop.eup %5631 }
 0xe57   :  { %v2236_v9 = vadd.f32 1.0, %v5632_v12 }
 0xe59   :  { %v2238_v13 = vmul.f32 0.5, %v2236_v9 }
 0xe5b   :  { %v2240_v42 = vmul.f32 %v2238_v13, %v2230_v3 }
 0xe5d   :  { %5218 = vmatmul.msk.f32.gmra.mxu1 %vm237_vm1, %v2240_v42 }
 0xe9c   :  { %v2308_v27 = vpop.permute.xlu2 %2307 }
 0xeac   :  { %v2306_v63 = vpop.permute.xlu1 %2305 }
 0xed2   :  { %v2264_v15 = vpop.f32.mrf.mxu1 }
 0xed3   :  { %v2265_v24 = vadd.f32 %v5811_v18, %v2264_v15  ;;  %v5813_v15 = vld [vmem:[%s7643_s2] ss:$0 sm:$0xff] }
 0xed5   :  { %v2293_v35 = vadd.f32 %v2288_v33, %v2265_v24 }
 0xed7   :  { %v2295_v19 = vmul.f32 0.5, %v2293_v35 }
 0xed9   :  { %5633 = vtanh.f32 %v2295_v19 }
 0xeda   :  { %v2267_v44 = vpop.f32.mrf.mxu1 }
 0xedb   :  { %v2268_v20 = vadd.f32 %v5811_v18, %v2267_v44  ;;  %v5814_v44 = vld [vmem:[%s6113_s14] sm:$0xff] }
 0xedd   :  { %v2294_v25 = vadd.f32 %v2291_v60, %v2268_v20 }
 0xedf   :  { %v5634_v8 = vpop.eup %5633  ;;  %v2296_v31 = vmul.f32 0.5, %v2294_v25  ;;  %v5231_v25 = vld [vmem:[%s6068_s5 + $0x50] sm:$0xff] }
 0xee0   :  { %v2299_v56 = vadd.f32 1.0, %v5634_v8  ;;  %v5230_v8 = vld [vmem:[%s6068_s5 + $0x48] sm:$0xff] }
 0xee1   :  { %5635 = vtanh.f32 %v2296_v31  ;;  %v5229_v31 = vld [vmem:[%s6068_s5 + $0x40] sm:$0xff] }
 0xee2   :  { %v2301_v55 = vmul.f32 0.5, %v2299_v56 }
 0xee4   :  { %v2311_v32 = vmul.f32 %v2306_v63, %v2301_v55  ;;  %v2325_v29 = vsub.f32 1.0, %v2301_v55  ;;  %v2337_v60 = vmul.f32 %v2301_v55, %v7649_v48  ;;  %v7650_v55 = vld [vmem:[#allocation33_spill] sm:$0xff]  ;;  %v2604_v63 = vld [vmem:[#allocation5 + $0x170] sm:$0xff] }
 0xee5   :  { %2670 = vmatpush.msrb.mxu1 %v2604_v63 }
 0xee6   :  { %2315 = vrot.lane.b32.xlu0 %v2311_v32, %s6055_s12  ;;  %v2599_v32 = vld [vmem:[#allocation5 + $0x148] sm:$0xff] }
 0xee7   :  { %v5636_v17 = vpop.eup %5635 }
 0xee8   :  { %v2300_v21 = vadd.f32 1.0, %v5636_v17  ;;  %v2600_v17 = vld [vmem:[#allocation5 + $0x150] sm:$0xff] }
 0xee9   :  { %2671 = vmatpush.msrb.mxu1 %v2600_v17 }
 0xeea   :  { %v2302_v54 = vmul.f32 0.5, %v2300_v21  ;;  %v2595_v21 = vld [vmem:[#allocation5 + $0x128] sm:$0xff] }
 0xeec   :  { %v2312_v57 = vmul.f32 %v2308_v27, %v2302_v54  ;;  %v2326_v47 = vsub.f32 1.0, %v2302_v54  ;;  %v2338_v50 = vmul.f32 %v2302_v54, %v7648_v43  ;;  %v2596_v54 = vld [vmem:[#allocation5 + $0x130] sm:$0xff]  ;;  %v2591_v27 = vld [vmem:[#allocation5 + $0x108] sm:$0xff]  ;;  %v5525_v43 = vld [vmem:[%s7625_s29 + $0x2] ss:$0 sm:$0xff] }
 0xeed   :  { %2672 = vmatpush.msrb.mxu1 %v2596_v54 }
 0xeee   :  { %2317 = vrot.lane.b32.xlu0 %v2312_v57, %s6055_s12  ;;  %v2592_v57 = vld [vmem:[#allocation5 + $0x110] sm:$0xff] }
 0xeef   :  { %2673 = vmatpush.msrb.mxu1 %v2592_v57  ;;  %v6984_v57 = vld [vmem:[%s7626_s24 + $0x8] sm:$0xf] }
 0xf58   :  { %v2316_v33 = vpop.permute.xlu0 %2315 }
 0xf59   :  { %v2321_v28 = vadd.f32 %v2316_v33, %v2265_v24  ;;  %v2605_v33 = vld [vmem:[#allocation5 + $0x178] sm:$0xff] }
 0xf5b   :  { %5637 = vtanh.f32 %v2321_v28  ;;  %v2601_v28 = vld [vmem:[#allocation5 + $0x158] sm:$0xff] }
 0xf60   :  { %v2318_v16 = vpop.permute.xlu0 %2317 }
 0xf61   :  { %v5638_v40 = vpop.eup %5637  ;;  %v2322_v46 = vadd.f32 %v2318_v16, %v2268_v20  ;;  %v5232_v20 = vld [vmem:[%s6068_s5 + $0x58] sm:$0xff] }
 0xf62   :  { %2329 = vrot.lane.b32.xlu1 %v5638_v40, %s6054_s6  ;;  %2561 = vmatpush.msrb.mxu3 %v5232_v20  ;;  %v2597_v16 = vld [vmem:[#allocation5 + $0x138] sm:$0xff]  ;;  %v2574_v20 = vld [vmem:[#allocation2 + $0x108] sm:$0xff] }
 0xf63   :  { %5639 = vtanh.f32 %v2322_v46  ;;  %v2593_v40 = vld [vmem:[#allocation5 + $0x118] sm:$0xff] }
 0xf64   :  { %2562 = vmatpush.msrb.mxu3 %v5231_v25  ;;  %v2575_v25 = vld [vmem:[#allocation2 + $0x110] sm:$0xff] }
 0xf66   :  { %2563 = vmatpush.msrb.mxu3 %v5230_v8  ;;  %v2576_v8 = vld [vmem:[#allocation2 + $0x118] sm:$0xff] }
 0xf68   :  { %2564 = vmatpush.msrb.mxu3 %v5229_v31 }
 0xf69   :  { %v5640_v39 = vpop.eup %5639 }
 0xf6a   :  { %2331 = vrot.lane.b32.xlu2 %v5640_v39, %s6054_s6  ;;  %v5815_v39 = vld [vmem:[%s7621_s13] ss:$0 sm:$0xff] }
 0xfc4   :  { %v2332_v41 = vpop.permute.xlu2 %2331 }
 0xfc5   :  { %v2336_v58 = vmul.f32 %v2332_v41, %v2326_v47 }
 0xfc7   :  { %v6916_v53 = vadd.f32 %v2338_v50, %v2336_v58 }
 0xfc9   :  { %2372 = vrot.lane.b32.xlu1 %v6916_v53, %s6054_s6 }
 0xfd4   :  { %v2330_v59 = vpop.permute.xlu1 %2329 }
 0xfd5   :  { %v2335_v61 = vmul.f32 %v2330_v59, %v2325_v29 }
 0xfd7   :  { %v6921_v22 = vadd.f32 %v2337_v60, %v2335_v61 }
 0xfd9   :  { %2370 = vrot.lane.b32.xlu0 %v6921_v22, %s6054_s6 }
0x103b   :  { %v6929_v45 = vpop.permute.xlu1 %2372 }
0x104b   :  { %v6925_v30 = vpop.permute.xlu0 %2370 }
0x104c   :  { %5223 = vmatmul.msk.f32.vlgmr.msra.gmra.mxu2 %vm237_vm1, %v6925_v30 }
0x104d   :  { %2693 = vmatpush.msra.mxu2 %v2605_v33 }
0x104f   :  { %2694 = vmatpush.msra.mxu2 %v2601_v28  ;;  %v2809_v28 = vperm.slane %v6984_v57, 0 }
0x1051   :  { %2695 = vmatpush.msra.mxu2 %v2597_v16 }
0x1053   :  { %2696 = vmatpush.msra.mxu2 %v2593_v40 }
0x1054   :  { %5224 = vmatmul.msk.f32.gmra.mxu2 %vm237_vm1, %v6929_v45 }
0x10cf   :  { %v2395_v37 = vpop.f32.mrf.mxu2 }
0x10d0   :  { %v2396_v14 = vadd.f32 %v2395_v37, %v2362_v11 }
0x10d2   :  { %v2401_v51 = vadd.f32 %v5812_v52, %v2396_v14  ;;  %v5816_v14 = vld [vmem:[%s7623_s17] ss:$0 sm:$0xff] }
0x10d4   :  { %v2403_v34 = vmul.f32 0.5, %v2401_v51 }
0x10d6   :  { %5641 = vtanh.f32 %v2403_v34  ;;  %v5817_v34 = vld [vmem:[%s7624_s25] sm:$0xff] }
0x10d7   :  { %v2398_v62 = vpop.f32.mrf.mxu2 }
0x10d8   :  { %v2399_v0 = vadd.f32 %v2398_v62, %v2365_v38  ;;  %v2598_v38 = vld [vmem:[#allocation5 + $0x140] sm:$0xff] }
0x10d9   :  { %v2594_v62 = vld [vmem:[#allocation5 + $0x120] sm:$0xff] }
0x10da   :  { %v2402_v36 = vadd.f32 %v5812_v52, %v2399_v0  ;;  %v2590_v0 = vld [vmem:[#allocation5 + $0x100] sm:$0xff] }
0x10dc   :  { %v5642_v2 = vpop.eup %5641  ;;  %v2404_v3 = vmul.f32 0.5, %v2402_v36 }
0x10dd   :  { %v2407_v4 = vadd.f32 1.0, %v5642_v2 }
0x10de   :  { %5643 = vtanh.f32 %v2404_v3 }
0x10df   :  { %v2409_v5 = vmul.f32 0.5, %v2407_v4 }
0x10e1   :  { %v2411_v6 = vmul.f32 %v2409_v5, %v2401_v51  ;;  %v2602_v51 = vld [vmem:[#allocation5 + $0x160] sm:$0xff] }
0x10e3   :  { %2429 = vmatmul.f32.vlgmr.msra.gmra.mxu1 %v2411_v6  ;;  %v2585_v6 = vld [vmem:[#allocation2 + $0x160] sm:$0xff] }
0x10e4   :  { %v5644_v7 = vpop.eup %5643 }
0x10e5   :  { %v2408_v10 = vadd.f32 1.0, %v5644_v7  ;;  %v2586_v7 = vld [vmem:[#allocation2 + $0x168] sm:$0xff] }
0x10e7   :  { %v2410_v12 = vmul.f32 0.5, %v2408_v10  ;;  %v2587_v10 = vld [vmem:[#allocation2 + $0x170] sm:$0xff] }
0x10e8   :  { %2772 = vmatpush.msra.mxu1 %v2587_v10  ;;  %v5819_v10 = vld [vmem:[%s7627_s20 + $0x18] sm:$0xff] }
0x10e9   :  { %v2412_v9 = vmul.f32 %v2410_v12, %v2402_v36  ;;  %v5818_v36 = vld [vmem:[%s7624_s25 + $0x8] sm:$0xff]  ;;  %v2588_v12 = vld [vmem:[#allocation2 + $0x178] sm:$0xff] }
0x10eb   :  { %2432 = vmatmul.f32.gmra.mxu1 %v2412_v9  ;;  %v2581_v9 = vld [vmem:[#allocation2 + $0x140] sm:$0xff] }
0x1160   :  { %v2430_v13 = vpop.f32.mrf.mxu1 }
0x1161   :  { %v2431_v18 = vadd.f32 %v5813_v15, %v2430_v13  ;;  %v2582_v13 = vld [vmem:[#allocation2 + $0x148] sm:$0xff] }
0x1163   :  { %v2436_v19 = vadd.f32 %v2431_v18, %v6742_v23  ;;  %v7651_v23 = vld [vmem:[#allocation32_spill] sm:$0xff]  ;;  %v2577_v18 = vld [vmem:[#allocation2 + $0x120] sm:$0xff] }
0x1168   :  { %v2433_v42 = vpop.f32.mrf.mxu1 }
0x1169   :  { %v2434_v24 = vadd.f32 %v5813_v15, %v2433_v42  ;;  %v2583_v42 = vld [vmem:[#allocation2 + $0x150] sm:$0xff]  ;;  %v2584_v15 = vld [vmem:[#allocation2 + $0x158] sm:$0xff] }
0x116a   :  { %2773 = vmatpush.msra.mxu1 %v2583_v42 }
0x116b   :  { %v2437_v35 = vadd.f32 %v2434_v24, %v6746_v49  ;;  %v2603_v49 = vld [vmem:[#allocation5 + $0x168] sm:$0xff] }
0x116c   :  { %v2578_v24 = vld [vmem:[#allocation2 + $0x128] sm:$0xff] }
0x116d   :  { %2452 = vmatpush.msrb.mxu0 %v2437_v35  ;;  %v2579_v35 = vld [vmem:[#allocation2 + $0x130] sm:$0xff] }
0x116e   :  { %2774 = vmatpush.msra.mxu1 %v2579_v35 }
0x116f   :  { %2453 = vmatpush.msrb.mxu0 %v2436_v19  ;;  %v2580_v19 = vld [vmem:[#allocation2 + $0x138] sm:$0xff] }
0x1170   :  { %5225 = vmatmul.msk.f32.vlgmr.msrb.gmra.mxu0 %vm343_vm2, %v5814_v44  ;;  %v2573_v44 = vld [vmem:[#allocation2 + $0x100] sm:$0xff]  ;;  %2775 = vmatpush.msra.mxu1 %v2575_v25  ;;  %v5825_v25 = vld [vmem:[%s7632_s22 + $0x10] sm:$0xff] }
0x11ed   :  { %v2455_v56 = vpop.f32.mrf.mxu0 }
0x11ee   :  { %5226 = vmatmul.msk.f32.vlgmr.msra.gmra.mxu3 %vm237_vm1, %v2455_v56 }
0x11ef   :  { %2647 = vmatpush.msra.mxu3 %v2603_v49 }
0x11f1   :  { %2648 = vmatpush.msra.mxu3 %v2599_v32 }
0x11f3   :  { %2649 = vmatpush.msra.mxu3 %v2595_v21 }
0x11f5   :  { %2650 = vmatpush.msra.mxu3 %v2591_v27 }
0x11f6   :  { %5234 = vmatmul.msk.f32.vlgmr.msrb.gmra.mxu3 %vm237_vm1, %v7650_v55 }
0x11f7   :  { %2749 = vmatpush.msrb.mxu3 %v2586_v7 }
0x11f9   :  { %2750 = vmatpush.msrb.mxu3 %v2582_v13 }
0x11fb   :  { %2751 = vmatpush.msrb.mxu3 %v2578_v24  ;;  %v5823_v24 = vld [vmem:[%s7632_s22 + $0x18] sm:$0xff] }
0x11fd   :  { %2752 = vmatpush.msrb.mxu3 %v2574_v20 }
0x11fe   :  { %5235 = vmatmul.msk.f32.gmra.mxu3 %vm237_vm1, %v7651_v23 }
0x1271   :  { %v2478_v46 = vpop.f32.mrf.mxu3 }
0x1272   :  { %v2479_v47 = vadd.f32 %v5815_v39, %v2478_v46 }
0x1274   :  { %v2481_v41 = vmul.f32 0.5, %v2479_v47 }
0x1276   :  { %5645 = vtanh.f32 %v2481_v41 }
0x1279   :  { %v2566_v50 = vpop.f32.mrf.mxu3 }
0x127a   :  { %v2567_v58 = vadd.f32 %v5525_v43, %v2566_v50 }
0x127c   :  { %v5646_v29 = vpop.eup %5645  ;;  %5238 = vmatmul.msk.f32.vlgmr.msra.gmra.mxu3 %vm237_vm1, %v2567_v58  ;;  %5240 = vmatmul.msk.f32.vlgmr.msrb.gmra.mxu1 %vm237_vm1, %v2567_v58 }
0x127d   :  { %v2483_v59 = vadd.f32 1.0, %v5646_v29 }
0x127f   :  { %v2484_v48 = vmul.f32 0.5, %v2483_v59 }
0x1281   :  { %v2485_v60 = vmul.f32 %v2484_v48, %v2479_v47  ;;  %v2569_v61 = vpop.f32.mrf.mxu3  ;;  %v2810_v47 = vperm.slane %v6984_v57, 1 }
0x1282   :  { %v2570_v11 = vadd.f32 %v5525_v43, %v2569_v61 }
0x1283   :  { %2502 = vmatmul.f32.vlgmr.msrb.gmra.mxu2 %v2485_v60 }
0x1284   :  { %5239 = vmatmul.msk.f32.gmra.mxu3 %vm237_vm1, %v2570_v11  ;;  %5241 = vmatmul.msk.f32.gmra.mxu1 %vm237_vm1, %v2570_v11 }
0x1285   :  { %2795 = vmatpush.msrb.mxu2 %v2588_v12  ;;  %v5820_v12 = vld [vmem:[%s7627_s20 + $0x10] sm:$0xff] }
0x1287   :  { %2796 = vmatpush.msrb.mxu2 %v2584_v15  ;;  %v5822_v15 = vld [vmem:[%s7627_s20] sm:$0xff] }
0x1289   :  { %2797 = vmatpush.msrb.mxu2 %v2580_v19 }
0x128b   :  { %5242 = vmatmul.msk.f32.vlgmr.msra.gmra.mxu2 %vm237_vm1, %v2567_v58 }
0x128c   :  { %2798 = vmatpush.msrb.mxu2 %v2576_v8 }
0x1293   :  { %5243 = vmatmul.msk.f32.gmra.mxu2 %vm237_vm1, %v2570_v11 }
0x12f9   :  { %v2675_v17 = vpop.f32.mrf.mxu1 }
0x12ff   :  { %v2652_v21 = vpop.f32.mrf.mxu3 }
0x1301   :  { %v2678_v27 = vpop.f32.mrf.mxu1 }
0x1306   :  { %v2503_v37 = vpop.f32.mrf.mxu2 }
0x1307   :  { %v2504_v52 = vadd.f32 %v5816_v14, %v2503_v37  ;;  %v2655_v33 = vpop.f32.mrf.mxu3 }
0x1309   :  { %2521 = vmatpush.msra.mxu0 %v2504_v52 }
0x130a   :  { %5227 = vmatmul.msk.f32.vlgmr.msra.gmra.mxu0 %vm197_vm0, %v5817_v34 }
0x130b   :  { %2624 = vmatpush.msrb.mxu0 %v2602_v51 }
0x130d   :  { %2625 = vmatpush.msrb.mxu0 %v2598_v38 }
0x130f   :  { %2626 = vmatpush.msrb.mxu0 %v2594_v62 }
0x1311   :  { %2627 = vmatpush.msrb.mxu0 %v2590_v0 }
0x1312   :  { %5228 = vmatmul.msk.f32.gmra.mxu0 %vm197_vm0, %v5818_v36 }
0x1313   :  { %2726 = vmatpush.msra.mxu0 %v2585_v6 }
0x1315   :  { %2727 = vmatpush.msra.mxu0 %v2581_v9  ;;  %v5821_v9 = vld [vmem:[%s7627_s20 + $0x8] sm:$0xff] }
0x1317   :  { %2728 = vmatpush.msra.mxu0 %v2577_v18 }
0x1319   :  { %2729 = vmatpush.msra.mxu0 %v2573_v44  ;;  %v7024_v44 = vld [vmem:[%s7628_s27] sm:$0xff] }
0x131a   :  { %5236 = vmatmul.msk.f32.vlgmr.msrb.gmra.mxu0 %vm237_vm1, %v2567_v58  ;;  %v2811_v58 = vperm.slane %v6984_v57, 2 }
0x1322   :  { %5237 = vmatmul.msk.f32.gmra.mxu0 %vm237_vm1, %v2570_v11 }
0x1387   :  { %v6963_v2 = vpop.f32.mrf.mxu0 }
0x1388   :  { %2531 = vrot.lane.b32.xlu2 %v6963_v2, %s6052_s1 }
0x138f   :  { %v6967_v3 = vpop.f32.mrf.mxu0 }
0x1390   :  { %2533 = vrot.lane.b32.xlu0 %v6967_v3, %s6052_s1 }
0x1397   :  { %v2629_v32 = vpop.f32.mrf.mxu0 }
0x139f   :  { %v2632_v54 = vpop.f32.mrf.mxu0 }
0x13e2   :  { %v2532_v4 = vpop.permute.xlu2 %2531 }
0x13e3   :  { %v2537_v5 = vadd.f32 %v2532_v4, %v6921_v22 }
0x13e5   :  { %2706 = vrot.lane.b32.xlu1 %v2537_v5, %s6054_s6 }
0x1402   :  { %v2534_v31 = vpop.permute.xlu0 %2533 }
0x1403   :  { %v2538_v56 = vadd.f32 %v2534_v31, %v6916_v53  ;;  %v5826_v31 = vld [vmem:[%s7632_s22 + $0x8] sm:$0xff] }
0x1405   :  { %2708 = vrot.lane.b32.xlu2 %v2538_v56, %s6054_s6 }
0x1457   :  { %v2707_v49 = vpop.permute.xlu1 %2706 }
0x1458   :  { %5244 = vmatmul.msk.f32.vlgmr.msra.gmra.mxu0 %vm237_vm1, %v2707_v49  ;;  %5246 = vmatmul.msk.f32.vlgmr.msrb.gmra.mxu3 %vm237_vm1, %v2707_v49 }
0x1459   :  { %5248 = vmatmul.msk.f32.vlgmr.msra.gmra.mxu1 %vm237_vm1, %v2707_v49  ;;  %5250 = vmatmul.msk.f32.vlgmr.msrb.gmra.mxu2 %vm237_vm1, %v2707_v49 }
0x145f   :  { %v2709_v63 = vpop.permute.xlu2 %2708 }
0x1460   :  { %5245 = vmatmul.msk.f32.gmra.mxu0 %vm237_vm1, %v2709_v63  ;;  %5247 = vmatmul.msk.f32.gmra.mxu3 %vm237_vm1, %v2709_v63 }
0x1461   :  { %5249 = vmatmul.msk.f32.gmra.mxu1 %vm237_vm1, %v2709_v63  ;;  %5251 = vmatmul.msk.f32.gmra.mxu2 %vm237_vm1, %v2709_v63  ;;  %v5827_v63 = vld [vmem:[%s7632_s22] sm:$0xff] }
0x14d5   :  { %v2731_v16 = vpop.f32.mrf.mxu0 }
0x14d6   :  { %v2732_v40 = vadd.f32 %v2731_v16, %v2629_v32  ;;  %v2777_v46 = vpop.f32.mrf.mxu1  ;;  %v5830_v16 = vld [vmem:[%s7638_s28 + $0x70] sm:$0xff] }
0x14d7   :  { %v2778_v50 = vadd.f32 %v2777_v46, %v2675_v17  ;;  %v5831_v46 = vld [vmem:[%s7638_s28 + $0x68] sm:$0xff] }
0x14d8   :  { %v2817_v39 = vadd.f32 %v2809_v28, %v2732_v40 }
0x14d9   :  { %v2819_v61 = vadd.f32 %v2811_v58, %v2778_v50  ;;  %v5835_v50 = vld [vmem:[%s7638_s28 + $0x48] sm:$0xff] }
0x14da   :  { %2917 = vrot.lane.b32.xlu2 %v2817_v39, %s6054_s6 }
0x14db   :  { %v2754_v41 = vpop.f32.mrf.mxu3 }
0x14dc   :  { %v2755_v43 = vadd.f32 %v2754_v41, %v2652_v21  ;;  %v5828_v21 = vld [vmem:[%s7638_s28 + $0x78] sm:$0xff] }
0x14dd   :  { %v2734_v60 = vpop.f32.mrf.mxu0  ;;  %v5833_v41 = vld [vmem:[%s7638_s28 + $0x58] sm:$0xff] }
0x14de   :  { %v2818_v29 = vadd.f32 %v2810_v47, %v2755_v43  ;;  %v2780_v59 = vpop.f32.mrf.mxu1  ;;  %v2735_v37 = vadd.f32 %v2734_v60, %v2632_v54  ;;  %v5834_v43 = vld [vmem:[%s7638_s28 + $0x50] sm:$0xff]  ;;  %v5840_v60 = vld [vmem:[%s7638_s28 + $0x20] sm:$0xff] }
0x14df   :  { %v2781_v48 = vadd.f32 %v2780_v59, %v2678_v27  ;;  %v5838_v59 = vld [vmem:[%s7638_s28 + $0x30] sm:$0xff] }
0x14e0   :  { %2921 = vrot.lane.b32.xlu1 %v2818_v29, %s6054_s6  ;;  %v2821_v38 = vadd.f32 %v2809_v28, %v2735_v37  ;;  %v5843_v37 = vld [vmem:[%s7638_s28 + $0x8] sm:$0xff] }
0x14e1   :  { %v2823_v11 = vadd.f32 %v2811_v58, %v2781_v48  ;;  %v5836_v58 = vld [vmem:[%s7638_s28 + $0x40] sm:$0xff]  ;;  %v5839_v48 = vld [vmem:[%s7638_s28 + $0x28] sm:$0xff] }
0x14e3   :  { %2904 = vmatpush.msra.mxu3 %v2823_v11  ;;  %v2757_v14 = vpop.f32.mrf.mxu3  ;;  %v6991_v52 = vpack.i.bf16 %v2819_v61, %v2823_v11  ;;  %v5842_v11 = vld [vmem:[%s7638_s28 + $0x10] sm:$0xff] }
0x14e4   :  { %v2758_v51 = vadd.f32 %v2757_v14, %v2655_v33  ;;  %v7038_v33 = vld [vmem:[%s7628_s27 + $0x8] sm:$0xff]  ;;  %v5844_v14 = vld [vmem:[%s7638_s28] sm:$0xff] }
0x14e5   :  { %2905 = vmatpush.msra.mxu3 %v2819_v61  ;;  %v5841_v61 = vld [vmem:[%s7638_s28 + $0x18] sm:$0xff] }
0x14e6   :  { %v2822_v34 = vadd.f32 %v2810_v47, %v2758_v51  ;;  %v5832_v47 = vld [vmem:[%s7638_s28 + $0x60] sm:$0xff]  ;;  %v7066_v51 = vld [vmem:[%s6163_s30 + $0x18] sm:$0xff] }
0x14e8   :  { %2923 = vrot.lane.b32.xlu0 %v2822_v34, %s6054_s6  ;;  %5253 = vmatpush.xpose.msk.msrb.mxu0 %vm237_vm1, %v2822_v34 }
0x14e9   :  { %2919 = vrot.lane.b32.xlu1 %v2821_v38, %s6054_s6  ;;  %3129 = vrot.lane.b32.xlu2 %v2822_v34, %s6052_s1 }
0x14ec   :  { %5254 = vmatpush.xpose.msk.msrb.mxu0 %vm237_vm1, %v2818_v29 }
0x14ef   :  { %5255 = vmatmul.msk.f32.vlgmr.msrb.gmra.mxu0 %vm237_vm1, %v2817_v39 }
0x14f0   :  { %3027 = vrot.lane.b32.xlu0 %v2822_v34, %s6055_s12  ;;  %v7070_v34 = vld [vmem:[%s6163_s30 + $0x10] sm:$0xff] }
0x14f1   :  { %3127 = vrot.lane.b32.xlu1 %v2818_v29, %s6052_s1  ;;  %3021 = vrot.lane.b32.xlu2 %v2817_v39, %s6055_s12 }
0x14f7   :  { %5256 = vmatmul.msk.f32.gmra.mxu0 %vm237_vm1, %v2821_v38 }
0x14f8   :  { %3025 = vrot.lane.b32.xlu0 %v2818_v29, %s6055_s12  ;;  %v5837_v29 = vld [vmem:[%s7638_s28 + $0x38] sm:$0xff] }
0x14f9   :  { %3023 = vrot.lane.b32.xlu1 %v2821_v38, %s6055_s12  ;;  %3125 = vrot.lane.b32.xlu2 %v2821_v38, %s6052_s1  ;;  %v7074_v38 = vld [vmem:[%s6163_s30 + $0x8] sm:$0xff] }
0x1500   :  { %3123 = vrot.lane.b32.xlu0 %v2817_v39, %s6052_s1 }
0x1501   :  { %5484 = vrot.lane.b32.xlu1 %v6991_v52, %s6054_s6 }
0x1534   :  { %v2918_v0 = vpop.permute.xlu2 %2917 }
0x1543   :  { %v3130_v5 = vpop.permute.xlu2 %3129 }
0x154b   :  { %v3022_v35 = vpop.permute.xlu2 %3021 }
0x1552   :  { %v2922_v62 = vpop.permute.xlu1 %2921 }
0x1553   :  { %v3126_v39 = vpop.permute.xlu2 %3125 }
0x155a   :  { %v2924_v36 = vpop.permute.xlu0 %2923 }
0x155b   :  { %v2920_v4 = vpop.permute.xlu1 %2919  ;;  %5259 = vmatpush.xpose.msk.msrb.mxu1 %vm237_vm1, %v2924_v36 }
0x155f   :  { %5260 = vmatpush.xpose.msk.msrb.mxu1 %vm237_vm1, %v2922_v62  ;;  %v7078_v62 = vld [vmem:[%s6163_s30] sm:$0xff]  ;;  %s7655_s30 = sld [smem:[#allocation16_spill]] }
0x1562   :  { %v3028_v6 = vpop.permute.xlu0 %3027  ;;  %5261 = vmatmul.msk.f32.vlgmr.msrb.gmra.mxu1 %vm237_vm1, %v2918_v0 }
0x1563   :  { %5271 = vmatpush.xpose.msk.msra.mxu1 %vm237_vm1, %v3130_v5  ;;  %v3128_v7 = vpop.permute.xlu1 %3127  ;;  %5265 = vmatpush.xpose.msk.msra.mxu0 %vm237_vm1, %v3028_v6 }
0x1567   :  { %5272 = vmatpush.xpose.msk.msra.mxu1 %vm237_vm1, %v3128_v7 }
0x156a   :  { %v3026_v13 = vpop.permute.xlu0 %3025  ;;  %5262 = vmatmul.msk.f32.gmra.mxu1 %vm237_vm1, %v2920_v4 }
0x156b   :  { %3355 = vmatpush.msrb.mxu1 %v5819_v10  ;;  %v3024_v42 = vpop.permute.xlu1 %3023  ;;  %5266 = vmatpush.xpose.msk.msra.mxu0 %vm237_vm1, %v3026_v13 }
0x156c   :  { %v2854_v18 = vpop.f32.mrf.mxu0 }
0x156d   :  { %3356 = vmatpush.msrb.mxu1 %v5820_v12  ;;  %v2860_v19 = vmul.f32 0.17677669, %v2854_v18 }
0x156e   :  { %5267 = vmatmul.msk.f32.vlgmr.msra.gmra.mxu0 %vm237_vm1, %v3022_v35 }
0x156f   :  { %3357 = vmatpush.msrb.mxu1 %v5821_v9  ;;  %3257 = vmatpush.msrb.mxu0 %v5823_v24  ;;  %v7027_v20 = vadd.f32 %v7024_v44, %v2860_v19 }
0x1571   :  { %3358 = vmatpush.msrb.mxu1 %v5822_v15  ;;  %3258 = vmatpush.msrb.mxu0 %v5825_v25  ;;  %v2864_v8 = vsel %vm343_vm2, %v7027_v20, -inf }
0x1572   :  { %v3124_v56 = vpop.permute.xlu0 %3123  ;;  %2865 = vmax.xlane.f32.xlu0 %v2864_v8 }
0x1573   :  { %3259 = vmatpush.msrb.mxu0 %v5826_v31  ;;  %v5485_v49 = vpop.permute.xlu1 %5484  ;;  %5273 = vmatmul.msk.f32.vlgmr.msra.gmra.mxu1 %vm237_vm1, %v3124_v56 }
0x1574   :  { %v5486_v32 = vunpack.i.l.bf16 %v5485_v49  ;;  %v2857_v17 = vpop.f32.mrf.mxu0  ;;  %3411 = vmatpush.msra.mxu1 %v5828_v21  ;;  %v5487_v27 = vunpack.i.h.bf16 %v5485_v49 }
0x1575   :  { %3260 = vmatpush.msrb.mxu0 %v5827_v63  ;;  %v2861_v54 = vmul.f32 0.17677669, %v2857_v17 }
0x1576   :  { %3008 = vmatpush.msra.mxu2 %v5486_v32  ;;  %5268 = vmatmul.msk.f32.gmra.mxu0 %vm237_vm1, %v3024_v42 }
0x1577   :  { %v7041_v28 = vadd.f32 %v7038_v33, %v2861_v54  ;;  %3412 = vmatpush.msra.mxu1 %v5830_v16 }
0x1578   :  { %3009 = vmatpush.msra.mxu2 %v5487_v27 }
0x1579   :  { %v2867_v40 = vsel %vm343_vm2, %v7041_v28, -inf  ;;  %3413 = vmatpush.msra.mxu1 %v5831_v46 }
0x157a   :  { %2868 = vmax.xlane.f32.xlu2 %v2867_v40 }
0x157b   :  { %5274 = vmatmul.msk.f32.gmra.mxu1 %vm237_vm1, %v3126_v39 }
0x157c   :  { %3414 = vmatpush.msra.mxu1 %v5832_v47 }
0x157e   :  { %3415 = vmatpush.msra.mxu1 %v5833_v41 }
0x1580   :  { %3416 = vmatpush.msra.mxu1 %v5834_v43 }
0x1582   :  { %3417 = vmatpush.msra.mxu1 %v5835_v50 }
0x1583   :  { %5281 = vmatmul.msk.f32.vlgmr.msrb.gmra.mxu1 %vm237_vm1, %v6963_v2 }
0x1584   :  { %3418 = vmatpush.msra.mxu1 %v5836_v58 }
0x1586   :  { %3419 = vmatpush.msra.mxu1 %v5837_v29 }
0x1588   :  { %3420 = vmatpush.msra.mxu1 %v5838_v59 }
0x158a   :  { %3421 = vmatpush.msra.mxu1 %v5839_v48 }
0x158b   :  { %5282 = vmatmul.msk.f32.gmra.mxu1 %vm237_vm1, %v6967_v3 }
0x158c   :  { %3422 = vmatpush.msra.mxu1 %v5840_v60 }
0x158e   :  { %3423 = vmatpush.msra.mxu1 %v5841_v61 }
0x1590   :  { %3424 = vmatpush.msra.mxu1 %v5842_v11 }
0x1592   :  { %3425 = vmatpush.msra.mxu1 %v5843_v37 }
0x1594   :  { %3426 = vmatpush.msra.mxu1 %v5844_v14 }
0x1596   :  { %3471 = vmatpush.msrb.mxu1 %v7066_v51 }
0x1598   :  { %3472 = vmatpush.msrb.mxu1 %v7070_v34 }
0x159a   :  { %3473 = vmatpush.msrb.mxu1 %v7074_v38 }
0x159c   :  { %3474 = vmatpush.msrb.mxu1 %v7078_v62 }
0x15df   :  { %v2950_v0 = vpop.f32.mrf.mxu1 }
0x15e0   :  { %v2956_v36 = vmul.f32 0.17677669, %v2950_v0 }
0x15e2   :  { %v2958_v4 = vadd.f32 %v7024_v44, %v2956_v36 }
0x15e4   :  { %v2960_v5 = vsel %vm343_vm2, %v2958_v4, -inf }
0x15e5   :  { %2961 = vmax.xlane.f32.xlu1 %v2960_v5  ;;  %v2866_v6 = vpop.xlane.xlu0 %2865 }
0x15e6   :  { %v2870_v7 = vsub.f32 %v7027_v20, %v2866_v6 }
0x15e7   :  { %v2953_v10 = vpop.f32.mrf.mxu1 }
0x15e8   :  { %v2872_v12 = vmul.f32 1.442695, %v2870_v7  ;;  %v2957_v9 = vmul.f32 0.17677669, %v2953_v10 }
0x15ea   :  { %5647 = vpow2.f32 %v2872_v12  ;;  %v2959_v13 = vadd.f32 %v7038_v33, %v2957_v9 }
0x15eb   :  { %v3054_v42 = vpop.f32.mrf.mxu0 }
0x15ec   :  { %v3060_v15 = vmul.f32 0.17677669, %v3054_v42  ;;  %v2963_v18 = vsel %vm343_vm2, %v2959_v13, -inf }
0x15ed   :  { %2964 = vmax.xlane.f32.xlu0 %v2963_v18  ;;  %v2869_v24 = vpop.xlane.xlu2 %2868 }
0x15ee   :  { %v2871_v35 = vsub.f32 %v7041_v28, %v2869_v24  ;;  %v3062_v19 = vadd.f32 %v7024_v44, %v3060_v15  ;;  %v5849_v15 = vld [vmem:[%s7636_s26 + $0x18] sm:$0xff]  ;;  %v7111_v24 = vld [vmem:[%s7636_s26 + $0x10] sm:$0xff] }
0x15f0   :  { %v5648_v25 = vpop.eup %5647  ;;  %v2874_v8 = vmul.f32 1.442695, %v2871_v35  ;;  %v3156_v31 = vpop.f32.mrf.mxu1  ;;  %v3064_v20 = vsel %vm343_vm2, %v3062_v19, -inf }
0x15f1   :  { %v3162_v56 = vmul.f32 0.17677669, %v3156_v31  ;;  %5257 = vmatmul.msk.f32.vlgmr.msra.gmra.mxu3 %vm343_vm2, %v5648_v25  ;;  %3065 = vmax.xlane.f32.xlu2 %v3064_v20  ;;  %v2876_v46 = vsel %vm343_vm2, %v5648_v25, 0.0  ;;  %v7119_v31 = vld [vmem:[%s7636_s26] sm:$0xff]  ;;  %v5853_v20 = vld [vmem:[%s6173_s3 + $0x78] sm:$0xff] }
0x15f2   :  { %5649 = vpow2.f32 %v2874_v8 }
0x15f3   :  { %v3057_v49 = vpop.f32.mrf.mxu0  ;;  %v3164_v63 = vadd.f32 %v7024_v44, %v3162_v56 }
0x15f4   :  { %v3061_v32 = vmul.f32 0.17677669, %v3057_v49 }
0x15f5   :  { %v3166_v17 = vsel %vm343_vm2, %v3164_v63, -inf }
0x15f6   :  { %3167 = vmax.xlane.f32.xlu0 %v3166_v17  ;;  %v3063_v21 = vadd.f32 %v7038_v33, %v3061_v32  ;;  %v5854_v32 = vld [vmem:[%s6173_s3 + $0x70] sm:$0xff]  ;;  %v5855_v17 = vld [vmem:[%s7629_s4 + $0x18] sm:$0xff] }
0x15f8   :  { %v5650_v54 = vpop.eup %5649  ;;  %v3159_v27 = vpop.f32.mrf.mxu1  ;;  %v3067_v28 = vsel %vm343_vm2, %v3063_v21, -inf }
0x15f9   :  { %v3163_v16 = vmul.f32 0.17677669, %v3159_v27  ;;  %3068 = vmax.xlane.f32.xlu2 %v3067_v28  ;;  %5258 = vmatmul.msk.f32.gmra.mxu3 %vm343_vm2, %v5650_v54  ;;  %v2879_v18 = vsel %vm343_vm2, %v5650_v54, 0.0  ;;  %v5857_v27 = vld [vmem:[%s7629_s4 + $0x10] sm:$0xff]  ;;  %v5858_v28 = vld [vmem:[%s6173_s3 + $0x60] sm:$0xff] }
0x15fb   :  { %v3165_v40 = vadd.f32 %v7038_v33, %v3163_v16  ;;  %v5859_v16 = vld [vmem:[%s7629_s4 + $0x8] sm:$0xff] }
0x15fd   :  { %v3169_v44 = vsel %vm343_vm2, %v3165_v40, -inf }
0x15fe   :  { %5494 = vrot.lane.b32.xlu1 %v6991_v52, %s6052_s1 }
0x1601   :  { %3170 = vmax.xlane.f32.xlu2 %v3169_v44  ;;  %v5860_v44 = vld [vmem:[%s6173_s3 + $0x58] sm:$0xff] }
0x1609   :  { %2877 = vadd.xlane.f32.xlu2 %v2876_v46  ;;  %v5861_v46 = vld [vmem:[%s7629_s4] sm:$0xff] }
0x160a   :  { %5489 = vrot.lane.b32.xlu0 %v6991_v52, %s6055_s12 }
0x1658   :  { %v2962_v39 = vpop.xlane.xlu1 %2961 }
0x1659   :  { %v2966_v47 = vsub.f32 %v2958_v4, %v2962_v39  ;;  %v5862_v39 = vld [vmem:[%s6173_s3 + $0x50] sm:$0xff] }
0x165b   :  { %v2968_v41 = vmul.f32 1.442695, %v2966_v47  ;;  %v5863_v47 = vld [vmem:[%s6173_s3 + $0x48] sm:$0xff] }
0x165d   :  { %5651 = vpow2.f32 %v2968_v41  ;;  %v5864_v41 = vld [vmem:[%s6173_s3 + $0x40] sm:$0xff] }
0x1660   :  { %v2965_v43 = vpop.xlane.xlu0 %2964 }
0x1661   :  { %v2967_v50 = vsub.f32 %v2959_v13, %v2965_v43 }
0x1663   :  { %v5652_v58 = vpop.eup %5651  ;;  %v2970_v33 = vmul.f32 1.442695, %v2967_v50  ;;  %v5865_v50 = vld [vmem:[%s6173_s3 + $0x38] sm:$0xff] }
0x1664   :  { %5263 = vmatmul.msk.f32.vlgmr.msra.gmra.mxu2 %vm343_vm2, %v5652_v58  ;;  %v3066_v29 = vpop.xlane.xlu2 %3065  ;;  %v2972_v59 = vsel %vm343_vm2, %v5652_v58, 0.0  ;;  %v5866_v58 = vld [vmem:[%s6173_s3 + $0x30] sm:$0xff] }
0x1665   :  { %5653 = vpow2.f32 %v2970_v33  ;;  %v3070_v48 = vsub.f32 %v3062_v19, %v3066_v29  ;;  %2973 = vadd.xlane.f32.xlu1 %v2972_v59  ;;  %v7115_v19 = vld [vmem:[%s7636_s26 + $0x8] sm:$0xff]  ;;  %v5868_v29 = vld [vmem:[%s6173_s3 + $0x20] sm:$0xff]  ;;  %v5869_v59 = vld [vmem:[%s6173_s3 + $0x18] sm:$0xff] }
0x1666   :  { %v5867_v33 = vld [vmem:[%s6173_s3 + $0x28] sm:$0xff] }
0x1667   :  { %v3072_v60 = vmul.f32 1.442695, %v3070_v48  ;;  %v5870_v48 = vld [vmem:[%s6173_s3 + $0x10] sm:$0xff] }
0x1669   :  { %5655 = vpow2.f32 %v3072_v60  ;;  %v3168_v61 = vpop.xlane.xlu0 %3167  ;;  %v5871_v60 = vld [vmem:[%s6173_s3 + $0x8] sm:$0xff] }
0x166a   :  { %v3172_v52 = vsub.f32 %v3164_v63, %v3168_v61  ;;  %v5872_v61 = vld [vmem:[%s6173_s3] sm:$0xff] }
0x166b   :  { %v5654_v11 = vpop.eup %5653 }
0x166c   :  { %v3174_v37 = vmul.f32 1.442695, %v3172_v52  ;;  %5264 = vmatmul.msk.f32.gmra.mxu2 %vm343_vm2, %v5654_v11  ;;  %v3069_v14 = vpop.xlane.xlu2 %3068  ;;  %v2975_v63 = vsel %vm343_vm2, %v5654_v11, 0.0  ;;  %v2698_v52 = vpop.f32.mrf.mxu2 }
0x166d   :  { %v3071_v13 = vsub.f32 %v3063_v21, %v3069_v14  ;;  %v5856_v21 = vld [vmem:[%s6173_s3 + $0x68] sm:$0xff] }
0x166e   :  { %5657 = vpow2.f32 %v3174_v37 }
0x166f   :  { %v5656_v0 = vpop.eup %5655  ;;  %v3074_v35 = vmul.f32 1.442695, %v3071_v13 }
0x1670   :  { %v5495_v36 = vpop.permute.xlu1 %5494  ;;  %v3076_v4 = vsel %vm343_vm2, %v5656_v0, 0.0 }
0x1671   :  { %v5496_v5 = vunpack.i.l.bf16 %v5495_v36  ;;  %3077 = vadd.xlane.f32.xlu2 %v3076_v4  ;;  %v5497_v6 = vunpack.i.h.bf16 %v5495_v36 }
0x1673   :  { %3212 = vmatpush.msrb.mxu2 %v5496_v5 }
0x1674   :  { %v5658_v7 = vpop.eup %5657  ;;  %v3171_v10 = vpop.xlane.xlu2 %3170 }
0x1675   :  { %v3173_v12 = vsub.f32 %v3165_v40, %v3171_v10  ;;  %3213 = vmatpush.msrb.mxu2 %v5497_v6  ;;  %v3178_v9 = vsel %vm343_vm2, %v5658_v7, 0.0  ;;  %v2701_v11 = vpop.f32.mrf.mxu2  ;;  %v2907_v4 = vpop.f32.mrf.mxu3 }
0x1676   :  { %5275 = vmatmul.msk.f32.vlgmr.msrb.gmra.mxu2 %vm343_vm2, %v5658_v7  ;;  %3179 = vadd.xlane.f32.xlu0 %v3178_v9 }
0x1677   :  { %v3176_v42 = vmul.f32 1.442695, %v3173_v12  ;;  %3388 = vmatpush.msra.mxu2 %v5849_v15 }
0x1679   :  { %5659 = vpow2.f32 %v3176_v42  ;;  %2880 = vadd.xlane.f32.xlu2 %v2879_v18  ;;  %3389 = vmatpush.msra.mxu2 %v7111_v24 }
0x167a   :  { %5661 = vpow2.f32 %v3074_v35 }
0x167b   :  { %3390 = vmatpush.msra.mxu2 %v7115_v19 }
0x167c   :  { %v5490_v25 = vpop.permute.xlu0 %5489 }
0x167d   :  { %v5491_v8 = vunpack.i.l.bf16 %v5490_v25  ;;  %3391 = vmatpush.msra.mxu2 %v7119_v31  ;;  %v5492_v49 = vunpack.i.h.bf16 %v5490_v25  ;;  %v2800_v37 = vpop.f32.mrf.mxu2 }
0x167f   :  { %3484 = vmatpush.msrb.mxu2 %v5853_v20  ;;  %v5660_v56 = vpop.eup %5659  ;;  %3110 = vmatpush.msrb.mxu3 %v5491_v8 }
0x1680   :  { %5276 = vmatmul.msk.f32.gmra.mxu2 %vm343_vm2, %v5660_v56  ;;  %v5662_v54 = vpop.eup %5661  ;;  %v3181_v43 = vsel %vm343_vm2, %v5660_v56, 0.0 }
0x1681   :  { %3111 = vmatpush.msrb.mxu3 %v5492_v49  ;;  %2976 = vadd.xlane.f32.xlu2 %v2975_v63  ;;  %v3079_v40 = vsel %vm343_vm2, %v5662_v54, 0.0 }
0x1682   :  { %5269 = vmatmul.msk.f32.vlgmr.msrb.gmra.mxu3 %vm343_vm2, %v5656_v0  ;;  %3485 = vmatpush.msrb.mxu2 %v5854_v32 }
0x1683   :  { %3280 = vmatpush.msra.mxu3 %v5855_v17  ;;  %v2801_v17 = vadd.f32 %v2800_v37, %v2698_v52 }
0x1684   :  { %3486 = vmatpush.msrb.mxu2 %v5856_v21  ;;  %v2812_v21 = vperm.slane %v6984_v57, 3 }
0x1685   :  { %3281 = vmatpush.msra.mxu3 %v5857_v27  ;;  %v2803_v0 = vpop.f32.mrf.mxu2 }
0x1686   :  { %3487 = vmatpush.msrb.mxu2 %v5858_v28 }
0x1687   :  { %3282 = vmatpush.msra.mxu3 %v5859_v16 }
0x1688   :  { %3488 = vmatpush.msrb.mxu2 %v5860_v44 }
0x1689   :  { %3080 = vadd.xlane.f32.xlu2 %v3079_v40  ;;  %3283 = vmatpush.msra.mxu3 %v5861_v46  ;;  %v2820_v46 = vadd.f32 %v2812_v21, %v2801_v17 }
0x168a   :  { %5270 = vmatmul.msk.f32.gmra.mxu3 %vm343_vm2, %v5662_v54  ;;  %3489 = vmatpush.msrb.mxu2 %v5862_v39 }
0x168c   :  { %3490 = vmatpush.msrb.mxu2 %v5863_v47 }
0x168e   :  { %3491 = vmatpush.msrb.mxu2 %v5864_v41 }
0x1690   :  { %3492 = vmatpush.msrb.mxu2 %v5865_v50 }
0x1691   :  { %3182 = vadd.xlane.f32.xlu2 %v3181_v43 }
0x1692   :  { %5279 = vmatmul.msk.f32.vlgmr.msra.gmra.mxu3 %vm237_vm1, %v6925_v30  ;;  %3493 = vmatpush.msrb.mxu2 %v5866_v58  ;;  %v2878_v30 = vpop.xlane.xlu2 %2877 }
0x1693   :  { %5663 = vrcp.f32 %v2878_v30 }
0x1694   :  { %3494 = vmatpush.msrb.mxu2 %v5867_v33 }
0x1696   :  { %3495 = vmatpush.msrb.mxu2 %v5868_v29 }
0x1698   :  { %3496 = vmatpush.msrb.mxu2 %v5869_v59  ;;  %v2804_v59 = vadd.f32 %v2803_v0, %v2701_v11 }
0x1699   :  { %v5664_v13 = vpop.eup %5663 }
0x169a   :  { %5280 = vmatmul.msk.f32.gmra.mxu3 %vm237_vm1, %v6929_v45  ;;  %3497 = vmatpush.msrb.mxu2 %v5870_v48  ;;  %v2910_v45 = vpop.f32.mrf.mxu3  ;;  %v2913_v18 = vmul.f32 %v5664_v13, %v2907_v4  ;;  %v2824_v52 = vadd.f32 %v2812_v21, %v2804_v59 }
0x169c   :  { %3498 = vmatpush.msrb.mxu2 %v5871_v60 }
0x169e   :  { %3499 = vmatpush.msrb.mxu2 %v5872_v61 }
0x16d8   :  { %v2974_v7 = vpop.xlane.xlu1 %2973 }
0x16d9   :  { %5665 = vrcp.f32 %v2974_v7 }
0x16df   :  { %v5666_v42 = vpop.eup %5665 }
0x16e4   :  { %v3078_v14 = vpop.xlane.xlu2 %3077 }
0x16e5   :  { %5667 = vrcp.f32 %v3078_v14  ;;  %v5873_v14 = vld [vmem:[%s7631_s18] ss:$0 sm:$0xff] }
0x16e7   :  { %v3011_v5 = vpop.f32.mrf.mxu2 }
0x16e8   :  { %v3017_v15 = vmul.f32 %v5666_v42, %v3011_v5 }
0x16e9   :  { %v3180_v12 = vpop.xlane.xlu0 %3179 }
0x16ea   :  { %5669 = vrcp.f32 %v3180_v12  ;;  %v3019_v49 = vadd.f32 %v3017_v15, %v2913_v18  ;;  %v5874_v18 = vld [vmem:[%s7635_s23] ss:$0 sm:$0xff] }
0x16eb   :  { %v5668_v25 = vpop.eup %5667 }
0x16ec   :  { %v2881_v36 = vpop.xlane.xlu2 %2880 }
0x16ef   :  { %v3014_v9 = vpop.f32.mrf.mxu2 }
0x16f0   :  { %v5670_v56 = vpop.eup %5669 }
0x16f4   :  { %v2977_v6 = vpop.xlane.xlu2 %2976 }
0x16f5   :  { %5671 = vrcp.f32 %v2977_v6 }
0x16f6   :  { %5673 = vrcp.f32 %v2881_v36 }
0x16f9   :  { %v3215_v8 = vpop.f32.mrf.mxu2 }
0x16fa   :  { %v3221_v54 = vmul.f32 %v5670_v56, %v3215_v8 }
0x16fb   :  { %v5672_v32 = vpop.eup %5671 }
0x16fc   :  { %v3081_v10 = vpop.xlane.xlu2 %3080  ;;  %v5674_v28 = vpop.eup %5673  ;;  %v3018_v16 = vmul.f32 %v5672_v32, %v3014_v9 }
0x16fd   :  { %5675 = vrcp.f32 %v3081_v10  ;;  %v2914_v39 = vmul.f32 %v5674_v28, %v2910_v45 }
0x16ff   :  { %v3020_v58 = vadd.f32 %v3018_v16, %v2914_v39 }
0x1703   :  { %v5676_v44 = vpop.eup %5675  ;;  %v3218_v29 = vpop.f32.mrf.mxu2 }
0x1704   :  { %v3183_v35 = vpop.xlane.xlu2 %3182 }
0x1705   :  { %v3113_v20 = vpop.f32.mrf.mxu3  ;;  %5677 = vrcp.f32 %v3183_v35 }
0x1706   :  { %v3119_v63 = vmul.f32 %v5668_v25, %v3113_v20 }
0x1708   :  { %v3121_v27 = vadd.f32 %v3119_v63, %v3019_v49 }
0x170a   :  { %v3223_v40 = vadd.f32 %v3221_v54, %v3121_v27 }
0x170b   :  { %v5678_v41 = vpop.eup %5677 }
0x170c   :  { %v3225_v47 = vmul.f32 %v3223_v40, %v7646_v26  ;;  %v3222_v48 = vmul.f32 %v5678_v41, %v3218_v29 }
0x170d   :  { %v3116_v43 = vpop.f32.mrf.mxu3 }
0x170e   :  { %v3227_v50 = vadd.f32 %v3225_v47, %v2820_v46  ;;  %v3120_v33 = vmul.f32 %v5676_v44, %v3116_v43 }
0x1710   :  { %v3229_v57 = vmul.f32 0.5, %v3227_v50  ;;  %v3122_v60 = vadd.f32 %v3120_v33, %v3020_v58 }
0x1712   :  { %5679 = vtanh.f32 %v3229_v57  ;;  %v3224_v61 = vadd.f32 %v3222_v48, %v3122_v60 }
0x1714   :  { %v3226_v30 = vmul.f32 %v3224_v61, %v7647_v1 }
0x1715   :  { %v3285_v37 = vpop.f32.mrf.mxu3 }
0x1716   :  { %v3286_v36 = vadd.f32 %v5873_v14, %v3285_v37  ;;  %v3228_v4 = vadd.f32 %v3226_v30, %v2824_v52 }
0x1718   :  { %v5680_v5 = vpop.eup %5679  ;;  %3303 = vrot.lane.b32.xlu2 %v3286_v36, %s6055_s12  ;;  %v3230_v6 = vmul.f32 0.5, %v3228_v4 }
0x1719   :  { %v3233_v7 = vadd.f32 1.0, %v5680_v5 }
0x171a   :  { %5681 = vtanh.f32 %v3230_v6 }
0x171b   :  { %v3235_v11 = vmul.f32 0.5, %v3233_v7 }
0x171d   :  { %v3237_v0 = vmul.f32 %v3235_v11, %v3227_v50  ;;  %v3288_v45 = vpop.f32.mrf.mxu3 }
0x171e   :  { %v3289_v10 = vadd.f32 %v5873_v14, %v3288_v45 }
0x171f   :  { %5277 = vmatmul.msk.f32.vlgmr.msrb.gmra.mxu0 %vm237_vm1, %v3237_v0 }
0x1720   :  { %v5682_v12 = vpop.eup %5681  ;;  %3305 = vrot.lane.b32.xlu1 %v3289_v10, %s6055_s12 }
0x1721   :  { %v3234_v9 = vadd.f32 1.0, %v5682_v12 }
0x1723   :  { %v3236_v13 = vmul.f32 0.5, %v3234_v9 }
0x1725   :  { %v3238_v42 = vmul.f32 %v3236_v13, %v3228_v4 }
0x1727   :  { %5278 = vmatmul.msk.f32.gmra.mxu0 %vm237_vm1, %v3238_v42 }
0x1772   :  { %v3304_v54 = vpop.permute.xlu2 %3303 }
0x1792   :  { %v3306_v44 = vpop.permute.xlu1 %3305 }
0x179c   :  { %v3262_v15 = vpop.f32.mrf.mxu0 }
0x179d   :  { %v3263_v35 = vadd.f32 %v5874_v18, %v3262_v15 }
0x179f   :  { %v3291_v25 = vadd.f32 %v3286_v36, %v3263_v35  ;;  %v3360_v36 = vpop.f32.mrf.mxu1 }
0x17a1   :  { %v3293_v8 = vmul.f32 0.5, %v3291_v25 }
0x17a3   :  { %5683 = vtanh.f32 %v3293_v8 }
0x17a4   :  { %v3265_v20 = vpop.f32.mrf.mxu0 }
0x17a5   :  { %v3266_v56 = vadd.f32 %v5874_v18, %v3265_v20 }
0x17a7   :  { %v3292_v49 = vadd.f32 %v3289_v10, %v3266_v56  ;;  %v3363_v11 = vpop.f32.mrf.mxu1 }
0x17a9   :  { %v5684_v63 = vpop.eup %5683  ;;  %v3294_v32 = vmul.f32 0.5, %v3292_v49  ;;  %v5876_v49 = vld [vmem:[%s7643_s2] ss:$0 sm:$0xff] }
0x17aa   :  { %v3297_v17 = vadd.f32 1.0, %v5684_v63 }
0x17ab   :  { %5685 = vtanh.f32 %v3294_v32 }
0x17ac   :  { %v3299_v21 = vmul.f32 0.5, %v3297_v17 }
0x17ae   :  { %v3309_v27 = vmul.f32 %v3304_v54, %v3299_v21  ;;  %v3323_v33 = vsub.f32 1.0, %v3299_v21  ;;  %v3335_v59 = vmul.f32 %v3299_v21, %v6921_v22  ;;  %v5877_v54 = vld [vmem:[%s6113_s14] sm:$0xff] }
0x17b0   :  { %3313 = vrot.lane.b32.xlu0 %v3309_v27, %s6055_s12  ;;  %v5292_v27 = vld [vmem:[%s6068_s5 + $0x78] sm:$0xff] }
0x17b1   :  { %v5686_v28 = vpop.eup %5685 }
0x17b2   :  { %v3298_v16 = vadd.f32 1.0, %v5686_v28  ;;  %v5291_v28 = vld [vmem:[%s6068_s5 + $0x70] sm:$0xff] }
0x17b4   :  { %v3300_v40 = vmul.f32 0.5, %v3298_v16  ;;  %v5290_v16 = vld [vmem:[%s6068_s5 + $0x68] sm:$0xff] }
0x17b6   :  { %v3310_v46 = vmul.f32 %v3306_v44, %v3300_v40  ;;  %v3324_v60 = vsub.f32 1.0, %v3300_v40  ;;  %v3336_v52 = vmul.f32 %v3300_v40, %v6916_v53  ;;  %v5875_v53 = vld [vmem:[%s7642_s0] ss:$0 sm:$0xff] }
0x17b7   :  { %v5289_v40 = vld [vmem:[%s6068_s5 + $0x60] sm:$0xff]  ;;  %s7652_s5 = sld [smem:[#allocation29_spill]] }
0x17b8   :  { %3315 = vrot.lane.b32.xlu0 %v3310_v46, %s6055_s12  ;;  %v3597_v46 = vld [vmem:[#allocation5 + $0x1c8] sm:$0xff] }
0x1822   :  { %v3314_v39 = vpop.permute.xlu0 %3313 }
0x1823   :  { %v3319_v47 = vadd.f32 %v3314_v39, %v3263_v35  ;;  %v3599_v39 = vld [vmem:[#allocation5 + $0x1d8] sm:$0xff] }
0x1825   :  { %5687 = vtanh.f32 %v3319_v47  ;;  %v3593_v47 = vld [vmem:[#allocation5 + $0x1a8] sm:$0xff] }
0x182a   :  { %v3316_v41 = vpop.permute.xlu0 %3315 }
0x182b   :  { %v5688_v43 = vpop.eup %5687  ;;  %v3320_v50 = vadd.f32 %v3316_v41, %v3266_v56  ;;  %v3595_v41 = vld [vmem:[#allocation5 + $0x1b8] sm:$0xff] }
0x182c   :  { %3327 = vrot.lane.b32.xlu2 %v5688_v43, %s6054_s6  ;;  %v3589_v43 = vld [vmem:[#allocation5 + $0x188] sm:$0xff] }
0x182d   :  { %5689 = vtanh.f32 %v3320_v50  ;;  %v3591_v50 = vld [vmem:[#allocation5 + $0x198] sm:$0xff] }
0x1833   :  { %v5690_v58 = vpop.eup %5689 }
0x1834   :  { %3329 = vrot.lane.b32.xlu1 %v5690_v58, %s6054_s6  ;;  %v3594_v58 = vld [vmem:[#allocation5 + $0x1b0] sm:$0xff] }
0x1886   :  { %v3328_v29 = vpop.permute.xlu2 %3327 }
0x1887   :  { %v3333_v48 = vmul.f32 %v3328_v29, %v3323_v33  ;;  %v3590_v33 = vld [vmem:[#allocation5 + $0x190] sm:$0xff] }
0x1889   :  { %v7166_v57 = vadd.f32 %v3335_v59, %v3333_v48  ;;  %v7199_v59 = vld [vmem:[%s7621_s13] ss:$0 sm:$0xff]  ;;  %s5998_s13 = scalar_lea.hbm %s6258_s21, 16 }
0x188a   :  { %p6000_p12 = scmp.lt.s32.totalorder %s5998_s13, %s5996_s16 }
0x188b   :  { %3368 = vrot.lane.b32.xlu0 %v7166_v57, %s6054_s6 }
0x188c   :  { %p6001_p13 = por %p6000_p12, %p5999_p11 }
0x188e   :  { %p6002_p0 = pnand %p6001_p13, %p5997_p10 }
0x18a6   :  { %v3330_v61 = vpop.permute.xlu1 %3329 }
0x18a7   :  { %v3334_v30 = vmul.f32 %v3330_v61, %v3324_v60  ;;  %v5526_v61 = vld [vmem:[%s7625_s29 + $0x3] ss:$0 sm:$0xff] }
0x18a9   :  { %v7171_v37 = vadd.f32 %v3336_v52, %v3334_v30 }
0x18ab   :  { %3370 = vrot.lane.b32.xlu2 %v7171_v37, %s6054_s6 }
0x18fd   :  { %v7175_v14 = vpop.permute.xlu0 %3368 }
0x18fe   :  { %5283 = vmatmul.msk.f32.vlgmr.msra.gmra.mxu2 %vm237_vm1, %v7175_v14 }
0x1905   :  { %v7179_v22 = vpop.permute.xlu2 %3370 }
0x1906   :  { %5284 = vmatmul.msk.f32.gmra.mxu2 %vm237_vm1, %v7179_v22 }
0x1981   :  { %v3393_v4 = vpop.f32.mrf.mxu2 }
0x1982   :  { %v3394_v5 = vadd.f32 %v3393_v4, %v3360_v36 }
0x1984   :  { %v3399_v6 = vadd.f32 %v5875_v53, %v3394_v5 }
0x1986   :  { %v3401_v7 = vmul.f32 0.5, %v3399_v6 }
0x1988   :  { %5691 = vtanh.f32 %v3401_v7 }
0x1989   :  { %v3396_v0 = vpop.f32.mrf.mxu2 }
0x198a   :  { %v3397_v45 = vadd.f32 %v3396_v0, %v3363_v11  ;;  %v7210_v0 = vld [vmem:[%s7623_s17] ss:$0 sm:$0xff] }
0x198c   :  { %v3400_v10 = vadd.f32 %v5875_v53, %v3397_v45 }
0x198e   :  { %v5692_v12 = vpop.eup %5691  ;;  %v3402_v9 = vmul.f32 0.5, %v3400_v10 }
0x198f   :  { %v3405_v13 = vadd.f32 1.0, %v5692_v12  ;;  %v7214_v12 = vld [vmem:[%s7624_s25] sm:$0xff] }
0x1990   :  { %5693 = vtanh.f32 %v3402_v9  ;;  %v3596_v9 = vld [vmem:[#allocation5 + $0x1c0] sm:$0xff] }
0x1991   :  { %v3407_v42 = vmul.f32 0.5, %v3405_v13  ;;  %v3592_v13 = vld [vmem:[#allocation5 + $0x1a0] sm:$0xff] }
0x1993   :  { %v3409_v15 = vmul.f32 %v3407_v42, %v3399_v6  ;;  %v3588_v42 = vld [vmem:[#allocation5 + $0x180] sm:$0xff] }
0x1995   :  { %3427 = vmatmul.f32.vlgmr.msra.gmra.mxu1 %v3409_v15  ;;  %v7219_v15 = vld [vmem:[%s7624_s25 + $0x8] sm:$0xff] }
0x1996   :  { %v5694_v18 = vpop.eup %5693  ;;  %3559 = vmatpush.msra.mxu1 %v5292_v27  ;;  %v3577_v27 = vld [vmem:[#allocation2 + $0x1b0] sm:$0xff] }
0x1997   :  { %v3406_v35 = vadd.f32 1.0, %v5694_v18 }
0x1998   :  { %3560 = vmatpush.msra.mxu1 %v5291_v28  ;;  %v3578_v28 = vld [vmem:[#allocation2 + $0x1b8] sm:$0xff] }
0x1999   :  { %v3408_v25 = vmul.f32 0.5, %v3406_v35 }
0x199a   :  { %3561 = vmatpush.msra.mxu1 %v5290_v16  ;;  %v3571_v16 = vld [vmem:[#allocation2 + $0x180] sm:$0xff] }
0x199b   :  { %v3410_v8 = vmul.f32 %v3408_v25, %v3400_v10  ;;  %v3600_v10 = vld [vmem:[#allocation5 + $0x1e0] sm:$0xff] }
0x199c   :  { %3562 = vmatpush.msra.mxu1 %v5289_v40  ;;  %v3583_v25 = vld [vmem:[#allocation2 + $0x1e0] sm:$0xff]  ;;  %v3572_v40 = vld [vmem:[#allocation2 + $0x188] sm:$0xff] }
0x199d   :  { %3430 = vmatmul.f32.gmra.mxu1 %v3410_v8  ;;  %v3584_v8 = vld [vmem:[#allocation2 + $0x1e8] sm:$0xff] }
0x1a12   :  { %v3428_v20 = vpop.f32.mrf.mxu1 }
0x1a13   :  { %v3429_v63 = vadd.f32 %v5876_v49, %v3428_v20  ;;  %v3585_v20 = vld [vmem:[#allocation2 + $0x1f0] sm:$0xff] }
0x1a15   :  { %v3434_v21 = vadd.f32 %v3429_v63, %v6963_v2  ;;  %v3601_v2 = vld [vmem:[#allocation5 + $0x1e8] sm:$0xff] }
0x1a16   :  { %v3580_v63 = vld [vmem:[#allocation2 + $0x1c8] sm:$0xff] }
0x1a1a   :  { %v3431_v56 = vpop.f32.mrf.mxu1 }
0x1a1b   :  { %v3432_v32 = vadd.f32 %v5876_v49, %v3431_v56  ;;  %v3586_v56 = vld [vmem:[#allocation2 + $0x1f8] sm:$0xff]  ;;  %v3579_v49 = vld [vmem:[#allocation2 + $0x1c0] sm:$0xff] }
0x1a1d   :  { %v3435_v17 = vadd.f32 %v3432_v32, %v6967_v3  ;;  %v3603_v3 = vld [vmem:[#allocation5 + $0x1f8] sm:$0xff]  ;;  %v3581_v32 = vld [vmem:[#allocation2 + $0x1d0] sm:$0xff] }
0x1a1e   :  { %3691 = vmatpush.msra.mxu0 %v3603_v3 }
0x1a1f   :  { %3450 = vmatpush.msrb.mxu3 %v3435_v17  ;;  %v3582_v17 = vld [vmem:[#allocation2 + $0x1d8] sm:$0xff] }
0x1a20   :  { %3692 = vmatpush.msra.mxu0 %v3599_v39 }
0x1a21   :  { %3451 = vmatpush.msrb.mxu3 %v3434_v21  ;;  %v3575_v21 = vld [vmem:[#allocation2 + $0x1a0] sm:$0xff] }
0x1a22   :  { %5285 = vmatmul.msk.f32.vlgmr.msrb.gmra.mxu3 %vm343_vm2, %v5877_v54  ;;  %3693 = vmatpush.msra.mxu0 %v3595_v41  ;;  %v3576_v54 = vld [vmem:[#allocation2 + $0x1a8] sm:$0xff] }
0x1a24   :  { %3694 = vmatpush.msra.mxu0 %v3591_v50 }
0x1a26   :  { %3793 = vmatpush.msrb.mxu0 %v3586_v56 }
0x1a28   :  { %3794 = vmatpush.msrb.mxu0 %v3582_v17 }
0x1a2a   :  { %3795 = vmatpush.msrb.mxu0 %v3578_v28 }
0x1aa5   :  { %v3453_v44 = vpop.f32.mrf.mxu3 }
0x1aa6   :  { %5286 = vmatmul.msk.f32.vlgmr.msrb.gmra.mxu1 %vm237_vm1, %v3453_v44  ;;  %v3573_v44 = vld [vmem:[#allocation2 + $0x190] sm:$0xff] }
0x1aa7   :  { %3645 = vmatpush.msrb.mxu1 %v3601_v2  ;;  %v3574_v2 = vld [vmem:[#allocation2 + $0x198] sm:$0xff] }
0x1aa8   :  { %3796 = vmatpush.msrb.mxu0 %v3574_v2  ;;  %v5884_v2 = vld [vmem:[%s7627_s20 + $0x8] sm:$0xff] }
0x1aa9   :  { %3646 = vmatpush.msrb.mxu1 %v3597_v46 }
0x1aab   :  { %3647 = vmatpush.msrb.mxu1 %v3593_v47 }
0x1aad   :  { %3648 = vmatpush.msrb.mxu1 %v3589_v43 }
0x1aae   :  { %5294 = vmatmul.msk.f32.vlgmr.msra.gmra.mxu1 %vm237_vm1, %v7650_v55  ;;  %v3602_v55 = vld [vmem:[#allocation5 + $0x1f0] sm:$0xff] }
0x1aaf   :  { %3668 = vmatpush.msra.mxu2 %v3602_v55  ;;  %3747 = vmatpush.msra.mxu1 %v3584_v8 }
0x1ab1   :  { %3748 = vmatpush.msra.mxu1 %v3580_v63 }
0x1ab3   :  { %3749 = vmatpush.msra.mxu1 %v3576_v54 }
0x1ab5   :  { %3750 = vmatpush.msra.mxu1 %v3572_v40  ;;  %v5882_v40 = vld [vmem:[%s7627_s20 + $0x18] sm:$0xff] }
0x1ab6   :  { %5295 = vmatmul.msk.f32.gmra.mxu1 %vm237_vm1, %v7651_v23  ;;  %v3598_v23 = vld [vmem:[#allocation5 + $0x1d0] sm:$0xff] }
0x1ab7   :  { %3669 = vmatpush.msra.mxu2 %v3598_v23 }
0x1ab9   :  { %3670 = vmatpush.msra.mxu2 %v3594_v58  ;;  %v7246_v58 = vld [vmem:[%s7626_s24 + $0xc] sm:$0xf] }
0x1abb   :  { %3671 = vmatpush.msra.mxu2 %v3590_v33 }
0x1b23   :  { %v3476_v29 = vpop.f32.mrf.mxu1 }
0x1b24   :  { %v3477_v48 = vadd.f32 %v7199_v59, %v3476_v29  ;;  %v3808_v29 = vperm.slane %v7246_v58, 1 }
0x1b26   :  { %v3479_v60 = vmul.f32 0.5, %v3477_v48 }
0x1b28   :  { %5695 = vtanh.f32 %v3479_v60 }
0x1b2b   :  { %v3564_v52 = vpop.f32.mrf.mxu1 }
0x1b2c   :  { %v3565_v30 = vadd.f32 %v5526_v61, %v3564_v52  ;;  %v3807_v52 = vperm.slane %v7246_v58, 0 }
0x1b2e   :  { %v5696_v36 = vpop.eup %5695  ;;  %5298 = vmatmul.msk.f32.vlgmr.msrb.gmra.mxu1 %vm237_vm1, %v3565_v30  ;;  %5302 = vmatmul.msk.f32.vlgmr.msra.gmra.mxu0 %vm237_vm1, %v3565_v30 }
0x1b2f   :  { %v3481_v4 = vadd.f32 1.0, %v5696_v36 }
0x1b31   :  { %v3482_v5 = vmul.f32 0.5, %v3481_v4 }
0x1b33   :  { %v3483_v53 = vmul.f32 %v3482_v5, %v3477_v48  ;;  %v3567_v6 = vpop.f32.mrf.mxu1 }
0x1b34   :  { %v3568_v7 = vadd.f32 %v5526_v61, %v3567_v6 }
0x1b35   :  { %3500 = vmatmul.f32.vlgmr.msrb.gmra.mxu2 %v3483_v53 }
0x1b36   :  { %5299 = vmatmul.msk.f32.gmra.mxu1 %vm237_vm1, %v3568_v7  ;;  %5303 = vmatmul.msk.f32.gmra.mxu0 %vm237_vm1, %v3568_v7 }
0x1b37   :  { %3770 = vmatpush.msrb.mxu2 %v3585_v20 }
0x1b39   :  { %3771 = vmatpush.msrb.mxu2 %v3581_v32 }
0x1b3b   :  { %3772 = vmatpush.msrb.mxu2 %v3577_v27 }
0x1b3d   :  { %5300 = vmatmul.msk.f32.vlgmr.msra.gmra.mxu2 %vm237_vm1, %v3565_v30 }
0x1b3e   :  { %3773 = vmatpush.msrb.mxu2 %v3573_v44  ;;  %v5883_v44 = vld [vmem:[%s7627_s20 + $0x10] sm:$0xff] }
0x1b45   :  { %5301 = vmatmul.msk.f32.gmra.mxu2 %vm237_vm1, %v3568_v7 }
0x1bab   :  { %v3650_v50 = vpop.f32.mrf.mxu1 }
0x1bb3   :  { %v3653_v23 = vpop.f32.mrf.mxu1 }
0x1bb8   :  { %v3501_v11 = vpop.f32.mrf.mxu2 }
0x1bb9   :  { %v3502_v45 = vadd.f32 %v7210_v0, %v3501_v11 }
0x1bbb   :  { %3519 = vmatpush.msra.mxu3 %v3502_v45 }
0x1bbc   :  { %5287 = vmatmul.msk.f32.vlgmr.msra.gmra.mxu3 %vm197_vm0, %v7214_v12 }
0x1bbd   :  { %3622 = vmatpush.msrb.mxu3 %v3600_v10 }
0x1bbf   :  { %3623 = vmatpush.msrb.mxu3 %v3596_v9  ;;  %v3809_v9 = vperm.slane %v7246_v58, 2 }
0x1bc0   :  { %v3673_v5 = vpop.f32.mrf.mxu2 }
0x1bc1   :  { %3624 = vmatpush.msrb.mxu3 %v3592_v13 }
0x1bc3   :  { %3625 = vmatpush.msrb.mxu3 %v3588_v42 }
0x1bc4   :  { %5288 = vmatmul.msk.f32.gmra.mxu3 %vm197_vm0, %v7219_v15 }
0x1bc5   :  { %3724 = vmatpush.msra.mxu3 %v3583_v25 }
0x1bc7   :  { %3725 = vmatpush.msra.mxu3 %v3579_v49 }
0x1bc8   :  { %v3676_v53 = vpop.f32.mrf.mxu2 }
0x1bc9   :  { %3726 = vmatpush.msra.mxu3 %v3575_v21 }
0x1bcb   :  { %3727 = vmatpush.msra.mxu3 %v3571_v16 }
0x1bcc   :  { %5296 = vmatmul.msk.f32.vlgmr.msrb.gmra.mxu3 %vm237_vm1, %v3565_v30 }
0x1bd4   :  { %5297 = vmatmul.msk.f32.gmra.mxu3 %vm237_vm1, %v3568_v7 }
0x1c3f   :  { %v7225_v18 = vpop.f32.mrf.mxu3 }
0x1c40   :  { %3529 = vrot.lane.b32.xlu1 %v7225_v18, %s6052_s1 }
0x1c47   :  { %v7229_v35 = vpop.f32.mrf.mxu3 }
0x1c48   :  { %3531 = vrot.lane.b32.xlu0 %v7229_v35, %s6052_s1 }
0x1c4f   :  { %v3627_v55 = vpop.f32.mrf.mxu3 }
0x1c57   :  { %v3630_v33 = vpop.f32.mrf.mxu3 }
0x1cb2   :  { %v3530_v3 = vpop.permute.xlu1 %3529 }
0x1cb3   :  { %v3535_v46 = vadd.f32 %v3530_v3, %v7166_v57 }
0x1cb5   :  { %3704 = vrot.lane.b32.xlu2 %v3535_v46, %s6054_s6  ;;  %v5885_v46 = vld [vmem:[%s7627_s20] sm:$0xff] }
0x1cba   :  { %v3532_v39 = vpop.permute.xlu0 %3531 }
0x1cbb   :  { %v3536_v47 = vadd.f32 %v3532_v39, %v7171_v37  ;;  %v5886_v39 = vld [vmem:[%s7632_s22 + $0x18] sm:$0xff] }
0x1cbd   :  { %3706 = vrot.lane.b32.xlu1 %v3536_v47, %s6054_s6 }
0x1d0f   :  { %v3705_v41 = vpop.permute.xlu2 %3704 }
0x1d10   :  { %5304 = vmatmul.msk.f32.vlgmr.msra.gmra.mxu3 %vm237_vm1, %v3705_v41  ;;  %5306 = vmatmul.msk.f32.vlgmr.msra.gmra.mxu1 %vm237_vm1, %v3705_v41 }
0x1d11   :  { %5308 = vmatmul.msk.f32.vlgmr.msrb.gmra.mxu2 %vm237_vm1, %v3705_v41  ;;  %5310 = vmatmul.msk.f32.vlgmr.msrb.gmra.mxu0 %vm237_vm1, %v3705_v41  ;;  %v5887_v41 = vld [vmem:[%s7632_s22 + $0x10] sm:$0xff] }
0x1d2f   :  { %v3707_v43 = vpop.permute.xlu1 %3706 }
0x1d30   :  { %5305 = vmatmul.msk.f32.gmra.mxu3 %vm237_vm1, %v3707_v43  ;;  %5307 = vmatmul.msk.f32.gmra.mxu1 %vm237_vm1, %v3707_v43 }
0x1d31   :  { %5309 = vmatmul.msk.f32.gmra.mxu2 %vm237_vm1, %v3707_v43  ;;  %5311 = vmatmul.msk.f32.gmra.mxu0 %vm237_vm1, %v3707_v43  ;;  %v5888_v43 = vld [vmem:[%s7632_s22 + $0x8] sm:$0xff] }
0x1d8d   :  { %v3752_v48 = vpop.f32.mrf.mxu1 }
0x1d8e   :  { %v3753_v60 = vadd.f32 %v3752_v48, %v3650_v50 }
0x1d90   :  { %v3816_v61 = vadd.f32 %v3808_v29, %v3753_v60  ;;  %v7292_v60 = vld [vmem:[%s7628_s27] sm:$0xff] }
0x1d92   :  { %3919 = vrot.lane.b32.xlu2 %v3816_v61, %s6054_s6 }
0x1d93   :  { %v3729_v30 = vpop.f32.mrf.mxu3 }
0x1d94   :  { %v3730_v36 = vadd.f32 %v3729_v30, %v3627_v55  ;;  %v3775_v6 = vpop.f32.mrf.mxu2  ;;  %v5892_v30 = vld [vmem:[%s7638_s28 + $0x70] sm:$0xff] }
0x1d95   :  { %v3776_v10 = vadd.f32 %v3775_v6, %v3673_v5  ;;  %v5894_v6 = vld [vmem:[%s7638_s28 + $0x60] sm:$0xff] }
0x1d96   :  { %v3815_v4 = vadd.f32 %v3807_v52, %v3730_v36  ;;  %v5893_v36 = vld [vmem:[%s7638_s28 + $0x68] sm:$0xff] }
0x1d97   :  { %v3817_v56 = vadd.f32 %v3809_v9, %v3776_v10  ;;  %v5897_v10 = vld [vmem:[%s7638_s28 + $0x50] sm:$0xff] }
0x1d98   :  { %3915 = vrot.lane.b32.xlu1 %v3815_v4, %s6054_s6 }
0x1dad   :  { %v3755_v7 = vpop.f32.mrf.mxu1 }
0x1dae   :  { %v3756_v11 = vadd.f32 %v3755_v7, %v3653_v23 }
0x1db0   :  { %v3820_v45 = vadd.f32 %v3808_v29, %v3756_v11  ;;  %v5890_v29 = vld [vmem:[%s7638_s28 + $0x78] sm:$0xff] }
0x1db2   :  { %3921 = vrot.lane.b32.xlu0 %v3820_v45, %s6054_s6  ;;  %5313 = vmatpush.xpose.msk.msrb.mxu3 %vm237_vm1, %v3820_v45 }
0x1db3   :  { %4127 = vrot.lane.b32.xlu1 %v3820_v45, %s6052_s1  ;;  %v3732_v13 = vpop.f32.mrf.mxu3 }
0x1db4   :  { %v3733_v42 = vadd.f32 %v3732_v13, %v3630_v33  ;;  %v3778_v25 = vpop.f32.mrf.mxu2  ;;  %v5889_v33 = vld [vmem:[%s7632_s22] sm:$0xff] }
0x1db5   :  { %v3779_v8 = vadd.f32 %v3778_v25, %v3676_v53  ;;  %v5899_v13 = vld [vmem:[%s7638_s28 + $0x40] sm:$0xff]  ;;  %v5901_v25 = vld [vmem:[%s7638_s28 + $0x30] sm:$0xff] }
0x1db6   :  { %v3819_v20 = vadd.f32 %v3807_v52, %v3733_v42  ;;  %5314 = vmatpush.xpose.msk.msrb.mxu3 %vm237_vm1, %v3816_v61  ;;  %v5900_v42 = vld [vmem:[%s7638_s28 + $0x38] sm:$0xff] }
0x1db7   :  { %v3821_v49 = vadd.f32 %v3809_v9, %v3779_v8  ;;  %v5898_v9 = vld [vmem:[%s7638_s28 + $0x48] sm:$0xff] }
0x1db8   :  { %3917 = vrot.lane.b32.xlu2 %v3819_v20, %s6054_s6  ;;  %v5902_v8 = vld [vmem:[%s7638_s28 + $0x28] sm:$0xff] }
0x1db9   :  { %3902 = vmatpush.msrb.mxu1 %v3821_v49  ;;  %5315 = vmatmul.msk.f32.vlgmr.msrb.gmra.mxu3 %vm237_vm1, %v3815_v4  ;;  %v7259_v63 = vpack.i.bf16 %v3817_v56, %v3821_v49  ;;  %v5905_v49 = vld [vmem:[%s7638_s28 + $0x10] sm:$0xff] }
0x1dba   :  { %4025 = vrot.lane.b32.xlu0 %v3820_v45, %s6055_s12  ;;  %v5896_v45 = vld [vmem:[%s7638_s28 + $0x58] sm:$0xff] }
0x1dbb   :  { %3903 = vmatpush.msrb.mxu1 %v3817_v56  ;;  %4019 = vrot.lane.b32.xlu1 %v3815_v4, %s6055_s12  ;;  %v5904_v56 = vld [vmem:[%s7638_s28 + $0x18] sm:$0xff] }
0x1dc0   :  { %4125 = vrot.lane.b32.xlu2 %v3816_v61, %s6052_s1 }
0x1dc1   :  { %5316 = vmatmul.msk.f32.gmra.mxu3 %vm237_vm1, %v3819_v20 }
0x1dc2   :  { %4023 = vrot.lane.b32.xlu0 %v3816_v61, %s6055_s12 }
0x1dc3   :  { %4123 = vrot.lane.b32.xlu1 %v3819_v20, %s6052_s1 }
0x1dc8   :  { %4021 = vrot.lane.b32.xlu2 %v3819_v20, %s6055_s12  ;;  %v5903_v20 = vld [vmem:[%s7638_s28 + $0x20] sm:$0xff] }
0x1dca   :  { %4121 = vrot.lane.b32.xlu0 %v3815_v4, %s6052_s1 }
0x1dd2   :  { %5499 = vrot.lane.b32.xlu0 %v7259_v63, %s6054_s6 }
0x1dec   :  { %v3920_v32 = vpop.permute.xlu2 %3919 }
0x1e0a   :  { %v3916_v17 = vpop.permute.xlu1 %3915 }
0x1e12   :  { %v3918_v21 = vpop.permute.xlu2 %3917 }
0x1e1a   :  { %v4126_v16 = vpop.permute.xlu2 %4125 }
0x1e22   :  { %v4022_v48 = vpop.permute.xlu2 %4021 }
0x1e24   :  { %v3922_v54 = vpop.permute.xlu0 %3921 }
0x1e25   :  { %5319 = vmatpush.xpose.msk.msra.mxu2 %vm237_vm1, %v3922_v54  ;;  %v4128_v27 = vpop.permute.xlu1 %4127 }
0x1e29   :  { %5320 = vmatpush.xpose.msk.msra.mxu2 %vm237_vm1, %v3920_v32  ;;  %v5906_v32 = vld [vmem:[%s7638_s28 + $0x8] sm:$0xff] }
0x1e2c   :  { %v4026_v28 = vpop.permute.xlu0 %4025  ;;  %5321 = vmatmul.msk.f32.vlgmr.msra.gmra.mxu2 %vm237_vm1, %v3916_v17  ;;  %v5907_v17 = vld [vmem:[%s7638_s28] sm:$0xff] }
0x1e2d   :  { %5331 = vmatpush.xpose.msk.msrb.mxu2 %vm237_vm1, %v4128_v27  ;;  %5325 = vmatpush.xpose.msk.msra.mxu3 %vm237_vm1, %v4026_v28  ;;  %v4020_v47 = vpop.permute.xlu1 %4019 }
0x1e31   :  { %5332 = vmatpush.xpose.msk.msrb.mxu2 %vm237_vm1, %v4126_v16 }
0x1e34   :  { %v4024_v3 = vpop.permute.xlu0 %4023  ;;  %5322 = vmatmul.msk.f32.gmra.mxu2 %vm237_vm1, %v3918_v21 }
0x1e35   :  { %4353 = vmatpush.msra.mxu2 %v5882_v40  ;;  %5326 = vmatpush.xpose.msk.msra.mxu3 %vm237_vm1, %v4024_v3 }
0x1e37   :  { %4354 = vmatpush.msra.mxu2 %v5883_v44 }
0x1e38   :  { %5327 = vmatmul.msk.f32.vlgmr.msra.gmra.mxu3 %vm237_vm1, %v4020_v47 }
0x1e39   :  { %4355 = vmatpush.msra.mxu2 %v5884_v2  ;;  %4255 = vmatpush.msrb.mxu3 %v5886_v39 }
0x1e3b   :  { %4356 = vmatpush.msra.mxu2 %v5885_v46  ;;  %4256 = vmatpush.msrb.mxu3 %v5887_v41 }
0x1e3c   :  { %v4122_v50 = vpop.permute.xlu0 %4121  ;;  %v3852_v55 = vpop.f32.mrf.mxu3 }
0x1e3d   :  { %4257 = vmatpush.msrb.mxu3 %v5888_v43  ;;  %v3858_v23 = vmul.f32 0.17677669, %v3852_v55  ;;  %5333 = vmatmul.msk.f32.vlgmr.msrb.gmra.mxu2 %vm237_vm1, %v4122_v50 }
0x1e3e   :  { %4469 = vmatpush.msrb.mxu2 %v7066_v51  ;;  %v4124_v51 = vpop.permute.xlu1 %4123 }
0x1e3f   :  { %4258 = vmatpush.msrb.mxu3 %v5889_v33  ;;  %v3860_v61 = vadd.f32 %v7292_v60, %v3858_v23 }
0x1e40   :  { %5328 = vmatmul.msk.f32.gmra.mxu3 %vm237_vm1, %v4022_v48  ;;  %4470 = vmatpush.msrb.mxu2 %v7070_v34 }
0x1e41   :  { %4409 = vmatpush.msra.mxu3 %v5890_v29  ;;  %v3862_v52 = vsel %vm343_vm2, %v3860_v61, -inf }
0x1e42   :  { %3863 = vmax.xlane.f32.xlu0 %v3862_v52  ;;  %4471 = vmatpush.msrb.mxu2 %v7074_v38  ;;  %v7305_v38 = vld [vmem:[%s7628_s27 + $0x8] sm:$0xff] }
0x1e43   :  { %4410 = vmatpush.msra.mxu3 %v5892_v30 }
0x1e44   :  { %v5500_v4 = vpop.permute.xlu0 %5499  ;;  %v3855_v5 = vpop.f32.mrf.mxu3  ;;  %4472 = vmatpush.msrb.mxu2 %v7078_v62 }
0x1e45   :  { %4411 = vmatpush.msra.mxu3 %v5893_v36  ;;  %v5501_v53 = vunpack.i.l.bf16 %v5500_v4  ;;  %v3859_v34 = vmul.f32 0.17677669, %v3855_v5  ;;  %5334 = vmatmul.msk.f32.gmra.mxu2 %vm237_vm1, %v4124_v51  ;;  %v5502_v7 = vunpack.i.h.bf16 %v5500_v4 }
0x1e47   :  { %4412 = vmatpush.msra.mxu3 %v5894_v6  ;;  %4006 = vmatpush.msra.mxu0 %v5501_v53  ;;  %v3861_v11 = vadd.f32 %v7305_v38, %v3859_v34 }
0x1e49   :  { %4413 = vmatpush.msra.mxu3 %v5896_v45  ;;  %4007 = vmatpush.msra.mxu0 %v5502_v7  ;;  %v3865_v62 = vsel %vm343_vm2, %v3861_v11, -inf }
0x1e4a   :  { %3866 = vmax.xlane.f32.xlu1 %v3865_v62 }
0x1e4b   :  { %4414 = vmatpush.msra.mxu3 %v5897_v10 }
0x1e4d   :  { %4415 = vmatpush.msra.mxu3 %v5898_v9  ;;  %5341 = vmatmul.msk.f32.vlgmr.msra.gmra.mxu2 %vm237_vm1, %v7225_v18 }
0x1e4f   :  { %4416 = vmatpush.msra.mxu3 %v5899_v13 }
0x1e51   :  { %4417 = vmatpush.msra.mxu3 %v5900_v42 }
0x1e53   :  { %4418 = vmatpush.msra.mxu3 %v5901_v25 }
0x1e55   :  { %4419 = vmatpush.msra.mxu3 %v5902_v8  ;;  %5342 = vmatmul.msk.f32.gmra.mxu2 %vm237_vm1, %v7229_v35 }
0x1e56   :  { %5509 = vrot.lane.b32.xlu0 %v7259_v63, %s6052_s1 }
0x1e57   :  { %4420 = vmatpush.msra.mxu3 %v5903_v20 }
0x1e59   :  { %4421 = vmatpush.msra.mxu3 %v5904_v56 }
0x1e5b   :  { %4422 = vmatpush.msra.mxu3 %v5905_v49 }
0x1e5d   :  { %4423 = vmatpush.msra.mxu3 %v5906_v32 }
0x1e5f   :  { %4424 = vmatpush.msra.mxu3 %v5907_v17  ;;  %v5908_v17 = vld [vmem:[%s7636_s26 + $0x18] sm:$0xff] }
0x1eaf   :  { %v3948_v21 = vpop.f32.mrf.mxu2 }
0x1eb0   :  { %v3954_v54 = vmul.f32 0.17677669, %v3948_v21 }
0x1eb2   :  { %v3956_v27 = vadd.f32 %v7292_v60, %v3954_v54 }
0x1eb4   :  { %v3958_v28 = vsel %vm343_vm2, %v3956_v27, -inf }
0x1eb5   :  { %3959 = vmax.xlane.f32.xlu2 %v3958_v28  ;;  %v3864_v16 = vpop.xlane.xlu0 %3863 }
0x1eb6   :  { %v3868_v40 = vsub.f32 %v3860_v61, %v3864_v16 }
0x1eb7   :  { %v3951_v44 = vpop.f32.mrf.mxu2 }
0x1eb8   :  { %v3870_v2 = vmul.f32 1.442695, %v3868_v40  ;;  %v3955_v3 = vmul.f32 0.17677669, %v3951_v44 }
0x1eba   :  { %5697 = vpow2.f32 %v3870_v2  ;;  %v3957_v46 = vadd.f32 %v7305_v38, %v3955_v3 }
0x1ebb   :  { %v4052_v39 = vpop.f32.mrf.mxu3 }
0x1ebc   :  { %v4058_v47 = vmul.f32 0.17677669, %v4052_v39  ;;  %v3961_v41 = vsel %vm343_vm2, %v3957_v46, -inf }
0x1ebd   :  { %3962 = vmax.xlane.f32.xlu2 %v3961_v41  ;;  %v3867_v43 = vpop.xlane.xlu1 %3866 }
0x1ebe   :  { %v3869_v50 = vsub.f32 %v3861_v11, %v3867_v43  ;;  %v4060_v55 = vadd.f32 %v7292_v60, %v4058_v47 }
0x1ec0   :  { %v5698_v23 = vpop.eup %5697  ;;  %v3872_v33 = vmul.f32 1.442695, %v3869_v50  ;;  %v4154_v29 = vpop.f32.mrf.mxu2  ;;  %v4062_v48 = vsel %vm343_vm2, %v4060_v55, -inf  ;;  %v5909_v50 = vld [vmem:[%s6173_s3 + $0x78] sm:$0xff] }
0x1ec1   :  { %v4160_v61 = vmul.f32 0.17677669, %v4154_v29  ;;  %5317 = vmatmul.msk.f32.vlgmr.msrb.gmra.mxu1 %vm343_vm2, %v5698_v23  ;;  %4063 = vmax.xlane.f32.xlu1 %v4062_v48  ;;  %v3874_v10 = vsel %vm343_vm2, %v5698_v23, 0.0  ;;  %v5910_v23 = vld [vmem:[%s7629_s4 + $0x18] sm:$0xff]  ;;  %v5912_v29 = vld [vmem:[%s7629_s4 + $0x10] sm:$0xff]  ;;  %v5913_v48 = vld [vmem:[%s6173_s3 + $0x68] sm:$0xff] }
0x1ec2   :  { %5699 = vpow2.f32 %v3872_v33  ;;  %v5911_v33 = vld [vmem:[%s6173_s3 + $0x70] sm:$0xff] }
0x1ec3   :  { %v4162_v52 = vadd.f32 %v7292_v60, %v4160_v61  ;;  %v4055_v30 = vpop.f32.mrf.mxu3  ;;  %v5914_v61 = vld [vmem:[%s7629_s4 + $0x8] sm:$0xff] }
0x1ec4   :  { %v4059_v51 = vmul.f32 0.17677669, %v4055_v30 }
0x1ec5   :  { %v4164_v36 = vsel %vm343_vm2, %v4162_v52, -inf }
0x1ec6   :  { %v4061_v4 = vadd.f32 %v7305_v38, %v4059_v51  ;;  %4165 = vmax.xlane.f32.xlu2 %v4164_v36  ;;  %v5916_v51 = vld [vmem:[%s7629_s4] sm:$0xff] }
0x1ec8   :  { %v7337_v5 = vpop.eup %5699  ;;  %v4157_v53 = vpop.f32.mrf.mxu2  ;;  %v4065_v6 = vsel %vm343_vm2, %v4061_v4, -inf }
0x1ec9   :  { %v5510_v34 = vpop.permute.xlu0 %5509  ;;  %v4161_v7 = vmul.f32 0.17677669, %v4157_v53  ;;  %4066 = vmax.xlane.f32.xlu1 %v4065_v6  ;;  %5318 = vmatmul.msk.f32.gmra.mxu1 %vm343_vm2, %v7337_v5  ;;  %v5918_v53 = vld [vmem:[%s6173_s3 + $0x50] sm:$0xff]  ;;  %v5920_v6 = vld [vmem:[%s6173_s3 + $0x40] sm:$0xff] }
0x1eca   :  { %v5511_v11 = vunpack.i.l.bf16 %v5510_v34  ;;  %v5512_v60 = vunpack.i.h.bf16 %v5510_v34  ;;  %v5919_v34 = vld [vmem:[%s6173_s3 + $0x48] sm:$0xff] }
0x1ecb   :  { %v4163_v45 = vadd.f32 %v7305_v38, %v4161_v7  ;;  %v5921_v7 = vld [vmem:[%s6173_s3 + $0x38] sm:$0xff] }
0x1ecc   :  { %4210 = vmatpush.msrb.mxu0 %v5511_v11 }
0x1ecd   :  { %v4167_v62 = vsel %vm343_vm2, %v4163_v45, -inf }
0x1ece   :  { %4211 = vmatpush.msrb.mxu0 %v5512_v60  ;;  %v5922_v60 = vld [vmem:[%s6173_s3 + $0x30] sm:$0xff] }
0x1ed1   :  { %4168 = vmax.xlane.f32.xlu1 %v4167_v62  ;;  %v5924_v62 = vld [vmem:[%s6173_s3 + $0x20] sm:$0xff] }
0x1ed9   :  { %3875 = vadd.xlane.f32.xlu1 %v3874_v10  ;;  %v5925_v10 = vld [vmem:[%s6173_s3 + $0x18] sm:$0xff] }
0x1ede   :  { %5504 = vrot.lane.b32.xlu2 %v7259_v63, %s6055_s12 }
0x1f28   :  { %v3960_v9 = vpop.xlane.xlu2 %3959 }
0x1f29   :  { %v3964_v13 = vsub.f32 %v3956_v27, %v3960_v9  ;;  %v5926_v9 = vld [vmem:[%s6173_s3 + $0x10] sm:$0xff] }
0x1f2b   :  { %v3966_v42 = vmul.f32 1.442695, %v3964_v13  ;;  %v5927_v13 = vld [vmem:[%s6173_s3 + $0x8] sm:$0xff] }
0x1f2d   :  { %5701 = vpow2.f32 %v3966_v42  ;;  %v5928_v42 = vld [vmem:[%s6173_s3] sm:$0xff] }
0x1f30   :  { %v3963_v25 = vpop.xlane.xlu2 %3962 }
0x1f31   :  { %v3965_v8 = vsub.f32 %v3957_v46, %v3963_v25  ;;  %v3696_v25 = vpop.f32.mrf.mxu0 }
0x1f33   :  { %v5702_v20 = vpop.eup %5701  ;;  %v3968_v56 = vmul.f32 1.442695, %v3965_v8 }
0x1f34   :  { %5323 = vmatmul.msk.f32.vlgmr.msra.gmra.mxu0 %vm343_vm2, %v5702_v20  ;;  %v4064_v38 = vpop.xlane.xlu1 %4063  ;;  %v3970_v49 = vsel %vm343_vm2, %v5702_v20, 0.0 }
0x1f35   :  { %5703 = vpow2.f32 %v3968_v56  ;;  %v4068_v32 = vsub.f32 %v4060_v55, %v4064_v38  ;;  %3971 = vadd.xlane.f32.xlu0 %v3970_v49  ;;  %4386 = vmatpush.msra.mxu0 %v5908_v17  ;;  %v3877_v55 = vsel %vm343_vm2, %v7337_v5, 0.0 }
0x1f37   :  { %v4070_v21 = vmul.f32 1.442695, %v4068_v32  ;;  %4387 = vmatpush.msra.mxu0 %v7111_v24 }
0x1f39   :  { %5705 = vpow2.f32 %v4070_v21  ;;  %v4166_v63 = vpop.xlane.xlu2 %4165  ;;  %4388 = vmatpush.msra.mxu0 %v7115_v19  ;;  %v3699_v8 = vpop.f32.mrf.mxu0 }
0x1f3a   :  { %v4170_v54 = vsub.f32 %v4162_v52, %v4166_v63  ;;  %v5915_v52 = vld [vmem:[%s6173_s3 + $0x60] sm:$0xff] }
0x1f3b   :  { %v5704_v27 = vpop.eup %5703  ;;  %4389 = vmatpush.msra.mxu0 %v7119_v31 }
0x1f3c   :  { %v4172_v28 = vmul.f32 1.442695, %v4170_v54  ;;  %5324 = vmatmul.msk.f32.gmra.mxu0 %vm343_vm2, %v5704_v27  ;;  %v4067_v16 = vpop.xlane.xlu1 %4066  ;;  %v3973_v5 = vsel %vm343_vm2, %v5704_v27, 0.0 }
0x1f3d   :  { %v4069_v44 = vsub.f32 %v4061_v4, %v4067_v16  ;;  %v5917_v4 = vld [vmem:[%s6173_s3 + $0x58] sm:$0xff] }
0x1f3e   :  { %5707 = vpow2.f32 %v4172_v28  ;;  %v3905_v32 = vpop.f32.mrf.mxu1 }
0x1f3f   :  { %v5706_v40 = vpop.eup %5705  ;;  %v4072_v19 = vmul.f32 1.442695, %v4069_v44 }
0x1f40   :  { %v4074_v2 = vsel %vm343_vm2, %v5706_v40, 0.0 }
0x1f41   :  { %v5505_v3 = vpop.permute.xlu2 %5504  ;;  %4075 = vadd.xlane.f32.xlu1 %v4074_v2  ;;  %5709 = vpow2.f32 %v4072_v19  ;;  %v3798_v20 = vpop.f32.mrf.mxu0 }
0x1f42   :  { %v5506_v24 = vunpack.i.l.bf16 %v5505_v3  ;;  %v5507_v39 = vunpack.i.h.bf16 %v5505_v3 }
0x1f44   :  { %v5708_v46 = vpop.eup %5707  ;;  %4108 = vmatpush.msra.mxu1 %v5506_v24  ;;  %v4169_v47 = vpop.xlane.xlu1 %4168 }
0x1f45   :  { %v4171_v31 = vsub.f32 %v4163_v45, %v4169_v47  ;;  %5335 = vmatmul.msk.f32.vlgmr.msrb.gmra.mxu0 %vm343_vm2, %v5708_v46  ;;  %v4176_v41 = vsel %vm343_vm2, %v5708_v46, 0.0  ;;  %v5923_v45 = vld [vmem:[%s6173_s3 + $0x28] sm:$0xff]  ;;  %s7653_s3 = sld [smem:[#allocation30_spill]] }
0x1f46   :  { %4177 = vadd.xlane.f32.xlu2 %v4176_v41  ;;  %4109 = vmatpush.msra.mxu1 %v5507_v39  ;;  %v3908_v63 = vpop.f32.mrf.mxu1  ;;  %v3810_v41 = vperm.slane %v7246_v58, 3 }
0x1f47   :  { %v4174_v43 = vmul.f32 1.442695, %v4171_v31  ;;  %5329 = vmatmul.msk.f32.vlgmr.msra.gmra.mxu1 %vm343_vm2, %v5706_v40  ;;  %4482 = vmatpush.msrb.mxu0 %v5909_v50  ;;  %v5710_v30 = vpop.eup %5709  ;;  %v3799_v31 = vadd.f32 %v3798_v20, %v3696_v25 }
0x1f48   :  { %4278 = vmatpush.msrb.mxu1 %v5910_v23  ;;  %v4077_v11 = vsel %vm343_vm2, %v5710_v30, 0.0 }
0x1f49   :  { %5711 = vpow2.f32 %v4174_v43  ;;  %3878 = vadd.xlane.f32.xlu1 %v3877_v55  ;;  %4483 = vmatpush.msrb.mxu0 %v5911_v33  ;;  %v3801_v56 = vpop.f32.mrf.mxu0  ;;  %v3818_v23 = vadd.f32 %v3810_v41, %v3799_v31 }
0x1f4a   :  { %4279 = vmatpush.msrb.mxu1 %v5912_v29 }
0x1f4b   :  { %4484 = vmatpush.msrb.mxu0 %v5913_v48 }
0x1f4c   :  { %4280 = vmatpush.msrb.mxu1 %v5914_v61  ;;  %v3876_v38 = vpop.xlane.xlu1 %3875 }
0x1f4d   :  { %4485 = vmatpush.msrb.mxu0 %v5915_v52  ;;  %5713 = vrcp.f32 %v3876_v38 }
0x1f4e   :  { %4281 = vmatpush.msrb.mxu1 %v5916_v51 }
0x1f4f   :  { %v5712_v36 = vpop.eup %5711  ;;  %5330 = vmatmul.msk.f32.gmra.mxu1 %vm343_vm2, %v5710_v30  ;;  %4486 = vmatpush.msrb.mxu0 %v5917_v4 }
0x1f50   :  { %5336 = vmatmul.msk.f32.gmra.mxu0 %vm343_vm2, %v5712_v36 }
0x1f51   :  { %3974 = vadd.xlane.f32.xlu1 %v3973_v5  ;;  %4487 = vmatpush.msrb.mxu0 %v5918_v53  ;;  %v5929_v5 = vld [vmem:[%s7631_s18] ss:$0 sm:$0xff] }
0x1f53   :  { %4488 = vmatpush.msrb.mxu0 %v5919_v34  ;;  %v5714_v28 = vpop.eup %5713 }
0x1f54   :  { %v3911_v44 = vmul.f32 %v5714_v28, %v3905_v32 }
0x1f55   :  { %4489 = vmatpush.msrb.mxu0 %v5920_v6 }
0x1f57   :  { %5339 = vmatmul.msk.f32.vlgmr.msrb.gmra.mxu1 %vm237_vm1, %v7175_v14  ;;  %4490 = vmatpush.msrb.mxu0 %v5921_v7  ;;  %v4179_v14 = vsel %vm343_vm2, %v5712_v36, 0.0 }
0x1f59   :  { %4078 = vadd.xlane.f32.xlu1 %v4077_v11  ;;  %4491 = vmatpush.msrb.mxu0 %v5922_v60 }
0x1f5b   :  { %4492 = vmatpush.msrb.mxu0 %v5923_v45 }
0x1f5d   :  { %4493 = vmatpush.msrb.mxu0 %v5924_v62 }
0x1f5f   :  { %5340 = vmatmul.msk.f32.gmra.mxu1 %vm237_vm1, %v7179_v22  ;;  %4494 = vmatpush.msrb.mxu0 %v5925_v10 }
0x1f61   :  { %4180 = vadd.xlane.f32.xlu1 %v4179_v14  ;;  %4495 = vmatpush.msrb.mxu0 %v5926_v9  ;;  %v3802_v14 = vadd.f32 %v3801_v56, %v3699_v8 }
0x1f63   :  { %4496 = vmatpush.msrb.mxu0 %v5927_v13 }
0x1f65   :  { %4497 = vmatpush.msrb.mxu0 %v5928_v42 }
0x1fa8   :  { %v3972_v22 = vpop.xlane.xlu0 %3971 }
0x1fa9   :  { %5715 = vrcp.f32 %v3972_v22 }
0x1faf   :  { %v5716_v16 = vpop.eup %5715 }
0x1fb1   :  { %v4009_v49 = vpop.f32.mrf.mxu0 }
0x1fb2   :  { %v4015_v40 = vmul.f32 %v5716_v16, %v4009_v49  ;;  %v3822_v49 = vadd.f32 %v3810_v41, %v3802_v14 }
0x1fb4   :  { %v4076_v17 = vpop.xlane.xlu1 %4075  ;;  %v4017_v19 = vadd.f32 %v4015_v40, %v3911_v44 }
0x1fb5   :  { %5717 = vrcp.f32 %v4076_v17 }
0x1fb9   :  { %v4012_v21 = vpop.f32.mrf.mxu0  ;;  %v4178_v27 = vpop.xlane.xlu2 %4177 }
0x1fba   :  { %5719 = vrcp.f32 %v4178_v27  ;;  %v5930_v27 = vld [vmem:[%s7635_s23] ss:$0 sm:$0xff] }
0x1fbb   :  { %v5718_v3 = vpop.eup %5717 }
0x1fbc   :  { %v3879_v54 = vpop.xlane.xlu1 %3878 }
0x1fc0   :  { %v5720_v47 = vpop.eup %5719 }
0x1fc2   :  { %v4213_v2 = vpop.f32.mrf.mxu0 }
0x1fc3   :  { %v4219_v43 = vmul.f32 %v5720_v47, %v4213_v2 }
0x1fc4   :  { %v4111_v24 = vpop.f32.mrf.mxu1  ;;  %v3975_v46 = vpop.xlane.xlu1 %3974 }
0x1fc5   :  { %v4117_v39 = vmul.f32 %v5718_v3, %v4111_v24  ;;  %5721 = vrcp.f32 %v3975_v46 }
0x1fc6   :  { %5723 = vrcp.f32 %v3879_v54 }
0x1fc7   :  { %v4119_v50 = vadd.f32 %v4117_v39, %v4017_v19 }
0x1fc9   :  { %v4221_v55 = vadd.f32 %v4219_v43, %v4119_v50 }
0x1fcb   :  { %v4223_v33 = vmul.f32 %v4221_v55, %v7646_v26  ;;  %v5722_v30 = vpop.eup %5721 }
0x1fcc   :  { %v4114_v29 = vpop.f32.mrf.mxu1  ;;  %v4079_v48 = vpop.xlane.xlu1 %4078  ;;  %v4016_v34 = vmul.f32 %v5722_v30, %v4012_v21 }
0x1fcd   :  { %v4225_v61 = vadd.f32 %v4223_v33, %v3818_v23  ;;  %5725 = vrcp.f32 %v4079_v48  ;;  %v5724_v51 = vpop.eup %5723  ;;  %v4216_v10 = vpop.f32.mrf.mxu0 }
0x1fce   :  { %v3912_v26 = vmul.f32 %v5724_v51, %v3908_v63 }
0x1fcf   :  { %v4227_v52 = vmul.f32 0.5, %v4225_v61 }
0x1fd0   :  { %v4018_v45 = vadd.f32 %v4016_v34, %v3912_v26 }
0x1fd1   :  { %5727 = vtanh.f32 %v4227_v52 }
0x1fd3   :  { %v5726_v58 = vpop.eup %5725 }
0x1fd4   :  { %v4283_v36 = vpop.f32.mrf.mxu1  ;;  %v4181_v4 = vpop.xlane.xlu1 %4180  ;;  %v4118_v11 = vmul.f32 %v5726_v58, %v4114_v29 }
0x1fd5   :  { %v4284_v53 = vadd.f32 %v5929_v5, %v4283_v36  ;;  %5729 = vrcp.f32 %v4181_v4 }
0x1fd6   :  { %v4120_v13 = vadd.f32 %v4118_v11, %v4018_v45 }
0x1fd7   :  { %v5728_v6 = vpop.eup %5727  ;;  %4301 = vrot.lane.b32.xlu0 %v4284_v53, %s6055_s12 }
0x1fd8   :  { %v4231_v7 = vadd.f32 1.0, %v5728_v6 }
0x1fda   :  { %v4233_v60 = vmul.f32 0.5, %v4231_v7 }
0x1fdb   :  { %v5730_v62 = vpop.eup %5729 }
0x1fdc   :  { %v4235_v9 = vmul.f32 %v4233_v60, %v4225_v61  ;;  %v4220_v42 = vmul.f32 %v5730_v62, %v4216_v10  ;;  %v4286_v25 = vpop.f32.mrf.mxu1  ;;  %v5931_v62 = vld [vmem:[%s7642_s0] ss:$0 sm:$0xff] }
0x1fdd   :  { %v4287_v20 = vadd.f32 %v5929_v5, %v4286_v25 }
0x1fde   :  { %v4222_v38 = vadd.f32 %v4220_v42, %v4120_v13  ;;  %5337 = vmatmul.msk.f32.vlgmr.msrb.gmra.mxu3 %vm237_vm1, %v4235_v9 }
0x1fdf   :  { %4303 = vrot.lane.b32.xlu1 %v4287_v20, %s6055_s12 }
0x1fe0   :  { %v4224_v32 = vmul.f32 %v4222_v38, %v7647_v1 }
0x1fe2   :  { %v4226_v17 = vadd.f32 %v4224_v32, %v3822_v49 }
0x1fe4   :  { %v4228_v22 = vmul.f32 0.5, %v4226_v17 }
0x1fe6   :  { %5731 = vtanh.f32 %v4228_v22 }
0x1fec   :  { %v5732_v21 = vpop.eup %5731 }
0x1fed   :  { %v4232_v63 = vadd.f32 1.0, %v5732_v21 }
0x1fef   :  { %v4234_v8 = vmul.f32 0.5, %v4232_v63 }
0x1ff1   :  { %v4236_v56 = vmul.f32 %v4234_v8, %v4226_v17 }
0x1ff3   :  { %5338 = vmatmul.msk.f32.gmra.mxu3 %vm237_vm1, %v4236_v56 }
0x2049   :  { %v4302_v24 = vpop.permute.xlu0 %4301 }
0x2051   :  { %v4304_v50 = vpop.permute.xlu1 %4303 }
0x2061   :  { %v4260_v54 = vpop.f32.mrf.mxu3 }
0x2062   :  { %v4261_v28 = vadd.f32 %v5930_v27, %v4260_v54  ;;  %v5932_v54 = vld [vmem:[%s7643_s2] ss:$0 sm:$0xff] }
0x2064   :  { %v4289_v16 = vadd.f32 %v4284_v53, %v4261_v28 }
0x2066   :  { %v4291_v40 = vmul.f32 0.5, %v4289_v16 }
0x2068   :  { %5733 = vtanh.f32 %v4291_v40 }
0x206e   :  { %v5734_v44 = vpop.eup %5733 }
0x206f   :  { %v4295_v2 = vadd.f32 1.0, %v5734_v44  ;;  %v5933_v44 = vld [vmem:[%s6113_s14] sm:$0xff]  ;;  %s7654_s14 = sld [smem:[#allocation17_spill]] }
0x2071   :  { %v4297_v3 = vmul.f32 0.5, %v4295_v2 }
0x2073   :  { %v4307_v1 = vmul.f32 %v4302_v24, %v4297_v3  ;;  %v4321_v30 = vsub.f32 1.0, %v4297_v3  ;;  %v4333_v36 = vmul.f32 %v4297_v3, %v7166_v57  ;;  %v4358_v57 = vpop.f32.mrf.mxu2 }
0x2075   :  { %4311 = vrot.lane.b32.xlu2 %v4307_v1, %s6055_s12 }
0x2076   :  { %v4263_v46 = vpop.f32.mrf.mxu3 }
0x2077   :  { %v4264_v19 = vadd.f32 %v5930_v27, %v4263_v46 }
0x2079   :  { %v4290_v39 = vadd.f32 %v4287_v20, %v4264_v19 }
0x207b   :  { %v4292_v47 = vmul.f32 0.5, %v4290_v39  ;;  %v4361_v25 = vpop.f32.mrf.mxu2 }
0x207d   :  { %5735 = vtanh.f32 %v4292_v47 }
0x2083   :  { %v5736_v31 = vpop.eup %5735 }
0x2084   :  { %v4296_v41 = vadd.f32 1.0, %v5736_v31 }
0x2086   :  { %v4298_v43 = vmul.f32 0.5, %v4296_v41 }
0x2088   :  { %v4308_v55 = vmul.f32 %v4304_v50, %v4298_v43  ;;  %v4322_v5 = vsub.f32 1.0, %v4298_v43  ;;  %v4334_v34 = vmul.f32 %v4298_v43, %v7171_v37  ;;  %v4579_v50 = vld [vmem:[%s7653_s3 + $0x18] sm:$0xff] }
0x208a   :  { %4313 = vrot.lane.b32.xlu0 %v4308_v55, %s6055_s12  ;;  %v4547_v55 = vld [vmem:[%s7652_s5 + $0x10] sm:$0xff] }
0x20cf   :  { %v4312_v23 = vpop.permute.xlu2 %4311 }
0x20d0   :  { %v4317_v33 = vadd.f32 %v4312_v23, %v4261_v28  ;;  %v4578_v23 = vld [vmem:[%s7653_s3 + $0x10] sm:$0xff] }
0x20d2   :  { %5737 = vtanh.f32 %v4317_v33  ;;  %v4546_v33 = vld [vmem:[%s7652_s5 + $0x8] sm:$0xff] }
0x20d8   :  { %v5738_v29 = vpop.eup %5737 }
0x20d9   :  { %4325 = vrot.lane.b32.xlu0 %v5738_v29, %s6054_s6  ;;  %v4577_v29 = vld [vmem:[%s7653_s3 + $0x8] sm:$0xff] }
0x20fc   :  { %v4314_v48 = vpop.permute.xlu0 %4313 }
0x20fd   :  { %v4318_v61 = vadd.f32 %v4314_v48, %v4264_v19  ;;  %v4545_v48 = vld [vmem:[%s7652_s5] sm:$0xff] }
0x20ff   :  { %5739 = vtanh.f32 %v4318_v61  ;;  %v4576_v61 = vld [vmem:[%s7653_s3] sm:$0xff] }
0x2105   :  { %v5740_v52 = vpop.eup %5739 }
0x2106   :  { %4327 = vrot.lane.b32.xlu1 %v5740_v52, %s6054_s6 }
0x214b   :  { %v4326_v51 = vpop.permute.xlu0 %4325 }
0x214c   :  { %v4331_v4 = vmul.f32 %v4326_v51, %v4321_v30 }
0x214e   :  { %v7403_v58 = vadd.f32 %v4333_v36, %v4331_v4 }
0x2150   :  { %4366 = vrot.lane.b32.xlu2 %v7403_v58, %s6054_s6 }
0x2178   :  { %v4328_v53 = vpop.permute.xlu1 %4327 }
0x2179   :  { %v4332_v6 = vmul.f32 %v4328_v53, %v4322_v5  ;;  %v4603_v53 = vld [vmem:[%s7655_s30] sm:$0xff] }
0x217b   :  { %v4336_v26 = vadd.f32 %v4334_v34, %v4332_v6  ;;  %v4618_v34 = vld [vmem:[%s7654_s14 + $0x8] sm:$0xff] }
0x217c   :  { %v4604_v6 = vld [vmem:[%s7655_s30 + $0x8] sm:$0xff] }
0x217d   :  { %4368 = vrot.lane.b32.xlu0 %v4336_v26, %s6054_s6 }
0x21aa   :  { %v4367_v7 = vpop.permute.xlu2 %4366 }
0x21ab   :  { %5343 = vmatmul.msk.f32.vlgmr.msra.gmra.mxu0 %vm237_vm1, %v4367_v7  ;;  %v4605_v7 = vld [vmem:[%s7655_s30 + $0x10] sm:$0xff] }
0x21ef   :  { %v4369_v11 = vpop.permute.xlu0 %4368 }
0x21f0   :  { %5344 = vmatmul.msk.f32.gmra.mxu0 %vm237_vm1, %v4369_v11  ;;  %v4620_v11 = vld [vmem:[%s7654_s14 + $0x18] sm:$0xff] }
0x2228   :  { %v4391_v60 = vpop.f32.mrf.mxu0 }
0x2229   :  { %v4392_v45 = vadd.f32 %v4391_v60, %v4358_v57  ;;  %v4606_v57 = vld [vmem:[%s7655_s30 + $0x18] sm:$0xff]  ;;  %v4621_v60 = vld [vmem:[%s7654_s14 + $0x20] sm:$0xff] }
0x222b   :  { %v4397_v10 = vadd.f32 %v5931_v62, %v4392_v45  ;;  %v4607_v45 = vld [vmem:[%s7655_s30 + $0x20] sm:$0xff] }
0x222d   :  { %v4399_v14 = vmul.f32 0.5, %v4397_v10 }
0x222f   :  { %5741 = vtanh.f32 %v4399_v14  ;;  %v4623_v14 = vld [vmem:[%s7654_s14 + $0x30] sm:$0xff] }
0x2235   :  { %v5742_v9 = vpop.eup %5741 }
0x2236   :  { %v4403_v13 = vadd.f32 1.0, %v5742_v9  ;;  %v4609_v9 = vld [vmem:[%s7655_s30 + $0x30] sm:$0xff] }
0x2238   :  { %v4405_v37 = vmul.f32 0.5, %v4403_v13  ;;  %v4624_v13 = vld [vmem:[%s7654_s14 + $0x38] sm:$0xff] }
0x223a   :  { %v4407_v42 = vmul.f32 %v4405_v37, %v4397_v10  ;;  %v4608_v10 = vld [vmem:[%s7655_s30 + $0x28] sm:$0xff]  ;;  %v4610_v37 = vld [vmem:[%s7655_s30 + $0x38] sm:$0xff] }
0x223c   :  { %4425 = vmatmul.f32.vlgmr.msra.gmra.mxu3 %v4407_v42  ;;  %v4625_v42 = vld [vmem:[%s7654_s14 + $0x40] sm:$0xff] }
0x226d   :  { %v4394_v20 = vpop.f32.mrf.mxu0 }
0x226e   :  { %v4395_v38 = vadd.f32 %v4394_v20, %v4361_v25  ;;  %v4611_v25 = vld [vmem:[%s7655_s30 + $0x40] sm:$0xff]  ;;  %v4626_v20 = vld [vmem:[%s7654_s14 + $0x48] sm:$0xff] }
0x2270   :  { %v4398_v49 = vadd.f32 %v5931_v62, %v4395_v38  ;;  %v4622_v62 = vld [vmem:[%s7654_s14 + $0x28] sm:$0xff] }
0x2271   :  { %v4612_v38 = vld [vmem:[%s7655_s30 + $0x48] sm:$0xff] }
0x2272   :  { %v4400_v32 = vmul.f32 0.5, %v4398_v49 }
0x2274   :  { %5743 = vtanh.f32 %v4400_v32  ;;  %v4613_v32 = vld [vmem:[%s7655_s30 + $0x50] sm:$0xff] }
0x227a   :  { %v5744_v17 = vpop.eup %5743 }
0x227b   :  { %v4404_v22 = vadd.f32 1.0, %v5744_v17  ;;  %v4628_v17 = vld [vmem:[%s7654_s14 + $0x58] sm:$0xff] }
0x227d   :  { %v4406_v21 = vmul.f32 0.5, %v4404_v22  ;;  %v4614_v22 = vld [vmem:[%s7655_s30 + $0x58] sm:$0xff] }
0x227f   :  { %v4408_v63 = vmul.f32 %v4406_v21, %v4398_v49  ;;  %v4627_v49 = vld [vmem:[%s7654_s14 + $0x50] sm:$0xff]  ;;  %v4629_v21 = vld [vmem:[%s7654_s14 + $0x60] sm:$0xff] }
0x2281   :  { %4428 = vmatmul.f32.gmra.mxu3 %v4408_v63  ;;  %v4615_v63 = vld [vmem:[%s7655_s30 + $0x60] sm:$0xff] }
0x22bf   :  { %v4426_v8 = vpop.f32.mrf.mxu3 }
0x22c0   :  { %v4427_v27 = vadd.f32 %v5932_v54, %v4426_v8  ;;  %v4630_v8 = vld [vmem:[%s7654_s14 + $0x68] sm:$0xff] }
0x22c2   :  { %v4432_v40 = vadd.f32 %v4427_v27, %v7225_v18  ;;  %v4923_v27 = vld [vmem:[%s6243_s9 + $0x10] sm:$0xff] }
0x2304   :  { %v4429_v56 = vpop.f32.mrf.mxu3 }
0x2305   :  { %v4430_v28 = vadd.f32 %v5932_v54, %v4429_v56  ;;  %v4616_v56 = vld [vmem:[%s7655_s30 + $0x68] sm:$0xff]  ;;  %v4924_v54 = vld [vmem:[%s6243_s9 + $0x18] sm:$0xff] }
0x2306   :  { %4983 = vmatpush.msrb.mxu3 %v4924_v54 }
0x2307   :  { %v4433_v16 = vadd.f32 %v4430_v28, %v7229_v35  ;;  %v4922_v28 = vld [vmem:[%s6243_s9 + $0x8] sm:$0xff] }
0x2308   :  { %4984 = vmatpush.msrb.mxu3 %v4923_v27 }
0x2309   :  { %4448 = vmatpush.msra.mxu1 %v4433_v16  ;;  %v4921_v16 = vld [vmem:[%s6243_s9] sm:$0xff]  ;;  %s6057_s9 = smov [#allocation7]  }
0x230a   :  { %4985 = vmatpush.msrb.mxu3 %v4922_v28  ;;  %s5051_s7 = sshll.u32 %s6057_s9, 4  ;;  %s5052_s7 = int_to_ptr.vmem [resolvable:$true] %s5051_s7 }
0x230b   :  { %4449 = vmatpush.msra.mxu1 %v4432_v40 }
0x230c   :  { %5345 = vmatmul.msk.f32.vlgmr.msra.gmra.mxu1 %vm343_vm2, %v5933_v44  ;;  %4986 = vmatpush.msrb.mxu3 %v4921_v16 }
0x2389   :  { %v4451_v2 = vpop.f32.mrf.mxu1 }
0x238a   :  { %5346 = vmatmul.msk.f32.vlgmr.msrb.gmra.mxu2 %vm237_vm1, %v4451_v2 }
0x240d   :  { %v4474_v3 = vpop.f32.mrf.mxu2 }
0x240e   :  { %v4475_v24 = vadd.f32 %v7199_v59, %v4474_v3 }
0x2410   :  { %v4477_v1 = vmul.f32 0.5, %v4475_v24 }
0x2412   :  { %5745 = vtanh.f32 %v4477_v1 }
0x2418   :  { %v5746_v46 = vpop.eup %5745 }
0x2419   :  { %v4479_v19 = vadd.f32 1.0, %v5746_v46 }
0x241b   :  { %v4480_v39 = vmul.f32 0.5, %v4479_v19 }
0x241d   :  { %v4481_v47 = vmul.f32 %v4480_v39, %v4475_v24 }
0x241f   :  { %4498 = vmatmul.f32.vlgmr.msrb.gmra.mxu0 %v4481_v47 }
0x249c   :  { %v4499_v18 = vpop.f32.mrf.mxu0 }
0x249d   :  { %v4500_v35 = vadd.f32 %v7210_v0, %v4499_v18 }
0x249f   :  { %4517 = vmatpush.msrb.mxu1 %v4500_v35 }
0x24a0   :  { %5347 = vmatmul.msk.f32.vlgmr.msrb.gmra.mxu1 %vm197_vm0, %v7214_v12 }
0x24a1   :  { %4592 = vmatpush.msra.mxu1 %v4579_v50 }
0x24a3   :  { %4593 = vmatpush.msra.mxu1 %v4578_v23 }
0x24a5   :  { %4594 = vmatpush.msra.mxu1 %v4577_v29 }
0x24a7   :  { %4595 = vmatpush.msra.mxu1 %v4576_v61 }
0x24a8   :  { %5348 = vmatmul.msk.f32.gmra.mxu1 %vm197_vm0, %v7219_v15  ;;  %v4548_v15 = vld [vmem:[%s7652_s5 + $0x18] sm:$0xff] }
0x24a9   :  { %4565 = vmatpush.msra.mxu2 %v4548_v15 }
0x24ab   :  { %4566 = vmatpush.msra.mxu2 %v4547_v55 }
0x24ad   :  { %4567 = vmatpush.msra.mxu2 %v4546_v33 }
0x24af   :  { %4568 = vmatpush.msra.mxu2 %v4545_v48 }
0x251d   :  { %v4519_v59 = vpop.f32.mrf.mxu1 }
0x251e   :  { %4527 = vrot.lane.b32.xlu1 %v4519_v59, %s6052_s1 }
0x2525   :  { %v4522_v31 = vpop.f32.mrf.mxu1 }
0x2526   :  { %4529 = vrot.lane.b32.xlu2 %v4522_v31, %s6052_s1  ;;  %s7656_s1 = sld [smem:[#allocation31_spill]] }
0x252c   :  { %v7504_v40 = vld [vmem:[%s7656_s1] ss:$0 sm:$0xff] }
0x2580   :  { %v4530_v41 = vpop.permute.xlu2 %4529 }
0x2581   :  { %v4534_v0 = vadd.f32 %v4530_v41, %v4336_v26  ;;  %v4619_v26 = vld [vmem:[%s7654_s14 + $0x10] sm:$0xff] }
0x2583   :  { %4539 = vrot.lane.b32.xlu1 %v4534_v0, %s6054_s6 }
0x2590   :  { %v4528_v43 = vpop.permute.xlu1 %4527 }
0x2591   :  { %v4533_v12 = vadd.f32 %v4528_v43, %v7403_v58  ;;  %v4617_v58 = vld [vmem:[%s7654_s14] sm:$0xff] }
0x2593   :  { %4537 = vrot.lane.b32.xlu0 %v4533_v12, %s6054_s6 }
0x25f5   :  { %v4540_v52 = vpop.permute.xlu1 %4539 }
0x25f6   :  { %4544 = vst.msk [vmem:[#allocation7 + $0x8] sm:$0xff] %vm237_vm1, %v4540_v52 }
0x2605   :  { %v4538_v30 = vpop.permute.xlu0 %4537 }
0x2606   :  { %4543 = vst.msk [vmem:[#allocation7] sm:$0xff] %vm237_vm1, %v4538_v30  ;;  %5349 = vmatmul.msk.f32.vlgmr.msra.gmra.mxu2 %vm237_vm1, %v4538_v30  ;;  %5351 = vmatmul.msk.f32.vlgmr.msra.gmra.mxu1 %vm237_vm1, %v4538_v30 }
0x260e   :  { %5350 = vmatmul.msk.f32.gmra.mxu2 %vm237_vm1, %v4540_v52  ;;  %5352 = vmatmul.msk.f32.gmra.mxu1 %vm237_vm1, %v4540_v52 }
0x2683   :  { %v4597_v51 = vpop.f32.mrf.mxu1 }
0x2689   :  { %v4570_v36 = vpop.f32.mrf.mxu2 }
0x268b   :  { %v4600_v4 = vpop.f32.mrf.mxu1 }
0x268c   :  { %4687 = vmatpush.msrb.mxu2 %v4600_v4 }
0x268e   :  { %4688 = vmatpush.msrb.mxu2 %v4597_v51 }
0x268f   :  { %5353 = vmatmul.msk.f32.vlgmr.msrb.gmra.mxu2 %vm343_vm2, %v4617_v58 }
0x2691   :  { %v4573_v5 = vpop.f32.mrf.mxu2 }
0x2692   :  { %4788 = vmatpush.msra.mxu0 %v4573_v5 }
0x2694   :  { %4789 = vmatpush.msra.mxu0 %v4570_v36 }
0x2695   :  { %5367 = vmatmul.msk.f32.vlgmr.msra.gmra.mxu0 %vm343_vm2, %v4603_v53 }
0x2697   :  { %5354 = vmatmul.msk.f32.gmra.mxu2 %vm343_vm2, %v4618_v34 }
0x269d   :  { %5368 = vmatmul.msk.f32.gmra.mxu0 %vm343_vm2, %v4604_v6 }
0x269f   :  { %5355 = vmatmul.msk.f32.gmra.mxu2 %vm343_vm2, %v4619_v26 }
0x26a5   :  { %5369 = vmatmul.msk.f32.gmra.mxu0 %vm343_vm2, %v4605_v7 }
0x26a7   :  { %5356 = vmatmul.msk.f32.gmra.mxu2 %vm343_vm2, %v4620_v11 }
0x26ad   :  { %5370 = vmatmul.msk.f32.gmra.mxu0 %vm343_vm2, %v4606_v57 }
0x26af   :  { %5357 = vmatmul.msk.f32.gmra.mxu2 %vm343_vm2, %v4621_v60 }
0x26b5   :  { %5371 = vmatmul.msk.f32.gmra.mxu0 %vm343_vm2, %v4607_v45 }
0x26b7   :  { %5358 = vmatmul.msk.f32.gmra.mxu2 %vm343_vm2, %v4622_v62 }
0x26bd   :  { %5372 = vmatmul.msk.f32.gmra.mxu0 %vm343_vm2, %v4608_v10 }
0x26bf   :  { %5359 = vmatmul.msk.f32.gmra.mxu2 %vm343_vm2, %v4623_v14 }
0x26c5   :  { %5373 = vmatmul.msk.f32.gmra.mxu0 %vm343_vm2, %v4609_v9 }
0x26c7   :  { %5360 = vmatmul.msk.f32.gmra.mxu2 %vm343_vm2, %v4624_v13 }
0x26cd   :  { %5374 = vmatmul.msk.f32.gmra.mxu0 %vm343_vm2, %v4610_v37 }
0x26cf   :  { %5361 = vmatmul.msk.f32.gmra.mxu2 %vm343_vm2, %v4625_v42 }
0x26d5   :  { %5375 = vmatmul.msk.f32.gmra.mxu0 %vm343_vm2, %v4611_v25 }
0x26d7   :  { %5362 = vmatmul.msk.f32.gmra.mxu2 %vm343_vm2, %v4626_v20 }
0x26dd   :  { %5376 = vmatmul.msk.f32.gmra.mxu0 %vm343_vm2, %v4612_v38 }
0x26df   :  { %5363 = vmatmul.msk.f32.gmra.mxu2 %vm343_vm2, %v4627_v49 }
0x26e5   :  { %5377 = vmatmul.msk.f32.gmra.mxu0 %vm343_vm2, %v4613_v32 }
0x26e7   :  { %5364 = vmatmul.msk.f32.gmra.mxu2 %vm343_vm2, %v4628_v17 }
0x26ed   :  { %5378 = vmatmul.msk.f32.gmra.mxu0 %vm343_vm2, %v4614_v22 }
0x26ef   :  { %5365 = vmatmul.msk.f32.gmra.mxu2 %vm343_vm2, %v4629_v21 }
0x26f5   :  { %5379 = vmatmul.msk.f32.gmra.mxu0 %vm343_vm2, %v4615_v63 }
0x26f7   :  { %5366 = vmatmul.msk.f32.gmra.mxu2 %vm343_vm2, %v4630_v8 }
0x26fd   :  { %5380 = vmatmul.msk.f32.gmra.mxu0 %vm343_vm2, %v4616_v56 }
0x2712   :  { %v4690_v44 = vpop.f32.mrf.mxu2  ;;  %v4791_v2 = vpop.f32.mrf.mxu0 }
0x2713   :  { %v4792_v3 = vadd.f32 %v4791_v2, %v4690_v44 }
0x2715   :  { %v4837_v24 = vadd.f32 %v7504_v40, %v4792_v3 }
0x2717   :  { %v4851_v1 = vmul.f32 0.5, %v4837_v24 }
0x2719   :  { %5747 = vtanh.f32 %v4851_v1 }
0x271a   :  { %v4693_v46 = vpop.f32.mrf.mxu2  ;;  %v4794_v19 = vpop.f32.mrf.mxu0 }
0x271b   :  { %v4795_v39 = vadd.f32 %v4794_v19, %v4693_v46 }
0x271d   :  { %v4838_v47 = vadd.f32 %v7504_v40, %v4795_v39 }
0x271f   :  { %v5748_v18 = vpop.eup %5747  ;;  %v4852_v35 = vmul.f32 0.5, %v4838_v47 }
0x2720   :  { %v4879_v59 = vadd.f32 1.0, %v5748_v18 }
0x2721   :  { %5749 = vtanh.f32 %v4852_v35 }
0x2722   :  { %v4893_v31 = vmul.f32 0.5, %v4879_v59  ;;  %v4696_v41 = vpop.f32.mrf.mxu2  ;;  %v4797_v0 = vpop.f32.mrf.mxu0 }
0x2723   :  { %v4798_v43 = vadd.f32 %v4797_v0, %v4696_v41 }
0x2724   :  { %v4907_v12 = vmul.f32 %v4893_v31, %v4837_v24 }
0x2725   :  { %v4839_v15 = vadd.f32 %v7504_v40, %v4798_v43 }
0x2726   :  { %5381 = vmatmul.msk.f32.vlgmr.msrb.gmra.mxu3 %vm237_vm1, %v4907_v12 }
0x2727   :  { %v5750_v50 = vpop.eup %5749  ;;  %v4853_v55 = vmul.f32 0.5, %v4839_v15 }
0x2728   :  { %v4880_v23 = vadd.f32 1.0, %v5750_v50 }
0x2729   :  { %5751 = vtanh.f32 %v4853_v55 }
0x272a   :  { %v4894_v33 = vmul.f32 0.5, %v4880_v23  ;;  %v4699_v29 = vpop.f32.mrf.mxu2  ;;  %v4800_v48 = vpop.f32.mrf.mxu0 }
0x272b   :  { %v4801_v61 = vadd.f32 %v4800_v48, %v4699_v29 }
0x272c   :  { %v4908_v52 = vmul.f32 %v4894_v33, %v4838_v47 }
0x272d   :  { %v4840_v30 = vadd.f32 %v7504_v40, %v4801_v61 }
0x272e   :  { %5382 = vmatmul.msk.f32.gmra.mxu3 %vm237_vm1, %v4908_v52 }
0x272f   :  { %v5752_v51 = vpop.eup %5751  ;;  %v4854_v36 = vmul.f32 0.5, %v4840_v30 }
0x2730   :  { %v4881_v4 = vadd.f32 1.0, %v5752_v51 }
0x2731   :  { %5753 = vtanh.f32 %v4854_v36 }
0x2732   :  { %v4895_v58 = vmul.f32 0.5, %v4881_v4  ;;  %v4702_v5 = vpop.f32.mrf.mxu2  ;;  %v4803_v53 = vpop.f32.mrf.mxu0 }
0x2733   :  { %v4804_v34 = vadd.f32 %v4803_v53, %v4702_v5 }
0x2734   :  { %v4909_v6 = vmul.f32 %v4895_v58, %v4839_v15 }
0x2735   :  { %v4841_v26 = vadd.f32 %v7504_v40, %v4804_v34 }
0x2736   :  { %5383 = vmatmul.msk.f32.gmra.mxu3 %vm237_vm1, %v4909_v6 }
0x2737   :  { %v5754_v7 = vpop.eup %5753  ;;  %v4855_v11 = vmul.f32 0.5, %v4841_v26 }
0x2738   :  { %v4882_v57 = vadd.f32 1.0, %v5754_v7 }
0x2739   :  { %5755 = vtanh.f32 %v4855_v11 }
0x273a   :  { %v4896_v60 = vmul.f32 0.5, %v4882_v57  ;;  %v4705_v45 = vpop.f32.mrf.mxu2  ;;  %v4806_v62 = vpop.f32.mrf.mxu0 }
0x273b   :  { %v4807_v10 = vadd.f32 %v4806_v62, %v4705_v45 }
0x273c   :  { %v4910_v14 = vmul.f32 %v4896_v60, %v4840_v30 }
0x273d   :  { %v4842_v9 = vadd.f32 %v7504_v40, %v4807_v10 }
0x273e   :  { %5384 = vmatmul.msk.f32.gmra.mxu3 %vm237_vm1, %v4910_v14 }
0x273f   :  { %v5756_v13 = vpop.eup %5755  ;;  %v4856_v37 = vmul.f32 0.5, %v4842_v9 }
0x2740   :  { %v4883_v42 = vadd.f32 1.0, %v5756_v13 }
0x2741   :  { %5757 = vtanh.f32 %v4856_v37 }
0x2742   :  { %v4897_v25 = vmul.f32 0.5, %v4883_v42  ;;  %v4708_v20 = vpop.f32.mrf.mxu2  ;;  %v4809_v38 = vpop.f32.mrf.mxu0 }
0x2743   :  { %v4810_v49 = vadd.f32 %v4809_v38, %v4708_v20 }
0x2744   :  { %v4911_v32 = vmul.f32 %v4897_v25, %v4841_v26 }
0x2745   :  { %v4843_v17 = vadd.f32 %v7504_v40, %v4810_v49 }
0x2746   :  { %5385 = vmatmul.msk.f32.gmra.mxu3 %vm237_vm1, %v4911_v32 }
0x2747   :  { %v5758_v22 = vpop.eup %5757  ;;  %v4857_v21 = vmul.f32 0.5, %v4843_v17 }
0x2748   :  { %v4884_v63 = vadd.f32 1.0, %v5758_v22 }
0x2749   :  { %5759 = vtanh.f32 %v4857_v21 }
0x274a   :  { %v4898_v8 = vmul.f32 0.5, %v4884_v63  ;;  %v4711_v56 = vpop.f32.mrf.mxu2  ;;  %v4812_v54 = vpop.f32.mrf.mxu0 }
0x274b   :  { %v4813_v27 = vadd.f32 %v4812_v54, %v4711_v56 }
0x274c   :  { %v4912_v28 = vmul.f32 %v4898_v8, %v4842_v9 }
0x274d   :  { %v4844_v16 = vadd.f32 %v7504_v40, %v4813_v27 }
0x274e   :  { %5386 = vmatmul.msk.f32.gmra.mxu3 %vm237_vm1, %v4912_v28 }
0x274f   :  { %v5760_v44 = vpop.eup %5759  ;;  %v4858_v2 = vmul.f32 0.5, %v4844_v16 }
0x2750   :  { %v4885_v3 = vadd.f32 1.0, %v5760_v44 }
0x2751   :  { %5761 = vtanh.f32 %v4858_v2 }
0x2752   :  { %v4899_v24 = vmul.f32 0.5, %v4885_v3  ;;  %v4714_v1 = vpop.f32.mrf.mxu2  ;;  %v4815_v46 = vpop.f32.mrf.mxu0 }
0x2753   :  { %v4816_v19 = vadd.f32 %v4815_v46, %v4714_v1 }
0x2754   :  { %v4913_v39 = vmul.f32 %v4899_v24, %v4843_v17 }
0x2755   :  { %v4845_v47 = vadd.f32 %v7504_v40, %v4816_v19 }
0x2756   :  { %5387 = vmatmul.msk.f32.gmra.mxu3 %vm237_vm1, %v4913_v39 }
0x2757   :  { %v5762_v18 = vpop.eup %5761  ;;  %v4859_v35 = vmul.f32 0.5, %v4845_v47 }
0x2758   :  { %v4886_v59 = vadd.f32 1.0, %v5762_v18 }
0x2759   :  { %5763 = vtanh.f32 %v4859_v35 }
0x275a   :  { %v4900_v31 = vmul.f32 0.5, %v4886_v59  ;;  %v4717_v41 = vpop.f32.mrf.mxu2  ;;  %v4818_v0 = vpop.f32.mrf.mxu0 }
0x275b   :  { %v4819_v43 = vadd.f32 %v4818_v0, %v4717_v41 }
0x275c   :  { %v4914_v12 = vmul.f32 %v4900_v31, %v4844_v16 }
0x275d   :  { %v4846_v15 = vadd.f32 %v7504_v40, %v4819_v43 }
0x275e   :  { %5388 = vmatmul.msk.f32.gmra.mxu3 %vm237_vm1, %v4914_v12 }
0x275f   :  { %v5764_v50 = vpop.eup %5763  ;;  %v4860_v55 = vmul.f32 0.5, %v4846_v15 }
0x2760   :  { %v4887_v23 = vadd.f32 1.0, %v5764_v50 }
0x2761   :  { %5765 = vtanh.f32 %v4860_v55 }
0x2762   :  { %v4901_v33 = vmul.f32 0.5, %v4887_v23  ;;  %v4720_v29 = vpop.f32.mrf.mxu2  ;;  %v4821_v48 = vpop.f32.mrf.mxu0 }
0x2763   :  { %v4822_v61 = vadd.f32 %v4821_v48, %v4720_v29 }
0x2764   :  { %v4915_v52 = vmul.f32 %v4901_v33, %v4845_v47 }
0x2765   :  { %v4847_v30 = vadd.f32 %v7504_v40, %v4822_v61 }
0x2766   :  { %5389 = vmatmul.msk.f32.gmra.mxu3 %vm237_vm1, %v4915_v52 }
0x2767   :  { %v5766_v51 = vpop.eup %5765  ;;  %v4861_v36 = vmul.f32 0.5, %v4847_v30 }
0x2768   :  { %v4888_v4 = vadd.f32 1.0, %v5766_v51 }
0x2769   :  { %5767 = vtanh.f32 %v4861_v36 }
0x276a   :  { %v4902_v58 = vmul.f32 0.5, %v4888_v4  ;;  %v4723_v5 = vpop.f32.mrf.mxu2  ;;  %v4824_v53 = vpop.f32.mrf.mxu0 }
0x276b   :  { %v4825_v34 = vadd.f32 %v4824_v53, %v4723_v5 }
0x276c   :  { %v4916_v6 = vmul.f32 %v4902_v58, %v4846_v15 }
0x276d   :  { %v4848_v26 = vadd.f32 %v7504_v40, %v4825_v34 }
0x276e   :  { %5390 = vmatmul.msk.f32.gmra.mxu3 %vm237_vm1, %v4916_v6 }
0x276f   :  { %v5768_v7 = vpop.eup %5767  ;;  %v4862_v11 = vmul.f32 0.5, %v4848_v26 }
0x2770   :  { %v4889_v57 = vadd.f32 1.0, %v5768_v7 }
0x2771   :  { %5769 = vtanh.f32 %v4862_v11 }
0x2772   :  { %v4903_v60 = vmul.f32 0.5, %v4889_v57  ;;  %v4726_v45 = vpop.f32.mrf.mxu2  ;;  %v4827_v62 = vpop.f32.mrf.mxu0 }
0x2773   :  { %v4828_v10 = vadd.f32 %v4827_v62, %v4726_v45 }
0x2774   :  { %v4917_v14 = vmul.f32 %v4903_v60, %v4847_v30 }
0x2775   :  { %v4849_v9 = vadd.f32 %v7504_v40, %v4828_v10 }
0x2776   :  { %5391 = vmatmul.msk.f32.gmra.mxu3 %vm237_vm1, %v4917_v14 }
0x2777   :  { %v5770_v13 = vpop.eup %5769  ;;  %v4863_v37 = vmul.f32 0.5, %v4849_v9 }
0x2778   :  { %v4890_v42 = vadd.f32 1.0, %v5770_v13 }
0x2779   :  { %5771 = vtanh.f32 %v4863_v37 }
0x277a   :  { %v4904_v25 = vmul.f32 0.5, %v4890_v42  ;;  %v4729_v20 = vpop.f32.mrf.mxu2  ;;  %v4830_v38 = vpop.f32.mrf.mxu0 }
0x277b   :  { %v4831_v49 = vadd.f32 %v4830_v38, %v4729_v20 }
0x277c   :  { %v4918_v32 = vmul.f32 %v4904_v25, %v4848_v26 }
0x277d   :  { %v4850_v17 = vadd.f32 %v7504_v40, %v4831_v49 }
0x277e   :  { %5392 = vmatmul.msk.f32.gmra.mxu3 %vm237_vm1, %v4918_v32 }
0x277f   :  { %v5772_v22 = vpop.eup %5771  ;;  %v4864_v21 = vmul.f32 0.5, %v4850_v17 }
0x2780   :  { %v4891_v63 = vadd.f32 1.0, %v5772_v22 }
0x2781   :  { %5773 = vtanh.f32 %v4864_v21 }
0x2782   :  { %v4905_v8 = vmul.f32 0.5, %v4891_v63 }
0x2784   :  { %v4919_v56 = vmul.f32 %v4905_v8, %v4849_v9 }
0x2786   :  { %5393 = vmatmul.msk.f32.gmra.mxu3 %vm237_vm1, %v4919_v56 }
0x2787   :  { %v5774_v54 = vpop.eup %5773 }
0x2788   :  { %v4892_v27 = vadd.f32 1.0, %v5774_v54 }
0x278a   :  { %v4906_v28 = vmul.f32 0.5, %v4892_v27 }
0x278c   :  { %v4920_v16 = vmul.f32 %v4906_v28, %v4850_v17 }
0x278e   :  { %5394 = vmatmul.msk.f32.gmra.mxu3 %vm237_vm1, %v4920_v16 }
0x278f   :  { %6005 = shalt.err (!%p6002_p0)
}
0x2790   :  { %s6058_s17 = smov 128   ;;  %s6059_s25 = smov 8   ;;  %v5528_v40 = vld [vmem:[%s6248_s19] ss:$0 sm:$0xff]  ;;  %vm5030_vm3 = vcmask 15360  }
0x2791   :  { %5059 = dma.vmem_to_hbm [thread:$0]  %s5052_s7, 256, %s5054_s10, [#allocation4], %s6058_s17, %s6058_s17, %s6059_s25  }
0x27a9   :  { %v4988_v44 = vpop.f32.mrf.mxu3 }
0x27aa   :  { %v4989_v2 = vadd.f32 %v5528_v40, %v4988_v44 }
0x27ac   :  { %5031 = vst.msk [vmem:[%s6253_s8] sm:$0xff] %vm5030_vm3, %v4989_v2 }
0x27b1   :  { %v4991_v3 = vpop.f32.mrf.mxu3 }
0x27b2   :  { %v4992_v24 = vadd.f32 %v5528_v40, %v4991_v3 }
0x27b4   :  { %5032 = vst.msk [vmem:[%s6253_s8 + $0x8] sm:$0xff] %vm5030_vm3, %v4992_v24 }
0x27b9   :  { %v4994_v1 = vpop.f32.mrf.mxu3 }
0x27ba   :  { %v4995_v46 = vadd.f32 %v5528_v40, %v4994_v1 }
0x27bc   :  { %5033 = vst.msk [vmem:[%s6253_s8 + $0x10] sm:$0xff] %vm5030_vm3, %v4995_v46 }
0x27c1   :  { %v4997_v19 = vpop.f32.mrf.mxu3 }
0x27c2   :  { %v4998_v39 = vadd.f32 %v5528_v40, %v4997_v19 }
0x27c4   :  { %5034 = vst.msk [vmem:[%s6253_s8 + $0x18] sm:$0xff] %vm5030_vm3, %v4998_v39 }
0x27c9   :  { %v5000_v47 = vpop.f32.mrf.mxu3 }
0x27ca   :  { %v5001_v18 = vadd.f32 %v5528_v40, %v5000_v47 }
0x27cc   :  { %5035 = vst.msk [vmem:[%s6253_s8 + $0x20] sm:$0xff] %vm5030_vm3, %v5001_v18 }
0x27d1   :  { %v5003_v35 = vpop.f32.mrf.mxu3 }
0x27d2   :  { %v5004_v59 = vadd.f32 %v5528_v40, %v5003_v35 }
0x27d4   :  { %5036 = vst.msk [vmem:[%s6253_s8 + $0x28] sm:$0xff] %vm5030_vm3, %v5004_v59 }
0x27d9   :  { %v5006_v31 = vpop.f32.mrf.mxu3 }
0x27da   :  { %v5007_v41 = vadd.f32 %v5528_v40, %v5006_v31 }
0x27dc   :  { %5037 = vst.msk [vmem:[%s6253_s8 + $0x30] sm:$0xff] %vm5030_vm3, %v5007_v41 }
0x27e1   :  { %v5009_v0 = vpop.f32.mrf.mxu3 }
0x27e2   :  { %v5010_v43 = vadd.f32 %v5528_v40, %v5009_v0 }
0x27e4   :  { %5038 = vst.msk [vmem:[%s6253_s8 + $0x38] sm:$0xff] %vm5030_vm3, %v5010_v43 }
0x27e9   :  { %v5012_v12 = vpop.f32.mrf.mxu3 }
0x27ea   :  { %v5013_v15 = vadd.f32 %v5528_v40, %v5012_v12 }
0x27ec   :  { %5039 = vst.msk [vmem:[%s6253_s8 + $0x40] sm:$0xff] %vm5030_vm3, %v5013_v15 }
0x27f1   :  { %v5015_v50 = vpop.f32.mrf.mxu3 }
0x27f2   :  { %v5016_v55 = vadd.f32 %v5528_v40, %v5015_v50 }
0x27f4   :  { %5040 = vst.msk [vmem:[%s6253_s8 + $0x48] sm:$0xff] %vm5030_vm3, %v5016_v55 }
0x27f9   :  { %v5018_v23 = vpop.f32.mrf.mxu3 }
0x27fa   :  { %v5019_v33 = vadd.f32 %v5528_v40, %v5018_v23 }
0x27fc   :  { %5041 = vst.msk [vmem:[%s6253_s8 + $0x50] sm:$0xff] %vm5030_vm3, %v5019_v33 }
0x2801   :  { %v5021_v29 = vpop.f32.mrf.mxu3 }
0x2802   :  { %v5022_v48 = vadd.f32 %v5528_v40, %v5021_v29 }
0x2804   :  { %5042 = vst.msk [vmem:[%s6253_s8 + $0x58] sm:$0xff] %vm5030_vm3, %v5022_v48 }
0x2809   :  { %v5024_v61 = vpop.f32.mrf.mxu3 }
0x280a   :  { %v5025_v52 = vadd.f32 %v5528_v40, %v5024_v61 }
0x280c   :  { %5043 = vst.msk [vmem:[%s6253_s8 + $0x60] sm:$0xff] %vm5030_vm3, %v5025_v52 }
0x2811   :  { %v5027_v30 = vpop.f32.mrf.mxu3 }
0x2812   :  { %v5028_v51 = vadd.f32 %v5528_v40, %v5027_v30 }
0x2814   :  { %5044 = vst.msk [vmem:[%s6253_s8 + $0x68] sm:$0xff] %vm5030_vm3, %v5028_v51 }
0x2815   :  { %6010 = dma.done.wait [#allocation4], 256  }
0x2816   :  { %6011 = vsyncadd [#allocation4], 4294967040 }
0x2817   :  { %5066 = vsyncpa [#allocation3], 1 }
0x2818   :  { %5067 = vsyncpa [#allocation6], 1 }
0x2819   :  { %5068 = vsyncpa [#allocation4], 1 }

</bundles_post_ra>
